<compile_context>
chip_gen: v5e
topology: v5e:2x2
jax: 0.10.0
libtpu: 0.0.40
codegen_flags: <defaults>
</compile_context>

<pallas_src>
import math
import functools

import jax
import jax.numpy as jnp
from jax import lax
from jax.experimental import pallas as pl
from jax.experimental.pallas import tpu as pltpu
import numpy as np


def _round_up(x, m):
    return ((x + m - 1) // m) * m


def _vmem_limits():
    """Per-generation VMEM sizing: v5e/v6e have 128 MiB physical, v7x 64 MiB."""
    try:
        cap = int(pltpu.get_tpu_info().vmem_capacity_bytes)
    except Exception:          # unknown chip / emulator: assume the small v7x VMEM
        cap = 64 * 1024 * 1024
    limit = min(96 * 1024 * 1024, (cap * 3) // 4)   # scoped limit we request
    budget = (limit * 7) // 10                      # block-buffer budget
    return budget, limit


def _choose_time_chunk(T, Bp, Hp, D, requested, budget_bytes):
    """Largest TT whose (double-buffered) blocks fit the VMEM budget."""
    per_t = 2 * D * Bp * (4 * Hp * 2 + Hp * 4)      # gx (bf16) + y (f32), x2 bufs
    fixed = (2 * D * Hp * 4 * Hp * 2                # W_hh (bf16), double-buffered
             + 6 * D * Bp * Hp * 4)                 # h/c scratch + h_n/c_n blocks
    tt = (budget_bytes - fixed) // max(per_t, 1)
    return int(max(1, min(requested, max(T, 1), tt)))


# --------------------------------------------------------------------------
# Pallas kernel: both LSTM directions interleaved, time-chunked.
# grid = (C,): C = Tp/TT time chunks ("arbitrary", state carried in scratch).
# Each grid step consumes one (D, TT, Bp, 4Hp) bf16 block of precomputed input
# gates and runs TT recurrence steps with h/c carried in registers.
# Direction 1's gx stream is pre-flipped in time by the wrapper.
# --------------------------------------------------------------------------
def _lstm_chunk_kernel(gx_ref, whh_ref, len_ref,
                       y_ref, hn_ref, cn_ref,
                       h_sc, c_sc, *, tt, hp, tp, ndir, unroll):
    cidx = pl.program_id(0)
    nchunks = pl.num_programs(0)

    @pl.when(cidx == 0)
    def _():
        h_sc[...] = jnp.zeros_like(h_sc)
        c_sc[...] = jnp.zeros_like(c_sc)

    lens = len_ref[...]                 # (Bp, 1) int32, resident in VMEM
    t0 = cidx * tt                      # absolute (flipped-for-bwd) time of step 0

    def sig(x):                         # sigmoid via tanh: one EUP op per gate
        return 0.5 * jnp.tanh(0.5 * x) + 0.5

    def step(k, carry):
        hs, cs = carry
        t = t0 + k
        new_h, new_c = [], []
        # Interleave the two independent directions: their h@W_hh dots and
        # activation chains fill each other's MXU/EUP pipeline bubbles on
        # single-TensorCore chips (v5e/v6e).
        for d in range(ndir):
            gates = gx_ref[d, k] + jnp.dot(             # bf16 gx promotes to f32
                hs[d].astype(jnp.bfloat16), whh_ref[d],
                preferred_element_type=jnp.float32)
            i_g = sig(gates[:, 0 * hp:1 * hp])
            f_g = sig(gates[:, 1 * hp:2 * hp])
            g_g = jnp.tanh(gates[:, 2 * hp:3 * hp])
            o_g = sig(gates[:, 3 * hp:4 * hp])
            c_cand = f_g * cs[d] + i_g * g_g
            h_cand = o_g * jnp.tanh(c_cand)
            # packed-sequence semantics: padded timesteps never update state.
            # Direction 1 runs on the time-flipped stream, so its validity test
            # uses the un-flipped index tp-1-t.
            if d == 0:
                valid = t < lens                         # (Bp, 1) bool
            else:
                valid = (tp - 1 - t) < lens
            h_new = jnp.where(valid, h_cand, hs[d])
            c_new = jnp.where(valid, c_cand, cs[d])
            y_ref[d, k] = jnp.where(valid, h_new, 0.0)   # unpack() zero-pads
            new_h.append(h_new)
            new_c.append(c_new)
        return tuple(new_h), tuple(new_c)

    h0 = tuple(h_sc[d] for d in range(ndir))
    c0 = tuple(c_sc[d] for d in range(ndir))
    hs, cs = lax.fori_loop(0, tt, step, (h0, c0), unroll=unroll)
    for d in range(ndir):
        h_sc[d] = hs[d]
        c_sc[d] = cs[d]

    @pl.when(cidx == nchunks - 1)
    def _():
        for d in range(ndir):
            hn_ref[d] = hs[d]
            cn_ref[d] = cs[d]


def lstm_layer_pallas(x_tbe, lengths, wih_stack, whh_stack_b16, bias_stack,
                      *, time_chunk=64):
    """Run all directions of one LSTM layer with a single fused Pallas call.

    x_tbe:          (T, B, E)      float32
    lengths:        (B,)           int32 valid lengths (prefix mask semantics)
    wih_stack:      (D, E, 4*Hp)   padded, transposed input-projection weights (f32)
    whh_stack_b16:  (D, Hp, 4*Hp)  padded, transposed recurrent weights (bf16)
    bias_stack:     (D, 4*Hp)      padded combined biases (f32)
    Returns y (D, T, B, Hp), h_n (D, B, Hp), c_n (D, B, Hp).
    """
    T, B, E = x_tbe.shape
    D, Hp4 = bias_stack.shape
    Hp = Hp4 // 4
    Bp = _round_up(B, 8)
    budget, vmem_limit = _vmem_limits()
    TT = _choose_time_chunk(T, Bp, Hp, D, time_chunk, budget)
    Tp = _round_up(T, TT)
    C = Tp // TT

    # Pad batch (sublanes) and time (chunk multiple) BEFORE the hoisted input
    # projection -- no second padded copy of the big gx tensor is materialised;
    # the in-kernel t<len mask neutralises the padded timesteps.
    xp = jnp.zeros((Tp, Bp, E), jnp.float32).at[:T, :B, :].set(x_tbe)
    lens = jnp.zeros((Bp, 1), jnp.int32).at[:B, 0].set(lengths.astype(jnp.int32))

    # Backward direction consumes time reversed: pre-flip x (the E-wide tensor,
    # cheapest to flip) so the kernel walks both directions with the same
    # monotone, non-program-id-dependent indices.
    x_dirs = jnp.stack([xp, xp[::-1]], axis=0) if D == 2 else xp[None]

    # Hoisted input projection: one big MXU-friendly matmul per direction, off
    # the serial recurrence path; bias folded in; streamed to the kernel in
    # bf16 (halves HBM traffic and the per-chunk VMEM block).
    gx = (jnp.einsum('dtbe,deg->dtbg', x_dirs, wih_stack,
                     preferred_element_type=jnp.float32)
          + bias_stack[:, None, None, :]).astype(jnp.bfloat16)

    grid_spec = pltpu.PrefetchScalarGridSpec(
        num_scalar_prefetch=0,
        grid=(C,),
        in_specs=[
            pl.BlockSpec((D, TT, Bp, Hp4), lambda c: (0, c, 0, 0)),   # gx (bf16)
            # TODO(synk): pipeline_mode=pl.Buffered(1) would drop W_hh's second
            # VMEM buffer (its block index never changes); kept default for safety.
            pl.BlockSpec((D, Hp, Hp4), lambda c: (0, 0, 0)),          # W_hh^T (bf16)
            pl.BlockSpec((Bp, 1), lambda c: (0, 0)),                  # lengths
        ],
        out_specs=[
            pl.BlockSpec((D, TT, Bp, Hp), lambda c: (0, c, 0, 0)),    # y
            pl.BlockSpec((D, Bp, Hp), lambda c: (0, 0, 0)),           # h_n
            pl.BlockSpec((D, Bp, Hp), lambda c: (0, 0, 0)),           # c_n
        ],
        scratch_shapes=[
            pltpu.VMEM((D, Bp, Hp), jnp.float32),   # h carried across chunks
            pltpu.VMEM((D, Bp, Hp), jnp.float32),   # c carried across chunks
        ],
    )

    y, hn, cn = pl.pallas_call(
        functools.partial(_lstm_chunk_kernel, tt=TT, hp=Hp, tp=Tp, ndir=D,
                          unroll=min(8, TT)),
        out_shape=(
            jax.ShapeDtypeStruct((D, Tp, Bp, Hp), jnp.float32),
            jax.ShapeDtypeStruct((D, Bp, Hp), jnp.float32),
            jax.ShapeDtypeStruct((D, Bp, Hp), jnp.float32),
        ),
        grid_spec=grid_spec,
        compiler_params=pltpu.CompilerParams(
            dimension_semantics=("arbitrary",),
            vmem_limit_bytes=int(vmem_limit)),
    )(gx, whh_stack_b16, lens)

    if D == 2:
        # direction 1 was computed on the time-flipped stream; un-flip it.
        y = jnp.stack([y[0], jnp.flip(y[1], axis=0)], axis=0)
    return y[:, :T, :B, :], hn[:, :B, :], cn[:, :B, :]


# --------------------------------------------------------------------------
# RNNEncoder equivalent (rnn_type="LSTM", bidirectional, batch_first=True)
# --------------------------------------------------------------------------
class RNNEncoderPallas:
    LANE = 128

    def __init__(self, vocab_size, embedding_dim, hidden_size,
                 num_layers=1, bidirectional=True, dropout=0.0, seed=0,
                 time_chunk=64):
        num_directions = 2 if bidirectional else 1
        assert hidden_size % num_directions == 0
        self.num_layers = num_layers
        self.num_directions = num_directions
        self.hidden_per_dir = hidden_size // num_directions
        self.hidden_padded = _round_up(self.hidden_per_dir, self.LANE)
        self.embedding_dim = embedding_dim
        self.time_chunk = time_chunk
        # TODO(synk): inter-layer dropout is a training-only op; not applied here.

        key = jax.random.PRNGKey(seed)
        key, ek = jax.random.split(key)
        self.embedding = jax.random.normal(
            ek, (vocab_size, embedding_dim), jnp.float32)

        H, Hp, D = self.hidden_per_dir, self.hidden_padded, num_directions
        bound = 1.0 / math.sqrt(H)
        self.params = []          # [layer][dir] raw transposed f32 weights (reference)
        self.kernel_weights = []  # [layer] padded, direction-stacked kernel weights
        for layer in range(num_layers):
            in_size = embedding_dim if layer == 0 else H * num_directions
            dirs = []
            wih_pad = jnp.zeros((D, in_size, 4 * Hp), jnp.float32)
            whh_pad = jnp.zeros((D, Hp, 4 * Hp), jnp.float32)
            b_pad = jnp.zeros((D, 4 * Hp), jnp.float32)
            for d in range(D):
                key, k1, k2, k3, k4 = jax.random.split(key, 5)
                w_ih = jax.random.uniform(k1, (4 * H, in_size), jnp.float32,
                                          -bound, bound)
                w_hh = jax.random.uniform(k2, (4 * H, H), jnp.float32,
                                          -bound, bound)
                b_ih = jax.random.uniform(k3, (4 * H,), jnp.float32,
                                          -bound, bound)
                b_hh = jax.random.uniform(k4, (4 * H,), jnp.float32,
                                          -bound, bound)
                dirs.append(dict(wih_t=w_ih.T, whh_t=w_hh.T,
                                 bias=(b_ih + b_hh)[None, :]))
                bsum = b_ih + b_hh
                # zero-pad each gate block to Hp lanes (padded hidden units stay
                # exactly zero through the recurrence, so results are exact)
                for g in range(4):
                    wih_pad = wih_pad.at[d, :, g * Hp:g * Hp + H].set(
                        w_ih[g * H:(g + 1) * H, :].T)
                    whh_pad = whh_pad.at[d, :H, g * Hp:g * Hp + H].set(
                        w_hh[g * H:(g + 1) * H, :].T)
                    b_pad = b_pad.at[d, g * Hp:g * Hp + H].set(
                        bsum[g * H:(g + 1) * H])
            self.params.append(dirs)
            # W_hh is stored in bf16 for the in-kernel MXU dot (f32 accumulate).
            self.kernel_weights.append(
                (wih_pad, whh_pad.astype(jnp.bfloat16), b_pad))

    def __call__(self, src, mask):
        """src: (B, T) int32 token ids; mask: (B, T) 0/1 prefix mask.

        Returns (memory_bank (B, T, D*H), (h_n, c_n)) like the PyTorch module,
        where h_n, c_n have shape (num_layers * num_directions, B, H).
        """
        emb = self.embedding[src]                                   # (B, T, E) glue gather
        B, T, _ = emb.shape
        x = jnp.transpose(emb, (1, 0, 2)).astype(jnp.float32)       # (T, B, E)
        lengths = jnp.sum(mask.astype(jnp.int32), axis=1)           # (B,) as in PyTorch

        H, D = self.hidden_per_dir, self.num_directions
        h_finals, c_finals = [], []
        layer_in = x
        for layer in range(self.num_layers):
            wih_s, whh_s, b_s = self.kernel_weights[layer]
            y, hn, cn = lstm_layer_pallas(
                layer_in, lengths, wih_s, whh_s, b_s,
                time_chunk=self.time_chunk)
            y = y[..., :H]                                          # drop hidden padding
            for d in range(D):
                h_finals.append(hn[d, :, :H])
                c_finals.append(cn[d, :, :H])
            layer_in = jnp.concatenate([y[d] for d in range(D)], axis=-1)

        memory_bank = jnp.transpose(layer_in, (1, 0, 2))            # (B, T, D*H)
        h_n = jnp.stack(h_finals, axis=0)                           # (L*D, B, H)
        c_n = jnp.stack(c_finals, axis=0)
        return memory_bank, (h_n, c_n)


# --------------------------------------------------------------------------
# Pure-JAX fp32 reference (lax.scan) used to validate the Pallas kernel.
# --------------------------------------------------------------------------
def _lstm_direction_ref(x_tbe, mask_tb1, wih_t, whh_t, bias, reverse):
    T, B, _ = x_tbe.shape
    H = whh_t.shape[0]
    ts = jnp.arange(T - 1, -1, -1) if reverse else jnp.arange(T)

    def step(carry, t):
        h, c = carry
        xt, mt = x_tbe[t], mask_tb1[t]
        gates = xt @ wih_t + h @ whh_t + bias
        i = jax.nn.sigmoid(gates[:, 0 * H:1 * H])
        f = jax.nn.sigmoid(gates[:, 1 * H:2 * H])
        g = jnp.tanh(gates[:, 2 * H:3 * H])
        o = jax.nn.sigmoid(gates[:, 3 * H:4 * H])
        c_cand = f * c + i * g
        h_cand = o * jnp.tanh(c_cand)
        h_new = mt * h_cand + (1.0 - mt) * h
        c_new = mt * c_cand + (1.0 - mt) * c
        return (h_new, c_new), h_new * mt

    zeros = jnp.zeros((B, H), jnp.float32)
    (hn, cn), ys = lax.scan(step, (zeros, zeros), ts)
    if reverse:
        ys = ys[::-1]
    return ys, hn, cn


if __name__ == "__main__":
    VOCAB, B, T, E, HID = 50, 4, 8, 32, 32   # HID is total (split over 2 dirs)

    enc = RNNEncoderPallas(vocab_size=VOCAB, embedding_dim=E,
                           hidden_size=HID, num_layers=1,
                           bidirectional=True, seed=0, time_chunk=64)

    key = jax.random.PRNGKey(0)
    k1, k2 = jax.random.split(key)
    src = jax.random.randint(k1, (B, T), 0, VOCAB, dtype=jnp.int32)
    lengths = jax.random.randint(k2, (B,), 1, T + 1, dtype=jnp.int32)
    mask = (jnp.arange(T)[None, :] < lengths[:, None]).astype(jnp.int32)

    memory_bank, (h_n, c_n) = enc(src, mask)
    memory_bank = jax.block_until_ready(memory_bank)
    h_n = jax.block_until_ready(h_n)
    c_n = jax.block_until_ready(c_n)

    # Validate against a pure-JAX fp32 reference of the same recurrence.
    # (The kernel stores gx and runs the recurrent dot in bf16, so the
    #  tolerance is relaxed accordingly; structural bugs would show O(1) errors.)
    emb = enc.embedding[src]
    x = jnp.transpose(emb, (1, 0, 2))
    m = jnp.transpose(mask, (1, 0)).astype(jnp.float32)[..., None]
    ys, hns, cns = [], [], []
    for d in range(2):
        p = enc.params[0][d]
        y, hn, cn = _lstm_direction_ref(x, m, p["wih_t"], p["whh_t"],
                                        p["bias"], reverse=(d == 1))
        ys.append(y); hns.append(hn); cns.append(cn)
    mb_ref = jnp.transpose(jnp.concatenate(ys, -1), (1, 0, 2))
    hn_ref = jnp.stack(hns, 0)
    cn_ref = jnp.stack(cns, 0)

    assert np.allclose(np.asarray(memory_bank), np.asarray(mb_ref), atol=5e-2)
    assert np.allclose(np.asarray(h_n), np.asarray(hn_ref), atol=5e-2)
    assert np.allclose(np.asarray(c_n), np.asarray(cn_ref), atol=5e-2)
    assert memory_bank.shape == (B, T, HID)
    assert h_n.shape == (2, B, HID // 2) and c_n.shape == (2, B, HID // 2)

    print("KERNEL_OK")
</pallas_src>

<mosaic_0001>
module attributes {stable_mosaic.version = 11 : i64} {
  func.func @_lstm_chunk_kernel(%arg0: i32, %arg1: memref<2x8x8x512xbf16, #tpu.memory_space<vmem>>, %arg2: memref<2x128x512xbf16, #tpu.memory_space<vmem>>, %arg3: memref<8x1xi32, #tpu.memory_space<vmem>>, %arg4: memref<2x8x8x128xf32, #tpu.memory_space<vmem>>, %arg5: memref<2x8x128xf32, #tpu.memory_space<vmem>>, %arg6: memref<2x8x128xf32, #tpu.memory_space<vmem>>, %arg7: memref<2x8x128xf32, #tpu.memory_space<vmem>>, %arg8: memref<2x8x128xf32, #tpu.memory_space<vmem>>) attributes {dimension_semantics = [#tpu.dimension_semantics<arbitrary>], iteration_bounds = array<i64: 1>, scalar_prefetch = 0 : i64, scratch_operands = 2 : i64, tpu.core_type = #tpu.core_type<tc>, window_params = [{transform_indices = @transform_0, window_bounds = array<i64: 2, 8, 8, 512>}, {pipeline_mode = #tpu.pipeline_mode<synchronous>, transform_indices = @transform_1, window_bounds = array<i64: 2, 128, 512>}, {pipeline_mode = #tpu.pipeline_mode<synchronous>, transform_indices = @transform_2, window_bounds = array<i64: 8, 1>}, {transform_indices = @transform_3, window_bounds = array<i64: 2, 8, 8, 128>}, {pipeline_mode = #tpu.pipeline_mode<synchronous>, transform_indices = @transform_4, window_bounds = array<i64: 2, 8, 128>}, {pipeline_mode = #tpu.pipeline_mode<synchronous>, transform_indices = @transform_5, window_bounds = array<i64: 2, 8, 128>}]} {
    %c0_i32 = arith.constant 0 : i32
    %0 = arith.cmpi eq, %arg0, %c0_i32 : i32
    %1 = arith.extui %0 : i1 to i32
    %c0_i32_0 = arith.constant 0 : i32
    %2 = arith.cmpi ne, %1, %c0_i32_0 : i32
    scf.if %2 {
      %cst_356 = arith.constant 0.000000e+00 : f32
      %940 = vector.broadcast %cst_356 : f32 to vector<2x8x128xf32>
      %c0_357 = arith.constant 0 : index
      %c0_358 = arith.constant 0 : index
      %c0_359 = arith.constant 0 : index
      %941 = vector.load %arg7[%c0_357, %c0_358, %c0_359] : memref<2x8x128xf32, #tpu.memory_space<vmem>>, vector<2x8x128xf32>
      tpu.vector_store %arg7[%c0_357, %c0_358, %c0_359], %940 {strides = array<i32>} : memref<2x8x128xf32, #tpu.memory_space<vmem>>, vector<2x8x128xf32>,
      %cst_360 = arith.constant 0.000000e+00 : f32
      %942 = vector.broadcast %cst_360 : f32 to vector<2x8x128xf32>
      %c0_361 = arith.constant 0 : index
      %c0_362 = arith.constant 0 : index
      %c0_363 = arith.constant 0 : index
      %943 = vector.load %arg8[%c0_361, %c0_362, %c0_363] : memref<2x8x128xf32, #tpu.memory_space<vmem>>, vector<2x8x128xf32>
      tpu.vector_store %arg8[%c0_361, %c0_362, %c0_363], %942 {strides = array<i32>} : memref<2x8x128xf32, #tpu.memory_space<vmem>>, vector<2x8x128xf32>,
    } else {
    }
    %c0 = arith.constant 0 : index
    %c0_1 = arith.constant 0 : index
    %3 = vector.load %arg3[%c0, %c0_1] : memref<8x1xi32, #tpu.memory_space<vmem>>, vector<8x1xi32>
    %c8_i32 = arith.constant 8 : i32
    %4 = arith.muli %arg0, %c8_i32 : i32
    %c0_2 = arith.constant 0 : index
    %c0_3 = arith.constant 0 : index
    %c0_4 = arith.constant 0 : index
    %5 = vector.load %arg7[%c0_2, %c0_3, %c0_4] : memref<2x8x128xf32, #tpu.memory_space<vmem>>, vector<1x8x128xf32>
    %6 = vector.shape_cast %5 : vector<1x8x128xf32> to vector<8x128xf32>
    %c1 = arith.constant 1 : index
    %c0_5 = arith.constant 0 : index
    %c0_6 = arith.constant 0 : index
    %7 = vector.load %arg7[%c1, %c0_5, %c0_6] : memref<2x8x128xf32, #tpu.memory_space<vmem>>, vector<1x8x128xf32>
    %8 = vector.shape_cast %7 : vector<1x8x128xf32> to vector<8x128xf32>
    %c0_7 = arith.constant 0 : index
    %c0_8 = arith.constant 0 : index
    %c0_9 = arith.constant 0 : index
    %9 = vector.load %arg8[%c0_7, %c0_8, %c0_9] : memref<2x8x128xf32, #tpu.memory_space<vmem>>, vector<1x8x128xf32>
    %10 = vector.shape_cast %9 : vector<1x8x128xf32> to vector<8x128xf32>
    %c1_10 = arith.constant 1 : index
    %c0_11 = arith.constant 0 : index
    %c0_12 = arith.constant 0 : index
    %11 = vector.load %arg8[%c1_10, %c0_11, %c0_12] : memref<2x8x128xf32, #tpu.memory_space<vmem>>, vector<1x8x128xf32>
    %12 = vector.shape_cast %11 : vector<1x8x128xf32> to vector<8x128xf32>
    %c0_i32_13 = arith.constant 0 : i32
    %13 = arith.addi %4, %c0_i32_13 : i32
    %c0_14 = arith.constant 0 : index
    %14 = arith.index_cast %c0_i32_13 : i32 to index
    %c0_15 = arith.constant 0 : index
    %c0_16 = arith.constant 0 : index
    %15 = vector.load %arg1[%c0_14, %14, %c0_15, %c0_16] : memref<2x8x8x512xbf16, #tpu.memory_space<vmem>>, vector<1x1x8x512xbf16>
    %16 = vector.shape_cast %15 : vector<1x1x8x512xbf16> to vector<8x512xbf16>
    %17 = arith.truncf %6 : vector<8x128xf32> to vector<8x128xbf16>
    %c0_17 = arith.constant 0 : index
    %c0_18 = arith.constant 0 : index
    %c0_19 = arith.constant 0 : index
    %18 = vector.load %arg2[%c0_17, %c0_18, %c0_19] : memref<2x128x512xbf16, #tpu.memory_space<vmem>>, vector<1x128x512xbf16>
    %19 = vector.shape_cast %18 : vector<1x128x512xbf16> to vector<128x512xbf16>
    %cst = arith.constant dense<0.000000e+00> : vector<8x512xf32>
    %20 = tpu.matmul %17, %19, %cst {dimension_numbers = #tpu.dot_dimension_numbers<[1], [0], [0], [1], [0, 0, 1, 1], [], []>} : vector<8x128xbf16>, vector<128x512xbf16>, vector<8x512xf32> -> vector<8x512xf32>
    %21 = arith.extf %16 : vector<8x512xbf16> to vector<8x512xf32>
    %22 = arith.addf %21, %20 : vector<8x512xf32>
    %23 = vector.extract_strided_slice %22 {offsets = [0, 0], sizes = [8, 128], strides = [1, 1]} : vector<8x512xf32> to vector<8x128xf32>
    %cst_20 = arith.constant 5.000000e-01 : f32
    %24 = vector.broadcast %cst_20 : f32 to vector<8x128xf32>
    %25 = arith.mulf %24, %23 : vector<8x128xf32>
    %26 = math.tanh %25 : vector<8x128xf32>
    %cst_21 = arith.constant 5.000000e-01 : f32
    %27 = vector.broadcast %cst_21 : f32 to vector<8x128xf32>
    %28 = arith.mulf %27, %26 : vector<8x128xf32>
    %cst_22 = arith.constant 5.000000e-01 : f32
    %29 = vector.broadcast %cst_22 : f32 to vector<8x128xf32>
    %30 = arith.addf %28, %29 : vector<8x128xf32>
    %31 = vector.extract_strided_slice %22 {offsets = [0, 128], sizes = [8, 128], strides = [1, 1]} : vector<8x512xf32> to vector<8x128xf32>
    %cst_23 = arith.constant 5.000000e-01 : f32
    %32 = vector.broadcast %cst_23 : f32 to vector<8x128xf32>
    %33 = arith.mulf %32, %31 : vector<8x128xf32>
    %34 = math.tanh %33 : vector<8x128xf32>
    %cst_24 = arith.constant 5.000000e-01 : f32
    %35 = vector.broadcast %cst_24 : f32 to vector<8x128xf32>
    %36 = arith.mulf %35, %34 : vector<8x128xf32>
    %cst_25 = arith.constant 5.000000e-01 : f32
    %37 = vector.broadcast %cst_25 : f32 to vector<8x128xf32>
    %38 = arith.addf %36, %37 : vector<8x128xf32>
    %39 = vector.extract_strided_slice %22 {offsets = [0, 256], sizes = [8, 128], strides = [1, 1]} : vector<8x512xf32> to vector<8x128xf32>
    %40 = math.tanh %39 : vector<8x128xf32>
    %41 = vector.extract_strided_slice %22 {offsets = [0, 384], sizes = [8, 128], strides = [1, 1]} : vector<8x512xf32> to vector<8x128xf32>
    %cst_26 = arith.constant 5.000000e-01 : f32
    %42 = vector.broadcast %cst_26 : f32 to vector<8x128xf32>
    %43 = arith.mulf %42, %41 : vector<8x128xf32>
    %44 = math.tanh %43 : vector<8x128xf32>
    %cst_27 = arith.constant 5.000000e-01 : f32
    %45 = vector.broadcast %cst_27 : f32 to vector<8x128xf32>
    %46 = arith.mulf %45, %44 : vector<8x128xf32>
    %cst_28 = arith.constant 5.000000e-01 : f32
    %47 = vector.broadcast %cst_28 : f32 to vector<8x128xf32>
    %48 = arith.addf %46, %47 : vector<8x128xf32>
    %49 = arith.mulf %38, %10 : vector<8x128xf32>
    %50 = arith.mulf %30, %40 : vector<8x128xf32>
    %51 = arith.addf %49, %50 : vector<8x128xf32>
    %52 = math.tanh %51 : vector<8x128xf32>
    %53 = arith.mulf %48, %52 : vector<8x128xf32>
    %54 = vector.broadcast %13 : i32 to vector<8x1xi32>
    %55 = arith.cmpi slt, %54, %3 : vector<8x1xi32>
    %56 = vector.shape_cast %55 : vector<8x1xi1> to vector<8x1xi1>
    %57 = vector.broadcast %56 : vector<8x1xi1> to vector<8x128xi1>
    %58 = arith.select %57, %53, %6 : vector<8x128xi1>, vector<8x128xf32>
    %59 = vector.shape_cast %55 : vector<8x1xi1> to vector<8x1xi1>
    %60 = vector.broadcast %59 : vector<8x1xi1> to vector<8x128xi1>
    %61 = arith.select %60, %51, %10 : vector<8x128xi1>, vector<8x128xf32>
    %cst_29 = arith.constant 0.000000e+00 : f32
    %62 = vector.shape_cast %55 : vector<8x1xi1> to vector<8x1xi1>
    %63 = vector.broadcast %62 : vector<8x1xi1> to vector<8x128xi1>
    %64 = vector.broadcast %cst_29 : f32 to vector<8x128xf32>
    %65 = arith.select %63, %58, %64 : vector<8x128xi1>, vector<8x128xf32>
    %c0_30 = arith.constant 0 : index
    %66 = arith.index_cast %c0_i32_13 : i32 to index
    %c0_31 = arith.constant 0 : index
    %c0_32 = arith.constant 0 : index
    %67 = vector.load %arg4[%c0_30, %66, %c0_31, %c0_32] : memref<2x8x8x128xf32, #tpu.memory_space<vmem>>, vector<1x1x8x128xf32>
    %68 = vector.shape_cast %67 : vector<1x1x8x128xf32> to vector<8x128xf32>
    %69 = vector.shape_cast %65 : vector<8x128xf32> to vector<1x1x8x128xf32>
    tpu.vector_store %arg4[%c0_30, %66, %c0_31, %c0_32], %69 {strides = array<i32>} : memref<2x8x8x128xf32, #tpu.memory_space<vmem>>, vector<1x1x8x128xf32>,
    %c1_33 = arith.constant 1 : index
    %70 = arith.index_cast %c0_i32_13 : i32 to index
    %c0_34 = arith.constant 0 : index
    %c0_35 = arith.constant 0 : index
    %71 = vector.load %arg1[%c1_33, %70, %c0_34, %c0_35] : memref<2x8x8x512xbf16, #tpu.memory_space<vmem>>, vector<1x1x8x512xbf16>
    %72 = vector.shape_cast %71 : vector<1x1x8x512xbf16> to vector<8x512xbf16>
    %73 = arith.truncf %8 : vector<8x128xf32> to vector<8x128xbf16>
    %c1_36 = arith.constant 1 : index
    %c0_37 = arith.constant 0 : index
    %c0_38 = arith.constant 0 : index
    %74 = vector.load %arg2[%c1_36, %c0_37, %c0_38] : memref<2x128x512xbf16, #tpu.memory_space<vmem>>, vector<1x128x512xbf16>
    %75 = vector.shape_cast %74 : vector<1x128x512xbf16> to vector<128x512xbf16>
    %cst_39 = arith.constant dense<0.000000e+00> : vector<8x512xf32>
    %76 = tpu.matmul %73, %75, %cst_39 {dimension_numbers = #tpu.dot_dimension_numbers<[1], [0], [0], [1], [0, 0, 1, 1], [], []>} : vector<8x128xbf16>, vector<128x512xbf16>, vector<8x512xf32> -> vector<8x512xf32>
    %77 = arith.extf %72 : vector<8x512xbf16> to vector<8x512xf32>
    %78 = arith.addf %77, %76 : vector<8x512xf32>
    %79 = vector.extract_strided_slice %78 {offsets = [0, 0], sizes = [8, 128], strides = [1, 1]} : vector<8x512xf32> to vector<8x128xf32>
    %cst_40 = arith.constant 5.000000e-01 : f32
    %80 = vector.broadcast %cst_40 : f32 to vector<8x128xf32>
    %81 = arith.mulf %80, %79 : vector<8x128xf32>
    %82 = math.tanh %81 : vector<8x128xf32>
    %cst_41 = arith.constant 5.000000e-01 : f32
    %83 = vector.broadcast %cst_41 : f32 to vector<8x128xf32>
    %84 = arith.mulf %83, %82 : vector<8x128xf32>
    %cst_42 = arith.constant 5.000000e-01 : f32
    %85 = vector.broadcast %cst_42 : f32 to vector<8x128xf32>
    %86 = arith.addf %84, %85 : vector<8x128xf32>
    %87 = vector.extract_strided_slice %78 {offsets = [0, 128], sizes = [8, 128], strides = [1, 1]} : vector<8x512xf32> to vector<8x128xf32>
    %cst_43 = arith.constant 5.000000e-01 : f32
    %88 = vector.broadcast %cst_43 : f32 to vector<8x128xf32>
    %89 = arith.mulf %88, %87 : vector<8x128xf32>
    %90 = math.tanh %89 : vector<8x128xf32>
    %cst_44 = arith.constant 5.000000e-01 : f32
    %91 = vector.broadcast %cst_44 : f32 to vector<8x128xf32>
    %92 = arith.mulf %91, %90 : vector<8x128xf32>
    %cst_45 = arith.constant 5.000000e-01 : f32
    %93 = vector.broadcast %cst_45 : f32 to vector<8x128xf32>
    %94 = arith.addf %92, %93 : vector<8x128xf32>
    %95 = vector.extract_strided_slice %78 {offsets = [0, 256], sizes = [8, 128], strides = [1, 1]} : vector<8x512xf32> to vector<8x128xf32>
    %96 = math.tanh %95 : vector<8x128xf32>
    %97 = vector.extract_strided_slice %78 {offsets = [0, 384], sizes = [8, 128], strides = [1, 1]} : vector<8x512xf32> to vector<8x128xf32>
    %cst_46 = arith.constant 5.000000e-01 : f32
    %98 = vector.broadcast %cst_46 : f32 to vector<8x128xf32>
    %99 = arith.mulf %98, %97 : vector<8x128xf32>
    %100 = math.tanh %99 : vector<8x128xf32>
    %cst_47 = arith.constant 5.000000e-01 : f32
    %101 = vector.broadcast %cst_47 : f32 to vector<8x128xf32>
    %102 = arith.mulf %101, %100 : vector<8x128xf32>
    %cst_48 = arith.constant 5.000000e-01 : f32
    %103 = vector.broadcast %cst_48 : f32 to vector<8x128xf32>
    %104 = arith.addf %102, %103 : vector<8x128xf32>
    %105 = arith.mulf %94, %12 : vector<8x128xf32>
    %106 = arith.mulf %86, %96 : vector<8x128xf32>
    %107 = arith.addf %105, %106 : vector<8x128xf32>
    %108 = math.tanh %107 : vector<8x128xf32>
    %109 = arith.mulf %104, %108 : vector<8x128xf32>
    %c7_i32 = arith.constant 7 : i32
    %110 = arith.subi %c7_i32, %13 : i32
    %111 = vector.broadcast %110 : i32 to vector<8x1xi32>
    %112 = arith.cmpi slt, %111, %3 : vector<8x1xi32>
    %113 = vector.shape_cast %112 : vector<8x1xi1> to vector<8x1xi1>
    %114 = vector.broadcast %113 : vector<8x1xi1> to vector<8x128xi1>
    %115 = arith.select %114, %109, %8 : vector<8x128xi1>, vector<8x128xf32>
    %116 = vector.shape_cast %112 : vector<8x1xi1> to vector<8x1xi1>
    %117 = vector.broadcast %116 : vector<8x1xi1> to vector<8x128xi1>
    %118 = arith.select %117, %107, %12 : vector<8x128xi1>, vector<8x128xf32>
    %cst_49 = arith.constant 0.000000e+00 : f32
    %119 = vector.shape_cast %112 : vector<8x1xi1> to vector<8x1xi1>
    %120 = vector.broadcast %119 : vector<8x1xi1> to vector<8x128xi1>
    %121 = vector.broadcast %cst_49 : f32 to vector<8x128xf32>
    %122 = arith.select %120, %115, %121 : vector<8x128xi1>, vector<8x128xf32>
    %c1_50 = arith.constant 1 : index
    %123 = arith.index_cast %c0_i32_13 : i32 to index
    %c0_51 = arith.constant 0 : index
    %c0_52 = arith.constant 0 : index
    %124 = vector.load %arg4[%c1_50, %123, %c0_51, %c0_52] : memref<2x8x8x128xf32, #tpu.memory_space<vmem>>, vector<1x1x8x128xf32>
    %125 = vector.shape_cast %124 : vector<1x1x8x128xf32> to vector<8x128xf32>
    %126 = vector.shape_cast %122 : vector<8x128xf32> to vector<1x1x8x128xf32>
    tpu.vector_store %arg4[%c1_50, %123, %c0_51, %c0_52], %126 {strides = array<i32>} : memref<2x8x8x128xf32, #tpu.memory_space<vmem>>, vector<1x1x8x128xf32>,
    %c1_i32 = arith.constant 1 : i32
    %127 = arith.addi %4, %c1_i32 : i32
    %c0_53 = arith.constant 0 : index
    %128 = arith.index_cast %c1_i32 : i32 to index
    %c0_54 = arith.constant 0 : index
    %c0_55 = arith.constant 0 : index
    %129 = vector.load %arg1[%c0_53, %128, %c0_54, %c0_55] : memref<2x8x8x512xbf16, #tpu.memory_space<vmem>>, vector<1x1x8x512xbf16>
    %130 = vector.shape_cast %129 : vector<1x1x8x512xbf16> to vector<8x512xbf16>
    %131 = arith.truncf %58 : vector<8x128xf32> to vector<8x128xbf16>
    %c0_56 = arith.constant 0 : index
    %c0_57 = arith.constant 0 : index
    %c0_58 = arith.constant 0 : index
    %132 = vector.load %arg2[%c0_56, %c0_57, %c0_58] : memref<2x128x512xbf16, #tpu.memory_space<vmem>>, vector<1x128x512xbf16>
    %133 = vector.shape_cast %132 : vector<1x128x512xbf16> to vector<128x512xbf16>
    %cst_59 = arith.constant dense<0.000000e+00> : vector<8x512xf32>
    %134 = tpu.matmul %131, %133, %cst_59 {dimension_numbers = #tpu.dot_dimension_numbers<[1], [0], [0], [1], [0, 0, 1, 1], [], []>} : vector<8x128xbf16>, vector<128x512xbf16>, vector<8x512xf32> -> vector<8x512xf32>
    %135 = arith.extf %130 : vector<8x512xbf16> to vector<8x512xf32>
    %136 = arith.addf %135, %134 : vector<8x512xf32>
    %137 = vector.extract_strided_slice %136 {offsets = [0, 0], sizes = [8, 128], strides = [1, 1]} : vector<8x512xf32> to vector<8x128xf32>
    %cst_60 = arith.constant 5.000000e-01 : f32
    %138 = vector.broadcast %cst_60 : f32 to vector<8x128xf32>
    %139 = arith.mulf %138, %137 : vector<8x128xf32>
    %140 = math.tanh %139 : vector<8x128xf32>
    %cst_61 = arith.constant 5.000000e-01 : f32
    %141 = vector.broadcast %cst_61 : f32 to vector<8x128xf32>
    %142 = arith.mulf %141, %140 : vector<8x128xf32>
    %cst_62 = arith.constant 5.000000e-01 : f32
    %143 = vector.broadcast %cst_62 : f32 to vector<8x128xf32>
    %144 = arith.addf %142, %143 : vector<8x128xf32>
    %145 = vector.extract_strided_slice %136 {offsets = [0, 128], sizes = [8, 128], strides = [1, 1]} : vector<8x512xf32> to vector<8x128xf32>
    %cst_63 = arith.constant 5.000000e-01 : f32
    %146 = vector.broadcast %cst_63 : f32 to vector<8x128xf32>
    %147 = arith.mulf %146, %145 : vector<8x128xf32>
    %148 = math.tanh %147 : vector<8x128xf32>
    %cst_64 = arith.constant 5.000000e-01 : f32
    %149 = vector.broadcast %cst_64 : f32 to vector<8x128xf32>
    %150 = arith.mulf %149, %148 : vector<8x128xf32>
    %cst_65 = arith.constant 5.000000e-01 : f32
    %151 = vector.broadcast %cst_65 : f32 to vector<8x128xf32>
    %152 = arith.addf %150, %151 : vector<8x128xf32>
    %153 = vector.extract_strided_slice %136 {offsets = [0, 256], sizes = [8, 128], strides = [1, 1]} : vector<8x512xf32> to vector<8x128xf32>
    %154 = math.tanh %153 : vector<8x128xf32>
    %155 = vector.extract_strided_slice %136 {offsets = [0, 384], sizes = [8, 128], strides = [1, 1]} : vector<8x512xf32> to vector<8x128xf32>
    %cst_66 = arith.constant 5.000000e-01 : f32
    %156 = vector.broadcast %cst_66 : f32 to vector<8x128xf32>
    %157 = arith.mulf %156, %155 : vector<8x128xf32>
    %158 = math.tanh %157 : vector<8x128xf32>
    %cst_67 = arith.constant 5.000000e-01 : f32
    %159 = vector.broadcast %cst_67 : f32 to vector<8x128xf32>
    %160 = arith.mulf %159, %158 : vector<8x128xf32>
    %cst_68 = arith.constant 5.000000e-01 : f32
    %161 = vector.broadcast %cst_68 : f32 to vector<8x128xf32>
    %162 = arith.addf %160, %161 : vector<8x128xf32>
    %163 = arith.mulf %152, %61 : vector<8x128xf32>
    %164 = arith.mulf %144, %154 : vector<8x128xf32>
    %165 = arith.addf %163, %164 : vector<8x128xf32>
    %166 = math.tanh %165 : vector<8x128xf32>
    %167 = arith.mulf %162, %166 : vector<8x128xf32>
    %168 = vector.broadcast %127 : i32 to vector<8x1xi32>
    %169 = arith.cmpi slt, %168, %3 : vector<8x1xi32>
    %170 = vector.shape_cast %169 : vector<8x1xi1> to vector<8x1xi1>
    %171 = vector.broadcast %170 : vector<8x1xi1> to vector<8x128xi1>
    %172 = arith.select %171, %167, %58 : vector<8x128xi1>, vector<8x128xf32>
    %173 = vector.shape_cast %169 : vector<8x1xi1> to vector<8x1xi1>
    %174 = vector.broadcast %173 : vector<8x1xi1> to vector<8x128xi1>
    %175 = arith.select %174, %165, %61 : vector<8x128xi1>, vector<8x128xf32>
    %cst_69 = arith.constant 0.000000e+00 : f32
    %176 = vector.shape_cast %169 : vector<8x1xi1> to vector<8x1xi1>
    %177 = vector.broadcast %176 : vector<8x1xi1> to vector<8x128xi1>
    %178 = vector.broadcast %cst_69 : f32 to vector<8x128xf32>
    %179 = arith.select %177, %172, %178 : vector<8x128xi1>, vector<8x128xf32>
    %c0_70 = arith.constant 0 : index
    %180 = arith.index_cast %c1_i32 : i32 to index
    %c0_71 = arith.constant 0 : index
    %c0_72 = arith.constant 0 : index
    %181 = vector.load %arg4[%c0_70, %180, %c0_71, %c0_72] : memref<2x8x8x128xf32, #tpu.memory_space<vmem>>, vector<1x1x8x128xf32>
    %182 = vector.shape_cast %181 : vector<1x1x8x128xf32> to vector<8x128xf32>
    %183 = vector.shape_cast %179 : vector<8x128xf32> to vector<1x1x8x128xf32>
    tpu.vector_store %arg4[%c0_70, %180, %c0_71, %c0_72], %183 {strides = array<i32>} : memref<2x8x8x128xf32, #tpu.memory_space<vmem>>, vector<1x1x8x128xf32>,
    %c1_73 = arith.constant 1 : index
    %184 = arith.index_cast %c1_i32 : i32 to index
    %c0_74 = arith.constant 0 : index
    %c0_75 = arith.constant 0 : index
    %185 = vector.load %arg1[%c1_73, %184, %c0_74, %c0_75] : memref<2x8x8x512xbf16, #tpu.memory_space<vmem>>, vector<1x1x8x512xbf16>
    %186 = vector.shape_cast %185 : vector<1x1x8x512xbf16> to vector<8x512xbf16>
    %187 = arith.truncf %115 : vector<8x128xf32> to vector<8x128xbf16>
    %c1_76 = arith.constant 1 : index
    %c0_77 = arith.constant 0 : index
    %c0_78 = arith.constant 0 : index
    %188 = vector.load %arg2[%c1_76, %c0_77, %c0_78] : memref<2x128x512xbf16, #tpu.memory_space<vmem>>, vector<1x128x512xbf16>
    %189 = vector.shape_cast %188 : vector<1x128x512xbf16> to vector<128x512xbf16>
    %cst_79 = arith.constant dense<0.000000e+00> : vector<8x512xf32>
    %190 = tpu.matmul %187, %189, %cst_79 {dimension_numbers = #tpu.dot_dimension_numbers<[1], [0], [0], [1], [0, 0, 1, 1], [], []>} : vector<8x128xbf16>, vector<128x512xbf16>, vector<8x512xf32> -> vector<8x512xf32>
    %191 = arith.extf %186 : vector<8x512xbf16> to vector<8x512xf32>
    %192 = arith.addf %191, %190 : vector<8x512xf32>
    %193 = vector.extract_strided_slice %192 {offsets = [0, 0], sizes = [8, 128], strides = [1, 1]} : vector<8x512xf32> to vector<8x128xf32>
    %cst_80 = arith.constant 5.000000e-01 : f32
    %194 = vector.broadcast %cst_80 : f32 to vector<8x128xf32>
    %195 = arith.mulf %194, %193 : vector<8x128xf32>
    %196 = math.tanh %195 : vector<8x128xf32>
    %cst_81 = arith.constant 5.000000e-01 : f32
    %197 = vector.broadcast %cst_81 : f32 to vector<8x128xf32>
    %198 = arith.mulf %197, %196 : vector<8x128xf32>
    %cst_82 = arith.constant 5.000000e-01 : f32
    %199 = vector.broadcast %cst_82 : f32 to vector<8x128xf32>
    %200 = arith.addf %198, %199 : vector<8x128xf32>
    %201 = vector.extract_strided_slice %192 {offsets = [0, 128], sizes = [8, 128], strides = [1, 1]} : vector<8x512xf32> to vector<8x128xf32>
    %cst_83 = arith.constant 5.000000e-01 : f32
    %202 = vector.broadcast %cst_83 : f32 to vector<8x128xf32>
    %203 = arith.mulf %202, %201 : vector<8x128xf32>
    %204 = math.tanh %203 : vector<8x128xf32>
    %cst_84 = arith.constant 5.000000e-01 : f32
    %205 = vector.broadcast %cst_84 : f32 to vector<8x128xf32>
    %206 = arith.mulf %205, %204 : vector<8x128xf32>
    %cst_85 = arith.constant 5.000000e-01 : f32
    %207 = vector.broadcast %cst_85 : f32 to vector<8x128xf32>
    %208 = arith.addf %206, %207 : vector<8x128xf32>
    %209 = vector.extract_strided_slice %192 {offsets = [0, 256], sizes = [8, 128], strides = [1, 1]} : vector<8x512xf32> to vector<8x128xf32>
    %210 = math.tanh %209 : vector<8x128xf32>
    %211 = vector.extract_strided_slice %192 {offsets = [0, 384], sizes = [8, 128], strides = [1, 1]} : vector<8x512xf32> to vector<8x128xf32>
    %cst_86 = arith.constant 5.000000e-01 : f32
    %212 = vector.broadcast %cst_86 : f32 to vector<8x128xf32>
    %213 = arith.mulf %212, %211 : vector<8x128xf32>
    %214 = math.tanh %213 : vector<8x128xf32>
    %cst_87 = arith.constant 5.000000e-01 : f32
    %215 = vector.broadcast %cst_87 : f32 to vector<8x128xf32>
    %216 = arith.mulf %215, %214 : vector<8x128xf32>
    %cst_88 = arith.constant 5.000000e-01 : f32
    %217 = vector.broadcast %cst_88 : f32 to vector<8x128xf32>
    %218 = arith.addf %216, %217 : vector<8x128xf32>
    %219 = arith.mulf %208, %118 : vector<8x128xf32>
    %220 = arith.mulf %200, %210 : vector<8x128xf32>
    %221 = arith.addf %219, %220 : vector<8x128xf32>
    %222 = math.tanh %221 : vector<8x128xf32>
    %223 = arith.mulf %218, %222 : vector<8x128xf32>
    %c7_i32_89 = arith.constant 7 : i32
    %224 = arith.subi %c7_i32_89, %127 : i32
    %225 = vector.broadcast %224 : i32 to vector<8x1xi32>
    %226 = arith.cmpi slt, %225, %3 : vector<8x1xi32>
    %227 = vector.shape_cast %226 : vector<8x1xi1> to vector<8x1xi1>
    %228 = vector.broadcast %227 : vector<8x1xi1> to vector<8x128xi1>
    %229 = arith.select %228, %223, %115 : vector<8x128xi1>, vector<8x128xf32>
    %230 = vector.shape_cast %226 : vector<8x1xi1> to vector<8x1xi1>
    %231 = vector.broadcast %230 : vector<8x1xi1> to vector<8x128xi1>
    %232 = arith.select %231, %221, %118 : vector<8x128xi1>, vector<8x128xf32>
    %cst_90 = arith.constant 0.000000e+00 : f32
    %233 = vector.shape_cast %226 : vector<8x1xi1> to vector<8x1xi1>
    %234 = vector.broadcast %233 : vector<8x1xi1> to vector<8x128xi1>
    %235 = vector.broadcast %cst_90 : f32 to vector<8x128xf32>
    %236 = arith.select %234, %229, %235 : vector<8x128xi1>, vector<8x128xf32>
    %c1_91 = arith.constant 1 : index
    %237 = arith.index_cast %c1_i32 : i32 to index
    %c0_92 = arith.constant 0 : index
    %c0_93 = arith.constant 0 : index
    %238 = vector.load %arg4[%c1_91, %237, %c0_92, %c0_93] : memref<2x8x8x128xf32, #tpu.memory_space<vmem>>, vector<1x1x8x128xf32>
    %239 = vector.shape_cast %238 : vector<1x1x8x128xf32> to vector<8x128xf32>
    %240 = vector.shape_cast %236 : vector<8x128xf32> to vector<1x1x8x128xf32>
    tpu.vector_store %arg4[%c1_91, %237, %c0_92, %c0_93], %240 {strides = array<i32>} : memref<2x8x8x128xf32, #tpu.memory_space<vmem>>, vector<1x1x8x128xf32>,
    %c2_i32 = arith.constant 2 : i32
    %241 = arith.addi %4, %c2_i32 : i32
    %c0_94 = arith.constant 0 : index
    %242 = arith.index_cast %c2_i32 : i32 to index
    %c0_95 = arith.constant 0 : index
    %c0_96 = arith.constant 0 : index
    %243 = vector.load %arg1[%c0_94, %242, %c0_95, %c0_96] : memref<2x8x8x512xbf16, #tpu.memory_space<vmem>>, vector<1x1x8x512xbf16>
    %244 = vector.shape_cast %243 : vector<1x1x8x512xbf16> to vector<8x512xbf16>
    %245 = arith.truncf %172 : vector<8x128xf32> to vector<8x128xbf16>
    %c0_97 = arith.constant 0 : index
    %c0_98 = arith.constant 0 : index
    %c0_99 = arith.constant 0 : index
    %246 = vector.load %arg2[%c0_97, %c0_98, %c0_99] : memref<2x128x512xbf16, #tpu.memory_space<vmem>>, vector<1x128x512xbf16>
    %247 = vector.shape_cast %246 : vector<1x128x512xbf16> to vector<128x512xbf16>
    %cst_100 = arith.constant dense<0.000000e+00> : vector<8x512xf32>
    %248 = tpu.matmul %245, %247, %cst_100 {dimension_numbers = #tpu.dot_dimension_numbers<[1], [0], [0], [1], [0, 0, 1, 1], [], []>} : vector<8x128xbf16>, vector<128x512xbf16>, vector<8x512xf32> -> vector<8x512xf32>
    %249 = arith.extf %244 : vector<8x512xbf16> to vector<8x512xf32>
    %250 = arith.addf %249, %248 : vector<8x512xf32>
    %251 = vector.extract_strided_slice %250 {offsets = [0, 0], sizes = [8, 128], strides = [1, 1]} : vector<8x512xf32> to vector<8x128xf32>
    %cst_101 = arith.constant 5.000000e-01 : f32
    %252 = vector.broadcast %cst_101 : f32 to vector<8x128xf32>
    %253 = arith.mulf %252, %251 : vector<8x128xf32>
    %254 = math.tanh %253 : vector<8x128xf32>
    %cst_102 = arith.constant 5.000000e-01 : f32
    %255 = vector.broadcast %cst_102 : f32 to vector<8x128xf32>
    %256 = arith.mulf %255, %254 : vector<8x128xf32>
    %cst_103 = arith.constant 5.000000e-01 : f32
    %257 = vector.broadcast %cst_103 : f32 to vector<8x128xf32>
    %258 = arith.addf %256, %257 : vector<8x128xf32>
    %259 = vector.extract_strided_slice %250 {offsets = [0, 128], sizes = [8, 128], strides = [1, 1]} : vector<8x512xf32> to vector<8x128xf32>
    %cst_104 = arith.constant 5.000000e-01 : f32
    %260 = vector.broadcast %cst_104 : f32 to vector<8x128xf32>
    %261 = arith.mulf %260, %259 : vector<8x128xf32>
    %262 = math.tanh %261 : vector<8x128xf32>
    %cst_105 = arith.constant 5.000000e-01 : f32
    %263 = vector.broadcast %cst_105 : f32 to vector<8x128xf32>
    %264 = arith.mulf %263, %262 : vector<8x128xf32>
    %cst_106 = arith.constant 5.000000e-01 : f32
    %265 = vector.broadcast %cst_106 : f32 to vector<8x128xf32>
    %266 = arith.addf %264, %265 : vector<8x128xf32>
    %267 = vector.extract_strided_slice %250 {offsets = [0, 256], sizes = [8, 128], strides = [1, 1]} : vector<8x512xf32> to vector<8x128xf32>
    %268 = math.tanh %267 : vector<8x128xf32>
    %269 = vector.extract_strided_slice %250 {offsets = [0, 384], sizes = [8, 128], strides = [1, 1]} : vector<8x512xf32> to vector<8x128xf32>
    %cst_107 = arith.constant 5.000000e-01 : f32
    %270 = vector.broadcast %cst_107 : f32 to vector<8x128xf32>
    %271 = arith.mulf %270, %269 : vector<8x128xf32>
    %272 = math.tanh %271 : vector<8x128xf32>
    %cst_108 = arith.constant 5.000000e-01 : f32
    %273 = vector.broadcast %cst_108 : f32 to vector<8x128xf32>
    %274 = arith.mulf %273, %272 : vector<8x128xf32>
    %cst_109 = arith.constant 5.000000e-01 : f32
    %275 = vector.broadcast %cst_109 : f32 to vector<8x128xf32>
    %276 = arith.addf %274, %275 : vector<8x128xf32>
    %277 = arith.mulf %266, %175 : vector<8x128xf32>
    %278 = arith.mulf %258, %268 : vector<8x128xf32>
    %279 = arith.addf %277, %278 : vector<8x128xf32>
    %280 = math.tanh %279 : vector<8x128xf32>
    %281 = arith.mulf %276, %280 : vector<8x128xf32>
    %282 = vector.broadcast %241 : i32 to vector<8x1xi32>
    %283 = arith.cmpi slt, %282, %3 : vector<8x1xi32>
    %284 = vector.shape_cast %283 : vector<8x1xi1> to vector<8x1xi1>
    %285 = vector.broadcast %284 : vector<8x1xi1> to vector<8x128xi1>
    %286 = arith.select %285, %281, %172 : vector<8x128xi1>, vector<8x128xf32>
    %287 = vector.shape_cast %283 : vector<8x1xi1> to vector<8x1xi1>
    %288 = vector.broadcast %287 : vector<8x1xi1> to vector<8x128xi1>
    %289 = arith.select %288, %279, %175 : vector<8x128xi1>, vector<8x128xf32>
    %cst_110 = arith.constant 0.000000e+00 : f32
    %290 = vector.shape_cast %283 : vector<8x1xi1> to vector<8x1xi1>
    %291 = vector.broadcast %290 : vector<8x1xi1> to vector<8x128xi1>
    %292 = vector.broadcast %cst_110 : f32 to vector<8x128xf32>
    %293 = arith.select %291, %286, %292 : vector<8x128xi1>, vector<8x128xf32>
    %c0_111 = arith.constant 0 : index
    %294 = arith.index_cast %c2_i32 : i32 to index
    %c0_112 = arith.constant 0 : index
    %c0_113 = arith.constant 0 : index
    %295 = vector.load %arg4[%c0_111, %294, %c0_112, %c0_113] : memref<2x8x8x128xf32, #tpu.memory_space<vmem>>, vector<1x1x8x128xf32>
    %296 = vector.shape_cast %295 : vector<1x1x8x128xf32> to vector<8x128xf32>
    %297 = vector.shape_cast %293 : vector<8x128xf32> to vector<1x1x8x128xf32>
    tpu.vector_store %arg4[%c0_111, %294, %c0_112, %c0_113], %297 {strides = array<i32>} : memref<2x8x8x128xf32, #tpu.memory_space<vmem>>, vector<1x1x8x128xf32>,
    %c1_114 = arith.constant 1 : index
    %298 = arith.index_cast %c2_i32 : i32 to index
    %c0_115 = arith.constant 0 : index
    %c0_116 = arith.constant 0 : index
    %299 = vector.load %arg1[%c1_114, %298, %c0_115, %c0_116] : memref<2x8x8x512xbf16, #tpu.memory_space<vmem>>, vector<1x1x8x512xbf16>
    %300 = vector.shape_cast %299 : vector<1x1x8x512xbf16> to vector<8x512xbf16>
    %301 = arith.truncf %229 : vector<8x128xf32> to vector<8x128xbf16>
    %c1_117 = arith.constant 1 : index
    %c0_118 = arith.constant 0 : index
    %c0_119 = arith.constant 0 : index
    %302 = vector.load %arg2[%c1_117, %c0_118, %c0_119] : memref<2x128x512xbf16, #tpu.memory_space<vmem>>, vector<1x128x512xbf16>
    %303 = vector.shape_cast %302 : vector<1x128x512xbf16> to vector<128x512xbf16>
    %cst_120 = arith.constant dense<0.000000e+00> : vector<8x512xf32>
    %304 = tpu.matmul %301, %303, %cst_120 {dimension_numbers = #tpu.dot_dimension_numbers<[1], [0], [0], [1], [0, 0, 1, 1], [], []>} : vector<8x128xbf16>, vector<128x512xbf16>, vector<8x512xf32> -> vector<8x512xf32>
    %305 = arith.extf %300 : vector<8x512xbf16> to vector<8x512xf32>
    %306 = arith.addf %305, %304 : vector<8x512xf32>
    %307 = vector.extract_strided_slice %306 {offsets = [0, 0], sizes = [8, 128], strides = [1, 1]} : vector<8x512xf32> to vector<8x128xf32>
    %cst_121 = arith.constant 5.000000e-01 : f32
    %308 = vector.broadcast %cst_121 : f32 to vector<8x128xf32>
    %309 = arith.mulf %308, %307 : vector<8x128xf32>
    %310 = math.tanh %309 : vector<8x128xf32>
    %cst_122 = arith.constant 5.000000e-01 : f32
    %311 = vector.broadcast %cst_122 : f32 to vector<8x128xf32>
    %312 = arith.mulf %311, %310 : vector<8x128xf32>
    %cst_123 = arith.constant 5.000000e-01 : f32
    %313 = vector.broadcast %cst_123 : f32 to vector<8x128xf32>
    %314 = arith.addf %312, %313 : vector<8x128xf32>
    %315 = vector.extract_strided_slice %306 {offsets = [0, 128], sizes = [8, 128], strides = [1, 1]} : vector<8x512xf32> to vector<8x128xf32>
    %cst_124 = arith.constant 5.000000e-01 : f32
    %316 = vector.broadcast %cst_124 : f32 to vector<8x128xf32>
    %317 = arith.mulf %316, %315 : vector<8x128xf32>
    %318 = math.tanh %317 : vector<8x128xf32>
    %cst_125 = arith.constant 5.000000e-01 : f32
    %319 = vector.broadcast %cst_125 : f32 to vector<8x128xf32>
    %320 = arith.mulf %319, %318 : vector<8x128xf32>
    %cst_126 = arith.constant 5.000000e-01 : f32
    %321 = vector.broadcast %cst_126 : f32 to vector<8x128xf32>
    %322 = arith.addf %320, %321 : vector<8x128xf32>
    %323 = vector.extract_strided_slice %306 {offsets = [0, 256], sizes = [8, 128], strides = [1, 1]} : vector<8x512xf32> to vector<8x128xf32>
    %324 = math.tanh %323 : vector<8x128xf32>
    %325 = vector.extract_strided_slice %306 {offsets = [0, 384], sizes = [8, 128], strides = [1, 1]} : vector<8x512xf32> to vector<8x128xf32>
    %cst_127 = arith.constant 5.000000e-01 : f32
    %326 = vector.broadcast %cst_127 : f32 to vector<8x128xf32>
    %327 = arith.mulf %326, %325 : vector<8x128xf32>
    %328 = math.tanh %327 : vector<8x128xf32>
    %cst_128 = arith.constant 5.000000e-01 : f32
    %329 = vector.broadcast %cst_128 : f32 to vector<8x128xf32>
    %330 = arith.mulf %329, %328 : vector<8x128xf32>
    %cst_129 = arith.constant 5.000000e-01 : f32
    %331 = vector.broadcast %cst_129 : f32 to vector<8x128xf32>
    %332 = arith.addf %330, %331 : vector<8x128xf32>
    %333 = arith.mulf %322, %232 : vector<8x128xf32>
    %334 = arith.mulf %314, %324 : vector<8x128xf32>
    %335 = arith.addf %333, %334 : vector<8x128xf32>
    %336 = math.tanh %335 : vector<8x128xf32>
    %337 = arith.mulf %332, %336 : vector<8x128xf32>
    %c7_i32_130 = arith.constant 7 : i32
    %338 = arith.subi %c7_i32_130, %241 : i32
    %339 = vector.broadcast %338 : i32 to vector<8x1xi32>
    %340 = arith.cmpi slt, %339, %3 : vector<8x1xi32>
    %341 = vector.shape_cast %340 : vector<8x1xi1> to vector<8x1xi1>
    %342 = vector.broadcast %341 : vector<8x1xi1> to vector<8x128xi1>
    %343 = arith.select %342, %337, %229 : vector<8x128xi1>, vector<8x128xf32>
    %344 = vector.shape_cast %340 : vector<8x1xi1> to vector<8x1xi1>
    %345 = vector.broadcast %344 : vector<8x1xi1> to vector<8x128xi1>
    %346 = arith.select %345, %335, %232 : vector<8x128xi1>, vector<8x128xf32>
    %cst_131 = arith.constant 0.000000e+00 : f32
    %347 = vector.shape_cast %340 : vector<8x1xi1> to vector<8x1xi1>
    %348 = vector.broadcast %347 : vector<8x1xi1> to vector<8x128xi1>
    %349 = vector.broadcast %cst_131 : f32 to vector<8x128xf32>
    %350 = arith.select %348, %343, %349 : vector<8x128xi1>, vector<8x128xf32>
    %c1_132 = arith.constant 1 : index
    %351 = arith.index_cast %c2_i32 : i32 to index
    %c0_133 = arith.constant 0 : index
    %c0_134 = arith.constant 0 : index
    %352 = vector.load %arg4[%c1_132, %351, %c0_133, %c0_134] : memref<2x8x8x128xf32, #tpu.memory_space<vmem>>, vector<1x1x8x128xf32>
    %353 = vector.shape_cast %352 : vector<1x1x8x128xf32> to vector<8x128xf32>
    %354 = vector.shape_cast %350 : vector<8x128xf32> to vector<1x1x8x128xf32>
    tpu.vector_store %arg4[%c1_132, %351, %c0_133, %c0_134], %354 {strides = array<i32>} : memref<2x8x8x128xf32, #tpu.memory_space<vmem>>, vector<1x1x8x128xf32>,
    %c3_i32 = arith.constant 3 : i32
    %355 = arith.addi %4, %c3_i32 : i32
    %c0_135 = arith.constant 0 : index
    %356 = arith.index_cast %c3_i32 : i32 to index
    %c0_136 = arith.constant 0 : index
    %c0_137 = arith.constant 0 : index
    %357 = vector.load %arg1[%c0_135, %356, %c0_136, %c0_137] : memref<2x8x8x512xbf16, #tpu.memory_space<vmem>>, vector<1x1x8x512xbf16>
    %358 = vector.shape_cast %357 : vector<1x1x8x512xbf16> to vector<8x512xbf16>
    %359 = arith.truncf %286 : vector<8x128xf32> to vector<8x128xbf16>
    %c0_138 = arith.constant 0 : index
    %c0_139 = arith.constant 0 : index
    %c0_140 = arith.constant 0 : index
    %360 = vector.load %arg2[%c0_138, %c0_139, %c0_140] : memref<2x128x512xbf16, #tpu.memory_space<vmem>>, vector<1x128x512xbf16>
    %361 = vector.shape_cast %360 : vector<1x128x512xbf16> to vector<128x512xbf16>
    %cst_141 = arith.constant dense<0.000000e+00> : vector<8x512xf32>
    %362 = tpu.matmul %359, %361, %cst_141 {dimension_numbers = #tpu.dot_dimension_numbers<[1], [0], [0], [1], [0, 0, 1, 1], [], []>} : vector<8x128xbf16>, vector<128x512xbf16>, vector<8x512xf32> -> vector<8x512xf32>
    %363 = arith.extf %358 : vector<8x512xbf16> to vector<8x512xf32>
    %364 = arith.addf %363, %362 : vector<8x512xf32>
    %365 = vector.extract_strided_slice %364 {offsets = [0, 0], sizes = [8, 128], strides = [1, 1]} : vector<8x512xf32> to vector<8x128xf32>
    %cst_142 = arith.constant 5.000000e-01 : f32
    %366 = vector.broadcast %cst_142 : f32 to vector<8x128xf32>
    %367 = arith.mulf %366, %365 : vector<8x128xf32>
    %368 = math.tanh %367 : vector<8x128xf32>
    %cst_143 = arith.constant 5.000000e-01 : f32
    %369 = vector.broadcast %cst_143 : f32 to vector<8x128xf32>
    %370 = arith.mulf %369, %368 : vector<8x128xf32>
    %cst_144 = arith.constant 5.000000e-01 : f32
    %371 = vector.broadcast %cst_144 : f32 to vector<8x128xf32>
    %372 = arith.addf %370, %371 : vector<8x128xf32>
    %373 = vector.extract_strided_slice %364 {offsets = [0, 128], sizes = [8, 128], strides = [1, 1]} : vector<8x512xf32> to vector<8x128xf32>
    %cst_145 = arith.constant 5.000000e-01 : f32
    %374 = vector.broadcast %cst_145 : f32 to vector<8x128xf32>
    %375 = arith.mulf %374, %373 : vector<8x128xf32>
    %376 = math.tanh %375 : vector<8x128xf32>
    %cst_146 = arith.constant 5.000000e-01 : f32
    %377 = vector.broadcast %cst_146 : f32 to vector<8x128xf32>
    %378 = arith.mulf %377, %376 : vector<8x128xf32>
    %cst_147 = arith.constant 5.000000e-01 : f32
    %379 = vector.broadcast %cst_147 : f32 to vector<8x128xf32>
    %380 = arith.addf %378, %379 : vector<8x128xf32>
    %381 = vector.extract_strided_slice %364 {offsets = [0, 256], sizes = [8, 128], strides = [1, 1]} : vector<8x512xf32> to vector<8x128xf32>
    %382 = math.tanh %381 : vector<8x128xf32>
    %383 = vector.extract_strided_slice %364 {offsets = [0, 384], sizes = [8, 128], strides = [1, 1]} : vector<8x512xf32> to vector<8x128xf32>
    %cst_148 = arith.constant 5.000000e-01 : f32
    %384 = vector.broadcast %cst_148 : f32 to vector<8x128xf32>
    %385 = arith.mulf %384, %383 : vector<8x128xf32>
    %386 = math.tanh %385 : vector<8x128xf32>
    %cst_149 = arith.constant 5.000000e-01 : f32
    %387 = vector.broadcast %cst_149 : f32 to vector<8x128xf32>
    %388 = arith.mulf %387, %386 : vector<8x128xf32>
    %cst_150 = arith.constant 5.000000e-01 : f32
    %389 = vector.broadcast %cst_150 : f32 to vector<8x128xf32>
    %390 = arith.addf %388, %389 : vector<8x128xf32>
    %391 = arith.mulf %380, %289 : vector<8x128xf32>
    %392 = arith.mulf %372, %382 : vector<8x128xf32>
    %393 = arith.addf %391, %392 : vector<8x128xf32>
    %394 = math.tanh %393 : vector<8x128xf32>
    %395 = arith.mulf %390, %394 : vector<8x128xf32>
    %396 = vector.broadcast %355 : i32 to vector<8x1xi32>
    %397 = arith.cmpi slt, %396, %3 : vector<8x1xi32>
    %398 = vector.shape_cast %397 : vector<8x1xi1> to vector<8x1xi1>
    %399 = vector.broadcast %398 : vector<8x1xi1> to vector<8x128xi1>
    %400 = arith.select %399, %395, %286 : vector<8x128xi1>, vector<8x128xf32>
    %401 = vector.shape_cast %397 : vector<8x1xi1> to vector<8x1xi1>
    %402 = vector.broadcast %401 : vector<8x1xi1> to vector<8x128xi1>
    %403 = arith.select %402, %393, %289 : vector<8x128xi1>, vector<8x128xf32>
    %cst_151 = arith.constant 0.000000e+00 : f32
    %404 = vector.shape_cast %397 : vector<8x1xi1> to vector<8x1xi1>
    %405 = vector.broadcast %404 : vector<8x1xi1> to vector<8x128xi1>
    %406 = vector.broadcast %cst_151 : f32 to vector<8x128xf32>
    %407 = arith.select %405, %400, %406 : vector<8x128xi1>, vector<8x128xf32>
    %c0_152 = arith.constant 0 : index
    %408 = arith.index_cast %c3_i32 : i32 to index
    %c0_153 = arith.constant 0 : index
    %c0_154 = arith.constant 0 : index
    %409 = vector.load %arg4[%c0_152, %408, %c0_153, %c0_154] : memref<2x8x8x128xf32, #tpu.memory_space<vmem>>, vector<1x1x8x128xf32>
    %410 = vector.shape_cast %409 : vector<1x1x8x128xf32> to vector<8x128xf32>
    %411 = vector.shape_cast %407 : vector<8x128xf32> to vector<1x1x8x128xf32>
    tpu.vector_store %arg4[%c0_152, %408, %c0_153, %c0_154], %411 {strides = array<i32>} : memref<2x8x8x128xf32, #tpu.memory_space<vmem>>, vector<1x1x8x128xf32>,
    %c1_155 = arith.constant 1 : index
    %412 = arith.index_cast %c3_i32 : i32 to index
    %c0_156 = arith.constant 0 : index
    %c0_157 = arith.constant 0 : index
    %413 = vector.load %arg1[%c1_155, %412, %c0_156, %c0_157] : memref<2x8x8x512xbf16, #tpu.memory_space<vmem>>, vector<1x1x8x512xbf16>
    %414 = vector.shape_cast %413 : vector<1x1x8x512xbf16> to vector<8x512xbf16>
    %415 = arith.truncf %343 : vector<8x128xf32> to vector<8x128xbf16>
    %c1_158 = arith.constant 1 : index
    %c0_159 = arith.constant 0 : index
    %c0_160 = arith.constant 0 : index
    %416 = vector.load %arg2[%c1_158, %c0_159, %c0_160] : memref<2x128x512xbf16, #tpu.memory_space<vmem>>, vector<1x128x512xbf16>
    %417 = vector.shape_cast %416 : vector<1x128x512xbf16> to vector<128x512xbf16>
    %cst_161 = arith.constant dense<0.000000e+00> : vector<8x512xf32>
    %418 = tpu.matmul %415, %417, %cst_161 {dimension_numbers = #tpu.dot_dimension_numbers<[1], [0], [0], [1], [0, 0, 1, 1], [], []>} : vector<8x128xbf16>, vector<128x512xbf16>, vector<8x512xf32> -> vector<8x512xf32>
    %419 = arith.extf %414 : vector<8x512xbf16> to vector<8x512xf32>
    %420 = arith.addf %419, %418 : vector<8x512xf32>
    %421 = vector.extract_strided_slice %420 {offsets = [0, 0], sizes = [8, 128], strides = [1, 1]} : vector<8x512xf32> to vector<8x128xf32>
    %cst_162 = arith.constant 5.000000e-01 : f32
    %422 = vector.broadcast %cst_162 : f32 to vector<8x128xf32>
    %423 = arith.mulf %422, %421 : vector<8x128xf32>
    %424 = math.tanh %423 : vector<8x128xf32>
    %cst_163 = arith.constant 5.000000e-01 : f32
    %425 = vector.broadcast %cst_163 : f32 to vector<8x128xf32>
    %426 = arith.mulf %425, %424 : vector<8x128xf32>
    %cst_164 = arith.constant 5.000000e-01 : f32
    %427 = vector.broadcast %cst_164 : f32 to vector<8x128xf32>
    %428 = arith.addf %426, %427 : vector<8x128xf32>
    %429 = vector.extract_strided_slice %420 {offsets = [0, 128], sizes = [8, 128], strides = [1, 1]} : vector<8x512xf32> to vector<8x128xf32>
    %cst_165 = arith.constant 5.000000e-01 : f32
    %430 = vector.broadcast %cst_165 : f32 to vector<8x128xf32>
    %431 = arith.mulf %430, %429 : vector<8x128xf32>
    %432 = math.tanh %431 : vector<8x128xf32>
    %cst_166 = arith.constant 5.000000e-01 : f32
    %433 = vector.broadcast %cst_166 : f32 to vector<8x128xf32>
    %434 = arith.mulf %433, %432 : vector<8x128xf32>
    %cst_167 = arith.constant 5.000000e-01 : f32
    %435 = vector.broadcast %cst_167 : f32 to vector<8x128xf32>
    %436 = arith.addf %434, %435 : vector<8x128xf32>
    %437 = vector.extract_strided_slice %420 {offsets = [0, 256], sizes = [8, 128], strides = [1, 1]} : vector<8x512xf32> to vector<8x128xf32>
    %438 = math.tanh %437 : vector<8x128xf32>
    %439 = vector.extract_strided_slice %420 {offsets = [0, 384], sizes = [8, 128], strides = [1, 1]} : vector<8x512xf32> to vector<8x128xf32>
    %cst_168 = arith.constant 5.000000e-01 : f32
    %440 = vector.broadcast %cst_168 : f32 to vector<8x128xf32>
    %441 = arith.mulf %440, %439 : vector<8x128xf32>
    %442 = math.tanh %441 : vector<8x128xf32>
    %cst_169 = arith.constant 5.000000e-01 : f32
    %443 = vector.broadcast %cst_169 : f32 to vector<8x128xf32>
    %444 = arith.mulf %443, %442 : vector<8x128xf32>
    %cst_170 = arith.constant 5.000000e-01 : f32
    %445 = vector.broadcast %cst_170 : f32 to vector<8x128xf32>
    %446 = arith.addf %444, %445 : vector<8x128xf32>
    %447 = arith.mulf %436, %346 : vector<8x128xf32>
    %448 = arith.mulf %428, %438 : vector<8x128xf32>
    %449 = arith.addf %447, %448 : vector<8x128xf32>
    %450 = math.tanh %449 : vector<8x128xf32>
    %451 = arith.mulf %446, %450 : vector<8x128xf32>
    %c7_i32_171 = arith.constant 7 : i32
    %452 = arith.subi %c7_i32_171, %355 : i32
    %453 = vector.broadcast %452 : i32 to vector<8x1xi32>
    %454 = arith.cmpi slt, %453, %3 : vector<8x1xi32>
    %455 = vector.shape_cast %454 : vector<8x1xi1> to vector<8x1xi1>
    %456 = vector.broadcast %455 : vector<8x1xi1> to vector<8x128xi1>
    %457 = arith.select %456, %451, %343 : vector<8x128xi1>, vector<8x128xf32>
    %458 = vector.shape_cast %454 : vector<8x1xi1> to vector<8x1xi1>
    %459 = vector.broadcast %458 : vector<8x1xi1> to vector<8x128xi1>
    %460 = arith.select %459, %449, %346 : vector<8x128xi1>, vector<8x128xf32>
    %cst_172 = arith.constant 0.000000e+00 : f32
    %461 = vector.shape_cast %454 : vector<8x1xi1> to vector<8x1xi1>
    %462 = vector.broadcast %461 : vector<8x1xi1> to vector<8x128xi1>
    %463 = vector.broadcast %cst_172 : f32 to vector<8x128xf32>
    %464 = arith.select %462, %457, %463 : vector<8x128xi1>, vector<8x128xf32>
    %c1_173 = arith.constant 1 : index
    %465 = arith.index_cast %c3_i32 : i32 to index
    %c0_174 = arith.constant 0 : index
    %c0_175 = arith.constant 0 : index
    %466 = vector.load %arg4[%c1_173, %465, %c0_174, %c0_175] : memref<2x8x8x128xf32, #tpu.memory_space<vmem>>, vector<1x1x8x128xf32>
    %467 = vector.shape_cast %466 : vector<1x1x8x128xf32> to vector<8x128xf32>
    %468 = vector.shape_cast %464 : vector<8x128xf32> to vector<1x1x8x128xf32>
    tpu.vector_store %arg4[%c1_173, %465, %c0_174, %c0_175], %468 {strides = array<i32>} : memref<2x8x8x128xf32, #tpu.memory_space<vmem>>, vector<1x1x8x128xf32>,
    %c4_i32 = arith.constant 4 : i32
    %469 = arith.addi %4, %c4_i32 : i32
    %c0_176 = arith.constant 0 : index
    %470 = arith.index_cast %c4_i32 : i32 to index
    %c0_177 = arith.constant 0 : index
    %c0_178 = arith.constant 0 : index
    %471 = vector.load %arg1[%c0_176, %470, %c0_177, %c0_178] : memref<2x8x8x512xbf16, #tpu.memory_space<vmem>>, vector<1x1x8x512xbf16>
    %472 = vector.shape_cast %471 : vector<1x1x8x512xbf16> to vector<8x512xbf16>
    %473 = arith.truncf %400 : vector<8x128xf32> to vector<8x128xbf16>
    %c0_179 = arith.constant 0 : index
    %c0_180 = arith.constant 0 : index
    %c0_181 = arith.constant 0 : index
    %474 = vector.load %arg2[%c0_179, %c0_180, %c0_181] : memref<2x128x512xbf16, #tpu.memory_space<vmem>>, vector<1x128x512xbf16>
    %475 = vector.shape_cast %474 : vector<1x128x512xbf16> to vector<128x512xbf16>
    %cst_182 = arith.constant dense<0.000000e+00> : vector<8x512xf32>
    %476 = tpu.matmul %473, %475, %cst_182 {dimension_numbers = #tpu.dot_dimension_numbers<[1], [0], [0], [1], [0, 0, 1, 1], [], []>} : vector<8x128xbf16>, vector<128x512xbf16>, vector<8x512xf32> -> vector<8x512xf32>
    %477 = arith.extf %472 : vector<8x512xbf16> to vector<8x512xf32>
    %478 = arith.addf %477, %476 : vector<8x512xf32>
    %479 = vector.extract_strided_slice %478 {offsets = [0, 0], sizes = [8, 128], strides = [1, 1]} : vector<8x512xf32> to vector<8x128xf32>
    %cst_183 = arith.constant 5.000000e-01 : f32
    %480 = vector.broadcast %cst_183 : f32 to vector<8x128xf32>
    %481 = arith.mulf %480, %479 : vector<8x128xf32>
    %482 = math.tanh %481 : vector<8x128xf32>
    %cst_184 = arith.constant 5.000000e-01 : f32
    %483 = vector.broadcast %cst_184 : f32 to vector<8x128xf32>
    %484 = arith.mulf %483, %482 : vector<8x128xf32>
    %cst_185 = arith.constant 5.000000e-01 : f32
    %485 = vector.broadcast %cst_185 : f32 to vector<8x128xf32>
    %486 = arith.addf %484, %485 : vector<8x128xf32>
    %487 = vector.extract_strided_slice %478 {offsets = [0, 128], sizes = [8, 128], strides = [1, 1]} : vector<8x512xf32> to vector<8x128xf32>
    %cst_186 = arith.constant 5.000000e-01 : f32
    %488 = vector.broadcast %cst_186 : f32 to vector<8x128xf32>
    %489 = arith.mulf %488, %487 : vector<8x128xf32>
    %490 = math.tanh %489 : vector<8x128xf32>
    %cst_187 = arith.constant 5.000000e-01 : f32
    %491 = vector.broadcast %cst_187 : f32 to vector<8x128xf32>
    %492 = arith.mulf %491, %490 : vector<8x128xf32>
    %cst_188 = arith.constant 5.000000e-01 : f32
    %493 = vector.broadcast %cst_188 : f32 to vector<8x128xf32>
    %494 = arith.addf %492, %493 : vector<8x128xf32>
    %495 = vector.extract_strided_slice %478 {offsets = [0, 256], sizes = [8, 128], strides = [1, 1]} : vector<8x512xf32> to vector<8x128xf32>
    %496 = math.tanh %495 : vector<8x128xf32>
    %497 = vector.extract_strided_slice %478 {offsets = [0, 384], sizes = [8, 128], strides = [1, 1]} : vector<8x512xf32> to vector<8x128xf32>
    %cst_189 = arith.constant 5.000000e-01 : f32
    %498 = vector.broadcast %cst_189 : f32 to vector<8x128xf32>
    %499 = arith.mulf %498, %497 : vector<8x128xf32>
    %500 = math.tanh %499 : vector<8x128xf32>
    %cst_190 = arith.constant 5.000000e-01 : f32
    %501 = vector.broadcast %cst_190 : f32 to vector<8x128xf32>
    %502 = arith.mulf %501, %500 : vector<8x128xf32>
    %cst_191 = arith.constant 5.000000e-01 : f32
    %503 = vector.broadcast %cst_191 : f32 to vector<8x128xf32>
    %504 = arith.addf %502, %503 : vector<8x128xf32>
    %505 = arith.mulf %494, %403 : vector<8x128xf32>
    %506 = arith.mulf %486, %496 : vector<8x128xf32>
    %507 = arith.addf %505, %506 : vector<8x128xf32>
    %508 = math.tanh %507 : vector<8x128xf32>
    %509 = arith.mulf %504, %508 : vector<8x128xf32>
    %510 = vector.broadcast %469 : i32 to vector<8x1xi32>
    %511 = arith.cmpi slt, %510, %3 : vector<8x1xi32>
    %512 = vector.shape_cast %511 : vector<8x1xi1> to vector<8x1xi1>
    %513 = vector.broadcast %512 : vector<8x1xi1> to vector<8x128xi1>
    %514 = arith.select %513, %509, %400 : vector<8x128xi1>, vector<8x128xf32>
    %515 = vector.shape_cast %511 : vector<8x1xi1> to vector<8x1xi1>
    %516 = vector.broadcast %515 : vector<8x1xi1> to vector<8x128xi1>
    %517 = arith.select %516, %507, %403 : vector<8x128xi1>, vector<8x128xf32>
    %cst_192 = arith.constant 0.000000e+00 : f32
    %518 = vector.shape_cast %511 : vector<8x1xi1> to vector<8x1xi1>
    %519 = vector.broadcast %518 : vector<8x1xi1> to vector<8x128xi1>
    %520 = vector.broadcast %cst_192 : f32 to vector<8x128xf32>
    %521 = arith.select %519, %514, %520 : vector<8x128xi1>, vector<8x128xf32>
    %c0_193 = arith.constant 0 : index
    %522 = arith.index_cast %c4_i32 : i32 to index
    %c0_194 = arith.constant 0 : index
    %c0_195 = arith.constant 0 : index
    %523 = vector.load %arg4[%c0_193, %522, %c0_194, %c0_195] : memref<2x8x8x128xf32, #tpu.memory_space<vmem>>, vector<1x1x8x128xf32>
    %524 = vector.shape_cast %523 : vector<1x1x8x128xf32> to vector<8x128xf32>
    %525 = vector.shape_cast %521 : vector<8x128xf32> to vector<1x1x8x128xf32>
    tpu.vector_store %arg4[%c0_193, %522, %c0_194, %c0_195], %525 {strides = array<i32>} : memref<2x8x8x128xf32, #tpu.memory_space<vmem>>, vector<1x1x8x128xf32>,
    %c1_196 = arith.constant 1 : index
    %526 = arith.index_cast %c4_i32 : i32 to index
    %c0_197 = arith.constant 0 : index
    %c0_198 = arith.constant 0 : index
    %527 = vector.load %arg1[%c1_196, %526, %c0_197, %c0_198] : memref<2x8x8x512xbf16, #tpu.memory_space<vmem>>, vector<1x1x8x512xbf16>
    %528 = vector.shape_cast %527 : vector<1x1x8x512xbf16> to vector<8x512xbf16>
    %529 = arith.truncf %457 : vector<8x128xf32> to vector<8x128xbf16>
    %c1_199 = arith.constant 1 : index
    %c0_200 = arith.constant 0 : index
    %c0_201 = arith.constant 0 : index
    %530 = vector.load %arg2[%c1_199, %c0_200, %c0_201] : memref<2x128x512xbf16, #tpu.memory_space<vmem>>, vector<1x128x512xbf16>
    %531 = vector.shape_cast %530 : vector<1x128x512xbf16> to vector<128x512xbf16>
    %cst_202 = arith.constant dense<0.000000e+00> : vector<8x512xf32>
    %532 = tpu.matmul %529, %531, %cst_202 {dimension_numbers = #tpu.dot_dimension_numbers<[1], [0], [0], [1], [0, 0, 1, 1], [], []>} : vector<8x128xbf16>, vector<128x512xbf16>, vector<8x512xf32> -> vector<8x512xf32>
    %533 = arith.extf %528 : vector<8x512xbf16> to vector<8x512xf32>
    %534 = arith.addf %533, %532 : vector<8x512xf32>
    %535 = vector.extract_strided_slice %534 {offsets = [0, 0], sizes = [8, 128], strides = [1, 1]} : vector<8x512xf32> to vector<8x128xf32>
    %cst_203 = arith.constant 5.000000e-01 : f32
    %536 = vector.broadcast %cst_203 : f32 to vector<8x128xf32>
    %537 = arith.mulf %536, %535 : vector<8x128xf32>
    %538 = math.tanh %537 : vector<8x128xf32>
    %cst_204 = arith.constant 5.000000e-01 : f32
    %539 = vector.broadcast %cst_204 : f32 to vector<8x128xf32>
    %540 = arith.mulf %539, %538 : vector<8x128xf32>
    %cst_205 = arith.constant 5.000000e-01 : f32
    %541 = vector.broadcast %cst_205 : f32 to vector<8x128xf32>
    %542 = arith.addf %540, %541 : vector<8x128xf32>
    %543 = vector.extract_strided_slice %534 {offsets = [0, 128], sizes = [8, 128], strides = [1, 1]} : vector<8x512xf32> to vector<8x128xf32>
    %cst_206 = arith.constant 5.000000e-01 : f32
    %544 = vector.broadcast %cst_206 : f32 to vector<8x128xf32>
    %545 = arith.mulf %544, %543 : vector<8x128xf32>
    %546 = math.tanh %545 : vector<8x128xf32>
    %cst_207 = arith.constant 5.000000e-01 : f32
    %547 = vector.broadcast %cst_207 : f32 to vector<8x128xf32>
    %548 = arith.mulf %547, %546 : vector<8x128xf32>
    %cst_208 = arith.constant 5.000000e-01 : f32
    %549 = vector.broadcast %cst_208 : f32 to vector<8x128xf32>
    %550 = arith.addf %548, %549 : vector<8x128xf32>
    %551 = vector.extract_strided_slice %534 {offsets = [0, 256], sizes = [8, 128], strides = [1, 1]} : vector<8x512xf32> to vector<8x128xf32>
    %552 = math.tanh %551 : vector<8x128xf32>
    %553 = vector.extract_strided_slice %534 {offsets = [0, 384], sizes = [8, 128], strides = [1, 1]} : vector<8x512xf32> to vector<8x128xf32>
    %cst_209 = arith.constant 5.000000e-01 : f32
    %554 = vector.broadcast %cst_209 : f32 to vector<8x128xf32>
    %555 = arith.mulf %554, %553 : vector<8x128xf32>
    %556 = math.tanh %555 : vector<8x128xf32>
    %cst_210 = arith.constant 5.000000e-01 : f32
    %557 = vector.broadcast %cst_210 : f32 to vector<8x128xf32>
    %558 = arith.mulf %557, %556 : vector<8x128xf32>
    %cst_211 = arith.constant 5.000000e-01 : f32
    %559 = vector.broadcast %cst_211 : f32 to vector<8x128xf32>
    %560 = arith.addf %558, %559 : vector<8x128xf32>
    %561 = arith.mulf %550, %460 : vector<8x128xf32>
    %562 = arith.mulf %542, %552 : vector<8x128xf32>
    %563 = arith.addf %561, %562 : vector<8x128xf32>
    %564 = math.tanh %563 : vector<8x128xf32>
    %565 = arith.mulf %560, %564 : vector<8x128xf32>
    %c7_i32_212 = arith.constant 7 : i32
    %566 = arith.subi %c7_i32_212, %469 : i32
    %567 = vector.broadcast %566 : i32 to vector<8x1xi32>
    %568 = arith.cmpi slt, %567, %3 : vector<8x1xi32>
    %569 = vector.shape_cast %568 : vector<8x1xi1> to vector<8x1xi1>
    %570 = vector.broadcast %569 : vector<8x1xi1> to vector<8x128xi1>
    %571 = arith.select %570, %565, %457 : vector<8x128xi1>, vector<8x128xf32>
    %572 = vector.shape_cast %568 : vector<8x1xi1> to vector<8x1xi1>
    %573 = vector.broadcast %572 : vector<8x1xi1> to vector<8x128xi1>
    %574 = arith.select %573, %563, %460 : vector<8x128xi1>, vector<8x128xf32>
    %cst_213 = arith.constant 0.000000e+00 : f32
    %575 = vector.shape_cast %568 : vector<8x1xi1> to vector<8x1xi1>
    %576 = vector.broadcast %575 : vector<8x1xi1> to vector<8x128xi1>
    %577 = vector.broadcast %cst_213 : f32 to vector<8x128xf32>
    %578 = arith.select %576, %571, %577 : vector<8x128xi1>, vector<8x128xf32>
    %c1_214 = arith.constant 1 : index
    %579 = arith.index_cast %c4_i32 : i32 to index
    %c0_215 = arith.constant 0 : index
    %c0_216 = arith.constant 0 : index
    %580 = vector.load %arg4[%c1_214, %579, %c0_215, %c0_216] : memref<2x8x8x128xf32, #tpu.memory_space<vmem>>, vector<1x1x8x128xf32>
    %581 = vector.shape_cast %580 : vector<1x1x8x128xf32> to vector<8x128xf32>
    %582 = vector.shape_cast %578 : vector<8x128xf32> to vector<1x1x8x128xf32>
    tpu.vector_store %arg4[%c1_214, %579, %c0_215, %c0_216], %582 {strides = array<i32>} : memref<2x8x8x128xf32, #tpu.memory_space<vmem>>, vector<1x1x8x128xf32>,
    %c5_i32 = arith.constant 5 : i32
    %583 = arith.addi %4, %c5_i32 : i32
    %c0_217 = arith.constant 0 : index
    %584 = arith.index_cast %c5_i32 : i32 to index
    %c0_218 = arith.constant 0 : index
    %c0_219 = arith.constant 0 : index
    %585 = vector.load %arg1[%c0_217, %584, %c0_218, %c0_219] : memref<2x8x8x512xbf16, #tpu.memory_space<vmem>>, vector<1x1x8x512xbf16>
    %586 = vector.shape_cast %585 : vector<1x1x8x512xbf16> to vector<8x512xbf16>
    %587 = arith.truncf %514 : vector<8x128xf32> to vector<8x128xbf16>
    %c0_220 = arith.constant 0 : index
    %c0_221 = arith.constant 0 : index
    %c0_222 = arith.constant 0 : index
    %588 = vector.load %arg2[%c0_220, %c0_221, %c0_222] : memref<2x128x512xbf16, #tpu.memory_space<vmem>>, vector<1x128x512xbf16>
    %589 = vector.shape_cast %588 : vector<1x128x512xbf16> to vector<128x512xbf16>
    %cst_223 = arith.constant dense<0.000000e+00> : vector<8x512xf32>
    %590 = tpu.matmul %587, %589, %cst_223 {dimension_numbers = #tpu.dot_dimension_numbers<[1], [0], [0], [1], [0, 0, 1, 1], [], []>} : vector<8x128xbf16>, vector<128x512xbf16>, vector<8x512xf32> -> vector<8x512xf32>
    %591 = arith.extf %586 : vector<8x512xbf16> to vector<8x512xf32>
    %592 = arith.addf %591, %590 : vector<8x512xf32>
    %593 = vector.extract_strided_slice %592 {offsets = [0, 0], sizes = [8, 128], strides = [1, 1]} : vector<8x512xf32> to vector<8x128xf32>
    %cst_224 = arith.constant 5.000000e-01 : f32
    %594 = vector.broadcast %cst_224 : f32 to vector<8x128xf32>
    %595 = arith.mulf %594, %593 : vector<8x128xf32>
    %596 = math.tanh %595 : vector<8x128xf32>
    %cst_225 = arith.constant 5.000000e-01 : f32
    %597 = vector.broadcast %cst_225 : f32 to vector<8x128xf32>
    %598 = arith.mulf %597, %596 : vector<8x128xf32>
    %cst_226 = arith.constant 5.000000e-01 : f32
    %599 = vector.broadcast %cst_226 : f32 to vector<8x128xf32>
    %600 = arith.addf %598, %599 : vector<8x128xf32>
    %601 = vector.extract_strided_slice %592 {offsets = [0, 128], sizes = [8, 128], strides = [1, 1]} : vector<8x512xf32> to vector<8x128xf32>
    %cst_227 = arith.constant 5.000000e-01 : f32
    %602 = vector.broadcast %cst_227 : f32 to vector<8x128xf32>
    %603 = arith.mulf %602, %601 : vector<8x128xf32>
    %604 = math.tanh %603 : vector<8x128xf32>
    %cst_228 = arith.constant 5.000000e-01 : f32
    %605 = vector.broadcast %cst_228 : f32 to vector<8x128xf32>
    %606 = arith.mulf %605, %604 : vector<8x128xf32>
    %cst_229 = arith.constant 5.000000e-01 : f32
    %607 = vector.broadcast %cst_229 : f32 to vector<8x128xf32>
    %608 = arith.addf %606, %607 : vector<8x128xf32>
    %609 = vector.extract_strided_slice %592 {offsets = [0, 256], sizes = [8, 128], strides = [1, 1]} : vector<8x512xf32> to vector<8x128xf32>
    %610 = math.tanh %609 : vector<8x128xf32>
    %611 = vector.extract_strided_slice %592 {offsets = [0, 384], sizes = [8, 128], strides = [1, 1]} : vector<8x512xf32> to vector<8x128xf32>
    %cst_230 = arith.constant 5.000000e-01 : f32
    %612 = vector.broadcast %cst_230 : f32 to vector<8x128xf32>
    %613 = arith.mulf %612, %611 : vector<8x128xf32>
    %614 = math.tanh %613 : vector<8x128xf32>
    %cst_231 = arith.constant 5.000000e-01 : f32
    %615 = vector.broadcast %cst_231 : f32 to vector<8x128xf32>
    %616 = arith.mulf %615, %614 : vector<8x128xf32>
    %cst_232 = arith.constant 5.000000e-01 : f32
    %617 = vector.broadcast %cst_232 : f32 to vector<8x128xf32>
    %618 = arith.addf %616, %617 : vector<8x128xf32>
    %619 = arith.mulf %608, %517 : vector<8x128xf32>
    %620 = arith.mulf %600, %610 : vector<8x128xf32>
    %621 = arith.addf %619, %620 : vector<8x128xf32>
    %622 = math.tanh %621 : vector<8x128xf32>
    %623 = arith.mulf %618, %622 : vector<8x128xf32>
    %624 = vector.broadcast %583 : i32 to vector<8x1xi32>
    %625 = arith.cmpi slt, %624, %3 : vector<8x1xi32>
    %626 = vector.shape_cast %625 : vector<8x1xi1> to vector<8x1xi1>
    %627 = vector.broadcast %626 : vector<8x1xi1> to vector<8x128xi1>
    %628 = arith.select %627, %623, %514 : vector<8x128xi1>, vector<8x128xf32>
    %629 = vector.shape_cast %625 : vector<8x1xi1> to vector<8x1xi1>
    %630 = vector.broadcast %629 : vector<8x1xi1> to vector<8x128xi1>
    %631 = arith.select %630, %621, %517 : vector<8x128xi1>, vector<8x128xf32>
    %cst_233 = arith.constant 0.000000e+00 : f32
    %632 = vector.shape_cast %625 : vector<8x1xi1> to vector<8x1xi1>
    %633 = vector.broadcast %632 : vector<8x1xi1> to vector<8x128xi1>
    %634 = vector.broadcast %cst_233 : f32 to vector<8x128xf32>
    %635 = arith.select %633, %628, %634 : vector<8x128xi1>, vector<8x128xf32>
    %c0_234 = arith.constant 0 : index
    %636 = arith.index_cast %c5_i32 : i32 to index
    %c0_235 = arith.constant 0 : index
    %c0_236 = arith.constant 0 : index
    %637 = vector.load %arg4[%c0_234, %636, %c0_235, %c0_236] : memref<2x8x8x128xf32, #tpu.memory_space<vmem>>, vector<1x1x8x128xf32>
    %638 = vector.shape_cast %637 : vector<1x1x8x128xf32> to vector<8x128xf32>
    %639 = vector.shape_cast %635 : vector<8x128xf32> to vector<1x1x8x128xf32>
    tpu.vector_store %arg4[%c0_234, %636, %c0_235, %c0_236], %639 {strides = array<i32>} : memref<2x8x8x128xf32, #tpu.memory_space<vmem>>, vector<1x1x8x128xf32>,
    %c1_237 = arith.constant 1 : index
    %640 = arith.index_cast %c5_i32 : i32 to index
    %c0_238 = arith.constant 0 : index
    %c0_239 = arith.constant 0 : index
    %641 = vector.load %arg1[%c1_237, %640, %c0_238, %c0_239] : memref<2x8x8x512xbf16, #tpu.memory_space<vmem>>, vector<1x1x8x512xbf16>
    %642 = vector.shape_cast %641 : vector<1x1x8x512xbf16> to vector<8x512xbf16>
    %643 = arith.truncf %571 : vector<8x128xf32> to vector<8x128xbf16>
    %c1_240 = arith.constant 1 : index
    %c0_241 = arith.constant 0 : index
    %c0_242 = arith.constant 0 : index
    %644 = vector.load %arg2[%c1_240, %c0_241, %c0_242] : memref<2x128x512xbf16, #tpu.memory_space<vmem>>, vector<1x128x512xbf16>
    %645 = vector.shape_cast %644 : vector<1x128x512xbf16> to vector<128x512xbf16>
    %cst_243 = arith.constant dense<0.000000e+00> : vector<8x512xf32>
    %646 = tpu.matmul %643, %645, %cst_243 {dimension_numbers = #tpu.dot_dimension_numbers<[1], [0], [0], [1], [0, 0, 1, 1], [], []>} : vector<8x128xbf16>, vector<128x512xbf16>, vector<8x512xf32> -> vector<8x512xf32>
    %647 = arith.extf %642 : vector<8x512xbf16> to vector<8x512xf32>
    %648 = arith.addf %647, %646 : vector<8x512xf32>
    %649 = vector.extract_strided_slice %648 {offsets = [0, 0], sizes = [8, 128], strides = [1, 1]} : vector<8x512xf32> to vector<8x128xf32>
    %cst_244 = arith.constant 5.000000e-01 : f32
    %650 = vector.broadcast %cst_244 : f32 to vector<8x128xf32>
    %651 = arith.mulf %650, %649 : vector<8x128xf32>
    %652 = math.tanh %651 : vector<8x128xf32>
    %cst_245 = arith.constant 5.000000e-01 : f32
    %653 = vector.broadcast %cst_245 : f32 to vector<8x128xf32>
    %654 = arith.mulf %653, %652 : vector<8x128xf32>
    %cst_246 = arith.constant 5.000000e-01 : f32
    %655 = vector.broadcast %cst_246 : f32 to vector<8x128xf32>
    %656 = arith.addf %654, %655 : vector<8x128xf32>
    %657 = vector.extract_strided_slice %648 {offsets = [0, 128], sizes = [8, 128], strides = [1, 1]} : vector<8x512xf32> to vector<8x128xf32>
    %cst_247 = arith.constant 5.000000e-01 : f32
    %658 = vector.broadcast %cst_247 : f32 to vector<8x128xf32>
    %659 = arith.mulf %658, %657 : vector<8x128xf32>
    %660 = math.tanh %659 : vector<8x128xf32>
    %cst_248 = arith.constant 5.000000e-01 : f32
    %661 = vector.broadcast %cst_248 : f32 to vector<8x128xf32>
    %662 = arith.mulf %661, %660 : vector<8x128xf32>
    %cst_249 = arith.constant 5.000000e-01 : f32
    %663 = vector.broadcast %cst_249 : f32 to vector<8x128xf32>
    %664 = arith.addf %662, %663 : vector<8x128xf32>
    %665 = vector.extract_strided_slice %648 {offsets = [0, 256], sizes = [8, 128], strides = [1, 1]} : vector<8x512xf32> to vector<8x128xf32>
    %666 = math.tanh %665 : vector<8x128xf32>
    %667 = vector.extract_strided_slice %648 {offsets = [0, 384], sizes = [8, 128], strides = [1, 1]} : vector<8x512xf32> to vector<8x128xf32>
    %cst_250 = arith.constant 5.000000e-01 : f32
    %668 = vector.broadcast %cst_250 : f32 to vector<8x128xf32>
    %669 = arith.mulf %668, %667 : vector<8x128xf32>
    %670 = math.tanh %669 : vector<8x128xf32>
    %cst_251 = arith.constant 5.000000e-01 : f32
    %671 = vector.broadcast %cst_251 : f32 to vector<8x128xf32>
    %672 = arith.mulf %671, %670 : vector<8x128xf32>
    %cst_252 = arith.constant 5.000000e-01 : f32
    %673 = vector.broadcast %cst_252 : f32 to vector<8x128xf32>
    %674 = arith.addf %672, %673 : vector<8x128xf32>
    %675 = arith.mulf %664, %574 : vector<8x128xf32>
    %676 = arith.mulf %656, %666 : vector<8x128xf32>
    %677 = arith.addf %675, %676 : vector<8x128xf32>
    %678 = math.tanh %677 : vector<8x128xf32>
    %679 = arith.mulf %674, %678 : vector<8x128xf32>
    %c7_i32_253 = arith.constant 7 : i32
    %680 = arith.subi %c7_i32_253, %583 : i32
    %681 = vector.broadcast %680 : i32 to vector<8x1xi32>
    %682 = arith.cmpi slt, %681, %3 : vector<8x1xi32>
    %683 = vector.shape_cast %682 : vector<8x1xi1> to vector<8x1xi1>
    %684 = vector.broadcast %683 : vector<8x1xi1> to vector<8x128xi1>
    %685 = arith.select %684, %679, %571 : vector<8x128xi1>, vector<8x128xf32>
    %686 = vector.shape_cast %682 : vector<8x1xi1> to vector<8x1xi1>
    %687 = vector.broadcast %686 : vector<8x1xi1> to vector<8x128xi1>
    %688 = arith.select %687, %677, %574 : vector<8x128xi1>, vector<8x128xf32>
    %cst_254 = arith.constant 0.000000e+00 : f32
    %689 = vector.shape_cast %682 : vector<8x1xi1> to vector<8x1xi1>
    %690 = vector.broadcast %689 : vector<8x1xi1> to vector<8x128xi1>
    %691 = vector.broadcast %cst_254 : f32 to vector<8x128xf32>
    %692 = arith.select %690, %685, %691 : vector<8x128xi1>, vector<8x128xf32>
    %c1_255 = arith.constant 1 : index
    %693 = arith.index_cast %c5_i32 : i32 to index
    %c0_256 = arith.constant 0 : index
    %c0_257 = arith.constant 0 : index
    %694 = vector.load %arg4[%c1_255, %693, %c0_256, %c0_257] : memref<2x8x8x128xf32, #tpu.memory_space<vmem>>, vector<1x1x8x128xf32>
    %695 = vector.shape_cast %694 : vector<1x1x8x128xf32> to vector<8x128xf32>
    %696 = vector.shape_cast %692 : vector<8x128xf32> to vector<1x1x8x128xf32>
    tpu.vector_store %arg4[%c1_255, %693, %c0_256, %c0_257], %696 {strides = array<i32>} : memref<2x8x8x128xf32, #tpu.memory_space<vmem>>, vector<1x1x8x128xf32>,
    %c6_i32 = arith.constant 6 : i32
    %697 = arith.addi %4, %c6_i32 : i32
    %c0_258 = arith.constant 0 : index
    %698 = arith.index_cast %c6_i32 : i32 to index
    %c0_259 = arith.constant 0 : index
    %c0_260 = arith.constant 0 : index
    %699 = vector.load %arg1[%c0_258, %698, %c0_259, %c0_260] : memref<2x8x8x512xbf16, #tpu.memory_space<vmem>>, vector<1x1x8x512xbf16>
    %700 = vector.shape_cast %699 : vector<1x1x8x512xbf16> to vector<8x512xbf16>
    %701 = arith.truncf %628 : vector<8x128xf32> to vector<8x128xbf16>
    %c0_261 = arith.constant 0 : index
    %c0_262 = arith.constant 0 : index
    %c0_263 = arith.constant 0 : index
    %702 = vector.load %arg2[%c0_261, %c0_262, %c0_263] : memref<2x128x512xbf16, #tpu.memory_space<vmem>>, vector<1x128x512xbf16>
    %703 = vector.shape_cast %702 : vector<1x128x512xbf16> to vector<128x512xbf16>
    %cst_264 = arith.constant dense<0.000000e+00> : vector<8x512xf32>
    %704 = tpu.matmul %701, %703, %cst_264 {dimension_numbers = #tpu.dot_dimension_numbers<[1], [0], [0], [1], [0, 0, 1, 1], [], []>} : vector<8x128xbf16>, vector<128x512xbf16>, vector<8x512xf32> -> vector<8x512xf32>
    %705 = arith.extf %700 : vector<8x512xbf16> to vector<8x512xf32>
    %706 = arith.addf %705, %704 : vector<8x512xf32>
    %707 = vector.extract_strided_slice %706 {offsets = [0, 0], sizes = [8, 128], strides = [1, 1]} : vector<8x512xf32> to vector<8x128xf32>
    %cst_265 = arith.constant 5.000000e-01 : f32
    %708 = vector.broadcast %cst_265 : f32 to vector<8x128xf32>
    %709 = arith.mulf %708, %707 : vector<8x128xf32>
    %710 = math.tanh %709 : vector<8x128xf32>
    %cst_266 = arith.constant 5.000000e-01 : f32
    %711 = vector.broadcast %cst_266 : f32 to vector<8x128xf32>
    %712 = arith.mulf %711, %710 : vector<8x128xf32>
    %cst_267 = arith.constant 5.000000e-01 : f32
    %713 = vector.broadcast %cst_267 : f32 to vector<8x128xf32>
    %714 = arith.addf %712, %713 : vector<8x128xf32>
    %715 = vector.extract_strided_slice %706 {offsets = [0, 128], sizes = [8, 128], strides = [1, 1]} : vector<8x512xf32> to vector<8x128xf32>
    %cst_268 = arith.constant 5.000000e-01 : f32
    %716 = vector.broadcast %cst_268 : f32 to vector<8x128xf32>
    %717 = arith.mulf %716, %715 : vector<8x128xf32>
    %718 = math.tanh %717 : vector<8x128xf32>
    %cst_269 = arith.constant 5.000000e-01 : f32
    %719 = vector.broadcast %cst_269 : f32 to vector<8x128xf32>
    %720 = arith.mulf %719, %718 : vector<8x128xf32>
    %cst_270 = arith.constant 5.000000e-01 : f32
    %721 = vector.broadcast %cst_270 : f32 to vector<8x128xf32>
    %722 = arith.addf %720, %721 : vector<8x128xf32>
    %723 = vector.extract_strided_slice %706 {offsets = [0, 256], sizes = [8, 128], strides = [1, 1]} : vector<8x512xf32> to vector<8x128xf32>
    %724 = math.tanh %723 : vector<8x128xf32>
    %725 = vector.extract_strided_slice %706 {offsets = [0, 384], sizes = [8, 128], strides = [1, 1]} : vector<8x512xf32> to vector<8x128xf32>
    %cst_271 = arith.constant 5.000000e-01 : f32
    %726 = vector.broadcast %cst_271 : f32 to vector<8x128xf32>
    %727 = arith.mulf %726, %725 : vector<8x128xf32>
    %728 = math.tanh %727 : vector<8x128xf32>
    %cst_272 = arith.constant 5.000000e-01 : f32
    %729 = vector.broadcast %cst_272 : f32 to vector<8x128xf32>
    %730 = arith.mulf %729, %728 : vector<8x128xf32>
    %cst_273 = arith.constant 5.000000e-01 : f32
    %731 = vector.broadcast %cst_273 : f32 to vector<8x128xf32>
    %732 = arith.addf %730, %731 : vector<8x128xf32>
    %733 = arith.mulf %722, %631 : vector<8x128xf32>
    %734 = arith.mulf %714, %724 : vector<8x128xf32>
    %735 = arith.addf %733, %734 : vector<8x128xf32>
    %736 = math.tanh %735 : vector<8x128xf32>
    %737 = arith.mulf %732, %736 : vector<8x128xf32>
    %738 = vector.broadcast %697 : i32 to vector<8x1xi32>
    %739 = arith.cmpi slt, %738, %3 : vector<8x1xi32>
    %740 = vector.shape_cast %739 : vector<8x1xi1> to vector<8x1xi1>
    %741 = vector.broadcast %740 : vector<8x1xi1> to vector<8x128xi1>
    %742 = arith.select %741, %737, %628 : vector<8x128xi1>, vector<8x128xf32>
    %743 = vector.shape_cast %739 : vector<8x1xi1> to vector<8x1xi1>
    %744 = vector.broadcast %743 : vector<8x1xi1> to vector<8x128xi1>
    %745 = arith.select %744, %735, %631 : vector<8x128xi1>, vector<8x128xf32>
    %cst_274 = arith.constant 0.000000e+00 : f32
    %746 = vector.shape_cast %739 : vector<8x1xi1> to vector<8x1xi1>
    %747 = vector.broadcast %746 : vector<8x1xi1> to vector<8x128xi1>
    %748 = vector.broadcast %cst_274 : f32 to vector<8x128xf32>
    %749 = arith.select %747, %742, %748 : vector<8x128xi1>, vector<8x128xf32>
    %c0_275 = arith.constant 0 : index
    %750 = arith.index_cast %c6_i32 : i32 to index
    %c0_276 = arith.constant 0 : index
    %c0_277 = arith.constant 0 : index
    %751 = vector.load %arg4[%c0_275, %750, %c0_276, %c0_277] : memref<2x8x8x128xf32, #tpu.memory_space<vmem>>, vector<1x1x8x128xf32>
    %752 = vector.shape_cast %751 : vector<1x1x8x128xf32> to vector<8x128xf32>
    %753 = vector.shape_cast %749 : vector<8x128xf32> to vector<1x1x8x128xf32>
    tpu.vector_store %arg4[%c0_275, %750, %c0_276, %c0_277], %753 {strides = array<i32>} : memref<2x8x8x128xf32, #tpu.memory_space<vmem>>, vector<1x1x8x128xf32>,
    %c1_278 = arith.constant 1 : index
    %754 = arith.index_cast %c6_i32 : i32 to index
    %c0_279 = arith.constant 0 : index
    %c0_280 = arith.constant 0 : index
    %755 = vector.load %arg1[%c1_278, %754, %c0_279, %c0_280] : memref<2x8x8x512xbf16, #tpu.memory_space<vmem>>, vector<1x1x8x512xbf16>
    %756 = vector.shape_cast %755 : vector<1x1x8x512xbf16> to vector<8x512xbf16>
    %757 = arith.truncf %685 : vector<8x128xf32> to vector<8x128xbf16>
    %c1_281 = arith.constant 1 : index
    %c0_282 = arith.constant 0 : index
    %c0_283 = arith.constant 0 : index
    %758 = vector.load %arg2[%c1_281, %c0_282, %c0_283] : memref<2x128x512xbf16, #tpu.memory_space<vmem>>, vector<1x128x512xbf16>
    %759 = vector.shape_cast %758 : vector<1x128x512xbf16> to vector<128x512xbf16>
    %cst_284 = arith.constant dense<0.000000e+00> : vector<8x512xf32>
    %760 = tpu.matmul %757, %759, %cst_284 {dimension_numbers = #tpu.dot_dimension_numbers<[1], [0], [0], [1], [0, 0, 1, 1], [], []>} : vector<8x128xbf16>, vector<128x512xbf16>, vector<8x512xf32> -> vector<8x512xf32>
    %761 = arith.extf %756 : vector<8x512xbf16> to vector<8x512xf32>
    %762 = arith.addf %761, %760 : vector<8x512xf32>
    %763 = vector.extract_strided_slice %762 {offsets = [0, 0], sizes = [8, 128], strides = [1, 1]} : vector<8x512xf32> to vector<8x128xf32>
    %cst_285 = arith.constant 5.000000e-01 : f32
    %764 = vector.broadcast %cst_285 : f32 to vector<8x128xf32>
    %765 = arith.mulf %764, %763 : vector<8x128xf32>
    %766 = math.tanh %765 : vector<8x128xf32>
    %cst_286 = arith.constant 5.000000e-01 : f32
    %767 = vector.broadcast %cst_286 : f32 to vector<8x128xf32>
    %768 = arith.mulf %767, %766 : vector<8x128xf32>
    %cst_287 = arith.constant 5.000000e-01 : f32
    %769 = vector.broadcast %cst_287 : f32 to vector<8x128xf32>
    %770 = arith.addf %768, %769 : vector<8x128xf32>
    %771 = vector.extract_strided_slice %762 {offsets = [0, 128], sizes = [8, 128], strides = [1, 1]} : vector<8x512xf32> to vector<8x128xf32>
    %cst_288 = arith.constant 5.000000e-01 : f32
    %772 = vector.broadcast %cst_288 : f32 to vector<8x128xf32>
    %773 = arith.mulf %772, %771 : vector<8x128xf32>
    %774 = math.tanh %773 : vector<8x128xf32>
    %cst_289 = arith.constant 5.000000e-01 : f32
    %775 = vector.broadcast %cst_289 : f32 to vector<8x128xf32>
    %776 = arith.mulf %775, %774 : vector<8x128xf32>
    %cst_290 = arith.constant 5.000000e-01 : f32
    %777 = vector.broadcast %cst_290 : f32 to vector<8x128xf32>
    %778 = arith.addf %776, %777 : vector<8x128xf32>
    %779 = vector.extract_strided_slice %762 {offsets = [0, 256], sizes = [8, 128], strides = [1, 1]} : vector<8x512xf32> to vector<8x128xf32>
    %780 = math.tanh %779 : vector<8x128xf32>
    %781 = vector.extract_strided_slice %762 {offsets = [0, 384], sizes = [8, 128], strides = [1, 1]} : vector<8x512xf32> to vector<8x128xf32>
    %cst_291 = arith.constant 5.000000e-01 : f32
    %782 = vector.broadcast %cst_291 : f32 to vector<8x128xf32>
    %783 = arith.mulf %782, %781 : vector<8x128xf32>
    %784 = math.tanh %783 : vector<8x128xf32>
    %cst_292 = arith.constant 5.000000e-01 : f32
    %785 = vector.broadcast %cst_292 : f32 to vector<8x128xf32>
    %786 = arith.mulf %785, %784 : vector<8x128xf32>
    %cst_293 = arith.constant 5.000000e-01 : f32
    %787 = vector.broadcast %cst_293 : f32 to vector<8x128xf32>
    %788 = arith.addf %786, %787 : vector<8x128xf32>
    %789 = arith.mulf %778, %688 : vector<8x128xf32>
    %790 = arith.mulf %770, %780 : vector<8x128xf32>
    %791 = arith.addf %789, %790 : vector<8x128xf32>
    %792 = math.tanh %791 : vector<8x128xf32>
    %793 = arith.mulf %788, %792 : vector<8x128xf32>
    %c7_i32_294 = arith.constant 7 : i32
    %794 = arith.subi %c7_i32_294, %697 : i32
    %795 = vector.broadcast %794 : i32 to vector<8x1xi32>
    %796 = arith.cmpi slt, %795, %3 : vector<8x1xi32>
    %797 = vector.shape_cast %796 : vector<8x1xi1> to vector<8x1xi1>
    %798 = vector.broadcast %797 : vector<8x1xi1> to vector<8x128xi1>
    %799 = arith.select %798, %793, %685 : vector<8x128xi1>, vector<8x128xf32>
    %800 = vector.shape_cast %796 : vector<8x1xi1> to vector<8x1xi1>
    %801 = vector.broadcast %800 : vector<8x1xi1> to vector<8x128xi1>
    %802 = arith.select %801, %791, %688 : vector<8x128xi1>, vector<8x128xf32>
    %cst_295 = arith.constant 0.000000e+00 : f32
    %803 = vector.shape_cast %796 : vector<8x1xi1> to vector<8x1xi1>
    %804 = vector.broadcast %803 : vector<8x1xi1> to vector<8x128xi1>
    %805 = vector.broadcast %cst_295 : f32 to vector<8x128xf32>
    %806 = arith.select %804, %799, %805 : vector<8x128xi1>, vector<8x128xf32>
    %c1_296 = arith.constant 1 : index
    %807 = arith.index_cast %c6_i32 : i32 to index
    %c0_297 = arith.constant 0 : index
    %c0_298 = arith.constant 0 : index
    %808 = vector.load %arg4[%c1_296, %807, %c0_297, %c0_298] : memref<2x8x8x128xf32, #tpu.memory_space<vmem>>, vector<1x1x8x128xf32>
    %809 = vector.shape_cast %808 : vector<1x1x8x128xf32> to vector<8x128xf32>
    %810 = vector.shape_cast %806 : vector<8x128xf32> to vector<1x1x8x128xf32>
    tpu.vector_store %arg4[%c1_296, %807, %c0_297, %c0_298], %810 {strides = array<i32>} : memref<2x8x8x128xf32, #tpu.memory_space<vmem>>, vector<1x1x8x128xf32>,
    %c7_i32_299 = arith.constant 7 : i32
    %811 = arith.addi %4, %c7_i32_299 : i32
    %c0_300 = arith.constant 0 : index
    %812 = arith.index_cast %c7_i32_299 : i32 to index
    %c0_301 = arith.constant 0 : index
    %c0_302 = arith.constant 0 : index
    %813 = vector.load %arg1[%c0_300, %812, %c0_301, %c0_302] : memref<2x8x8x512xbf16, #tpu.memory_space<vmem>>, vector<1x1x8x512xbf16>
    %814 = vector.shape_cast %813 : vector<1x1x8x512xbf16> to vector<8x512xbf16>
    %815 = arith.truncf %742 : vector<8x128xf32> to vector<8x128xbf16>
    %c0_303 = arith.constant 0 : index
    %c0_304 = arith.constant 0 : index
    %c0_305 = arith.constant 0 : index
    %816 = vector.load %arg2[%c0_303, %c0_304, %c0_305] : memref<2x128x512xbf16, #tpu.memory_space<vmem>>, vector<1x128x512xbf16>
    %817 = vector.shape_cast %816 : vector<1x128x512xbf16> to vector<128x512xbf16>
    %cst_306 = arith.constant dense<0.000000e+00> : vector<8x512xf32>
    %818 = tpu.matmul %815, %817, %cst_306 {dimension_numbers = #tpu.dot_dimension_numbers<[1], [0], [0], [1], [0, 0, 1, 1], [], []>} : vector<8x128xbf16>, vector<128x512xbf16>, vector<8x512xf32> -> vector<8x512xf32>
    %819 = arith.extf %814 : vector<8x512xbf16> to vector<8x512xf32>
    %820 = arith.addf %819, %818 : vector<8x512xf32>
    %821 = vector.extract_strided_slice %820 {offsets = [0, 0], sizes = [8, 128], strides = [1, 1]} : vector<8x512xf32> to vector<8x128xf32>
    %cst_307 = arith.constant 5.000000e-01 : f32
    %822 = vector.broadcast %cst_307 : f32 to vector<8x128xf32>
    %823 = arith.mulf %822, %821 : vector<8x128xf32>
    %824 = math.tanh %823 : vector<8x128xf32>
    %cst_308 = arith.constant 5.000000e-01 : f32
    %825 = vector.broadcast %cst_308 : f32 to vector<8x128xf32>
    %826 = arith.mulf %825, %824 : vector<8x128xf32>
    %cst_309 = arith.constant 5.000000e-01 : f32
    %827 = vector.broadcast %cst_309 : f32 to vector<8x128xf32>
    %828 = arith.addf %826, %827 : vector<8x128xf32>
    %829 = vector.extract_strided_slice %820 {offsets = [0, 128], sizes = [8, 128], strides = [1, 1]} : vector<8x512xf32> to vector<8x128xf32>
    %cst_310 = arith.constant 5.000000e-01 : f32
    %830 = vector.broadcast %cst_310 : f32 to vector<8x128xf32>
    %831 = arith.mulf %830, %829 : vector<8x128xf32>
    %832 = math.tanh %831 : vector<8x128xf32>
    %cst_311 = arith.constant 5.000000e-01 : f32
    %833 = vector.broadcast %cst_311 : f32 to vector<8x128xf32>
    %834 = arith.mulf %833, %832 : vector<8x128xf32>
    %cst_312 = arith.constant 5.000000e-01 : f32
    %835 = vector.broadcast %cst_312 : f32 to vector<8x128xf32>
    %836 = arith.addf %834, %835 : vector<8x128xf32>
    %837 = vector.extract_strided_slice %820 {offsets = [0, 256], sizes = [8, 128], strides = [1, 1]} : vector<8x512xf32> to vector<8x128xf32>
    %838 = math.tanh %837 : vector<8x128xf32>
    %839 = vector.extract_strided_slice %820 {offsets = [0, 384], sizes = [8, 128], strides = [1, 1]} : vector<8x512xf32> to vector<8x128xf32>
    %cst_313 = arith.constant 5.000000e-01 : f32
    %840 = vector.broadcast %cst_313 : f32 to vector<8x128xf32>
    %841 = arith.mulf %840, %839 : vector<8x128xf32>
    %842 = math.tanh %841 : vector<8x128xf32>
    %cst_314 = arith.constant 5.000000e-01 : f32
    %843 = vector.broadcast %cst_314 : f32 to vector<8x128xf32>
    %844 = arith.mulf %843, %842 : vector<8x128xf32>
    %cst_315 = arith.constant 5.000000e-01 : f32
    %845 = vector.broadcast %cst_315 : f32 to vector<8x128xf32>
    %846 = arith.addf %844, %845 : vector<8x128xf32>
    %847 = arith.mulf %836, %745 : vector<8x128xf32>
    %848 = arith.mulf %828, %838 : vector<8x128xf32>
    %849 = arith.addf %847, %848 : vector<8x128xf32>
    %850 = math.tanh %849 : vector<8x128xf32>
    %851 = arith.mulf %846, %850 : vector<8x128xf32>
    %852 = vector.broadcast %811 : i32 to vector<8x1xi32>
    %853 = arith.cmpi slt, %852, %3 : vector<8x1xi32>
    %854 = vector.shape_cast %853 : vector<8x1xi1> to vector<8x1xi1>
    %855 = vector.broadcast %854 : vector<8x1xi1> to vector<8x128xi1>
    %856 = arith.select %855, %851, %742 : vector<8x128xi1>, vector<8x128xf32>
    %857 = vector.shape_cast %853 : vector<8x1xi1> to vector<8x1xi1>
    %858 = vector.broadcast %857 : vector<8x1xi1> to vector<8x128xi1>
    %859 = arith.select %858, %849, %745 : vector<8x128xi1>, vector<8x128xf32>
    %cst_316 = arith.constant 0.000000e+00 : f32
    %860 = vector.shape_cast %853 : vector<8x1xi1> to vector<8x1xi1>
    %861 = vector.broadcast %860 : vector<8x1xi1> to vector<8x128xi1>
    %862 = vector.broadcast %cst_316 : f32 to vector<8x128xf32>
    %863 = arith.select %861, %856, %862 : vector<8x128xi1>, vector<8x128xf32>
    %c0_317 = arith.constant 0 : index
    %864 = arith.index_cast %c7_i32_299 : i32 to index
    %c0_318 = arith.constant 0 : index
    %c0_319 = arith.constant 0 : index
    %865 = vector.load %arg4[%c0_317, %864, %c0_318, %c0_319] : memref<2x8x8x128xf32, #tpu.memory_space<vmem>>, vector<1x1x8x128xf32>
    %866 = vector.shape_cast %865 : vector<1x1x8x128xf32> to vector<8x128xf32>
    %867 = vector.shape_cast %863 : vector<8x128xf32> to vector<1x1x8x128xf32>
    tpu.vector_store %arg4[%c0_317, %864, %c0_318, %c0_319], %867 {strides = array<i32>} : memref<2x8x8x128xf32, #tpu.memory_space<vmem>>, vector<1x1x8x128xf32>,
    %c1_320 = arith.constant 1 : index
    %868 = arith.index_cast %c7_i32_299 : i32 to index
    %c0_321 = arith.constant 0 : index
    %c0_322 = arith.constant 0 : index
    %869 = vector.load %arg1[%c1_320, %868, %c0_321, %c0_322] : memref<2x8x8x512xbf16, #tpu.memory_space<vmem>>, vector<1x1x8x512xbf16>
    %870 = vector.shape_cast %869 : vector<1x1x8x512xbf16> to vector<8x512xbf16>
    %871 = arith.truncf %799 : vector<8x128xf32> to vector<8x128xbf16>
    %c1_323 = arith.constant 1 : index
    %c0_324 = arith.constant 0 : index
    %c0_325 = arith.constant 0 : index
    %872 = vector.load %arg2[%c1_323, %c0_324, %c0_325] : memref<2x128x512xbf16, #tpu.memory_space<vmem>>, vector<1x128x512xbf16>
    %873 = vector.shape_cast %872 : vector<1x128x512xbf16> to vector<128x512xbf16>
    %cst_326 = arith.constant dense<0.000000e+00> : vector<8x512xf32>
    %874 = tpu.matmul %871, %873, %cst_326 {dimension_numbers = #tpu.dot_dimension_numbers<[1], [0], [0], [1], [0, 0, 1, 1], [], []>} : vector<8x128xbf16>, vector<128x512xbf16>, vector<8x512xf32> -> vector<8x512xf32>
    %875 = arith.extf %870 : vector<8x512xbf16> to vector<8x512xf32>
    %876 = arith.addf %875, %874 : vector<8x512xf32>
    %877 = vector.extract_strided_slice %876 {offsets = [0, 0], sizes = [8, 128], strides = [1, 1]} : vector<8x512xf32> to vector<8x128xf32>
    %cst_327 = arith.constant 5.000000e-01 : f32
    %878 = vector.broadcast %cst_327 : f32 to vector<8x128xf32>
    %879 = arith.mulf %878, %877 : vector<8x128xf32>
    %880 = math.tanh %879 : vector<8x128xf32>
    %cst_328 = arith.constant 5.000000e-01 : f32
    %881 = vector.broadcast %cst_328 : f32 to vector<8x128xf32>
    %882 = arith.mulf %881, %880 : vector<8x128xf32>
    %cst_329 = arith.constant 5.000000e-01 : f32
    %883 = vector.broadcast %cst_329 : f32 to vector<8x128xf32>
    %884 = arith.addf %882, %883 : vector<8x128xf32>
    %885 = vector.extract_strided_slice %876 {offsets = [0, 128], sizes = [8, 128], strides = [1, 1]} : vector<8x512xf32> to vector<8x128xf32>
    %cst_330 = arith.constant 5.000000e-01 : f32
    %886 = vector.broadcast %cst_330 : f32 to vector<8x128xf32>
    %887 = arith.mulf %886, %885 : vector<8x128xf32>
    %888 = math.tanh %887 : vector<8x128xf32>
    %cst_331 = arith.constant 5.000000e-01 : f32
    %889 = vector.broadcast %cst_331 : f32 to vector<8x128xf32>
    %890 = arith.mulf %889, %888 : vector<8x128xf32>
    %cst_332 = arith.constant 5.000000e-01 : f32
    %891 = vector.broadcast %cst_332 : f32 to vector<8x128xf32>
    %892 = arith.addf %890, %891 : vector<8x128xf32>
    %893 = vector.extract_strided_slice %876 {offsets = [0, 256], sizes = [8, 128], strides = [1, 1]} : vector<8x512xf32> to vector<8x128xf32>
    %894 = math.tanh %893 : vector<8x128xf32>
    %895 = vector.extract_strided_slice %876 {offsets = [0, 384], sizes = [8, 128], strides = [1, 1]} : vector<8x512xf32> to vector<8x128xf32>
    %cst_333 = arith.constant 5.000000e-01 : f32
    %896 = vector.broadcast %cst_333 : f32 to vector<8x128xf32>
    %897 = arith.mulf %896, %895 : vector<8x128xf32>
    %898 = math.tanh %897 : vector<8x128xf32>
    %cst_334 = arith.constant 5.000000e-01 : f32
    %899 = vector.broadcast %cst_334 : f32 to vector<8x128xf32>
    %900 = arith.mulf %899, %898 : vector<8x128xf32>
    %cst_335 = arith.constant 5.000000e-01 : f32
    %901 = vector.broadcast %cst_335 : f32 to vector<8x128xf32>
    %902 = arith.addf %900, %901 : vector<8x128xf32>
    %903 = arith.mulf %892, %802 : vector<8x128xf32>
    %904 = arith.mulf %884, %894 : vector<8x128xf32>
    %905 = arith.addf %903, %904 : vector<8x128xf32>
    %906 = math.tanh %905 : vector<8x128xf32>
    %907 = arith.mulf %902, %906 : vector<8x128xf32>
    %c7_i32_336 = arith.constant 7 : i32
    %908 = arith.subi %c7_i32_336, %811 : i32
    %909 = vector.broadcast %908 : i32 to vector<8x1xi32>
    %910 = arith.cmpi slt, %909, %3 : vector<8x1xi32>
    %911 = vector.shape_cast %910 : vector<8x1xi1> to vector<8x1xi1>
    %912 = vector.broadcast %911 : vector<8x1xi1> to vector<8x128xi1>
    %913 = arith.select %912, %907, %799 : vector<8x128xi1>, vector<8x128xf32>
    %914 = vector.shape_cast %910 : vector<8x1xi1> to vector<8x1xi1>
    %915 = vector.broadcast %914 : vector<8x1xi1> to vector<8x128xi1>
    %916 = arith.select %915, %905, %802 : vector<8x128xi1>, vector<8x128xf32>
    %cst_337 = arith.constant 0.000000e+00 : f32
    %917 = vector.shape_cast %910 : vector<8x1xi1> to vector<8x1xi1>
    %918 = vector.broadcast %917 : vector<8x1xi1> to vector<8x128xi1>
    %919 = vector.broadcast %cst_337 : f32 to vector<8x128xf32>
    %920 = arith.select %918, %913, %919 : vector<8x128xi1>, vector<8x128xf32>
    %c1_338 = arith.constant 1 : index
    %921 = arith.index_cast %c7_i32_299 : i32 to index
    %c0_339 = arith.constant 0 : index
    %c0_340 = arith.constant 0 : index
    %922 = vector.load %arg4[%c1_338, %921, %c0_339, %c0_340] : memref<2x8x8x128xf32, #tpu.memory_space<vmem>>, vector<1x1x8x128xf32>
    %923 = vector.shape_cast %922 : vector<1x1x8x128xf32> to vector<8x128xf32>
    %924 = vector.shape_cast %920 : vector<8x128xf32> to vector<1x1x8x128xf32>
    tpu.vector_store %arg4[%c1_338, %921, %c0_339, %c0_340], %924 {strides = array<i32>} : memref<2x8x8x128xf32, #tpu.memory_space<vmem>>, vector<1x1x8x128xf32>,
    %c8_i32_341 = arith.constant 8 : i32
    %c0_342 = arith.constant 0 : index
    %c0_343 = arith.constant 0 : index
    %c0_344 = arith.constant 0 : index
    %925 = vector.load %arg7[%c0_342, %c0_343, %c0_344] : memref<2x8x128xf32, #tpu.memory_space<vmem>>, vector<1x8x128xf32>
    %926 = vector.shape_cast %925 : vector<1x8x128xf32> to vector<8x128xf32>
    %927 = vector.shape_cast %856 : vector<8x128xf32> to vector<1x8x128xf32>
    tpu.vector_store %arg7[%c0_342, %c0_343, %c0_344], %927 {strides = array<i32>} : memref<2x8x128xf32, #tpu.memory_space<vmem>>, vector<1x8x128xf32>,
    %c0_345 = arith.constant 0 : index
    %c0_346 = arith.constant 0 : index
    %c0_347 = arith.constant 0 : index
    %928 = vector.load %arg8[%c0_345, %c0_346, %c0_347] : memref<2x8x128xf32, #tpu.memory_space<vmem>>, vector<1x8x128xf32>
    %929 = vector.shape_cast %928 : vector<1x8x128xf32> to vector<8x128xf32>
    %930 = vector.shape_cast %859 : vector<8x128xf32> to vector<1x8x128xf32>
    tpu.vector_store %arg8[%c0_345, %c0_346, %c0_347], %930 {strides = array<i32>} : memref<2x8x128xf32, #tpu.memory_space<vmem>>, vector<1x8x128xf32>,
    %c1_348 = arith.constant 1 : index
    %c0_349 = arith.constant 0 : index
    %c0_350 = arith.constant 0 : index
    %931 = vector.load %arg7[%c1_348, %c0_349, %c0_350] : memref<2x8x128xf32, #tpu.memory_space<vmem>>, vector<1x8x128xf32>
    %932 = vector.shape_cast %931 : vector<1x8x128xf32> to vector<8x128xf32>
    %933 = vector.shape_cast %913 : vector<8x128xf32> to vector<1x8x128xf32>
    tpu.vector_store %arg7[%c1_348, %c0_349, %c0_350], %933 {strides = array<i32>} : memref<2x8x128xf32, #tpu.memory_space<vmem>>, vector<1x8x128xf32>,
    %c1_351 = arith.constant 1 : index
    %c0_352 = arith.constant 0 : index
    %c0_353 = arith.constant 0 : index
    %934 = vector.load %arg8[%c1_351, %c0_352, %c0_353] : memref<2x8x128xf32, #tpu.memory_space<vmem>>, vector<1x8x128xf32>
    %935 = vector.shape_cast %934 : vector<1x8x128xf32> to vector<8x128xf32>
    %936 = vector.shape_cast %916 : vector<8x128xf32> to vector<1x8x128xf32>
    tpu.vector_store %arg8[%c1_351, %c0_352, %c0_353], %936 {strides = array<i32>} : memref<2x8x128xf32, #tpu.memory_space<vmem>>, vector<1x8x128xf32>,
    %c0_i32_354 = arith.constant 0 : i32
    %937 = arith.cmpi eq, %arg0, %c0_i32_354 : i32
    %938 = arith.extui %937 : i1 to i32
    %c0_i32_355 = arith.constant 0 : i32
    %939 = arith.cmpi ne, %938, %c0_i32_355 : i32
    scf.if %939 {
      %c0_356 = arith.constant 0 : index
      %c0_357 = arith.constant 0 : index
      %c0_358 = arith.constant 0 : index
      %940 = vector.load %arg5[%c0_356, %c0_357, %c0_358] : memref<2x8x128xf32, #tpu.memory_space<vmem>>, vector<1x8x128xf32>
      %941 = vector.shape_cast %940 : vector<1x8x128xf32> to vector<8x128xf32>
      %942 = vector.shape_cast %856 : vector<8x128xf32> to vector<1x8x128xf32>
      tpu.vector_store %arg5[%c0_356, %c0_357, %c0_358], %942 {strides = array<i32>} : memref<2x8x128xf32, #tpu.memory_space<vmem>>, vector<1x8x128xf32>,
      %c0_359 = arith.constant 0 : index
      %c0_360 = arith.constant 0 : index
      %c0_361 = arith.constant 0 : index
      %943 = vector.load %arg6[%c0_359, %c0_360, %c0_361] : memref<2x8x128xf32, #tpu.memory_space<vmem>>, vector<1x8x128xf32>
      %944 = vector.shape_cast %943 : vector<1x8x128xf32> to vector<8x128xf32>
      %945 = vector.shape_cast %859 : vector<8x128xf32> to vector<1x8x128xf32>
      tpu.vector_store %arg6[%c0_359, %c0_360, %c0_361], %945 {strides = array<i32>} : memref<2x8x128xf32, #tpu.memory_space<vmem>>, vector<1x8x128xf32>,
      %c1_362 = arith.constant 1 : index
      %c0_363 = arith.constant 0 : index
      %c0_364 = arith.constant 0 : index
      %946 = vector.load %arg5[%c1_362, %c0_363, %c0_364] : memref<2x8x128xf32, #tpu.memory_space<vmem>>, vector<1x8x128xf32>
      %947 = vector.shape_cast %946 : vector<1x8x128xf32> to vector<8x128xf32>
      %948 = vector.shape_cast %913 : vector<8x128xf32> to vector<1x8x128xf32>
      tpu.vector_store %arg5[%c1_362, %c0_363, %c0_364], %948 {strides = array<i32>} : memref<2x8x128xf32, #tpu.memory_space<vmem>>, vector<1x8x128xf32>,
      %c1_365 = arith.constant 1 : index
      %c0_366 = arith.constant 0 : index
      %c0_367 = arith.constant 0 : index
      %949 = vector.load %arg6[%c1_365, %c0_366, %c0_367] : memref<2x8x128xf32, #tpu.memory_space<vmem>>, vector<1x8x128xf32>
      %950 = vector.shape_cast %949 : vector<1x8x128xf32> to vector<8x128xf32>
      %951 = vector.shape_cast %916 : vector<8x128xf32> to vector<1x8x128xf32>
      tpu.vector_store %arg6[%c1_365, %c0_366, %c0_367], %951 {strides = array<i32>} : memref<2x8x128xf32, #tpu.memory_space<vmem>>, vector<1x8x128xf32>,
    } else {
    }
    return
  }
  func.func @transform_0(%arg0: i32) -> (i32, i32, i32, i32) {
    %c0_i32 = arith.constant 0 : i32
    %c0_i32_0 = arith.constant 0 : i32
    %c0_i32_1 = arith.constant 0 : i32
    %c0_i32_2 = arith.constant 0 : i32
    return %c0_i32, %arg0, %c0_i32_0, %c0_i32_1 : i32, i32, i32, i32
  }
  func.func @transform_1(%arg0: i32) -> (i32, i32, i32) {
    %c0_i32 = arith.constant 0 : i32
    %c0_i32_0 = arith.constant 0 : i32
    %c0_i32_1 = arith.constant 0 : i32
    %c0_i32_2 = arith.constant 0 : i32
    return %c0_i32, %c0_i32_0, %c0_i32_1 : i32, i32, i32
  }
  func.func @transform_2(%arg0: i32) -> (i32, i32) {
    %c0_i32 = arith.constant 0 : i32
    %c0_i32_0 = arith.constant 0 : i32
    %c0_i32_1 = arith.constant 0 : i32
    return %c0_i32, %c0_i32_0 : i32, i32
  }
  func.func @transform_3(%arg0: i32) -> (i32, i32, i32, i32) {
    %c0_i32 = arith.constant 0 : i32
    %c0_i32_0 = arith.constant 0 : i32
    %c0_i32_1 = arith.constant 0 : i32
    %c0_i32_2 = arith.constant 0 : i32
    return %c0_i32, %arg0, %c0_i32_0, %c0_i32_1 : i32, i32, i32, i32
  }
  func.func @transform_4(%arg0: i32) -> (i32, i32, i32) {
    %c0_i32 = arith.constant 0 : i32
    %c0_i32_0 = arith.constant 0 : i32
    %c0_i32_1 = arith.constant 0 : i32
    %c0_i32_2 = arith.constant 0 : i32
    return %c0_i32, %c0_i32_0, %c0_i32_1 : i32, i32, i32
  }
  func.func @transform_5(%arg0: i32) -> (i32, i32, i32) {
    %c0_i32 = arith.constant 0 : i32
    %c0_i32_0 = arith.constant 0 : i32
    %c0_i32_1 = arith.constant 0 : i32
    %c0_i32_2 = arith.constant 0 : i32
    return %c0_i32, %c0_i32_0, %c0_i32_1 : i32, i32, i32
  }
}

</mosaic_0001>

<bundles_post_ra>
// kernel: tpu_custom_call.1
= control target key start
LH: loop header
LB: loop body
LE: loop exit
PB: predicated region body
PF: predicated region fallthrough
CT: control target
= control target key end

     0   :  { %11 = vsyncpa [#allocation5], 0  ;;  %s7921_s0 = inlined_call_operand.hbm [shape: bf16[2,8,8,512], index: 0, kind: input, shape index: {}]   ;;  %s7922_s1 = inlined_call_operand.hbm [shape: bf16[2,128,512], index: 1, kind: input, shape index: {}]   ;;  %s7923_s2 = inlined_call_operand.vmem [shape: s32[8,1], index: 2, kind: input, shape index: {}]   ;;  %s7924_s3 = inlined_call_operand.hbm [shape: f32[2,8,8,128], index: 3, kind: output, shape index: {0}]   ;;  %s7925_s4 = inlined_call_operand.hbm [shape: f32[2,8,128], index: 4, kind: output, shape index: {1}]   ;;  %s7926_s5 = inlined_call_operand.hbm [shape: f32[2,8,128], index: 5, kind: output, shape index: {2}]  }
   0x1   :  { %12 = vsyncpa [#allocation8], 0 }
   0x2   :  { %13 = vsyncpa [#allocation6], 0 }
   0x3   :  { %14 = vsyncpa [#allocation11], 0  ;;  %s19_s20 = sshll.u32 %s7921_s0, 4  ;;  %s7628_s21 = smov [#allocation4]   ;;  %s20_s20 = int_to_ptr.hbm [resolvable:$true] %s19_s20 }
   0x4   :  { %s21_s22 = sshll.u32 %s7628_s21, 4  ;;  %s32_s25 = sshll.u32 %s7922_s1, 4  ;;  %s22_s22 = int_to_ptr.vmem [resolvable:$true] %s21_s22  ;;  %s33_s25 = int_to_ptr.hbm [resolvable:$true] %s32_s25 }
   0x5   :  { %s7629_s26 = smov 256   ;;  %s7630_s27 = smov 16  }
   0x6   :  { %27 = dma.hbm_to_vmem [thread:$0]  %s20_s20, 4096, %s22_s22, [#allocation5], %s7629_s26, %s7629_s26, %s7630_s27  }
   0x7   :  { %s7631_s28 = smov [#allocation7]  }
   0x8   :  { %s34_s29 = sshll.u32 %s7631_s28, 4  ;;  %s35_s29 = int_to_ptr.vmem [resolvable:$true] %s34_s29 }
   0x9   :  { %40 = dma.hbm_to_vmem [thread:$0]  %s33_s25, 8192, %s35_s29, [#allocation8], %s7629_s26, %s7629_s26, %s7630_s27  }
   0xa   :  { %7620 = dma.done.wait [#allocation5], 4096  }
   0xb   :  { %7621 = vsyncadd [#allocation5], 4294963200 }
   0xc   :  { %7622 = dma.done.wait [#allocation8], 8192  }
   0xd   :  { %7623 = vsyncadd [#allocation8], 4294959104  ;;  %v4839_v0 = vld [vmem:[#allocation7 + $0xe0] sm:$0xf]  ;;  %v6819_v1 = vld [vmem:[#allocation7 + $0xec] sm:$0xf0] }
   0xe   :  { %v6817_v2 = vld [vmem:[#allocation7 + $0xe4] sm:$0xf]  ;;  %v4840_v3 = vor.u32 %v6819_v1, %v4839_v0  ;;  %v4841_v4 = vld [vmem:[#allocation7 + $0xf0] sm:$0xf0]  ;;  %v4847_v5 = vld [vmem:[#allocation7 + $0xe8] sm:$0xf] }
   0xf   :  { %v6820_v6 = vld [vmem:[#allocation7 + $0xf4] sm:$0xf0]  ;;  %v4844_v7 = vor.u32 %v6817_v2, %v4841_v4  ;;  %v6818_v9 = vld [vmem:[#allocation7 + $0xec] sm:$0xf]  ;;  %v4849_v10 = vld [vmem:[#allocation7 + $0xf8] sm:$0xf0] }
  0x10   :  { %v4848_v8 = vor.u32 %v6820_v6, %v4847_v5  ;;  %v4823_v11 = vld [vmem:[#allocation7 + $0xc0] sm:$0xf]  ;;  %262 = vmatpush.bf16.msra.mxu0 %v4840_v3  ;;  %v4852_v12 = vor.u32 %v6818_v9, %v4849_v10  ;;  %v6815_v13 = vld [vmem:[#allocation7 + $0xcc] sm:$0xf0]  ;;  %v6813_v14 = vld [vmem:[#allocation7 + $0xc4] sm:$0xf] }
  0x11   :  { %v4825_v15 = vld [vmem:[#allocation7 + $0xd0] sm:$0xf0]  ;;  %275 = vmatpush.bf16.msra.mxu1 %v4844_v7  ;;  %v4824_v16 = vor.u32 %v6815_v13, %v4823_v11  ;;  %v4831_v18 = vld [vmem:[#allocation7 + $0xc8] sm:$0xf]  ;;  %v6816_v19 = vld [vmem:[#allocation7 + $0xd4] sm:$0xf0] }
  0x12   :  { %288 = vmatpush.bf16.msra.mxu2 %v4848_v8  ;;  %v4828_v17 = vor.u32 %v6813_v14, %v4825_v15  ;;  %v6814_v20 = vld [vmem:[#allocation7 + $0xcc] sm:$0xf]  ;;  %301 = vmatpush.bf16.msra.mxu3 %v4852_v12  ;;  %v4832_v21 = vor.u32 %v6816_v19, %v4831_v18  ;;  %v4833_v22 = vld [vmem:[#allocation7 + $0xd8] sm:$0xf0]  ;;  %v4807_v23 = vld [vmem:[#allocation7 + $0xa0] sm:$0xf] }
  0x13   :  { %v6811_v24 = vld [vmem:[#allocation7 + $0xac] sm:$0xf0]  ;;  %v4836_v25 = vor.u32 %v6814_v20, %v4833_v22  ;;  %v6809_v26 = vld [vmem:[#allocation7 + $0xa4] sm:$0xf]  ;;  %v4809_v27 = vld [vmem:[#allocation7 + $0xb0] sm:$0xf0] }
  0x14   :  { %v4815_v28 = vld [vmem:[#allocation7 + $0xa8] sm:$0xf]  ;;  %263 = vmatpush.bf16.msra.mxu0 %v4824_v16  ;;  %v4808_v29 = vor.u32 %v6811_v24, %v4807_v23  ;;  %v6812_v30 = vld [vmem:[#allocation7 + $0xb4] sm:$0xf0]  ;;  %v6810_v31 = vld [vmem:[#allocation7 + $0xac] sm:$0xf]  ;;  %v4812_v33 = vor.u32 %v6809_v26, %v4809_v27 }
  0x15   :  { %v4817_v32 = vld [vmem:[#allocation7 + $0xb8] sm:$0xf0]  ;;  %276 = vmatpush.bf16.msra.mxu1 %v4828_v17  ;;  %v4816_v34 = vor.u32 %v6812_v30, %v4815_v28  ;;  %v4791_v35 = vld [vmem:[#allocation7 + $0x80] sm:$0xf]  ;;  %v6807_v36 = vld [vmem:[#allocation7 + $0x8c] sm:$0xf0] }
  0x16   :  { %289 = vmatpush.bf16.msra.mxu2 %v4832_v21  ;;  %v6805_v37 = vld [vmem:[#allocation7 + $0x84] sm:$0xf]  ;;  %302 = vmatpush.bf16.msra.mxu3 %v4836_v25  ;;  %v4820_v38 = vor.u32 %v6810_v31, %v4817_v32  ;;  %v4793_v39 = vld [vmem:[#allocation7 + $0x90] sm:$0xf0]  ;;  %v4799_v40 = vld [vmem:[#allocation7 + $0x88] sm:$0xf]  ;;  %v4792_v44 = vor.u32 %v6807_v36, %v4791_v35 }
  0x17   :  { %v6808_v41 = vld [vmem:[#allocation7 + $0x94] sm:$0xf0]  ;;  %v6806_v42 = vld [vmem:[#allocation7 + $0x8c] sm:$0xf]  ;;  %v4801_v43 = vld [vmem:[#allocation7 + $0x98] sm:$0xf0]  ;;  %v4796_v45 = vor.u32 %v6805_v37, %v4793_v39 }
  0x18   :  { %264 = vmatpush.bf16.msra.mxu0 %v4808_v29  ;;  %v4800_v46 = vor.u32 %v6808_v41, %v4799_v40  ;;  %v4775_v47 = vld [vmem:[#allocation7 + $0x60] sm:$0xf]  ;;  %v6803_v48 = vld [vmem:[#allocation7 + $0x6c] sm:$0xf0]  ;;  %v6801_v49 = vld [vmem:[#allocation7 + $0x64] sm:$0xf]  ;;  %v4804_v50 = vor.u32 %v6806_v42, %v4801_v43 }
  0x19   :  { %277 = vmatpush.bf16.msra.mxu1 %v4812_v33  ;;  %v4777_v51 = vld [vmem:[#allocation7 + $0x70] sm:$0xf0]  ;;  %v4783_v52 = vld [vmem:[#allocation7 + $0x68] sm:$0xf]  ;;  %v6804_v53 = vld [vmem:[#allocation7 + $0x74] sm:$0xf0]  ;;  %v4776_v56 = vor.u32 %v6803_v48, %v4775_v47 }
  0x1a   :  { %290 = vmatpush.bf16.msra.mxu2 %v4816_v34  ;;  %303 = vmatpush.bf16.msra.mxu3 %v4820_v38  ;;  %v6802_v54 = vld [vmem:[#allocation7 + $0x6c] sm:$0xf]  ;;  %v4785_v55 = vld [vmem:[#allocation7 + $0x78] sm:$0xf0]  ;;  %v4780_v57 = vor.u32 %v6801_v49, %v4777_v51  ;;  %v4784_v58 = vor.u32 %v6804_v53, %v4783_v52  ;;  %v4759_v59 = vld [vmem:[#allocation7 + $0x40] sm:$0xf] }
  0x1b   :  { %v6799_v60 = vld [vmem:[#allocation7 + $0x4c] sm:$0xf0]  ;;  %v6797_v61 = vld [vmem:[#allocation7 + $0x44] sm:$0xf]  ;;  %v4788_v62 = vor.u32 %v6802_v54, %v4785_v55  ;;  %v4761_v63 = vld [vmem:[#allocation7 + $0x50] sm:$0xf0] }
  0x1c   :  { %265 = vmatpush.bf16.msra.mxu0 %v4792_v44  ;;  %v4767_v0 = vld [vmem:[#allocation7 + $0x48] sm:$0xf]  ;;  %v6800_v1 = vld [vmem:[#allocation7 + $0x54] sm:$0xf0]  ;;  %v6798_v2 = vld [vmem:[#allocation7 + $0x4c] sm:$0xf]  ;;  %v4760_v4 = vor.u32 %v6799_v60, %v4759_v59  ;;  %v4764_v5 = vor.u32 %v6797_v61, %v4761_v63 }
  0x1d   :  { %278 = vmatpush.bf16.msra.mxu1 %v4796_v45  ;;  %v4769_v3 = vld [vmem:[#allocation7 + $0x58] sm:$0xf0]  ;;  %v4768_v6 = vor.u32 %v6800_v1, %v4767_v0  ;;  %v4743_v7 = vld [vmem:[#allocation7 + $0x20] sm:$0xf]  ;;  %v6795_v8 = vld [vmem:[#allocation7 + $0x2c] sm:$0xf0] }
  0x1e   :  { %291 = vmatpush.bf16.msra.mxu2 %v4800_v46  ;;  %304 = vmatpush.bf16.msra.mxu3 %v4804_v50  ;;  %v6793_v9 = vld [vmem:[#allocation7 + $0x24] sm:$0xf]  ;;  %v4772_v10 = vor.u32 %v6798_v2, %v4769_v3  ;;  %v4745_v11 = vld [vmem:[#allocation7 + $0x30] sm:$0xf0]  ;;  %v4751_v12 = vld [vmem:[#allocation7 + $0x28] sm:$0xf]  ;;  %v4744_v16 = vor.u32 %v6795_v8, %v4743_v7 }
  0x1f   :  { %v6796_v13 = vld [vmem:[#allocation7 + $0x34] sm:$0xf0]  ;;  %v6794_v14 = vld [vmem:[#allocation7 + $0x2c] sm:$0xf]  ;;  %v4753_v15 = vld [vmem:[#allocation7 + $0x38] sm:$0xf0]  ;;  %v4748_v20 = vor.u32 %v6793_v9, %v4745_v11 }
  0x20   :  { %266 = vmatpush.bf16.msra.mxu0 %v4776_v56  ;;  %v4727_v17 = vld [vmem:[#allocation7] sm:$0xf]  ;;  %v6791_v18 = vld [vmem:[#allocation7 + $0xc] sm:$0xf0]  ;;  %v6789_v19 = vld [vmem:[#allocation7 + $0x4] sm:$0xf]  ;;  %v4752_v21 = vor.u32 %v6796_v13, %v4751_v12  ;;  %v4756_v24 = vor.u32 %v6794_v14, %v4753_v15 }
  0x21   :  { %279 = vmatpush.bf16.msra.mxu1 %v4780_v57  ;;  %v4729_v22 = vld [vmem:[#allocation7 + $0x10] sm:$0xf0]  ;;  %v4735_v23 = vld [vmem:[#allocation7 + $0x8] sm:$0xf]  ;;  %v6792_v25 = vld [vmem:[#allocation7 + $0x14] sm:$0xf0]  ;;  %v4728_v32 = vor.u32 %v6791_v18, %v4727_v17 }
  0x22   :  { %292 = vmatpush.bf16.msra.mxu2 %v4784_v58  ;;  %305 = vmatpush.bf16.msra.mxu3 %v4788_v62  ;;  %v6790_v26 = vld [vmem:[#allocation7 + $0xc] sm:$0xf]  ;;  %v4737_v27 = vld [vmem:[#allocation7 + $0x18] sm:$0xf0]  ;;  %v7632_v28 = vmov 0   ;;  %v4732_v36 = vor.u32 %v6789_v19, %v4729_v22  ;;  %v4736_v37 = vor.u32 %v6792_v25, %v4735_v23  ;;  %v7681_v53 = vld [vmem:[%s7923_s2] sm:$0xff] }
  0x23   :  { %7336 = vset.pattern.permute.xlu0 %v7632_v28  ;;  %v4968_v29 = vld [vmem:[#allocation7 + $0x1e0] sm:$0xf]  ;;  %v6851_v30 = vld [vmem:[#allocation7 + $0x1ec] sm:$0xf0]  ;;  %v6849_v31 = vld [vmem:[#allocation7 + $0x1e4] sm:$0xf]  ;;  %7337 = vset.pattern.permute.xlu1 %v7632_v28  ;;  %v4740_v40 = vor.u32 %v6790_v26, %v4737_v27 }
  0x24   :  { %267 = vmatpush.bf16.msra.mxu0 %v4760_v4  ;;  %7338 = vset.pattern.permute.xlu2 %v7632_v28  ;;  %v4970_v33 = vld [vmem:[#allocation7 + $0x1f0] sm:$0xf0]  ;;  %v4976_v34 = vld [vmem:[#allocation7 + $0x1e8] sm:$0xf]  ;;  %v6852_v35 = vld [vmem:[#allocation7 + $0x1f4] sm:$0xf0]  ;;  %v4969_v41 = vor.u32 %v6851_v30, %v4968_v29 }
  0x25   :  { %280 = vmatpush.bf16.msra.mxu1 %v4764_v5  ;;  %v6850_v38 = vld [vmem:[#allocation7 + $0x1ec] sm:$0xf]  ;;  %v4978_v39 = vld [vmem:[#allocation7 + $0x1f8] sm:$0xf0]  ;;  %v4973_v42 = vor.u32 %v6849_v31, %v4970_v33  ;;  %v4977_v43 = vor.u32 %v6852_v35, %v4976_v34  ;;  %v4952_v44 = vld [vmem:[#allocation7 + $0x1c0] sm:$0xf] }
  0x26   :  { %293 = vmatpush.bf16.msra.mxu2 %v4768_v6  ;;  %306 = vmatpush.bf16.msra.mxu3 %v4772_v10  ;;  %v6847_v45 = vld [vmem:[#allocation7 + $0x1cc] sm:$0xf0]  ;;  %v6845_v46 = vld [vmem:[#allocation7 + $0x1c4] sm:$0xf]  ;;  %v4981_v47 = vor.u32 %v6850_v38, %v4978_v39  ;;  %v4954_v48 = vld [vmem:[#allocation7 + $0x1d0] sm:$0xf0] }
  0x27   :  { %v4960_v49 = vld [vmem:[#allocation7 + $0x1c8] sm:$0xf]  ;;  %v6848_v50 = vld [vmem:[#allocation7 + $0x1d4] sm:$0xf0]  ;;  %v6846_v51 = vld [vmem:[#allocation7 + $0x1cc] sm:$0xf]  ;;  %v4953_v54 = vor.u32 %v6847_v45, %v4952_v44  ;;  %v4957_v55 = vor.u32 %v6845_v46, %v4954_v48 }
  0x28   :  { %268 = vmatpush.bf16.msra.mxu0 %v4744_v16  ;;  %v4962_v52 = vld [vmem:[#allocation7 + $0x1d8] sm:$0xf0]  ;;  %vm4853_vm0 = vcmp.gt.s32.totalorder %v7681_v53, 0  ;;  %v4961_v56 = vor.u32 %v6848_v50, %v4960_v49  ;;  %v4936_v57 = vld [vmem:[#allocation7 + $0x1a0] sm:$0xf]  ;;  %v7633_v60 = vmov 0.0|0.0  }
  0x29   :  { %281 = vmatpush.bf16.msra.mxu1 %v4748_v20  ;;  %v6843_v58 = vld [vmem:[#allocation7 + $0x1ac] sm:$0xf0]  ;;  %v6841_v59 = vld [vmem:[#allocation7 + $0x1a4] sm:$0xf]  ;;  %v4965_v61 = vor.u32 %v6846_v51, %v4962_v52  ;;  %v4938_v62 = vld [vmem:[#allocation7 + $0x1b0] sm:$0xf0] }
  0x2a   :  { %294 = vmatpush.bf16.msra.mxu2 %v4752_v21  ;;  %307 = vmatpush.bf16.msra.mxu3 %v4756_v24  ;;  %v4944_v63 = vld [vmem:[#allocation7 + $0x1a8] sm:$0xf]  ;;  %v6844_v0 = vld [vmem:[#allocation7 + $0x1b4] sm:$0xf0]  ;;  %v6842_v1 = vld [vmem:[#allocation7 + $0x1ac] sm:$0xf]  ;;  %v4937_v4 = vor.u32 %v6843_v58, %v4936_v57  ;;  %v4941_v5 = vor.u32 %v6841_v59, %v4938_v62 }
  0x2b   :  { %v4946_v2 = vld [vmem:[#allocation7 + $0x1b8] sm:$0xf0]  ;;  %v7690_v3 = vsel %vm4853_vm0, 1, %v7632_v28  ;;  %v4945_v6 = vor.u32 %v6844_v0, %v4944_v63  ;;  %v4920_v7 = vld [vmem:[#allocation7 + $0x180] sm:$0xf]  ;;  %vm4982_vm1 = vcmp.gt.s32.totalorder %v7681_v53, 7 }
  0x2c   :  { %269 = vmatpush.bf16.msra.mxu0 %v4728_v32  ;;  %v6839_v8 = vld [vmem:[#allocation7 + $0x18c] sm:$0xf0]  ;;  %v6837_v9 = vld [vmem:[#allocation7 + $0x184] sm:$0xf]  ;;  %v4949_v10 = vor.u32 %v6842_v1, %v4946_v2  ;;  %v4922_v11 = vld [vmem:[#allocation7 + $0x190] sm:$0xf0]  ;;  %344 = vperm.xlu0 %7336, %v7690_v3  }
  0x2d   :  { %282 = vmatpush.bf16.msra.mxu1 %v4732_v36  ;;  %v4928_v12 = vld [vmem:[#allocation7 + $0x188] sm:$0xf]  ;;  %v6840_v13 = vld [vmem:[#allocation7 + $0x194] sm:$0xf0]  ;;  %v6838_v14 = vld [vmem:[#allocation7 + $0x18c] sm:$0xf]  ;;  %v4921_v16 = vor.u32 %v6839_v8, %v4920_v7  ;;  %v4925_v17 = vor.u32 %v6837_v9, %v4922_v11 }
  0x2e   :  { %295 = vmatpush.bf16.msra.mxu2 %v4736_v37  ;;  %308 = vmatpush.bf16.msra.mxu3 %v4740_v40  ;;  %v4930_v15 = vld [vmem:[#allocation7 + $0x198] sm:$0xf0]  ;;  %v4929_v18 = vor.u32 %v6840_v13, %v4928_v12  ;;  %v4904_v19 = vld [vmem:[#allocation7 + $0x160] sm:$0xf]  ;;  %v6835_v20 = vld [vmem:[#allocation7 + $0x16c] sm:$0xf0] }
  0x2f   :  { %270 = vmatmul.bf16.vlgmr.msra.gmra.mxu0 %v7633_v60  ;;  %v6833_v21 = vld [vmem:[#allocation7 + $0x164] sm:$0xf]  ;;  %v4933_v22 = vor.u32 %v6838_v14, %v4930_v15  ;;  %v4906_v23 = vld [vmem:[#allocation7 + $0x170] sm:$0xf0]  ;;  %v4912_v24 = vld [vmem:[#allocation7 + $0x168] sm:$0xf]  ;;  %v4905_v30 = vor.u32 %v6835_v20, %v4904_v19 }
  0x30   :  { %548 = vmatpush.bf16.msrb.mxu0 %v4969_v41  ;;  %283 = vmatmul.bf16.vlgmr.msra.gmra.mxu1 %v7633_v60  ;;  %v6836_v25 = vld [vmem:[#allocation7 + $0x174] sm:$0xf0]  ;;  %v6834_v26 = vld [vmem:[#allocation7 + $0x16c] sm:$0xf]  ;;  %v4914_v27 = vld [vmem:[#allocation7 + $0x178] sm:$0xf0]  ;;  %v4909_v31 = vor.u32 %v6833_v21, %v4906_v23 }
  0x31   :  { %561 = vmatpush.bf16.msrb.mxu1 %v4973_v42  ;;  %296 = vmatmul.bf16.vlgmr.msra.gmra.mxu2 %v7633_v60  ;;  %v7696_v29 = vsel %vm4982_vm1, 1, %v7632_v28  ;;  %v4913_v32 = vor.u32 %v6836_v25, %v4912_v24  ;;  %v4888_v33 = vld [vmem:[#allocation7 + $0x140] sm:$0xf]  ;;  %v6831_v34 = vld [vmem:[#allocation7 + $0x14c] sm:$0xf0]  ;;  %v4917_v36 = vor.u32 %v6834_v26, %v4914_v27  ;;  %vm5627_vm2 = vcmp.gt.s32.totalorder %v7681_v53, 3 }
  0x32   :  { %574 = vmatpush.bf16.msrb.mxu2 %v4977_v43  ;;  %587 = vmatpush.bf16.msrb.mxu3 %v4981_v47  ;;  %v6829_v35 = vld [vmem:[#allocation7 + $0x144] sm:$0xf]  ;;  %v4890_v37 = vld [vmem:[#allocation7 + $0x150] sm:$0xf0]  ;;  %v4896_v38 = vld [vmem:[#allocation7 + $0x148] sm:$0xf]  ;;  %v4889_v42 = vor.u32 %v6831_v34, %v4888_v33 }
  0x33   :  { %309 = vmatmul.bf16.vlgmr.msra.gmra.mxu3 %v7633_v60  ;;  %v6832_v39 = vld [vmem:[#allocation7 + $0x154] sm:$0xf0]  ;;  %v6830_v40 = vld [vmem:[#allocation7 + $0x14c] sm:$0xf]  ;;  %v4898_v41 = vld [vmem:[#allocation7 + $0x158] sm:$0xf0]  ;;  %v4893_v43 = vor.u32 %v6829_v35, %v4890_v37 }
  0x34   :  { %549 = vmatpush.bf16.msrb.mxu0 %v4953_v54  ;;  %631 = vperm.xlu0 %7336, %v7696_v29   ;;  %v4897_v44 = vor.u32 %v6832_v39, %v4896_v38  ;;  %v4872_v45 = vld [vmem:[#allocation7 + $0x120] sm:$0xf]  ;;  %v6827_v46 = vld [vmem:[#allocation7 + $0x12c] sm:$0xf0]  ;;  %v6825_v47 = vld [vmem:[#allocation7 + $0x124] sm:$0xf]  ;;  %v4901_v48 = vor.u32 %v6830_v40, %v4898_v41 }
  0x35   :  { %562 = vmatpush.bf16.msrb.mxu1 %v4957_v55  ;;  %v4874_v49 = vld [vmem:[#allocation7 + $0x130] sm:$0xf0]  ;;  %v4880_v50 = vld [vmem:[#allocation7 + $0x128] sm:$0xf]  ;;  %v6828_v51 = vld [vmem:[#allocation7 + $0x134] sm:$0xf0] }
  0x36   :  { %575 = vmatpush.bf16.msrb.mxu2 %v4961_v56  ;;  %588 = vmatpush.bf16.msrb.mxu3 %v4965_v61  ;;  %v6826_v52 = vld [vmem:[#allocation7 + $0x12c] sm:$0xf]  ;;  %v4882_v54 = vld [vmem:[#allocation7 + $0x138] sm:$0xf0]  ;;  %v2064_v55 = vsel %vm5627_vm2, 1, %v7632_v28  ;;  %v4873_v56 = vor.u32 %v6827_v46, %v4872_v45  ;;  %v4877_v57 = vor.u32 %v6825_v47, %v4874_v49  ;;  %v4881_v58 = vor.u32 %v6828_v51, %v4880_v50  ;;  %s4689_s10 = sshll.u32 %s7925_s4, 4  ;;  %s4690_s10 = int_to_ptr.hbm [resolvable:$true] %s4689_s10 }
  0x37   :  { %v4856_v59 = vld [vmem:[#allocation7 + $0x100] sm:$0xf]  ;;  %v6823_v61 = vld [vmem:[#allocation7 + $0x10c] sm:$0xf0]  ;;  %v6821_v62 = vld [vmem:[#allocation7 + $0x104] sm:$0xf]  ;;  %v4885_v63 = vor.u32 %v6826_v52, %v4882_v54 }
  0x38   :  { %550 = vmatpush.bf16.msrb.mxu0 %v4937_v4  ;;  %v4858_v0 = vld [vmem:[#allocation7 + $0x110] sm:$0xf0]  ;;  %v4864_v1 = vld [vmem:[#allocation7 + $0x108] sm:$0xf]  ;;  %v6824_v2 = vld [vmem:[#allocation7 + $0x114] sm:$0xf0] }
  0x39   :  { %563 = vmatpush.bf16.msrb.mxu1 %v4941_v5  ;;  %v6822_v4 = vld [vmem:[#allocation7 + $0x10c] sm:$0xf]  ;;  %v4866_v5 = vld [vmem:[#allocation7 + $0x118] sm:$0xf0]  ;;  %v4861_v7 = vor.u32 %v6821_v62, %v4858_v0  ;;  %v4865_v8 = vor.u32 %v6824_v2, %v4864_v1  ;;  %vm5240_vm3 = vcmp.gt.s32.totalorder %v7681_v53, 6  ;;  %vm5111_vm4 = vcmp.gt.s32.totalorder %v7681_v53, 1 }
  0x3a   :  { %576 = vmatpush.bf16.msrb.mxu2 %v4945_v6  ;;  %589 = vmatpush.bf16.msrb.mxu3 %v4949_v10  ;;  %v4857_v6 = vor.u32 %v6823_v61, %v4856_v59  ;;  %v4869_v9 = vor.u32 %v6822_v4, %v4866_v5  ;;  %v7707_v10 = vsel %vm5240_vm3, 1, %v7632_v28  ;;  %v5097_v11 = vld [vmem:[#allocation7 + $0xe0] sm:$0xf]  ;;  %v6883_v12 = vld [vmem:[#allocation7 + $0xec] sm:$0xf0]  ;;  %vm5756_vm7 = vcmp.gt.s32.totalorder %v7681_v53, 4 }
  0x3b   :  { %v6881_v13 = vld [vmem:[#allocation7 + $0xe4] sm:$0xf]  ;;  %v5098_v14 = vor.u32 %v6883_v12, %v5097_v11  ;;  %v5099_v15 = vld [vmem:[#allocation7 + $0xf0] sm:$0xf0]  ;;  %v6882_v20 = vld [vmem:[#allocation7 + $0xec] sm:$0xf] }
  0x3c   :  { %551 = vmatpush.bf16.msrb.mxu0 %v4921_v16  ;;  %2066 = vperm.xlu0 %7336, %v2064_v55   ;;  %v5105_v16 = vld [vmem:[#allocation7 + $0xe8] sm:$0xf]  ;;  %v5107_v21 = vld [vmem:[#allocation7 + $0xf8] sm:$0xf0]  ;;  %v6879_v23 = vld [vmem:[#allocation7 + $0xcc] sm:$0xf0] }
  0x3d   :  { %564 = vmatpush.bf16.msrb.mxu1 %v4925_v17  ;;  %v6884_v17 = vld [vmem:[#allocation7 + $0xf4] sm:$0xf0]  ;;  %v6877_v24 = vld [vmem:[#allocation7 + $0xc4] sm:$0xf]  ;;  %v5083_v25 = vld [vmem:[#allocation7 + $0xd0] sm:$0xf0] }
  0x3e   :  { %577 = vmatpush.bf16.msrb.mxu2 %v4929_v18  ;;  %590 = vmatpush.bf16.msrb.mxu3 %v4933_v22  ;;  %v5102_v18 = vor.u32 %v6881_v13, %v5099_v15  ;;  %v5106_v19 = vor.u32 %v6884_v17, %v5105_v16  ;;  %v5081_v22 = vld [vmem:[#allocation7 + $0xc0] sm:$0xf]  ;;  %v5089_v26 = vld [vmem:[#allocation7 + $0xc8] sm:$0xf]  ;;  %v6880_v27 = vld [vmem:[#allocation7 + $0xd4] sm:$0xf0] }
  0x3f   :  { %v5091_v33 = vld [vmem:[#allocation7 + $0xd8] sm:$0xf0]  ;;  %v5065_v35 = vld [vmem:[#allocation7 + $0xa0] sm:$0xf]  ;;  %v6873_v37 = vld [vmem:[#allocation7 + $0xa4] sm:$0xf] }
  0x40   :  { %552 = vmatpush.bf16.msrb.mxu0 %v4905_v30  ;;  %v5086_v30 = vor.u32 %v6877_v24, %v5083_v25  ;;  %v5067_v39 = vld [vmem:[#allocation7 + $0xb0] sm:$0xf0]  ;;  %v5073_v40 = vld [vmem:[#allocation7 + $0xa8] sm:$0xf]  ;;  %v6876_v41 = vld [vmem:[#allocation7 + $0xb4] sm:$0xf0] }
  0x41   :  { %565 = vmatpush.bf16.msrb.mxu1 %v4909_v31  ;;  %v5090_v31 = vor.u32 %v6880_v27, %v5089_v26  ;;  %v5075_v45 = vld [vmem:[#allocation7 + $0xb8] sm:$0xf0]  ;;  %v5049_v47 = vld [vmem:[#allocation7 + $0x80] sm:$0xf]  ;;  %v6869_v49 = vld [vmem:[#allocation7 + $0x84] sm:$0xf] }
  0x42   :  { %578 = vmatpush.bf16.msrb.mxu2 %v4913_v32  ;;  %591 = vmatpush.bf16.msrb.mxu3 %v4917_v36  ;;  %v6878_v32 = vld [vmem:[#allocation7 + $0xcc] sm:$0xf]  ;;  %v6875_v36 = vld [vmem:[#allocation7 + $0xac] sm:$0xf0]  ;;  %v5051_v51 = vld [vmem:[#allocation7 + $0x90] sm:$0xf0] }
  0x43   :  { %v5094_v34 = vor.u32 %v6878_v32, %v5091_v33  ;;  %v5066_v38 = vor.u32 %v6875_v36, %v5065_v35  ;;  %v5057_v52 = vld [vmem:[#allocation7 + $0x88] sm:$0xf]  ;;  %v6872_v54 = vld [vmem:[#allocation7 + $0x94] sm:$0xf0]  ;;  %v5033_v61 = vld [vmem:[#allocation7 + $0x60] sm:$0xf] }
  0x44   :  { %553 = vmatpush.bf16.msrb.mxu0 %v4889_v42  ;;  %2927 = vperm.xlu0 %7336, %v2064_v55   ;;  %v5070_v42 = vor.u32 %v6873_v37, %v5067_v39  ;;  %v5054_v55 = vor.u32 %v6869_v49, %v5051_v51  ;;  %v6867_v62 = vld [vmem:[#allocation7 + $0x6c] sm:$0xf0]  ;;  %v5035_v1 = vld [vmem:[#allocation7 + $0x70] sm:$0xf0]  ;;  %v5041_v2 = vld [vmem:[#allocation7 + $0x68] sm:$0xf] }
  0x45   :  { %566 = vmatpush.bf16.msrb.mxu1 %v4893_v43  ;;  %v5074_v43 = vor.u32 %v6876_v41, %v5073_v40  ;;  %v5034_v0 = vor.u32 %v6867_v62, %v5033_v61  ;;  %v6868_v4 = vld [vmem:[#allocation7 + $0x74] sm:$0xf0]  ;;  %v5017_v11 = vld [vmem:[#allocation7 + $0x40] sm:$0xf]  ;;  %v6863_v12 = vld [vmem:[#allocation7 + $0x4c] sm:$0xf0] }
  0x46   :  { %579 = vmatpush.bf16.msrb.mxu2 %v4897_v44  ;;  %592 = vmatpush.bf16.msrb.mxu3 %v4901_v48  ;;  %v6874_v44 = vld [vmem:[#allocation7 + $0xac] sm:$0xf]  ;;  %v6871_v48 = vld [vmem:[#allocation7 + $0x8c] sm:$0xf0]  ;;  %v6861_v13 = vld [vmem:[#allocation7 + $0x44] sm:$0xf] }
  0x47   :  { %v5078_v46 = vor.u32 %v6874_v44, %v5075_v45  ;;  %v5050_v50 = vor.u32 %v6871_v48, %v5049_v47  ;;  %v5019_v15 = vld [vmem:[#allocation7 + $0x50] sm:$0xf0]  ;;  %v5025_v16 = vld [vmem:[#allocation7 + $0x48] sm:$0xf]  ;;  %v6864_v17 = vld [vmem:[#allocation7 + $0x54] sm:$0xf0] }
  0x48   :  { %554 = vmatpush.bf16.msrb.mxu0 %v4873_v56  ;;  %v5058_v56 = vor.u32 %v6872_v54, %v5057_v52  ;;  %v6857_v24 = vld [vmem:[#allocation7 + $0x24] sm:$0xf]  ;;  %v5003_v25 = vld [vmem:[#allocation7 + $0x30] sm:$0xf0]  ;;  %v5009_v26 = vld [vmem:[#allocation7 + $0x28] sm:$0xf] }
  0x49   :  { %567 = vmatpush.bf16.msrb.mxu1 %v4877_v57  ;;  %v6870_v57 = vld [vmem:[#allocation7 + $0x8c] sm:$0xf]  ;;  %v6860_v27 = vld [vmem:[#allocation7 + $0x34] sm:$0xf0]  ;;  %v5011_v33 = vld [vmem:[#allocation7 + $0x38] sm:$0xf0] }
  0x4a   :  { %580 = vmatpush.bf16.msrb.mxu2 %v4881_v58  ;;  %593 = vmatpush.bf16.msrb.mxu3 %v4885_v63  ;;  %v5059_v58 = vld [vmem:[#allocation7 + $0x98] sm:$0xf0]  ;;  %v6865_v63 = vld [vmem:[#allocation7 + $0x64] sm:$0xf]  ;;  %v6858_v32 = vld [vmem:[#allocation7 + $0x2c] sm:$0xf] }
  0x4b   :  { %v5062_v59 = vor.u32 %v6870_v57, %v5059_v58  ;;  %v5038_v5 = vor.u32 %v6865_v63, %v5035_v1  ;;  %v5014_v35 = vor.u32 %v6858_v32, %v5011_v33  ;;  %v4985_v36 = vld [vmem:[#allocation7] sm:$0xf]  ;;  %v6855_v37 = vld [vmem:[#allocation7 + $0xc] sm:$0xf0]  ;;  %v6853_v39 = vld [vmem:[#allocation7 + $0x4] sm:$0xf] }
  0x4c   :  { %555 = vmatpush.bf16.msrb.mxu0 %v4857_v6  ;;  %3788 = vperm.xlu0 %7336, %v7707_v10   ;;  %v5042_v6 = vor.u32 %v6868_v4, %v5041_v2  ;;  %v4987_v40 = vld [vmem:[#allocation7 + $0x10] sm:$0xf0]  ;;  %v4993_v41 = vld [vmem:[#allocation7 + $0x8] sm:$0xf]  ;;  %v6856_v44 = vld [vmem:[#allocation7 + $0x14] sm:$0xf0] }
  0x4d   :  { %568 = vmatpush.bf16.msrb.mxu1 %v4861_v7  ;;  %v6866_v7 = vld [vmem:[#allocation7 + $0x6c] sm:$0xf]  ;;  %v4994_v48 = vor.u32 %v6856_v44, %v4993_v41  ;;  %v6915_v51 = vld [vmem:[#allocation7 + $0x1ec] sm:$0xf0]  ;;  %v5234_v57 = vld [vmem:[#allocation7 + $0x1e8] sm:$0xf] }
  0x4e   :  { %581 = vmatpush.bf16.msrb.mxu2 %v4865_v8  ;;  %594 = vmatpush.bf16.msrb.mxu3 %v4869_v9  ;;  %v5043_v8 = vld [vmem:[#allocation7 + $0x78] sm:$0xf0]  ;;  %v6854_v45 = vld [vmem:[#allocation7 + $0xc] sm:$0xf]  ;;  %v6916_v61 = vld [vmem:[#allocation7 + $0x1f4] sm:$0xf0] }
  0x4f   :  { %556 = vmatmul.bf16.vlgmr.msrb.gmra.mxu0 %v7633_v60  ;;  %v5046_v9 = vor.u32 %v6866_v7, %v5043_v8  ;;  %v7711_v52 = vld [vmem:[#allocation4 + $0x8] sm:$0xff]  ;;  %v5236_v63 = vld [vmem:[#allocation7 + $0x1f8] sm:$0xf0]  ;;  %v5235_v2 = vor.u32 %v6916_v61, %v5234_v57  ;;  %v6909_v7 = vld [vmem:[#allocation7 + $0x1c4] sm:$0xf]  ;;  %vm5498_vm8 = vcmp.gt.s32.totalorder %v7681_v53, 5 }
  0x50   :  { %569 = vmatmul.bf16.vlgmr.msrb.gmra.mxu1 %v7633_v60  ;;  %836 = vmatpush.bf16.msra.mxu0 %v5098_v14  ;;  %v5018_v14 = vor.u32 %v6863_v12, %v5017_v11  ;;  %v6914_v62 = vld [vmem:[#allocation7 + $0x1ec] sm:$0xf]  ;;  %v5212_v11 = vld [vmem:[#allocation7 + $0x1d0] sm:$0xf0]  ;;  %v5218_v12 = vld [vmem:[#allocation7 + $0x1c8] sm:$0xf] }
  0x51   :  { %582 = vmatmul.bf16.vlgmr.msrb.gmra.mxu2 %v7633_v60  ;;  %595 = vmatmul.bf16.vlgmr.msrb.gmra.mxu3 %v7633_v60  ;;  %v5110_v60 = vor.u32 %v6882_v20, %v5107_v21  ;;  %v6862_v20 = vld [vmem:[#allocation7 + $0x4c] sm:$0xf]  ;;  %v5027_v21 = vld [vmem:[#allocation7 + $0x58] sm:$0xf0]  ;;  %v5239_v4 = vor.u32 %v6914_v62, %v5236_v63  ;;  %v6901_v41 = vld [vmem:[#allocation7 + $0x184] sm:$0xf] }
  0x52   :  { %849 = vmatpush.bf16.msra.mxu1 %v5102_v18  ;;  %862 = vmatpush.bf16.msra.mxu2 %v5106_v19  ;;  %v5022_v18 = vor.u32 %v6861_v13, %v5019_v15  ;;  %v5026_v19 = vor.u32 %v6864_v17, %v5025_v16  ;;  %v6912_v15 = vld [vmem:[#allocation7 + $0x1d4] sm:$0xf0]  ;;  %v6910_v16 = vld [vmem:[#allocation7 + $0x1cc] sm:$0xf]  ;;  %v6897_v63 = vld [vmem:[#allocation7 + $0x164] sm:$0xf] }
  0x53   :  { %875 = vmatpush.bf16.msra.mxu3 %v5110_v60  ;;  %v5030_v60 = vor.u32 %v6862_v20, %v5027_v21  ;;  %v5220_v20 = vld [vmem:[#allocation7 + $0x1d8] sm:$0xf0]  ;;  %v5194_v21 = vld [vmem:[#allocation7 + $0x1a0] sm:$0xf]  ;;  %s7635_s11 = smov [#allocation9]   ;;  %s4676_s15 = sshll.u32 %s7924_s3, 4  ;;  %s4677_s15 = int_to_ptr.hbm [resolvable:$true] %s4676_s15 }
  0x54   :  { %4649 = vperm.xlu0 %7336, %v7690_v3   ;;  %v5082_v3 = vor.u32 %v6879_v23, %v5081_v22  ;;  %v5001_v22 = vld [vmem:[#allocation7 + $0x20] sm:$0xf]  ;;  %v6859_v23 = vld [vmem:[#allocation7 + $0x2c] sm:$0xf0]  ;;  %s4674_s12 = sshll.u32 %s7635_s11, 4  ;;  %s7636_s16 = smov [#allocation12]   ;;  %s4675_s12 = int_to_ptr.vmem [resolvable:$true] %s4674_s12 }
  0x55   :  { %s4700_s17 = sshll.u32 %s7636_s16, 4  ;;  %s4702_s20 = sshll.u32 %s7926_s5, 4  ;;  %s4701_s17 = int_to_ptr.vmem [resolvable:$true] %s4700_s17  ;;  %s4703_s20 = int_to_ptr.hbm [resolvable:$true] %s4702_s20 }
  0x56   :  { %837 = vmatpush.bf16.msra.mxu0 %v5082_v3  ;;  %850 = vmatpush.bf16.msra.mxu1 %v5086_v30  ;;  %v5002_v3 = vor.u32 %v6859_v23, %v5001_v22  ;;  %v5006_v30 = vor.u32 %v6857_v24, %v5003_v25  ;;  %v5223_v22 = vor.u32 %v6910_v16, %v5220_v20  ;;  %v6907_v23 = vld [vmem:[#allocation7 + $0x1ac] sm:$0xf0]  ;;  %v6905_v24 = vld [vmem:[#allocation7 + $0x1a4] sm:$0xf]  ;;  %s7637_s3 = smov 128   ;;  %s7638_s4 = smov 8  }
  0x57   :  { %863 = vmatpush.bf16.msra.mxu2 %v5090_v31  ;;  %876 = vmatpush.bf16.msra.mxu3 %v5094_v34  ;;  %v5010_v31 = vor.u32 %v6860_v27, %v5009_v26  ;;  %v67_v34 = vld [vmem:[#allocation4] sm:$0xff]  ;;  %v5195_v25 = vor.u32 %v6907_v23, %v5194_v21  ;;  %v5202_v27 = vld [vmem:[#allocation7 + $0x1a8] sm:$0xf]  ;;  %v6895_v16 = vld [vmem:[#allocation7 + $0x14c] sm:$0xf0] }
  0x58   :  { %v315_v47 = vunpack.c.h.bf16 %v67_v34  ;;  %v5148_v21 = vld [vmem:[#allocation7 + $0x150] sm:$0xf0]  ;;  %v6896_v23 = vld [vmem:[#allocation7 + $0x154] sm:$0xf0] }
  0x5a   :  { %838 = vmatpush.bf16.msra.mxu0 %v5066_v38  ;;  %851 = vmatpush.bf16.msra.mxu1 %v5070_v42  ;;  %v4986_v38 = vor.u32 %v6855_v37, %v4985_v36  ;;  %v314_v42 = vunpack.c.l.bf16 %v67_v34  ;;  %v5204_v34 = vld [vmem:[#allocation7 + $0x1b8] sm:$0xf0] }
  0x5b   :  { %864 = vmatpush.bf16.msra.mxu2 %v5074_v43  ;;  %877 = vmatpush.bf16.msra.mxu3 %v5078_v46  ;;  %v4990_v43 = vor.u32 %v6853_v39, %v4987_v40  ;;  %v4995_v46 = vld [vmem:[#allocation7 + $0x18] sm:$0xf0]  ;;  %v5178_v39 = vld [vmem:[#allocation7 + $0x180] sm:$0xf]  ;;  %v6903_v40 = vld [vmem:[#allocation7 + $0x18c] sm:$0xf0] }
  0x5c   :  { %v4998_v49 = vor.u32 %v6854_v45, %v4995_v46  ;;  %v5179_v44 = vor.u32 %v6903_v40, %v5178_v39  ;;  %v5180_v45 = vld [vmem:[#allocation7 + $0x190] sm:$0xf0]  ;;  %v5186_v46 = vld [vmem:[#allocation7 + $0x188] sm:$0xf] }
  0x5d   :  { %v5138_v39 = vld [vmem:[#allocation7 + $0x128] sm:$0xf] }
  0x5e   :  { %839 = vmatpush.bf16.msra.mxu0 %v5050_v50  ;;  %852 = vmatpush.bf16.msra.mxu1 %v5054_v55  ;;  %v5226_v50 = vld [vmem:[#allocation7 + $0x1e0] sm:$0xf]  ;;  %v6913_v55 = vld [vmem:[#allocation7 + $0x1e4] sm:$0xf] }
  0x5f   :  { %865 = vmatpush.bf16.msra.mxu2 %v5058_v56  ;;  %878 = vmatpush.bf16.msra.mxu3 %v5062_v59  ;;  %v5227_v54 = vor.u32 %v6915_v51, %v5226_v50  ;;  %v5228_v56 = vld [vmem:[#allocation7 + $0x1f0] sm:$0xf0]  ;;  %v5188_v50 = vld [vmem:[#allocation7 + $0x198] sm:$0xf0] }
  0x60   :  { %v5231_v59 = vor.u32 %v6913_v55, %v5228_v56 }
  0x62   :  { %840 = vmatpush.bf16.msra.mxu0 %v5034_v0  ;;  %853 = vmatpush.bf16.msra.mxu1 %v5038_v5  ;;  %v5210_v5 = vld [vmem:[#allocation7 + $0x1c0] sm:$0xf] }
  0x63   :  { %866 = vmatpush.bf16.msra.mxu2 %v5042_v6  ;;  %879 = vmatpush.bf16.msra.mxu3 %v5046_v9  ;;  %v6911_v6 = vld [vmem:[#allocation7 + $0x1cc] sm:$0xf0] }
  0x64   :  { %v5211_v9 = vor.u32 %v6911_v6, %v5210_v5  ;;  %v6900_v5 = vld [vmem:[#allocation7 + $0x174] sm:$0xf0] }
  0x66   :  { %841 = vmatpush.bf16.msra.mxu0 %v5018_v14  ;;  %854 = vmatpush.bf16.msra.mxu1 %v5022_v18  ;;  %v5215_v14 = vor.u32 %v6909_v7, %v5212_v11  ;;  %v316_v18 = vunpack.c.l.bf16 %v7711_v52  ;;  %v5172_v11 = vld [vmem:[#allocation7 + $0x178] sm:$0xf0] }
  0x67   :  { %867 = vmatpush.bf16.msra.mxu2 %v5026_v19  ;;  %880 = vmatpush.bf16.msra.mxu3 %v5030_v60  ;;  %v5219_v19 = vor.u32 %v6912_v15, %v5218_v12  ;;  %v317_v60 = vunpack.c.h.bf16 %v7711_v52  ;;  %v5146_v15 = vld [vmem:[#allocation7 + $0x140] sm:$0xf] }
  0x68   :  { %v5147_v20 = vor.u32 %v6895_v16, %v5146_v15  ;;  %v7744_v15 = vsel %vm5756_vm7, 1, %v7632_v28 }
  0x6a   :  { %842 = vmatpush.bf16.msra.mxu0 %v5002_v3  ;;  %855 = vmatpush.bf16.msra.mxu1 %v5006_v30  ;;  %v5196_v3 = vld [vmem:[#allocation7 + $0x1b0] sm:$0xf0]  ;;  %v6908_v30 = vld [vmem:[#allocation7 + $0x1b4] sm:$0xf0] }
  0x6b   :  { %868 = vmatpush.bf16.msra.mxu2 %v5010_v31  ;;  %881 = vmatpush.bf16.msra.mxu3 %v5014_v35  ;;  %v5199_v26 = vor.u32 %v6905_v24, %v5196_v3  ;;  %v6906_v31 = vld [vmem:[#allocation7 + $0x1ac] sm:$0xf]  ;;  %v5203_v33 = vor.u32 %v6908_v30, %v5202_v27  ;;  %v5156_v30 = vld [vmem:[#allocation7 + $0x158] sm:$0xf0] }
  0x6c   :  { %v6894_v24 = vld [vmem:[#allocation7 + $0x14c] sm:$0xf] }
  0x6e   :  { %843 = vmatpush.bf16.msra.mxu0 %v4986_v38  ;;  %856 = vmatpush.bf16.msra.mxu1 %v4990_v43  ;;  %v5207_v38 = vor.u32 %v6906_v31, %v5204_v34  ;;  %v7717_v31 = vsel %vm5111_vm4, 1, %v7632_v28  ;;  %v5130_v34 = vld [vmem:[#allocation7 + $0x120] sm:$0xf] }
  0x6f   :  { %869 = vmatpush.bf16.msra.mxu2 %v4994_v48  ;;  %882 = vmatpush.bf16.msra.mxu3 %v4998_v49  ;;  %v5183_v48 = vor.u32 %v6901_v41, %v5180_v45  ;;  %v6902_v49 = vld [vmem:[#allocation7 + $0x18c] sm:$0xf]  ;;  %v6892_v41 = vld [vmem:[#allocation7 + $0x134] sm:$0xf0]  ;;  %v352_v45 = vld [vmem:[#allocation4 + $0x80] sm:$0xff] }
  0x70   :  { %v5191_v55 = vor.u32 %v6902_v49, %v5188_v50  ;;  %918 = vperm.xlu1 %7337, %v7717_v31   ;;  %v5114_v49 = vld [vmem:[#allocation7 + $0x100] sm:$0xf]  ;;  %v6887_v50 = vld [vmem:[#allocation7 + $0x10c] sm:$0xf0] }
  0x72   :  { %1122 = vmatpush.bf16.msrb.mxu0 %v5227_v54  ;;  %1135 = vmatpush.bf16.msrb.mxu1 %v5231_v59  ;;  %v6899_v59 = vld [vmem:[#allocation7 + $0x16c] sm:$0xf0] }
  0x73   :  { %1148 = vmatpush.bf16.msrb.mxu2 %v5235_v2  ;;  %1161 = vmatpush.bf16.msrb.mxu3 %v5239_v4  ;;  %v5170_v4 = vld [vmem:[#allocation7 + $0x168] sm:$0xf] }
  0x76   :  { %1123 = vmatpush.bf16.msrb.mxu0 %v5211_v9  ;;  %1136 = vmatpush.bf16.msrb.mxu1 %v5215_v14  ;;  %v6898_v9 = vld [vmem:[#allocation7 + $0x16c] sm:$0xf] }
  0x77   :  { %1149 = vmatpush.bf16.msrb.mxu2 %v5219_v19  ;;  %1162 = vmatpush.bf16.msrb.mxu3 %v5223_v22  ;;  %v5175_v14 = vor.u32 %v6898_v9, %v5172_v11  ;;  %v353_v11 = vld [vmem:[#allocation4 + $0x88] sm:$0xff] }
  0x78   :  { %1205 = vperm.xlu1 %7337, %v7707_v10   ;;  %v603_v16 = vunpack.c.h.bf16 %v353_v11 }
  0x7a   :  { %1124 = vmatpush.bf16.msrb.mxu0 %v5195_v25  ;;  %1137 = vmatpush.bf16.msrb.mxu1 %v5199_v26 }
  0x7b   :  { %1150 = vmatpush.bf16.msrb.mxu2 %v5203_v33  ;;  %1163 = vmatpush.bf16.msrb.mxu3 %v5207_v38  ;;  %v5159_v33 = vor.u32 %v6894_v24, %v5156_v30  ;;  %v5132_v38 = vld [vmem:[#allocation7 + $0x130] sm:$0xf0] }
  0x7e   :  { %1125 = vmatpush.bf16.msrb.mxu0 %v5179_v44  ;;  %1138 = vmatpush.bf16.msrb.mxu1 %v5183_v48 }
  0x7f   :  { %1164 = vmatpush.bf16.msrb.mxu3 %v5191_v55  ;;  %v5122_v55 = vld [vmem:[#allocation7 + $0x108] sm:$0xf] }
  0x80   :  { %2353 = vperm.xlu1 %7337, %v7744_v15  }
  0x83   :  { %1165 = vmatpush.bf16.msrb.mxu3 %v5175_v14  ;;  %v602_v14 = vunpack.c.l.bf16 %v353_v11  ;;  %v5323_v11 = vld [vmem:[#allocation7 + $0xa0] sm:$0xf] }
  0x87   :  { %1166 = vmatpush.bf16.msrb.mxu3 %v5159_v33 }
  0x9e   :  { %v345_v25 = vpop.permute.xlu0 %344 }
  0x9f   :  { %vm346_vm5 = vcmp.eq.s32.totalorder %v345_v25, 1  ;;  %v7749_v25 = vsel %vm5498_vm8, 1, %v7632_v28 }
  0xa0   :  { %vm7726_vm6 = vmpackc.low %vm346_vm5, %vm346_vm5  ;;  %3214 = vperm.xlu1 %7337, %v7749_v25  }
  0xa8   :  { %4075 = vperm.xlu1 %7337, %v7717_v31   ;;  %v6948_v31 = vld [vmem:[#allocation7 + $0xf4] sm:$0xf0] }
  0xac   :  { %v271_v58 = vpop.f32.mrf.mxu0 }
  0xad   :  { %v318_v0 = vadd.f32 %v314_v42, %v271_v58  ;;  %v284_v1 = vpop.f32.mrf.mxu1  ;;  %v5162_v58 = vld [vmem:[#allocation7 + $0x160] sm:$0xf] }
  0xae   :  { %v319_v8 = vadd.f32 %v315_v47, %v284_v1  ;;  %v6904_v47 = vld [vmem:[#allocation7 + $0x194] sm:$0xf0]  ;;  %v5163_v62 = vor.u32 %v6899_v59, %v5162_v58  ;;  %v6886_v59 = vld [vmem:[#allocation7 + $0x10c] sm:$0xf] }
  0xaf   :  { %v322_v13 = vmul.f32 0.5, %v318_v0  ;;  %v5187_v54 = vor.u32 %v6904_v47, %v5186_v46  ;;  %v5164_v0 = vld [vmem:[#allocation7 + $0x170] sm:$0xf0]  ;;  %v5139_v46 = vor.u32 %v6892_v41, %v5138_v39  ;;  %v5140_v47 = vld [vmem:[#allocation7 + $0x138] sm:$0xf0] }
  0xb0   :  { %v326_v17 = vmul.f32 0.5, %v319_v8  ;;  %v5167_v2 = vor.u32 %v6897_v63, %v5164_v0  ;;  %v5171_v8 = vor.u32 %v6900_v5, %v5170_v4  ;;  %1126 = vmatpush.bf16.msrb.mxu0 %v5163_v62  ;;  %v601_v63 = vunpack.c.h.bf16 %v352_v45 }
  0xb1   :  { %7339 = vtanh.f32 %v322_v13  ;;  %1151 = vmatpush.bf16.msrb.mxu2 %v5187_v54  ;;  %v5116_v54 = vld [vmem:[#allocation7 + $0x110] sm:$0xf0] }
  0xb2   :  { %7341 = vtanh.f32 %v326_v17  ;;  %v6893_v17 = vld [vmem:[#allocation7 + $0x144] sm:$0xf]  ;;  %1139 = vmatpush.bf16.msrb.mxu1 %v5167_v2 }
  0xb3   :  { %v5151_v22 = vor.u32 %v6893_v17, %v5148_v21 }
  0xb4   :  { %v297_v32 = vpop.f32.mrf.mxu2  ;;  %v273_v37 = vpop.f32.mrf.mxu0  ;;  %1127 = vmatpush.bf16.msrb.mxu0 %v5147_v20 }
  0xb5   :  { %v320_v35 = vadd.f32 %v316_v18, %v297_v32  ;;  %v286_v43 = vpop.f32.mrf.mxu1  ;;  %1152 = vmatpush.bf16.msrb.mxu2 %v5171_v8  ;;  %v6889_v37 = vld [vmem:[#allocation7 + $0x124] sm:$0xf] }
  0xb6   :  { %v310_v36 = vpop.f32.mrf.mxu3  ;;  %1140 = vmatpush.bf16.msrb.mxu1 %v5151_v22  ;;  %v5135_v40 = vor.u32 %v6889_v37, %v5132_v38  ;;  %v632_v37 = vpop.permute.xlu0 %631 }
  0xb7   :  { %v321_v42 = vadd.f32 %v317_v60, %v310_v36  ;;  %7343 = vtanh.f32 %v320_v35  ;;  %v7340_v51 = vpop.eup %7339  ;;  %v5154_v60 = vld [vmem:[#allocation7 + $0x148] sm:$0xf]  ;;  %v6891_v35 = vld [vmem:[#allocation7 + $0x12c] sm:$0xf0]  ;;  %vm633_vm9 = vcmp.eq.s32.totalorder %v632_v37, 1 }
  0xb8   :  { %v7342_v56 = vpop.eup %7341  ;;  %v324_v57 = vmul.f32 0.5, %v7340_v51  ;;  %v5155_v27 = vor.u32 %v6896_v23, %v5154_v60  ;;  %v5131_v36 = vor.u32 %v6891_v35, %v5130_v34  ;;  %v6885_v51 = vld [vmem:[#allocation7 + $0x104] sm:$0xf]  ;;  %vm7313_vm10 = vmpackc.low %vm633_vm9, %vm633_vm9  ;;  %v6931_v37 = vld [vmem:[#allocation7 + $0x6c] sm:$0xf0] }
  0xb9   :  { %v331_v52 = vmul.f32 0.5, %v321_v42  ;;  %v328_v61 = vmul.f32 0.5, %v7342_v56  ;;  %v6890_v42 = vld [vmem:[#allocation7 + $0x12c] sm:$0xf]  ;;  %v6888_v56 = vld [vmem:[#allocation7 + $0x114] sm:$0xf0]  ;;  %v5119_v58 = vor.u32 %v6885_v51, %v5116_v54 }
  0xba   :  { %v325_v1 = vadd.f32 0.5, %v324_v57  ;;  %1153 = vmatpush.bf16.msrb.mxu2 %v5155_v27  ;;  %v5143_v48 = vor.u32 %v6890_v42, %v5140_v47  ;;  %1128 = vmatpush.bf16.msrb.mxu0 %v5131_v36  ;;  %v600_v57 = vunpack.c.l.bf16 %v352_v45  ;;  %v5123_v0 = vor.u32 %v6888_v56, %v5122_v55  ;;  %v5355_v47 = vld [vmem:[#allocation7 + $0xe0] sm:$0xf]  ;;  %v5357_v51 = vld [vmem:[#allocation7 + $0xf0] sm:$0xf0] }
  0xbb   :  { %7345 = vtanh.f32 %v331_v52  ;;  %v329_v6 = vadd.f32 0.5, %v328_v61  ;;  %v5115_v52 = vor.u32 %v6887_v50, %v5114_v49  ;;  %1141 = vmatpush.bf16.msrb.mxu1 %v5135_v40  ;;  %v5124_v61 = vld [vmem:[#allocation7 + $0x118] sm:$0xf0]  ;;  %v6945_v49 = vld [vmem:[#allocation7 + $0xe4] sm:$0xf] }
  0xbc   :  { %v299_v7 = vpop.f32.mrf.mxu2  ;;  %1167 = vmatpush.bf16.msrb.mxu3 %v5143_v48  ;;  %v6947_v48 = vld [vmem:[#allocation7 + $0xec] sm:$0xf0]  ;;  %v5360_v54 = vor.u32 %v6945_v49, %v5357_v51  ;;  %v6946_v56 = vld [vmem:[#allocation7 + $0xec] sm:$0xf]  ;;  %v5301_v49 = vld [vmem:[#allocation7 + $0x78] sm:$0xf0] }
  0xbd   :  { %v7344_v12 = vpop.eup %7343  ;;  %v335_v18 = vmul.f32 0.0, %v329_v6  ;;  %v5356_v50 = vor.u32 %v6947_v48, %v5355_v47  ;;  %v6930_v48 = vld [vmem:[#allocation7 + $0x6c] sm:$0xf]  ;;  %v5275_v51 = vld [vmem:[#allocation7 + $0x40] sm:$0xf] }
  0xbe   :  { %v312_v13 = vpop.f32.mrf.mxu3  ;;  %v336_v19 = vmul.f32 %v7344_v12, %v325_v1  ;;  %1154 = vmatpush.bf16.msrb.mxu2 %v5139_v46  ;;  %v5127_v1 = vor.u32 %v6886_v59, %v5124_v61  ;;  %1129 = vmatpush.bf16.msrb.mxu0 %v5115_v52  ;;  %v5363_v52 = vld [vmem:[#allocation7 + $0xe8] sm:$0xf]  ;;  %v5339_v59 = vld [vmem:[#allocation7 + $0xc0] sm:$0xf]  ;;  %v6943_v61 = vld [vmem:[#allocation7 + $0xcc] sm:$0xf0] }
  0xbf   :  { %1142 = vmatpush.bf16.msrb.mxu1 %v5119_v58  ;;  %v5364_v55 = vor.u32 %v6948_v31, %v5363_v52  ;;  %v6927_v52 = vld [vmem:[#allocation7 + $0x4c] sm:$0xf0]  ;;  %v6925_v31 = vld [vmem:[#allocation7 + $0x44] sm:$0xf] }
  0xc0   :  { %v337_v26 = vadd.f32 %v336_v19, %v335_v18  ;;  %1168 = vmatpush.bf16.msrb.mxu3 %v5127_v1  ;;  %v5347_v1 = vld [vmem:[#allocation7 + $0xc8] sm:$0xf] }
  0xc1   :  { %v7346_v3 = vpop.eup %7345 }
  0xc2   :  { %v333_v32 = vmul.f32 0.5, %v7346_v3  ;;  %7347 = vtanh.f32 %v337_v26  ;;  %v7721_v43 = vsel %vm346_vm5, %v337_v26, 0.0  ;;  %1155 = vmatpush.bf16.msrb.mxu2 %v5123_v0  ;;  %v5341_v0 = vld [vmem:[#allocation7 + $0xd0] sm:$0xf0] }
  0xc4   :  { %v334_v44 = vadd.f32 0.5, %v333_v32 }
  0xc8   :  { %v7348_v62 = vpop.eup %7347 }
  0xc9   :  { %v339_v2 = vmul.f32 %v7348_v62, %v334_v44  ;;  %v6941_v62 = vld [vmem:[#allocation7 + $0xc4] sm:$0xf] }
  0xca   :  { %v5344_v4 = vor.u32 %v6941_v62, %v5341_v0  ;;  %v5259_v0 = vld [vmem:[#allocation7 + $0x20] sm:$0xf] }
  0xcb   :  { %v7731_v6 = vsel %vm346_vm5, %v339_v2, 0.0  ;;  %v7302_v7 = vpack.c.bf16 %v339_v2, %v339_v2  ;;  %v6944_v2 = vld [vmem:[#allocation7 + $0xd4] sm:$0xf0] }
  0xcc   :  { %v557_v5 = vpop.f32.mrf.mxu0  ;;  %350 = vst [vmem:[#allocation9] sm:$0xff] %v7731_v6 }
  0xcd   :  { %v604_v8 = vadd.f32 %v600_v57, %v557_v5  ;;  %v570_v9 = vpop.f32.mrf.mxu1  ;;  %7303 = vmatmul.msk.bf16.vlgmr.msra.gmra.mxu0 %vm7726_vm6, %v7302_v7  ;;  %7306 = vmatmul.msk.bf16.vlgmr.msra.gmra.mxu1 %vm7726_vm6, %v7302_v7  ;;  %v5365_v57 = vld [vmem:[#allocation7 + $0xf8] sm:$0xf0]  ;;  %v5348_v5 = vor.u32 %v6944_v2, %v5347_v1  ;;  %v6923_v1 = vld [vmem:[#allocation7 + $0x2c] sm:$0xf0]  ;;  %v6921_v2 = vld [vmem:[#allocation7 + $0x24] sm:$0xf] }
  0xce   :  { %v605_v10 = vadd.f32 %v601_v63, %v570_v9  ;;  %7309 = vmatmul.msk.bf16.vlgmr.msra.gmra.mxu2 %vm7726_vm6, %v7302_v7  ;;  %7312 = vmatmul.msk.bf16.vlgmr.msra.gmra.mxu3 %vm7726_vm6, %v7302_v7  ;;  %v5368_v58 = vor.u32 %v6946_v56, %v5365_v57  ;;  %v5340_v63 = vor.u32 %v6943_v61, %v5339_v59  ;;  %v6942_v7 = vld [vmem:[#allocation7 + $0xcc] sm:$0xf]  ;;  %v5283_v56 = vld [vmem:[#allocation7 + $0x48] sm:$0xf]  ;;  %v5285_v61 = vld [vmem:[#allocation7 + $0x58] sm:$0xf0] }
  0xcf   :  { %v608_v12 = vmul.f32 0.5, %v604_v8  ;;  %1410 = vmatpush.bf16.msra.mxu0 %v5356_v50  ;;  %1423 = vmatpush.bf16.msra.mxu1 %v5360_v54  ;;  %v5349_v8 = vld [vmem:[#allocation7 + $0xd8] sm:$0xf0]  ;;  %v5304_v50 = vor.u32 %v6930_v48, %v5301_v49  ;;  %v5276_v54 = vor.u32 %v6927_v52, %v5275_v51  ;;  %v6926_v59 = vld [vmem:[#allocation7 + $0x4c] sm:$0xf] }
  0xd0   :  { %v612_v13 = vmul.f32 0.5, %v605_v10  ;;  %1436 = vmatpush.bf16.msra.mxu2 %v5364_v55  ;;  %1449 = vmatpush.bf16.msra.mxu3 %v5368_v58  ;;  %v5352_v9 = vor.u32 %v6942_v7, %v5349_v8  ;;  %v6939_v10 = vld [vmem:[#allocation7 + $0xac] sm:$0xf0]  ;;  %v5277_v55 = vld [vmem:[#allocation7 + $0x50] sm:$0xf0] }
  0xd1   :  { %7349 = vtanh.f32 %v608_v12  ;;  %v6937_v12 = vld [vmem:[#allocation7 + $0xa4] sm:$0xf]  ;;  %v5280_v57 = vor.u32 %v6925_v31, %v5277_v55  ;;  %v6928_v58 = vld [vmem:[#allocation7 + $0x54] sm:$0xf0]  ;;  %v5267_v7 = vld [vmem:[#allocation7 + $0x28] sm:$0xf] }
  0xd2   :  { %7351 = vtanh.f32 %v612_v13  ;;  %v5324_v13 = vor.u32 %v6939_v10, %v5323_v11  ;;  %v5284_v62 = vor.u32 %v6928_v58, %v5283_v56  ;;  %v6924_v8 = vld [vmem:[#allocation7 + $0x34] sm:$0xf0]  ;;  %v6922_v10 = vld [vmem:[#allocation7 + $0x2c] sm:$0xf]  ;;  %v5468_v51 = vld [vmem:[#allocation7 + $0x1c0] sm:$0xf] }
  0xd3   :  { %1411 = vmatpush.bf16.msra.mxu0 %v5340_v63  ;;  %1424 = vmatpush.bf16.msra.mxu1 %v5344_v4  ;;  %v5288_v63 = vor.u32 %v6926_v59, %v5285_v61  ;;  %v5260_v4 = vor.u32 %v6923_v1, %v5259_v0  ;;  %v5268_v11 = vor.u32 %v6924_v8, %v5267_v7  ;;  %v6975_v52 = vld [vmem:[#allocation7 + $0x1cc] sm:$0xf0]  ;;  %v6973_v31 = vld [vmem:[#allocation7 + $0x1c4] sm:$0xf]  ;;  %v5470_v55 = vld [vmem:[#allocation7 + $0x1d0] sm:$0xf0] }
  0xd4   :  { %v583_v17 = vpop.f32.mrf.mxu2  ;;  %v596_v19 = vpop.f32.mrf.mxu3  ;;  %1437 = vmatpush.bf16.msra.mxu2 %v5348_v5  ;;  %1450 = vmatpush.bf16.msra.mxu3 %v5352_v9  ;;  %v5261_v5 = vld [vmem:[#allocation7 + $0x30] sm:$0xf0]  ;;  %v5476_v56 = vld [vmem:[#allocation7 + $0x1c8] sm:$0xf]  ;;  %v5473_v61 = vor.u32 %v6973_v31, %v5470_v55  ;;  %v5478_v0 = vld [vmem:[#allocation7 + $0x1d8] sm:$0xf0] }
  0xd5   :  { %v606_v18 = vadd.f32 %v602_v14, %v583_v17  ;;  %v559_v20 = vpop.f32.mrf.mxu0  ;;  %v607_v21 = vadd.f32 %v603_v16, %v596_v19  ;;  %v572_v60 = vpop.f32.mrf.mxu1  ;;  %v5325_v14 = vld [vmem:[#allocation7 + $0xb0] sm:$0xf0]  ;;  %v5331_v16 = vld [vmem:[#allocation7 + $0xa8] sm:$0xf]  ;;  %v6940_v17 = vld [vmem:[#allocation7 + $0xb4] sm:$0xf0]  ;;  %v5264_v9 = vor.u32 %v6921_v2, %v5261_v5 }
  0xd6   :  { %v5332_v19 = vor.u32 %v6940_v17, %v5331_v16  ;;  %v6938_v20 = vld [vmem:[#allocation7 + $0xac] sm:$0xf]  ;;  %v5243_v16 = vld [vmem:[#allocation7] sm:$0xf]  ;;  %v6919_v17 = vld [vmem:[#allocation7 + $0xc] sm:$0xf0] }
  0xd7   :  { %7353 = vtanh.f32 %v606_v18  ;;  %v7350_v22 = vpop.eup %7349  ;;  %v617_v23 = vmul.f32 0.5, %v607_v21  ;;  %v5328_v18 = vor.u32 %v6937_v12, %v5325_v14  ;;  %v5333_v21 = vld [vmem:[#allocation7 + $0xb8] sm:$0xf0]  ;;  %1412 = vmatpush.bf16.msra.mxu0 %v5324_v13  ;;  %v641_v13 = vld [vmem:[#allocation4 + $0x10] sm:$0xff]  ;;  %v5452_v5 = vld [vmem:[#allocation7 + $0x1a0] sm:$0xf] }
  0xd8   :  { %v7352_v24 = vpop.eup %7351  ;;  %v610_v3 = vmul.f32 0.5, %v7350_v22  ;;  %v5336_v60 = vor.u32 %v6938_v20, %v5333_v21  ;;  %1438 = vmatpush.bf16.msra.mxu2 %v5332_v19  ;;  %v5307_v22 = vld [vmem:[#allocation7 + $0x80] sm:$0xf]  ;;  %v5269_v12 = vld [vmem:[#allocation7 + $0x38] sm:$0xf0]  ;;  %v5244_v19 = vor.u32 %v6919_v17, %v5243_v16 }
  0xd9   :  { %v614_v26 = vmul.f32 0.5, %v7352_v24  ;;  %7355 = vtanh.f32 %v617_v23  ;;  %1425 = vmatpush.bf16.msra.mxu1 %v5328_v18  ;;  %v6935_v23 = vld [vmem:[#allocation7 + $0x8c] sm:$0xf0]  ;;  %v6933_v24 = vld [vmem:[#allocation7 + $0x84] sm:$0xf]  ;;  %v5272_v14 = vor.u32 %v6922_v10, %v5269_v12 }
  0xda   :  { %v611_v27 = vadd.f32 0.5, %v610_v3  ;;  %1451 = vmatpush.bf16.msra.mxu3 %v5336_v60  ;;  %v5308_v3 = vor.u32 %v6935_v23, %v5307_v22  ;;  %v6917_v18 = vld [vmem:[#allocation7 + $0x4] sm:$0xf]  ;;  %v5245_v20 = vld [vmem:[#allocation7 + $0x10] sm:$0xf0]  ;;  %v888_v60 = vunpack.c.l.bf16 %v641_v13  ;;  %v889_v22 = vunpack.c.h.bf16 %v641_v13 }
  0xdb   :  { %v615_v30 = vadd.f32 0.5, %v614_v26  ;;  %v5309_v26 = vld [vmem:[#allocation7 + $0x90] sm:$0xf0]  ;;  %v5251_v21 = vld [vmem:[#allocation7 + $0x8] sm:$0xf]  ;;  %v5248_v23 = vor.u32 %v6917_v18, %v5245_v20 }
  0xdc   :  { %v585_v32 = vpop.f32.mrf.mxu2  ;;  %v598_v34 = vpop.f32.mrf.mxu3  ;;  %1413 = vmatpush.bf16.msra.mxu0 %v5308_v3  ;;  %v6918_v3 = vld [vmem:[#allocation7 + $0xc] sm:$0xf]  ;;  %v6971_v7 = vld [vmem:[#allocation7 + $0x1ac] sm:$0xf0]  ;;  %v6969_v8 = vld [vmem:[#allocation7 + $0x1a4] sm:$0xf] }
  0xdd   :  { %v7354_v33 = vpop.eup %7353  ;;  %v621_v35 = vmul.f32 0.0, %v615_v30  ;;  %v6936_v30 = vld [vmem:[#allocation7 + $0x94] sm:$0xf0]  ;;  %v5312_v32 = vor.u32 %v6933_v24, %v5309_v26  ;;  %v6934_v34 = vld [vmem:[#allocation7 + $0x8c] sm:$0xf] }
  0xde   :  { %v622_v36 = vmul.f32 %v7354_v33, %v611_v27  ;;  %v5315_v27 = vld [vmem:[#allocation7 + $0x88] sm:$0xf]  ;;  %v6920_v24 = vld [vmem:[#allocation7 + $0x14] sm:$0xf0]  ;;  %v5253_v26 = vld [vmem:[#allocation7 + $0x18] sm:$0xf0] }
  0xdf   :  { %v7356_v53 = vpop.eup %7355  ;;  %v5316_v33 = vor.u32 %v6936_v30, %v5315_v27  ;;  %1426 = vmatpush.bf16.msra.mxu1 %v5312_v32  ;;  %v5252_v27 = vor.u32 %v6920_v24, %v5251_v21  ;;  %v5256_v30 = vor.u32 %v6918_v3, %v5253_v26  ;;  %v5484_v32 = vld [vmem:[#allocation7 + $0x1e0] sm:$0xf]  ;;  %v5460_v10 = vld [vmem:[#allocation7 + $0x1a8] sm:$0xf]  ;;  %v6972_v12 = vld [vmem:[#allocation7 + $0x1b4] sm:$0xf0] }
  0xe0   :  { %v623_v38 = vadd.f32 %v622_v36, %v621_v35  ;;  %v619_v39 = vmul.f32 0.5, %v7356_v53  ;;  %v5317_v35 = vld [vmem:[#allocation7 + $0x98] sm:$0xf0]  ;;  %v5291_v53 = vld [vmem:[#allocation7 + $0x60] sm:$0xf]  ;;  %v5461_v17 = vor.u32 %v6972_v12, %v5460_v10 }
  0xe1   :  { %v5320_v36 = vor.u32 %v6934_v34, %v5317_v35  ;;  %1439 = vmatpush.bf16.msra.mxu2 %v5316_v33  ;;  %v6979_v33 = vld [vmem:[#allocation7 + $0x1ec] sm:$0xf0]  ;;  %v6977_v34 = vld [vmem:[#allocation7 + $0x1e4] sm:$0xf]  ;;  %v642_v35 = vld [vmem:[#allocation4 + $0x18] sm:$0xff] }
  0xe2   :  { %7357 = vtanh.f32 %v623_v38  ;;  %v7752_v40 = vsel %vm633_vm9, %v623_v38, 0.0  ;;  %v620_v41 = vadd.f32 0.5, %v619_v39  ;;  %v6929_v38 = vld [vmem:[#allocation7 + $0x64] sm:$0xf]  ;;  %v5292_v39 = vor.u32 %v6931_v37, %v5291_v53  ;;  %v5486_v53 = vld [vmem:[#allocation7 + $0x1f0] sm:$0xf0] }
  0xe3   :  { %1452 = vmatpush.bf16.msra.mxu3 %v5320_v36  ;;  %v5485_v36 = vor.u32 %v6979_v33, %v5484_v32  ;;  %v5492_v37 = vld [vmem:[#allocation7 + $0x1e8] sm:$0xf]  ;;  %v890_v1 = vunpack.c.l.bf16 %v642_v35  ;;  %v891_v2 = vunpack.c.h.bf16 %v642_v35  ;;  %v6970_v18 = vld [vmem:[#allocation7 + $0x1ac] sm:$0xf]  ;;  %v5436_v24 = vld [vmem:[#allocation7 + $0x180] sm:$0xf] }
  0xe4   :  { %1414 = vmatpush.bf16.msra.mxu0 %v5292_v39  ;;  %v6967_v3 = vld [vmem:[#allocation7 + $0x18c] sm:$0xf0]  ;;  %v6965_v26 = vld [vmem:[#allocation7 + $0x184] sm:$0xf]  ;;  %v5438_v32 = vld [vmem:[#allocation7 + $0x190] sm:$0xf0] }
  0xe5   :  { %v5444_v33 = vld [vmem:[#allocation7 + $0x188] sm:$0xf]  ;;  %v5441_v35 = vor.u32 %v6965_v26, %v5438_v32  ;;  %v6960_v12 = vld [vmem:[#allocation7 + $0x154] sm:$0xf0]  ;;  %v5390_v26 = vld [vmem:[#allocation7 + $0x130] sm:$0xf0] }
  0xe6   :  { %v5412_v10 = vld [vmem:[#allocation7 + $0x148] sm:$0xf]  ;;  %v6956_v32 = vld [vmem:[#allocation7 + $0x134] sm:$0xf0] }
  0xe7   :  { %1453 = vmatpush.bf16.msra.mxu3 %v5304_v50 }
  0xe8   :  { %v7358_v42 = vpop.eup %7357  ;;  %1415 = vmatpush.bf16.msra.mxu0 %v5276_v54  ;;  %v5469_v54 = vor.u32 %v6975_v52, %v5468_v51  ;;  %v6961_v51 = vld [vmem:[#allocation7 + $0x164] sm:$0xf]  ;;  %v5422_v52 = vld [vmem:[#allocation7 + $0x170] sm:$0xf0] }
  0xe9   :  { %v625_v44 = vmul.f32 %v7358_v42, %v620_v41  ;;  %v5293_v41 = vld [vmem:[#allocation7 + $0x70] sm:$0xf0]  ;;  %v5299_v42 = vld [vmem:[#allocation7 + $0x68] sm:$0xf] }
  0xeb   :  { %v7755_v45 = vsel %vm633_vm9, %v625_v44, 0.0  ;;  %v7314_v46 = vpack.c.bf16 %v625_v44, %v625_v44  ;;  %v6932_v44 = vld [vmem:[#allocation7 + $0x74] sm:$0xf0]  ;;  %1454 = vmatpush.bf16.msra.mxu3 %v5288_v63  ;;  %v6974_v63 = vld [vmem:[#allocation7 + $0x1cc] sm:$0xf] }
  0xec   :  { %638 = vst [vmem:[#allocation9 + $0x40] sm:$0xff] %v7755_v45  ;;  %v5300_v47 = vor.u32 %v6932_v44, %v5299_v42  ;;  %1416 = vmatpush.bf16.msra.mxu0 %v5260_v4  ;;  %v6980_v42 = vld [vmem:[#allocation7 + $0x1f4] sm:$0xf0]  ;;  %v6978_v44 = vld [vmem:[#allocation7 + $0x1ec] sm:$0xf]  ;;  %v5481_v4 = vor.u32 %v6974_v63, %v5478_v0 }
  0xed   :  { %7315 = vmatmul.msk.bf16.vlgmr.msrb.gmra.mxu0 %vm7313_vm10, %v7314_v46  ;;  %7318 = vmatmul.msk.bf16.vlgmr.msrb.gmra.mxu1 %vm7313_vm10, %v7314_v46  ;;  %v5493_v49 = vor.u32 %v6980_v42, %v5492_v37  ;;  %v5430_v63 = vld [vmem:[#allocation7 + $0x178] sm:$0xf0] }
  0xee   :  { %7321 = vmatmul.msk.bf16.vlgmr.msrb.gmra.mxu2 %vm7313_vm10, %v7314_v46  ;;  %7324 = vmatmul.msk.bf16.vlgmr.msrb.gmra.mxu3 %vm7313_vm10, %v7314_v46  ;;  %v5296_v46 = vor.u32 %v6929_v38, %v5293_v41  ;;  %v5489_v41 = vor.u32 %v6977_v34, %v5486_v53  ;;  %v6966_v53 = vld [vmem:[#allocation7 + $0x18c] sm:$0xf] }
  0xef   :  { %1440 = vmatpush.bf16.msra.mxu2 %v5300_v47  ;;  %1455 = vmatpush.bf16.msra.mxu3 %v5272_v14 }
  0xf0   :  { %1427 = vmatpush.bf16.msra.mxu1 %v5296_v46  ;;  %1417 = vmatpush.bf16.msra.mxu0 %v5244_v19  ;;  %v5494_v46 = vld [vmem:[#allocation7 + $0x1f8] sm:$0xf0] }
  0xf1   :  { %v5497_v50 = vor.u32 %v6978_v44, %v5494_v46  ;;  %v5462_v19 = vld [vmem:[#allocation7 + $0x1b8] sm:$0xf0]  ;;  %v5420_v46 = vld [vmem:[#allocation7 + $0x160] sm:$0xf] }
  0xf3   :  { %1441 = vmatpush.bf16.msra.mxu2 %v5284_v62  ;;  %1456 = vmatpush.bf16.msra.mxu3 %v5256_v30  ;;  %v5437_v30 = vor.u32 %v6967_v3, %v5436_v24  ;;  %v6953_v3 = vld [vmem:[#allocation7 + $0x124] sm:$0xf] }
  0xf4   :  { %1428 = vmatpush.bf16.msra.mxu1 %v5280_v57  ;;  %1696 = vmatpush.bf16.msrb.mxu0 %v5485_v36  ;;  %v6976_v57 = vld [vmem:[#allocation7 + $0x1d4] sm:$0xf0] }
  0xf5   :  { %v5477_v62 = vor.u32 %v6976_v57, %v5476_v56  ;;  %v6968_v36 = vld [vmem:[#allocation7 + $0x194] sm:$0xf0]  ;;  %v5425_v56 = vor.u32 %v6961_v51, %v5422_v52  ;;  %v5428_v57 = vld [vmem:[#allocation7 + $0x168] sm:$0xf]  ;;  %v6950_v52 = vld [vmem:[#allocation7 + $0x10c] sm:$0xf] }
  0xf7   :  { %1442 = vmatpush.bf16.msra.mxu2 %v5268_v11  ;;  %1735 = vmatpush.bf16.msrb.mxu3 %v5497_v50  ;;  %v5454_v11 = vld [vmem:[#allocation7 + $0x1b0] sm:$0xf0] }
  0xf8   :  { %1429 = vmatpush.bf16.msra.mxu1 %v5264_v9  ;;  %1697 = vmatpush.bf16.msrb.mxu0 %v5469_v54  ;;  %v5453_v9 = vor.u32 %v6971_v7, %v5452_v5  ;;  %v5457_v16 = vor.u32 %v6969_v8, %v5454_v11  ;;  %v6959_v5 = vld [vmem:[#allocation7 + $0x14c] sm:$0xf0]  ;;  %v6957_v7 = vld [vmem:[#allocation7 + $0x144] sm:$0xf]  ;;  %v5406_v11 = vld [vmem:[#allocation7 + $0x150] sm:$0xf0] }
  0xfb   :  { %1443 = vmatpush.bf16.msra.mxu2 %v5252_v27  ;;  %1736 = vmatpush.bf16.msrb.mxu3 %v5481_v4  ;;  %v5404_v4 = vld [vmem:[#allocation7 + $0x140] sm:$0xf] }
  0xfc   :  { %1430 = vmatpush.bf16.msra.mxu1 %v5248_v23  ;;  %v5465_v23 = vor.u32 %v6970_v18, %v5462_v19  ;;  %1698 = vmatpush.bf16.msrb.mxu0 %v5453_v9  ;;  %v5405_v9 = vor.u32 %v6959_v5, %v5404_v4  ;;  %v5414_v18 = vld [vmem:[#allocation7 + $0x158] sm:$0xf0] }
  0xff   :  { %1722 = vmatpush.bf16.msrb.mxu2 %v5493_v49  ;;  %1737 = vmatpush.bf16.msrb.mxu3 %v5465_v23  ;;  %v7758_v49 = vpop.permute.xlu1 %918  ;;  %v6955_v23 = vld [vmem:[#allocation7 + $0x12c] sm:$0xf0] }
 0x100   :  { %1709 = vmatpush.bf16.msrb.mxu1 %v5489_v41  ;;  %v5446_v41 = vld [vmem:[#allocation7 + $0x198] sm:$0xf0]  ;;  %1699 = vmatpush.bf16.msrb.mxu0 %v5437_v30  ;;  %vm920_vm11 = vcmp.eq.s32.totalorder %v7758_v49, 1  ;;  %v5393_v30 = vor.u32 %v6953_v3, %v5390_v26 }
 0x101   :  { %v5449_v44 = vor.u32 %v6966_v53, %v5446_v41 }
 0x103   :  { %1723 = vmatpush.bf16.msrb.mxu2 %v5477_v62  ;;  %1738 = vmatpush.bf16.msrb.mxu3 %v5449_v44  ;;  %v6962_v62 = vld [vmem:[#allocation7 + $0x16c] sm:$0xf]  ;;  %v5374_v44 = vld [vmem:[#allocation7 + $0x110] sm:$0xf0] }
 0x104   :  { %1710 = vmatpush.bf16.msrb.mxu1 %v5473_v61 }
 0x107   :  { %1724 = vmatpush.bf16.msrb.mxu2 %v5461_v17  ;;  %v6958_v17 = vld [vmem:[#allocation7 + $0x14c] sm:$0xf]  ;;  %v1206_v26 = vpop.permute.xlu1 %1205 }
 0x108   :  { %1711 = vmatpush.bf16.msrb.mxu1 %v5457_v16  ;;  %v5413_v16 = vor.u32 %v6960_v12, %v5412_v10  ;;  %vm1207_vm13 = vcmp.eq.s32.totalorder %v1206_v26, 1  ;;  %v5551_v26 = vld [vmem:[#allocation7 + $0x70] sm:$0xf0] }
 0x10c   :  { %1712 = vmatpush.bf16.msrb.mxu1 %v5441_v35 }
 0x110   :  { %1713 = vmatpush.bf16.msrb.mxu1 %v5425_v56 }
 0x14a   :  { %v845_v38 = vpop.f32.mrf.mxu0  ;;  %v858_v39 = vpop.f32.mrf.mxu1 }
 0x14b   :  { %v892_v47 = vadd.f32 %v888_v60, %v845_v38  ;;  %v893_v48 = vadd.f32 %v889_v22, %v858_v39  ;;  %v5445_v39 = vor.u32 %v6968_v36, %v5444_v33  ;;  %v6954_v33 = vld [vmem:[#allocation7 + $0x12c] sm:$0xf] }
 0x14d   :  { %v896_v58 = vmul.f32 0.5, %v892_v47  ;;  %v900_v59 = vmul.f32 0.5, %v893_v48  ;;  %v6963_v47 = vld [vmem:[#allocation7 + $0x16c] sm:$0xf0]  ;;  %1725 = vmatpush.bf16.msrb.mxu2 %v5445_v39 }
 0x14e   :  { %v5421_v50 = vor.u32 %v6963_v47, %v5420_v46  ;;  %v5380_v46 = vld [vmem:[#allocation7 + $0x108] sm:$0xf]  ;;  %v6952_v47 = vld [vmem:[#allocation7 + $0x114] sm:$0xf0] }
 0x14f   :  { %7359 = vtanh.f32 %v896_v58  ;;  %v6964_v58 = vld [vmem:[#allocation7 + $0x174] sm:$0xf0]  ;;  %v5381_v51 = vor.u32 %v6952_v47, %v5380_v46  ;;  %v5623_v46 = vld [vmem:[#allocation7 + $0xf8] sm:$0xf0] }
 0x150   :  { %7361 = vtanh.f32 %v900_v59  ;;  %v5429_v61 = vor.u32 %v6964_v58, %v5428_v57  ;;  %1700 = vmatpush.bf16.msrb.mxu0 %v5421_v50 }
 0x151   :  { %v871_v13 = vpop.f32.mrf.mxu2  ;;  %v884_v14 = vpop.f32.mrf.mxu3 }
 0x152   :  { %v894_v20 = vadd.f32 %v890_v1, %v871_v13  ;;  %v895_v21 = vadd.f32 %v891_v2, %v884_v14  ;;  %v847_v60 = vpop.f32.mrf.mxu0  ;;  %v860_v22 = vpop.f32.mrf.mxu1  ;;  %v5433_v2 = vor.u32 %v6962_v62, %v5430_v63  ;;  %1726 = vmatpush.bf16.msrb.mxu2 %v5429_v61  ;;  %v5409_v14 = vor.u32 %v6957_v7, %v5406_v11  ;;  %v928_v63 = vld [vmem:[#allocation4 + $0x98] sm:$0xff] }
 0x153   :  { %v927_v60 = vld [vmem:[#allocation4 + $0x90] sm:$0xff]  ;;  %v5388_v22 = vld [vmem:[#allocation7 + $0x120] sm:$0xf]  ;;  %v1177_v49 = vunpack.c.h.bf16 %v928_v63 }
 0x154   :  { %7363 = vtanh.f32 %v894_v20  ;;  %v905_v27 = vmul.f32 0.5, %v895_v21  ;;  %1739 = vmatpush.bf16.msrb.mxu3 %v5433_v2  ;;  %v5417_v20 = vor.u32 %v6958_v17, %v5414_v18  ;;  %1701 = vmatpush.bf16.msrb.mxu0 %v5405_v9  ;;  %v5389_v24 = vor.u32 %v6955_v23, %v5388_v22 }
 0x155   :  { %v7360_v34 = vpop.eup %7359  ;;  %1714 = vmatpush.bf16.msrb.mxu1 %v5409_v14  ;;  %v1174_v39 = vunpack.c.l.bf16 %v927_v60  ;;  %v1175_v41 = vunpack.c.h.bf16 %v927_v60 }
 0x156   :  { %v7362_v37 = vpop.eup %7361  ;;  %v898_v38 = vmul.f32 0.5, %v7360_v34  ;;  %7365 = vtanh.f32 %v905_v27  ;;  %v5396_v27 = vld [vmem:[#allocation7 + $0x128] sm:$0xf]  ;;  %1727 = vmatpush.bf16.msrb.mxu2 %v5413_v16  ;;  %v5398_v34 = vld [vmem:[#allocation7 + $0x138] sm:$0xf0] }
 0x157   :  { %v902_v42 = vmul.f32 0.5, %v7362_v37  ;;  %v5397_v36 = vor.u32 %v6956_v32, %v5396_v27  ;;  %v5401_v53 = vor.u32 %v6954_v33, %v5398_v34  ;;  %v6951_v37 = vld [vmem:[#allocation7 + $0x10c] sm:$0xf0] }
 0x158   :  { %v899_v48 = vadd.f32 0.5, %v898_v38  ;;  %1740 = vmatpush.bf16.msrb.mxu3 %v5417_v20  ;;  %1702 = vmatpush.bf16.msrb.mxu0 %v5389_v24  ;;  %v6949_v38 = vld [vmem:[#allocation7 + $0x104] sm:$0xf] }
 0x159   :  { %v903_v31 = vadd.f32 0.5, %v902_v42  ;;  %v873_v54 = vpop.f32.mrf.mxu2  ;;  %v886_v55 = vpop.f32.mrf.mxu3  ;;  %1715 = vmatpush.bf16.msrb.mxu1 %v5393_v30  ;;  %v5377_v50 = vor.u32 %v6949_v38, %v5374_v44  ;;  %v5615_v38 = vld [vmem:[#allocation7 + $0xf0] sm:$0xf0]  ;;  %v7010_v44 = vld [vmem:[#allocation7 + $0xec] sm:$0xf] }
 0x15a   :  { %v7364_v59 = vpop.eup %7363  ;;  %1728 = vmatpush.bf16.msrb.mxu2 %v5397_v36  ;;  %v5626_v47 = vor.u32 %v7010_v44, %v5623_v46  ;;  %v5543_v44 = vld [vmem:[#allocation7 + $0x58] sm:$0xf0] }
 0x15b   :  { %v910_v0 = vmul.f32 %v7364_v59, %v899_v48  ;;  %v909_v1 = vmul.f32 %v903_v31, %v7721_v43  ;;  %v5382_v31 = vld [vmem:[#allocation7 + $0x118] sm:$0xf0] }
 0x15c   :  { %v7366_v8 = vpop.eup %7365  ;;  %1741 = vmatpush.bf16.msrb.mxu3 %v5401_v53  ;;  %v5385_v55 = vor.u32 %v6950_v52, %v5382_v31  ;;  %v5599_v52 = vld [vmem:[#allocation7 + $0xd0] sm:$0xf0]  ;;  %v5605_v31 = vld [vmem:[#allocation7 + $0xc8] sm:$0xf] }
 0x15d   :  { %v911_v13 = vadd.f32 %v910_v0, %v909_v1  ;;  %v907_v19 = vmul.f32 0.5, %v7366_v8  ;;  %1716 = vmatpush.bf16.msrb.mxu1 %v5377_v50  ;;  %v7499_v1 = vld [vmem:[%s7923_s2] sm:$0xff]  ;;  %v7007_v50 = vld [vmem:[#allocation7 + $0xcc] sm:$0xf0]  ;;  %s7634_s2 = smov [#allocation10]  }
 0x15e   :  { %1729 = vmatpush.bf16.msrb.mxu2 %v5381_v51  ;;  %vm5369_vm12 = vcmp.gt.s32.totalorder %v7499_v1, 2  ;;  %v7005_v51 = vld [vmem:[#allocation7 + $0xc4] sm:$0xf]  ;;  %s4687_s7 = sshll.u32 %s7634_s2, 4  ;;  %s4688_s7 = int_to_ptr.vmem [resolvable:$true] %s4687_s7 }
 0x15f   :  { %7367 = vtanh.f32 %v911_v13  ;;  %v7765_v21 = vsel %vm920_vm11, %v911_v13, %v7721_v43  ;;  %v908_v35 = vadd.f32 0.5, %v907_v19  ;;  %v5372_v43 = vld [vmem:[#allocation7 + $0x100] sm:$0xf]  ;;  %v1490_v5 = vsel %vm5369_vm12, 1, %v7632_v28 }
 0x160   :  { %v5373_v42 = vor.u32 %v6951_v37, %v5372_v43  ;;  %1742 = vmatpush.bf16.msrb.mxu3 %v5385_v55  ;;  %1492 = vperm.xlu2 %7338, %v1490_v5   ;;  %v7009_v43 = vld [vmem:[#allocation7 + $0xe4] sm:$0xf]  ;;  %v5602_v55 = vor.u32 %v7005_v51, %v5599_v52  ;;  %v5519_v52 = vld [vmem:[#allocation7 + $0x30] sm:$0xf0] }
 0x161   :  { %v6985_v51 = vld [vmem:[#allocation7 + $0x24] sm:$0xf] }
 0x162   :  { %1703 = vmatpush.bf16.msrb.mxu0 %v5373_v42 }
 0x165   :  { %v7368_v48 = vpop.eup %7367 }
 0x166   :  { %v913_v54 = vmul.f32 %v7368_v48, %v908_v35  ;;  %v5597_v48 = vld [vmem:[#allocation7 + $0xc0] sm:$0xf] }
 0x168   :  { %v923_v58 = vsel %vm920_vm11, %v913_v54, 0.0  ;;  %v7772_v62 = vsel %vm920_vm11, %v913_v54, %v7731_v6  ;;  %v1176_v6 = vunpack.c.l.bf16 %v928_v63  ;;  %1779 = vperm.xlu2 %7338, %v7749_v25   ;;  %v7008_v54 = vld [vmem:[#allocation7 + $0xd4] sm:$0xf0]  ;;  %v7003_v63 = vld [vmem:[#allocation7 + $0xac] sm:$0xf0] }
 0x169   :  { %925 = vst [vmem:[#allocation9 + $0x8] sm:$0xff] %v923_v58  ;;  %v1217_v0 = vpack.c.bf16 %v7772_v62, %v7772_v62  ;;  %v5607_v58 = vld [vmem:[#allocation7 + $0xd8] sm:$0xf0] }
 0x16a   :  { %v1131_v56 = vpop.f32.mrf.mxu0  ;;  %v1144_v57 = vpop.f32.mrf.mxu1 }
 0x16b   :  { %v1178_v59 = vadd.f32 %v1174_v39, %v1131_v56  ;;  %v1179_v61 = vadd.f32 %v1175_v41, %v1144_v57  ;;  %1418 = vmatmul.bf16.vlgmr.msra.gmra.mxu0 %v1217_v0  ;;  %1431 = vmatmul.bf16.vlgmr.msra.gmra.mxu1 %v1217_v0  ;;  %v5621_v39 = vld [vmem:[#allocation7 + $0xe8] sm:$0xf]  ;;  %v7012_v41 = vld [vmem:[#allocation7 + $0xf4] sm:$0xf0]  ;;  %v5606_v56 = vor.u32 %v7008_v54, %v5605_v31  ;;  %v7006_v57 = vld [vmem:[#allocation7 + $0xcc] sm:$0xf] }
 0x16c   :  { %1444 = vmatmul.bf16.vlgmr.msra.gmra.mxu2 %v1217_v0  ;;  %1457 = vmatmul.bf16.vlgmr.msra.gmra.mxu3 %v1217_v0  ;;  %v5622_v42 = vor.u32 %v7012_v41, %v5621_v39  ;;  %v7001_v0 = vld [vmem:[#allocation7 + $0xa4] sm:$0xf]  ;;  %v5541_v39 = vld [vmem:[#allocation7 + $0x48] sm:$0xf]  ;;  %v6988_v54 = vld [vmem:[#allocation7 + $0x34] sm:$0xf0] }
 0x16d   :  { %v1182_v2 = vmul.f32 0.5, %v1178_v59  ;;  %v1186_v4 = vmul.f32 0.5, %v1179_v61  ;;  %2023 = vmatpush.bf16.msra.mxu3 %v5626_v47  ;;  %v5610_v59 = vor.u32 %v7006_v57, %v5607_v58  ;;  %v5581_v61 = vld [vmem:[#allocation7 + $0xa0] sm:$0xf]  ;;  %v5525_v31 = vld [vmem:[#allocation7 + $0x28] sm:$0xf] }
 0x16e   :  { %2010 = vmatpush.bf16.msra.mxu2 %v5622_v42  ;;  %v5582_v1 = vor.u32 %v7003_v63, %v5581_v61  ;;  %v6990_v42 = vld [vmem:[#allocation7 + $0x4c] sm:$0xf]  ;;  %v5527_v58 = vld [vmem:[#allocation7 + $0x38] sm:$0xf0]  ;;  %v5501_v63 = vld [vmem:[#allocation7] sm:$0xf] }
 0x16f   :  { %7369 = vtanh.f32 %v1182_v2  ;;  %v5583_v2 = vld [vmem:[#allocation7 + $0xb0] sm:$0xf0]  ;;  %v5546_v47 = vor.u32 %v6990_v42, %v5543_v44  ;;  %v6986_v57 = vld [vmem:[#allocation7 + $0x2c] sm:$0xf]  ;;  %v5736_v42 = vld [vmem:[#allocation7 + $0x1d8] sm:$0xf0] }
 0x170   :  { %7371 = vtanh.f32 %v1186_v4  ;;  %2640 = vperm.xlu2 %7338, %v7744_v15   ;;  %v7011_v15 = vld [vmem:[#allocation7 + $0xec] sm:$0xf0]  ;;  %v5589_v4 = vld [vmem:[#allocation7 + $0xa8] sm:$0xf]  ;;  %v5530_v61 = vor.u32 %v6986_v57, %v5527_v58 }
 0x171   :  { %v1157_v7 = vpop.f32.mrf.mxu2  ;;  %v1170_v8 = vpop.f32.mrf.mxu3  ;;  %2024 = vmatpush.bf16.msra.mxu3 %v5610_v59  ;;  %v1215_v59 = vld [vmem:[#allocation4 + $0x20] sm:$0xff] }
 0x172   :  { %v1180_v9 = vadd.f32 %v1176_v6, %v1157_v7  ;;  %v1181_v11 = vadd.f32 %v1177_v49, %v1170_v8  ;;  %v1133_v10 = vpop.f32.mrf.mxu0  ;;  %v1146_v12 = vpop.f32.mrf.mxu1  ;;  %2011 = vmatpush.bf16.msra.mxu2 %v5606_v56  ;;  %v5586_v6 = vor.u32 %v7001_v0, %v5583_v2  ;;  %v7002_v7 = vld [vmem:[#allocation7 + $0xac] sm:$0xf]  ;;  %v5591_v8 = vld [vmem:[#allocation7 + $0xb8] sm:$0xf0]  ;;  %v5526_v56 = vor.u32 %v6988_v54, %v5525_v31  ;;  %v6983_v0 = vld [vmem:[#allocation7 + $0xc] sm:$0xf0] }
 0x173   :  { %v6999_v10 = vld [vmem:[#allocation7 + $0x8c] sm:$0xf0]  ;;  %v6997_v12 = vld [vmem:[#allocation7 + $0x84] sm:$0xf]  ;;  %v5502_v2 = vor.u32 %v6983_v0, %v5501_v63  ;;  %v5718_v31 = vld [vmem:[#allocation7 + $0x1a8] sm:$0xf] }
 0x174   :  { %7373 = vtanh.f32 %v1180_v9  ;;  %v1191_v13 = vmul.f32 0.5, %v1181_v11  ;;  %v5594_v9 = vor.u32 %v7002_v7, %v5591_v8  ;;  %v5565_v11 = vld [vmem:[#allocation7 + $0x80] sm:$0xf]  ;;  %v6984_v8 = vld [vmem:[#allocation7 + $0x14] sm:$0xf0] }
 0x175   :  { %v7370_v14 = vpop.eup %7369  ;;  %v7036_v54 = vld [vmem:[#allocation7 + $0x1b4] sm:$0xf0] }
 0x176   :  { %v7372_v16 = vpop.eup %7371  ;;  %v1184_v28 = vmul.f32 0.5, %v7370_v14  ;;  %7375 = vtanh.f32 %v1191_v13  ;;  %2025 = vmatpush.bf16.msra.mxu3 %v5594_v9  ;;  %v5566_v13 = vor.u32 %v6999_v10, %v5565_v11  ;;  %v5567_v14 = vld [vmem:[#allocation7 + $0x90] sm:$0xf0]  ;;  %v6982_v9 = vld [vmem:[#allocation7 + $0xc] sm:$0xf]  ;;  %v5719_v58 = vor.u32 %v7036_v54, %v5718_v31 }
 0x177   :  { %v1188_v17 = vmul.f32 0.5, %v7372_v16  ;;  %v5573_v16 = vld [vmem:[#allocation7 + $0x88] sm:$0xf]  ;;  %v5511_v11 = vld [vmem:[#allocation7 + $0x18] sm:$0xf0] }
 0x178   :  { %v1185_v18 = vadd.f32 0.5, %v1184_v28  ;;  %3501 = vperm.xlu2 %7338, %v1490_v5   ;;  %v7004_v5 = vld [vmem:[#allocation7 + $0xb4] sm:$0xf0]  ;;  %v7022_v54 = vld [vmem:[#allocation7 + $0x14c] sm:$0xf] }
 0x179   :  { %v1189_v19 = vadd.f32 0.5, %v1188_v17  ;;  %v1159_v20 = vpop.f32.mrf.mxu2  ;;  %v1172_v60 = vpop.f32.mrf.mxu3  ;;  %v5590_v49 = vor.u32 %v7004_v5, %v5589_v4  ;;  %v7000_v28 = vld [vmem:[#allocation7 + $0x94] sm:$0xf0]  ;;  %v5570_v17 = vor.u32 %v6997_v12, %v5567_v14  ;;  %v5503_v4 = vld [vmem:[#allocation7 + $0x10] sm:$0xf0]  ;;  %v5514_v12 = vor.u32 %v6982_v9, %v5511_v11 }
 0x17a   :  { %v7374_v22 = vpop.eup %7373  ;;  %v5575_v20 = vld [vmem:[#allocation7 + $0x98] sm:$0xf0]  ;;  %v5509_v5 = vld [vmem:[#allocation7 + $0x8] sm:$0xf]  ;;  %v7043_v14 = vld [vmem:[#allocation7 + $0x1ec] sm:$0xf0] }
 0x17b   :  { %v1195_v23 = vmul.f32 %v1189_v19, %v7752_v40  ;;  %v1196_v24 = vmul.f32 %v7374_v22, %v1185_v18  ;;  %2012 = vmatpush.bf16.msra.mxu2 %v5590_v49  ;;  %v5574_v18 = vor.u32 %v7000_v28, %v5573_v16  ;;  %v6998_v19 = vld [vmem:[#allocation7 + $0x8c] sm:$0xf]  ;;  %v5549_v22 = vld [vmem:[#allocation7 + $0x60] sm:$0xf]  ;;  %v1463_v49 = vunpack.c.h.bf16 %v1215_v59  ;;  %v7041_v16 = vld [vmem:[#allocation7 + $0x1e4] sm:$0xf] }
 0x17c   :  { %v7376_v3 = vpop.eup %7375  ;;  %v5578_v60 = vor.u32 %v6998_v19, %v5575_v20  ;;  %v5510_v10 = vor.u32 %v6984_v8, %v5509_v5  ;;  %v1216_v28 = vld [vmem:[#allocation4 + $0x28] sm:$0xff]  ;;  %v5694_v5 = vld [vmem:[#allocation7 + $0x180] sm:$0xf]  ;;  %v5696_v9 = vld [vmem:[#allocation7 + $0x190] sm:$0xf0] }
 0x17d   :  { %v1197_v27 = vadd.f32 %v1196_v24, %v1195_v23  ;;  %v1193_v32 = vmul.f32 0.5, %v7376_v3  ;;  %v6995_v23 = vld [vmem:[#allocation7 + $0x6c] sm:$0xf0]  ;;  %v6993_v24 = vld [vmem:[#allocation7 + $0x64] sm:$0xf]  ;;  %v1464_v44 = vunpack.c.l.bf16 %v1216_v28 }
 0x17e   :  { %2026 = vmatpush.bf16.msra.mxu3 %v5578_v60  ;;  %v5550_v3 = vor.u32 %v6995_v23, %v5549_v22  ;;  %v5750_v19 = vld [vmem:[#allocation7 + $0x1e8] sm:$0xf]  ;;  %v7044_v23 = vld [vmem:[#allocation7 + $0x1f4] sm:$0xf0] }
 0x17f   :  { %7377 = vtanh.f32 %v1197_v27  ;;  %v7783_v30 = vsel %vm1207_vm13, %v1197_v27, %v7752_v40  ;;  %v1194_v33 = vadd.f32 0.5, %v1193_v32  ;;  %v5613_v40 = vld [vmem:[#allocation7 + $0xe0] sm:$0xf]  ;;  %2013 = vmatpush.bf16.msra.mxu2 %v5574_v18  ;;  %v5557_v27 = vld [vmem:[#allocation7 + $0x68] sm:$0xf] }
 0x180   :  { %4362 = vperm.xlu2 %7338, %v7696_v29   ;;  %v5614_v37 = vor.u32 %v7011_v15, %v5613_v40  ;;  %v5598_v29 = vor.u32 %v7007_v50, %v5597_v48  ;;  %v6996_v32 = vld [vmem:[#allocation7 + $0x74] sm:$0xf0]  ;;  %v5533_v40 = vld [vmem:[#allocation7 + $0x40] sm:$0xf]  ;;  %v6991_v15 = vld [vmem:[#allocation7 + $0x4c] sm:$0xf0] }
 0x181   :  { %v5517_v48 = vld [vmem:[#allocation7 + $0x20] sm:$0xf]  ;;  %v6987_v50 = vld [vmem:[#allocation7 + $0x2c] sm:$0xf0]  ;;  %v5744_v18 = vld [vmem:[#allocation7 + $0x1f0] sm:$0xf0] }
 0x182   :  { %1984 = vmatpush.bf16.msra.mxu0 %v5614_v37  ;;  %v5534_v37 = vor.u32 %v6991_v15, %v5533_v40  ;;  %v5747_v22 = vor.u32 %v7041_v16, %v5744_v18  ;;  %v5728_v40 = vld [vmem:[#allocation7 + $0x1d0] sm:$0xf0]  ;;  %v5734_v15 = vld [vmem:[#allocation7 + $0x1c8] sm:$0xf]  ;;  %v5704_v18 = vld [vmem:[#allocation7 + $0x198] sm:$0xf0] }
 0x183   :  { %v5702_v11 = vld [vmem:[#allocation7 + $0x188] sm:$0xf] }
 0x185   :  { %v7378_v25 = vpop.eup %7377 }
 0x186   :  { %v1199_v34 = vmul.f32 %v7378_v25, %v1194_v33  ;;  %1985 = vmatpush.bf16.msra.mxu0 %v5598_v29  ;;  %v5554_v33 = vor.u32 %v6993_v24, %v5551_v26  ;;  %v5558_v25 = vor.u32 %v6996_v32, %v5557_v27  ;;  %v5518_v29 = vor.u32 %v6987_v50, %v5517_v48  ;;  %v7042_v24 = vld [vmem:[#allocation7 + $0x1ec] sm:$0xf]  ;;  %v5710_v48 = vld [vmem:[#allocation7 + $0x1a0] sm:$0xf]  ;;  %v7035_v50 = vld [vmem:[#allocation7 + $0x1ac] sm:$0xf0] }
 0x187   :  { %v5751_v32 = vor.u32 %v7044_v23, %v5750_v19 }
 0x188   :  { %v1210_v35 = vsel %vm1207_vm13, %v1199_v34, 0.0  ;;  %v7787_v36 = vsel %vm1207_vm13, %v1199_v34, %v7755_v45  ;;  %v5618_v45 = vor.u32 %v7009_v43, %v5615_v38  ;;  %v6994_v34 = vld [vmem:[#allocation7 + $0x6c] sm:$0xf]  ;;  %2014 = vmatpush.bf16.msra.mxu2 %v5558_v25  ;;  %v6989_v43 = vld [vmem:[#allocation7 + $0x44] sm:$0xf] }
 0x189   :  { %1212 = vst [vmem:[#allocation9 + $0x48] sm:$0xff] %v1210_v35  ;;  %v1503_v53 = vpack.c.bf16 %v7787_v36, %v7787_v36  ;;  %v5559_v35 = vld [vmem:[#allocation7 + $0x78] sm:$0xf0]  ;;  %v5535_v38 = vld [vmem:[#allocation7 + $0x50] sm:$0xf0] }
 0x18a   :  { %1997 = vmatpush.bf16.msra.mxu1 %v5618_v45  ;;  %1986 = vmatpush.bf16.msra.mxu0 %v5582_v1  ;;  %v5538_v41 = vor.u32 %v6989_v43, %v5535_v38  ;;  %v6992_v45 = vld [vmem:[#allocation7 + $0x54] sm:$0xf0]  ;;  %v6981_v1 = vld [vmem:[#allocation7 + $0x4] sm:$0xf]  ;;  %v5726_v25 = vld [vmem:[#allocation7 + $0x1c0] sm:$0xf] }
 0x18b   :  { %1704 = vmatmul.bf16.vlgmr.msrb.gmra.mxu0 %v1503_v53  ;;  %1717 = vmatmul.bf16.vlgmr.msrb.gmra.mxu1 %v1503_v53  ;;  %v5542_v46 = vor.u32 %v6992_v45, %v5541_v39  ;;  %v5506_v7 = vor.u32 %v6981_v1, %v5503_v4  ;;  %v7040_v43 = vld [vmem:[#allocation7 + $0x1d4] sm:$0xf0]  ;;  %v7038_v45 = vld [vmem:[#allocation7 + $0x1cc] sm:$0xf] }
 0x18c   :  { %1730 = vmatmul.bf16.vlgmr.msrb.gmra.mxu2 %v1503_v53  ;;  %1743 = vmatmul.bf16.vlgmr.msrb.gmra.mxu3 %v1503_v53  ;;  %v5562_v53 = vor.u32 %v6994_v34, %v5559_v35  ;;  %v7039_v34 = vld [vmem:[#allocation7 + $0x1cc] sm:$0xf0]  ;;  %v7037_v35 = vld [vmem:[#allocation7 + $0x1c4] sm:$0xf] }
 0x18d   :  { %2015 = vmatpush.bf16.msra.mxu2 %v5542_v46  ;;  %v5731_v39 = vor.u32 %v7037_v35, %v5728_v40  ;;  %v1465_v46 = vunpack.c.h.bf16 %v1216_v28  ;;  %v5686_v35 = vld [vmem:[#allocation7 + $0x168] sm:$0xf] }
 0x18e   :  { %1998 = vmatpush.bf16.msra.mxu1 %v5602_v55  ;;  %1987 = vmatpush.bf16.msra.mxu0 %v5566_v13  ;;  %v5522_v55 = vor.u32 %v6985_v51, %v5519_v52  ;;  %v5742_v13 = vld [vmem:[#allocation7 + $0x1e0] sm:$0xf]  ;;  %v7033_v51 = vld [vmem:[#allocation7 + $0x1a4] sm:$0xf]  ;;  %v5712_v52 = vld [vmem:[#allocation7 + $0x1b0] sm:$0xf0] }
 0x18f   :  { %2027 = vmatpush.bf16.msra.mxu3 %v5562_v53  ;;  %v5727_v53 = vor.u32 %v7039_v34, %v5726_v25  ;;  %v5715_v57 = vor.u32 %v7033_v51, %v5712_v52  ;;  %v7024_v51 = vld [vmem:[#allocation7 + $0x154] sm:$0xf0] }
 0x191   :  { %2016 = vmatpush.bf16.msra.mxu2 %v5526_v56 }
 0x192   :  { %1999 = vmatpush.bf16.msra.mxu1 %v5586_v6  ;;  %1988 = vmatpush.bf16.msra.mxu0 %v5550_v3  ;;  %v1462_v6 = vunpack.c.l.bf16 %v1215_v59  ;;  %v5752_v3 = vld [vmem:[#allocation7 + $0x1f8] sm:$0xf0]  ;;  %v7034_v59 = vld [vmem:[#allocation7 + $0x1ac] sm:$0xf] }
 0x193   :  { %2028 = vmatpush.bf16.msra.mxu3 %v5546_v47  ;;  %v5739_v47 = vor.u32 %v7038_v45, %v5736_v42  ;;  %v5662_v45 = vld [vmem:[#allocation7 + $0x140] sm:$0xf]  ;;  %v7023_v42 = vld [vmem:[#allocation7 + $0x14c] sm:$0xf0] }
 0x195   :  { %2017 = vmatpush.bf16.msra.mxu2 %v5510_v10 }
 0x196   :  { %2000 = vmatpush.bf16.msra.mxu1 %v5570_v17  ;;  %1989 = vmatpush.bf16.msra.mxu0 %v5534_v37  ;;  %v5743_v17 = vor.u32 %v7043_v14, %v5742_v13  ;;  %v7032_v13 = vld [vmem:[#allocation7 + $0x194] sm:$0xf0]  ;;  %v7030_v14 = vld [vmem:[#allocation7 + $0x18c] sm:$0xf] }
 0x197   :  { %2029 = vmatpush.bf16.msra.mxu3 %v5530_v61  ;;  %v5720_v61 = vld [vmem:[#allocation7 + $0x1b8] sm:$0xf0] }
 0x198   :  { %v5723_v4 = vor.u32 %v7034_v59, %v5720_v61  ;;  %v1501_v59 = vld [vmem:[#allocation4 + $0xa0] sm:$0xff] }
 0x199   :  { %2296 = vmatpush.bf16.msrb.mxu2 %v5751_v32  ;;  %v5646_v61 = vld [vmem:[#allocation7 + $0x120] sm:$0xf] }
 0x19a   :  { %2001 = vmatpush.bf16.msra.mxu1 %v5554_v33  ;;  %1990 = vmatpush.bf16.msra.mxu0 %v5518_v29  ;;  %v5755_v33 = vor.u32 %v7042_v24, %v5752_v3  ;;  %v5711_v29 = vor.u32 %v7035_v50, %v5710_v48  ;;  %v5664_v48 = vld [vmem:[#allocation7 + $0x150] sm:$0xf0]  ;;  %v5670_v50 = vld [vmem:[#allocation7 + $0x148] sm:$0xf] }
 0x19b   :  { %2030 = vmatpush.bf16.msra.mxu3 %v5514_v12  ;;  %v5671_v31 = vor.u32 %v7024_v51, %v5670_v50 }
 0x19e   :  { %2002 = vmatpush.bf16.msra.mxu1 %v5538_v41  ;;  %1991 = vmatpush.bf16.msra.mxu0 %v5502_v2  ;;  %v5735_v41 = vor.u32 %v7040_v43, %v5734_v15  ;;  %v7026_v43 = vld [vmem:[#allocation7 + $0x16c] sm:$0xf] }
 0x19f   :  { %2309 = vmatpush.bf16.msrb.mxu3 %v5755_v33 }
 0x1a0   :  { %2297 = vmatpush.bf16.msrb.mxu2 %v5735_v41 }
 0x1a2   :  { %2003 = vmatpush.bf16.msra.mxu1 %v5522_v55  ;;  %2270 = vmatpush.bf16.msrb.mxu0 %v5743_v17  ;;  %v5703_v17 = vor.u32 %v7032_v13, %v5702_v11  ;;  %v1748_v13 = vunpack.c.l.bf16 %v1501_v59 }
 0x1a3   :  { %2310 = vmatpush.bf16.msrb.mxu3 %v5739_v47  ;;  %v5663_v47 = vor.u32 %v7023_v42, %v5662_v45 }
 0x1a4   :  { %2298 = vmatpush.bf16.msrb.mxu2 %v5719_v58 }
 0x1a6   :  { %2004 = vmatpush.bf16.msra.mxu1 %v5506_v7  ;;  %2271 = vmatpush.bf16.msrb.mxu0 %v5727_v53  ;;  %v7028_v53 = vld [vmem:[#allocation7 + $0x174] sm:$0xf0] }
 0x1a7   :  { %2311 = vmatpush.bf16.msrb.mxu3 %v5723_v4  ;;  %v5687_v15 = vor.u32 %v7028_v53, %v5686_v35  ;;  %v5654_v4 = vld [vmem:[#allocation7 + $0x128] sm:$0xf] }
 0x1a8   :  { %2299 = vmatpush.bf16.msrb.mxu2 %v5703_v17  ;;  %v5638_v17 = vld [vmem:[#allocation7 + $0x108] sm:$0xf] }
 0x1a9   :  { %v1502_v53 = vld [vmem:[#allocation4 + $0xa8] sm:$0xff] }
 0x1aa   :  { %2283 = vmatpush.bf16.msrb.mxu1 %v5747_v22  ;;  %2272 = vmatpush.bf16.msrb.mxu0 %v5711_v29  ;;  %v7027_v22 = vld [vmem:[#allocation7 + $0x16c] sm:$0xf0] }
 0x1ac   :  { %2300 = vmatpush.bf16.msrb.mxu2 %v5687_v15 }
 0x1ae   :  { %2284 = vmatpush.bf16.msrb.mxu1 %v5731_v39 }
 0x1b0   :  { %2301 = vmatpush.bf16.msrb.mxu2 %v5671_v31 }
 0x1b2   :  { %2285 = vmatpush.bf16.msrb.mxu1 %v5715_v57 }
 0x1ba   :  { %v7792_v24 = vpop.permute.xlu2 %1492 }
 0x1bb   :  { %vm1494_vm14 = vcmp.eq.s32.totalorder %v7792_v24, 1 }
 0x1e8   :  { %v1419_v20 = vpop.f32.mrf.mxu0  ;;  %v1432_v60 = vpop.f32.mrf.mxu1 }
 0x1e9   :  { %v1466_v26 = vadd.f32 %v1462_v6, %v1419_v20  ;;  %v1467_v27 = vadd.f32 %v1463_v49, %v1432_v60  ;;  %v7031_v6 = vld [vmem:[#allocation7 + $0x18c] sm:$0xf0]  ;;  %v7029_v49 = vld [vmem:[#allocation7 + $0x184] sm:$0xf]  ;;  %v5707_v20 = vor.u32 %v7030_v14, %v5704_v18  ;;  %v5678_v60 = vld [vmem:[#allocation7 + $0x160] sm:$0xf]  ;;  %v1749_v14 = vunpack.c.h.bf16 %v1501_v59  ;;  %v1780_v59 = vpop.permute.xlu2 %1779 }
 0x1ea   :  { %v5695_v8 = vor.u32 %v7031_v6, %v5694_v5  ;;  %v5699_v12 = vor.u32 %v7029_v49, %v5696_v9  ;;  %v5679_v3 = vor.u32 %v7027_v22, %v5678_v60  ;;  %v7020_v6 = vld [vmem:[#allocation7 + $0x134] sm:$0xf0]  ;;  %v7018_v49 = vld [vmem:[#allocation7 + $0x12c] sm:$0xf]  ;;  %vm1781_vm15 = vcmp.eq.s32.totalorder %v1780_v59, 1 }
 0x1eb   :  { %v1470_v37 = vmul.f32 0.5, %v1466_v26  ;;  %v1474_v38 = vmul.f32 0.5, %v1467_v27  ;;  %v7025_v26 = vld [vmem:[#allocation7 + $0x164] sm:$0xf]  ;;  %v5680_v27 = vld [vmem:[#allocation7 + $0x170] sm:$0xf0]  ;;  %2312 = vmatpush.bf16.msrb.mxu3 %v5707_v20  ;;  %v5655_v9 = vor.u32 %v7020_v6, %v5654_v4 }
 0x1ec   :  { %2273 = vmatpush.bf16.msrb.mxu0 %v5695_v8  ;;  %2286 = vmatpush.bf16.msrb.mxu1 %v5699_v12  ;;  %v5683_v34 = vor.u32 %v7025_v26, %v5680_v27  ;;  %v7013_v12 = vld [vmem:[#allocation7 + $0x104] sm:$0xf]  ;;  %v7016_v18 = vld [vmem:[#allocation7 + $0x114] sm:$0xf0]  ;;  %v7014_v22 = vld [vmem:[#allocation7 + $0x10c] sm:$0xf] }
 0x1ed   :  { %7379 = vtanh.f32 %v1470_v37  ;;  %v5688_v37 = vld [vmem:[#allocation7 + $0x178] sm:$0xf0]  ;;  %2302 = vmatpush.bf16.msrb.mxu2 %v5655_v9  ;;  %v5639_v60 = vor.u32 %v7016_v18, %v5638_v17  ;;  %v7071_v17 = vld [vmem:[#allocation7 + $0xcc] sm:$0xf0]  ;;  %v7069_v18 = vld [vmem:[#allocation7 + $0xc4] sm:$0xf] }
 0x1ee   :  { %7381 = vtanh.f32 %v1474_v38  ;;  %v5691_v41 = vor.u32 %v7026_v43, %v5688_v37  ;;  %v1750_v37 = vunpack.c.l.bf16 %v1502_v53  ;;  %v5809_v59 = vld [vmem:[#allocation7 + $0x70] sm:$0xf0] }
 0x1ef   :  { %v1445_v55 = vpop.f32.mrf.mxu2  ;;  %v1458_v56 = vpop.f32.mrf.mxu3 }
 0x1f0   :  { %v1468_v63 = vadd.f32 %v1464_v44, %v1445_v55  ;;  %v1469_v0 = vadd.f32 %v1465_v46, %v1458_v56  ;;  %v1421_v1 = vpop.f32.mrf.mxu0  ;;  %v1434_v2 = vpop.f32.mrf.mxu1  ;;  %2274 = vmatpush.bf16.msrb.mxu0 %v5679_v3  ;;  %v7021_v44 = vld [vmem:[#allocation7 + $0x144] sm:$0xf]  ;;  %2287 = vmatpush.bf16.msrb.mxu1 %v5683_v34  ;;  %v5672_v55 = vld [vmem:[#allocation7 + $0x158] sm:$0xf0] }
 0x1f1   :  { %2313 = vmatpush.bf16.msrb.mxu3 %v5691_v41  ;;  %v5667_v52 = vor.u32 %v7021_v44, %v5664_v48  ;;  %v5675_v57 = vor.u32 %v7022_v54, %v5672_v55  ;;  %v7017_v1 = vld [vmem:[#allocation7 + $0x124] sm:$0xf]  ;;  %v5648_v2 = vld [vmem:[#allocation7 + $0x130] sm:$0xf0]  ;;  %2303 = vmatpush.bf16.msrb.mxu2 %v5639_v60  ;;  %v5863_v60 = vld [vmem:[#allocation7 + $0xc8] sm:$0xf] }
 0x1f2   :  { %7383 = vtanh.f32 %v1468_v63  ;;  %v1479_v7 = vmul.f32 0.5, %v1469_v0  ;;  %v7019_v63 = vld [vmem:[#allocation7 + $0x12c] sm:$0xf0]  ;;  %v5651_v5 = vor.u32 %v7017_v1, %v5648_v2 }
 0x1f3   :  { %v7380_v10 = vpop.eup %7379  ;;  %v5647_v0 = vor.u32 %v7019_v63, %v5646_v61 }
 0x1f4   :  { %v7382_v16 = vpop.eup %7381  ;;  %v1472_v28 = vmul.f32 0.5, %v7380_v10  ;;  %7385 = vtanh.f32 %v1479_v7  ;;  %2275 = vmatpush.bf16.msrb.mxu0 %v5663_v47  ;;  %2288 = vmatpush.bf16.msrb.mxu1 %v5667_v52  ;;  %v5656_v7 = vld [vmem:[#allocation7 + $0x138] sm:$0xf0]  ;;  %v7015_v10 = vld [vmem:[#allocation7 + $0x10c] sm:$0xf0] }
 0x1f5   :  { %v1476_v19 = vmul.f32 0.5, %v7382_v16  ;;  %2314 = vmatpush.bf16.msrb.mxu3 %v5675_v57  ;;  %v5659_v11 = vor.u32 %v7018_v49, %v5656_v7  ;;  %v5871_v7 = vld [vmem:[#allocation7 + $0xe0] sm:$0xf] }
 0x1f6   :  { %v1473_v23 = vadd.f32 0.5, %v1472_v28  ;;  %v5632_v28 = vld [vmem:[#allocation7 + $0x110] sm:$0xf0] }
 0x1f7   :  { %v1477_v32 = vadd.f32 0.5, %v1476_v19  ;;  %v1447_v33 = vpop.f32.mrf.mxu2  ;;  %v1460_v25 = vpop.f32.mrf.mxu3  ;;  %v5635_v20 = vor.u32 %v7013_v12, %v5632_v28  ;;  %v5855_v28 = vld [vmem:[#allocation7 + $0xc0] sm:$0xf] }
 0x1f8   :  { %v7384_v40 = vpop.eup %7383  ;;  %2276 = vmatpush.bf16.msrb.mxu0 %v5647_v0  ;;  %2289 = vmatpush.bf16.msrb.mxu1 %v5651_v5 }
 0x1f9   :  { %v1483_v38 = vmul.f32 %v1477_v32, %v7765_v21  ;;  %v1484_v39 = vmul.f32 %v7384_v40, %v1473_v23  ;;  %2315 = vmatpush.bf16.msrb.mxu3 %v5659_v11  ;;  %v5640_v23 = vld [vmem:[#allocation7 + $0x118] sm:$0xf0]  ;;  %v5873_v11 = vld [vmem:[#allocation7 + $0xf0] sm:$0xf0] }
 0x1fa   :  { %v7386_v46 = vpop.eup %7385  ;;  %v5643_v26 = vor.u32 %v7014_v22, %v5640_v23  ;;  %v7072_v22 = vld [vmem:[#allocation7 + $0xd4] sm:$0xf0] }
 0x1fb   :  { %v1485_v29 = vadd.f32 %v1484_v39, %v1483_v38  ;;  %v1481_v56 = vmul.f32 0.5, %v7386_v46 }
 0x1fc   :  { %2290 = vmatpush.bf16.msrb.mxu1 %v5635_v20  ;;  %v5857_v20 = vld [vmem:[#allocation7 + $0xd0] sm:$0xf0] }
 0x1fd   :  { %7387 = vtanh.f32 %v1485_v29  ;;  %v7799_v58 = vsel %vm1494_vm14, %v1485_v29, %v7765_v21  ;;  %v1482_v8 = vadd.f32 0.5, %v1481_v56  ;;  %v5630_v21 = vld [vmem:[#allocation7 + $0x100] sm:$0xf]  ;;  %2316 = vmatpush.bf16.msrb.mxu3 %v5643_v26  ;;  %v5860_v23 = vor.u32 %v7069_v18, %v5857_v20  ;;  %v7070_v26 = vld [vmem:[#allocation7 + $0xcc] sm:$0xf] }
 0x1fe   :  { %v5631_v16 = vor.u32 %v7015_v10, %v5630_v21  ;;  %v5879_v21 = vld [vmem:[#allocation7 + $0xe8] sm:$0xf]  ;;  %v7076_v10 = vld [vmem:[#allocation7 + $0xf4] sm:$0xf0]  ;;  %v7049_v18 = vld [vmem:[#allocation7 + $0x24] sm:$0xf] }
 0x1ff   :  { %v5777_v20 = vld [vmem:[#allocation7 + $0x30] sm:$0xf0] }
 0x200   :  { %2277 = vmatpush.bf16.msrb.mxu0 %v5631_v16 }
 0x203   :  { %v7388_v19 = vpop.eup %7387 }
 0x204   :  { %v1487_v3 = vmul.f32 %v7388_v19, %v1482_v8  ;;  %v7075_v8 = vld [vmem:[#allocation7 + $0xec] sm:$0xf0]  ;;  %v5856_v19 = vor.u32 %v7071_v17, %v5855_v28  ;;  %v5775_v28 = vld [vmem:[#allocation7 + $0x20] sm:$0xf] }
 0x205   :  { %v5872_v9 = vor.u32 %v7075_v8, %v5871_v7  ;;  %v5791_v7 = vld [vmem:[#allocation7 + $0x40] sm:$0xf]  ;;  %v7055_v8 = vld [vmem:[#allocation7 + $0x4c] sm:$0xf0] }
 0x206   :  { %v7804_v33 = vsel %vm1494_vm14, %v1487_v3, %v7772_v62  ;;  %v1497_v25 = vsel %vm1494_vm14, %v1487_v3, 0.0  ;;  %v1751_v62 = vunpack.c.h.bf16 %v1502_v53  ;;  %v5864_v3 = vor.u32 %v7072_v22, %v5863_v60  ;;  %v7051_v17 = vld [vmem:[#allocation7 + $0x2c] sm:$0xf0]  ;;  %v5783_v60 = vld [vmem:[#allocation7 + $0x28] sm:$0xf] }
 0x207   :  { %1499 = vst [vmem:[#allocation9 + $0x10] sm:$0xff] %v1497_v25  ;;  %v1791_v40 = vpack.c.bf16 %v7804_v33, %v7804_v33  ;;  %v5839_v25 = vld [vmem:[#allocation7 + $0xa0] sm:$0xf]  ;;  %v7052_v22 = vld [vmem:[#allocation7 + $0x34] sm:$0xf0] }
 0x208   :  { %v1705_v27 = vpop.f32.mrf.mxu0  ;;  %v1718_v32 = vpop.f32.mrf.mxu1 }
 0x209   :  { %v1752_v34 = vadd.f32 %v1748_v13, %v1705_v27  ;;  %v1753_v35 = vadd.f32 %v1749_v14, %v1718_v32  ;;  %1992 = vmatmul.bf16.vlgmr.msra.gmra.mxu0 %v1791_v40  ;;  %2005 = vmatmul.bf16.vlgmr.msra.gmra.mxu1 %v1791_v40  ;;  %v5880_v13 = vor.u32 %v7076_v10, %v5879_v21  ;;  %v7074_v14 = vld [vmem:[#allocation7 + $0xec] sm:$0xf]  ;;  %v5865_v27 = vld [vmem:[#allocation7 + $0xd8] sm:$0xf0]  ;;  %v5799_v21 = vld [vmem:[#allocation7 + $0x48] sm:$0xf] }
 0x20a   :  { %2018 = vmatmul.bf16.vlgmr.msra.gmra.mxu2 %v1791_v40  ;;  %2031 = vmatmul.bf16.vlgmr.msra.gmra.mxu3 %v1791_v40  ;;  %v5868_v32 = vor.u32 %v7070_v26, %v5865_v27  ;;  %v5841_v40 = vld [vmem:[#allocation7 + $0xb0] sm:$0xf0]  ;;  %v7056_v10 = vld [vmem:[#allocation7 + $0x54] sm:$0xf0]  ;;  %v7050_v26 = vld [vmem:[#allocation7 + $0x2c] sm:$0xf] }
 0x20b   :  { %v1756_v15 = vmul.f32 0.5, %v1752_v34  ;;  %v1760_v43 = vmul.f32 0.5, %v1753_v35  ;;  %2558 = vmatpush.bf16.msra.mxu0 %v5872_v9  ;;  %2584 = vmatpush.bf16.msra.mxu2 %v5880_v13  ;;  %v7067_v34 = vld [vmem:[#allocation7 + $0xac] sm:$0xf0]  ;;  %v7065_v35 = vld [vmem:[#allocation7 + $0xa4] sm:$0xf]  ;;  %v5792_v9 = vor.u32 %v7055_v8, %v5791_v7  ;;  %v5800_v13 = vor.u32 %v7056_v10, %v5799_v21 }
 0x20c   :  { %v5840_v53 = vor.u32 %v7067_v34, %v5839_v25  ;;  %v5785_v27 = vld [vmem:[#allocation7 + $0x38] sm:$0xf0]  ;;  %v5759_v34 = vld [vmem:[#allocation7] sm:$0xf]  ;;  %v5986_v7 = vld [vmem:[#allocation7 + $0x1d0] sm:$0xf0] }
 0x20d   :  { %7389 = vtanh.f32 %v1756_v15  ;;  %v5847_v15 = vld [vmem:[#allocation7 + $0xa8] sm:$0xf]  ;;  %v5788_v25 = vor.u32 %v7050_v26, %v5785_v27 }
 0x20e   :  { %7391 = vtanh.f32 %v1760_v43  ;;  %v7068_v43 = vld [vmem:[#allocation7 + $0xb4] sm:$0xf0]  ;;  %v5992_v8 = vld [vmem:[#allocation7 + $0x1c8] sm:$0xf] }
 0x20f   :  { %v1731_v24 = vpop.f32.mrf.mxu2  ;;  %v1744_v38 = vpop.f32.mrf.mxu3  ;;  %2559 = vmatpush.bf16.msra.mxu0 %v5856_v19  ;;  %2585 = vmatpush.bf16.msra.mxu2 %v5864_v3  ;;  %v5776_v19 = vor.u32 %v7051_v17, %v5775_v28  ;;  %v5784_v3 = vor.u32 %v7052_v22, %v5783_v60  ;;  %v5968_v28 = vld [vmem:[#allocation7 + $0x1a0] sm:$0xf]  ;;  %v7099_v17 = vld [vmem:[#allocation7 + $0x1ac] sm:$0xf0]  ;;  %v5976_v60 = vld [vmem:[#allocation7 + $0x1a8] sm:$0xf] }
 0x210   :  { %v1754_v39 = vadd.f32 %v1750_v37, %v1731_v24  ;;  %v1755_v41 = vadd.f32 %v1751_v62, %v1744_v38  ;;  %v1707_v45 = vpop.f32.mrf.mxu0  ;;  %v1720_v42 = vpop.f32.mrf.mxu1  ;;  %v5844_v37 = vor.u32 %v7065_v35, %v5841_v40  ;;  %v5848_v62 = vor.u32 %v7068_v43, %v5847_v15  ;;  %v7066_v24 = vld [vmem:[#allocation7 + $0xac] sm:$0xf]  ;;  %v5849_v38 = vld [vmem:[#allocation7 + $0xb8] sm:$0xf0]  ;;  %v7047_v35 = vld [vmem:[#allocation7 + $0xc] sm:$0xf0] }
 0x211   :  { %v7063_v45 = vld [vmem:[#allocation7 + $0x8c] sm:$0xf0]  ;;  %v7061_v42 = vld [vmem:[#allocation7 + $0x84] sm:$0xf]  ;;  %v5760_v40 = vor.u32 %v7047_v35, %v5759_v34  ;;  %v5761_v15 = vld [vmem:[#allocation7 + $0x10] sm:$0xf0] }
 0x212   :  { %7393 = vtanh.f32 %v1754_v39  ;;  %v1765_v44 = vmul.f32 0.5, %v1755_v41  ;;  %v5852_v39 = vor.u32 %v7066_v24, %v5849_v38  ;;  %v5823_v41 = vld [vmem:[#allocation7 + $0x80] sm:$0xf]  ;;  %v5767_v43 = vld [vmem:[#allocation7 + $0x8] sm:$0xf] }
 0x213   :  { %v7390_v46 = vpop.eup %7389  ;;  %2560 = vmatpush.bf16.msra.mxu0 %v5840_v53  ;;  %2586 = vmatpush.bf16.msra.mxu2 %v5848_v62  ;;  %v7045_v53 = vld [vmem:[#allocation7 + $0x4] sm:$0xf]  ;;  %v7048_v38 = vld [vmem:[#allocation7 + $0x14] sm:$0xf0] }
 0x214   :  { %v7392_v47 = vpop.eup %7391  ;;  %v1758_v48 = vmul.f32 0.5, %v7390_v46  ;;  %7395 = vtanh.f32 %v1765_v44  ;;  %v5824_v44 = vor.u32 %v7063_v45, %v5823_v41  ;;  %v5825_v46 = vld [vmem:[#allocation7 + $0x90] sm:$0xf0]  ;;  %v5764_v24 = vor.u32 %v7045_v53, %v5761_v15  ;;  %v5769_v41 = vld [vmem:[#allocation7 + $0x18] sm:$0xf0] }
 0x215   :  { %v1762_v50 = vmul.f32 0.5, %v7392_v47  ;;  %v5831_v47 = vld [vmem:[#allocation7 + $0x88] sm:$0xf]  ;;  %v5768_v45 = vor.u32 %v7048_v38, %v5767_v43  ;;  %v7100_v22 = vld [vmem:[#allocation7 + $0x1b4] sm:$0xf0] }
 0x216   :  { %v1759_v51 = vadd.f32 0.5, %v1758_v48  ;;  %v7064_v48 = vld [vmem:[#allocation7 + $0x94] sm:$0xf0]  ;;  %v5977_v27 = vor.u32 %v7100_v22, %v5976_v60  ;;  %v5952_v43 = vld [vmem:[#allocation7 + $0x180] sm:$0xf] }
 0x217   :  { %v1763_v29 = vadd.f32 0.5, %v1762_v50  ;;  %v1733_v52 = vpop.f32.mrf.mxu2  ;;  %v1746_v31 = vpop.f32.mrf.mxu3  ;;  %v5828_v50 = vor.u32 %v7061_v42, %v5825_v46  ;;  %2561 = vmatpush.bf16.msra.mxu0 %v5824_v44  ;;  %v6000_v44 = vld [vmem:[#allocation7 + $0x1e0] sm:$0xf]  ;;  %v7107_v46 = vld [vmem:[#allocation7 + $0x1ec] sm:$0xf0] }
 0x218   :  { %v7394_v54 = vpop.eup %7393  ;;  %v5833_v52 = vld [vmem:[#allocation7 + $0x98] sm:$0xf0]  ;;  %v7086_v22 = vld [vmem:[#allocation7 + $0x14c] sm:$0xf] }
 0x219   :  { %v1769_v55 = vmul.f32 %v1763_v29, %v7783_v30  ;;  %v1770_v56 = vmul.f32 %v7394_v54, %v1759_v51  ;;  %v5832_v51 = vor.u32 %v7064_v48, %v5831_v47  ;;  %v7062_v29 = vld [vmem:[#allocation7 + $0x8c] sm:$0xf]  ;;  %v5807_v54 = vld [vmem:[#allocation7 + $0x60] sm:$0xf]  ;;  %v7105_v47 = vld [vmem:[#allocation7 + $0x1e4] sm:$0xf]  ;;  %v6001_v48 = vor.u32 %v7107_v46, %v6000_v44 }
 0x21a   :  { %v7396_v57 = vpop.eup %7395  ;;  %v5836_v31 = vor.u32 %v7062_v29, %v5833_v52  ;;  %v7108_v29 = vld [vmem:[#allocation7 + $0x1f4] sm:$0xf0]  ;;  %v7094_v46 = vld [vmem:[#allocation7 + $0x18c] sm:$0xf] }
 0x21b   :  { %v1771_v61 = vadd.f32 %v1770_v56, %v1769_v55  ;;  %v1767_v0 = vmul.f32 0.5, %v7396_v57  ;;  %2587 = vmatpush.bf16.msra.mxu2 %v5832_v51  ;;  %v7059_v55 = vld [vmem:[#allocation7 + $0x6c] sm:$0xf0]  ;;  %v7057_v56 = vld [vmem:[#allocation7 + $0x64] sm:$0xf] }
 0x21c   :  { %v5808_v57 = vor.u32 %v7059_v55, %v5807_v54  ;;  %v6008_v51 = vld [vmem:[#allocation7 + $0x1e8] sm:$0xf]  ;;  %v1790_v54 = vld [vmem:[#allocation4 + $0x38] sm:$0xff] }
 0x21d   :  { %7397 = vtanh.f32 %v1771_v61  ;;  %v7812_v63 = vsel %vm1781_vm15, %v1771_v61, %v7783_v30  ;;  %v1768_v1 = vadd.f32 0.5, %v1767_v0  ;;  %v7073_v30 = vld [vmem:[#allocation7 + $0xe4] sm:$0xf]  ;;  %v5815_v61 = vld [vmem:[#allocation7 + $0x68] sm:$0xf] }
 0x21e   :  { %v5876_v12 = vor.u32 %v7073_v30, %v5873_v11  ;;  %v7060_v0 = vld [vmem:[#allocation7 + $0x74] sm:$0xf0]  ;;  %2562 = vmatpush.bf16.msra.mxu0 %v5808_v57  ;;  %v7053_v30 = vld [vmem:[#allocation7 + $0x44] sm:$0xf]  ;;  %v5793_v11 = vld [vmem:[#allocation7 + $0x50] sm:$0xf0] }
 0x21f   :  { %v7106_v57 = vld [vmem:[#allocation7 + $0x1ec] sm:$0xf]  ;;  %v7096_v44 = vld [vmem:[#allocation7 + $0x194] sm:$0xf0] }
 0x220   :  { %2571 = vmatpush.bf16.msra.mxu1 %v5876_v12  ;;  %v5796_v12 = vor.u32 %v7053_v30, %v5793_v11  ;;  %v7104_v30 = vld [vmem:[#allocation7 + $0x1d4] sm:$0xf0] }
 0x221   :  { %v5993_v10 = vor.u32 %v7104_v30, %v5992_v8  ;;  %v7090_v8 = vld [vmem:[#allocation7 + $0x16c] sm:$0xf]  ;;  %v5946_v30 = vld [vmem:[#allocation7 + $0x178] sm:$0xf0] }
 0x222   :  { %2563 = vmatpush.bf16.msra.mxu0 %v5792_v9 }
 0x223   :  { %v7398_v2 = vpop.eup %7397 }
 0x224   :  { %v1773_v4 = vmul.f32 %v7398_v2, %v1768_v1  ;;  %2572 = vmatpush.bf16.msra.mxu1 %v5860_v23  ;;  %v5812_v1 = vor.u32 %v7057_v56, %v5809_v59  ;;  %v5816_v2 = vor.u32 %v7060_v0, %v5815_v61  ;;  %v5780_v23 = vor.u32 %v7049_v18, %v5777_v20  ;;  %v6010_v59 = vld [vmem:[#allocation7 + $0x1f8] sm:$0xf0]  ;;  %v7097_v18 = vld [vmem:[#allocation7 + $0x1a4] sm:$0xf]  ;;  %v5970_v20 = vld [vmem:[#allocation7 + $0x1b0] sm:$0xf0] }
 0x225   :  { %v6009_v56 = vor.u32 %v7108_v29, %v6008_v51  ;;  %v5973_v26 = vor.u32 %v7097_v18, %v5970_v20  ;;  %v2067_v18 = vpop.permute.xlu0 %2066 }
 0x226   :  { %v1784_v5 = vsel %vm1781_vm15, %v1773_v4, 0.0  ;;  %v7815_v6 = vsel %vm1781_vm15, %v1773_v4, %v7787_v36  ;;  %v5881_v36 = vld [vmem:[#allocation7 + $0xf8] sm:$0xf0]  ;;  %v7058_v4 = vld [vmem:[#allocation7 + $0x6c] sm:$0xf]  ;;  %2588 = vmatpush.bf16.msra.mxu2 %v5816_v2  ;;  %2564 = vmatpush.bf16.msra.mxu0 %v5776_v19  ;;  %v5969_v19 = vor.u32 %v7099_v17, %v5968_v28  ;;  %vm2068_vm0 = vcmp.eq.s32.totalorder %v2067_v18, 1 }
 0x227   :  { %1786 = vst [vmem:[#allocation9 + $0x50] sm:$0xff] %v1784_v5  ;;  %v2077_v49 = vpack.c.bf16 %v7815_v6, %v7815_v6  ;;  %v5884_v16 = vor.u32 %v7074_v14, %v5881_v36  ;;  %v5817_v5 = vld [vmem:[#allocation7 + $0x78] sm:$0xf0]  ;;  %v7054_v14 = vld [vmem:[#allocation7 + $0x4c] sm:$0xf] }
 0x228   :  { %2573 = vmatpush.bf16.msra.mxu1 %v5844_v37  ;;  %v5801_v36 = vld [vmem:[#allocation7 + $0x58] sm:$0xf0]  ;;  %v5984_v2 = vld [vmem:[#allocation7 + $0x1c0] sm:$0xf]  ;;  %v5928_v28 = vld [vmem:[#allocation7 + $0x148] sm:$0xf] }
 0x229   :  { %2278 = vmatmul.bf16.vlgmr.msrb.gmra.mxu0 %v2077_v49  ;;  %2291 = vmatmul.bf16.vlgmr.msrb.gmra.mxu1 %v2077_v49  ;;  %v7088_v17 = vld [vmem:[#allocation7 + $0x154] sm:$0xf0] }
 0x22a   :  { %2304 = vmatmul.bf16.vlgmr.msrb.gmra.mxu2 %v2077_v49  ;;  %2317 = vmatmul.bf16.vlgmr.msrb.gmra.mxu3 %v2077_v49  ;;  %v5820_v49 = vor.u32 %v7058_v4, %v5817_v5  ;;  %v7103_v4 = vld [vmem:[#allocation7 + $0x1cc] sm:$0xf0]  ;;  %v7101_v5 = vld [vmem:[#allocation7 + $0x1c4] sm:$0xf]  ;;  %v5929_v60 = vor.u32 %v7088_v17, %v5928_v28 }
 0x22b   :  { %2597 = vmatpush.bf16.msra.mxu3 %v5884_v16  ;;  %v5804_v16 = vor.u32 %v7054_v14, %v5801_v36  ;;  %2589 = vmatpush.bf16.msra.mxu2 %v5800_v13  ;;  %v5989_v21 = vor.u32 %v7101_v5, %v5986_v7  ;;  %v5994_v13 = vld [vmem:[#allocation7 + $0x1d8] sm:$0xf0]  ;;  %v2038_v14 = vunpack.c.l.bf16 %v1790_v54  ;;  %v2039_v36 = vunpack.c.h.bf16 %v1790_v54  ;;  %v7091_v54 = vld [vmem:[#allocation7 + $0x16c] sm:$0xf0]  ;;  %v7092_v5 = vld [vmem:[#allocation7 + $0x174] sm:$0xf0] }
 0x22c   :  { %2574 = vmatpush.bf16.msra.mxu1 %v5828_v50  ;;  %2565 = vmatpush.bf16.msra.mxu0 %v5760_v40  ;;  %v6002_v50 = vld [vmem:[#allocation7 + $0x1f0] sm:$0xf0] }
 0x22d   :  { %v6005_v55 = vor.u32 %v7105_v47, %v6002_v50  ;;  %v5962_v47 = vld [vmem:[#allocation7 + $0x198] sm:$0xf0] }
 0x22e   :  { %v5965_v29 = vor.u32 %v7094_v46, %v5962_v47 }
 0x22f   :  { %2598 = vmatpush.bf16.msra.mxu3 %v5868_v32  ;;  %v1789_v32 = vld [vmem:[#allocation4 + $0x30] sm:$0xff]  ;;  %2590 = vmatpush.bf16.msra.mxu2 %v5784_v3 }
 0x230   :  { %2575 = vmatpush.bf16.msra.mxu1 %v5812_v1  ;;  %v2036_v37 = vunpack.c.l.bf16 %v1789_v32  ;;  %v2037_v62 = vunpack.c.h.bf16 %v1789_v32  ;;  %2844 = vmatpush.bf16.msrb.mxu0 %v6001_v48  ;;  %v6013_v1 = vor.u32 %v7106_v57, %v6010_v59  ;;  %v7098_v32 = vld [vmem:[#allocation7 + $0x1ac] sm:$0xf]  ;;  %v7089_v57 = vld [vmem:[#allocation7 + $0x164] sm:$0xf]  ;;  %v5938_v59 = vld [vmem:[#allocation7 + $0x170] sm:$0xf0] }
 0x233   :  { %2599 = vmatpush.bf16.msra.mxu3 %v5852_v39  ;;  %v7046_v39 = vld [vmem:[#allocation7 + $0xc] sm:$0xf]  ;;  %2591 = vmatpush.bf16.msra.mxu2 %v5768_v45 }
 0x234   :  { %2576 = vmatpush.bf16.msra.mxu1 %v5796_v12  ;;  %v5772_v42 = vor.u32 %v7046_v39, %v5769_v41  ;;  %v7102_v12 = vld [vmem:[#allocation7 + $0x1cc] sm:$0xf]  ;;  %v5954_v39 = vld [vmem:[#allocation7 + $0x190] sm:$0xf0]  ;;  %v5960_v41 = vld [vmem:[#allocation7 + $0x188] sm:$0xf] }
 0x235   :  { %v5961_v51 = vor.u32 %v7096_v44, %v5960_v41  ;;  %v7077_v44 = vld [vmem:[#allocation7 + $0x104] sm:$0xf] }
 0x237   :  { %2600 = vmatpush.bf16.msra.mxu3 %v5836_v31  ;;  %2870 = vmatpush.bf16.msrb.mxu2 %v6009_v56 }
 0x238   :  { %2577 = vmatpush.bf16.msra.mxu1 %v5780_v23 }
 0x23b   :  { %2601 = vmatpush.bf16.msra.mxu3 %v5820_v49  ;;  %v5985_v49 = vor.u32 %v7103_v4, %v5984_v2  ;;  %2871 = vmatpush.bf16.msrb.mxu2 %v5993_v10  ;;  %v5941_v2 = vor.u32 %v7089_v57, %v5938_v59  ;;  %v5944_v4 = vld [vmem:[#allocation7 + $0x168] sm:$0xf]  ;;  %v5920_v10 = vld [vmem:[#allocation7 + $0x140] sm:$0xf] }
 0x23c   :  { %2578 = vmatpush.bf16.msra.mxu1 %v5764_v24  ;;  %v5945_v7 = vor.u32 %v7092_v5, %v5944_v4  ;;  %v2076_v5 = vld [vmem:[#allocation4 + $0xb8] sm:$0xff] }
 0x23d   :  { %2845 = vmatpush.bf16.msrb.mxu0 %v5985_v49 }
 0x23f   :  { %2602 = vmatpush.bf16.msra.mxu3 %v5804_v16  ;;  %v5997_v16 = vor.u32 %v7102_v12, %v5994_v13  ;;  %2872 = vmatpush.bf16.msrb.mxu2 %v5977_v27  ;;  %v7087_v12 = vld [vmem:[#allocation7 + $0x14c] sm:$0xf0]  ;;  %v7085_v13 = vld [vmem:[#allocation7 + $0x144] sm:$0xf] }
 0x240   :  { %2857 = vmatpush.bf16.msrb.mxu1 %v6005_v55  ;;  %v2075_v27 = vld [vmem:[#allocation4 + $0xb0] sm:$0xff] }
 0x241   :  { %2846 = vmatpush.bf16.msrb.mxu0 %v5969_v19  ;;  %v2323_v46 = vunpack.c.h.bf16 %v2075_v27 }
 0x243   :  { %2603 = vmatpush.bf16.msra.mxu3 %v5788_v25  ;;  %v5978_v25 = vld [vmem:[#allocation7 + $0x1b8] sm:$0xf0]  ;;  %2873 = vmatpush.bf16.msrb.mxu2 %v5961_v51  ;;  %v7080_v51 = vld [vmem:[#allocation7 + $0x114] sm:$0xf0] }
 0x244   :  { %2858 = vmatpush.bf16.msrb.mxu1 %v5989_v21  ;;  %v5981_v15 = vor.u32 %v7098_v32, %v5978_v25  ;;  %v5949_v21 = vor.u32 %v7090_v8, %v5946_v30  ;;  %v5904_v32 = vld [vmem:[#allocation7 + $0x120] sm:$0xf]  ;;  %v7083_v25 = vld [vmem:[#allocation7 + $0x12c] sm:$0xf0]  ;;  %v2324_v30 = vunpack.c.l.bf16 %v2076_v5 }
 0x247   :  { %2604 = vmatpush.bf16.msra.mxu3 %v5772_v42  ;;  %2874 = vmatpush.bf16.msrb.mxu2 %v5945_v7 }
 0x248   :  { %2859 = vmatpush.bf16.msrb.mxu1 %v5973_v26 }
 0x24b   :  { %2883 = vmatpush.bf16.msrb.mxu3 %v6013_v1  ;;  %2875 = vmatpush.bf16.msrb.mxu2 %v5929_v60 }
 0x24f   :  { %2884 = vmatpush.bf16.msrb.mxu3 %v5997_v16  ;;  %v5922_v16 = vld [vmem:[#allocation7 + $0x150] sm:$0xf0] }
 0x250   :  { %v5925_v20 = vor.u32 %v7085_v13, %v5922_v16 }
 0x253   :  { %2885 = vmatpush.bf16.msrb.mxu3 %v5981_v15  ;;  %v5912_v15 = vld [vmem:[#allocation7 + $0x128] sm:$0xf] }
 0x257   :  { %2886 = vmatpush.bf16.msrb.mxu3 %v5965_v29 }
 0x25b   :  { %2887 = vmatpush.bf16.msrb.mxu3 %v5949_v21 }
 0x286   :  { %v1993_v52 = vpop.f32.mrf.mxu0  ;;  %v2006_v31 = vpop.f32.mrf.mxu1 }
 0x287   :  { %v2040_v61 = vadd.f32 %v2036_v37, %v1993_v52  ;;  %v2041_v0 = vadd.f32 %v2037_v62, %v2006_v31  ;;  %v7095_v37 = vld [vmem:[#allocation7 + $0x18c] sm:$0xf0]  ;;  %v7093_v62 = vld [vmem:[#allocation7 + $0x184] sm:$0xf]  ;;  %v5936_v31 = vld [vmem:[#allocation7 + $0x160] sm:$0xf] }
 0x288   :  { %v5953_v38 = vor.u32 %v7095_v37, %v5952_v43  ;;  %v5957_v42 = vor.u32 %v7093_v62, %v5954_v39  ;;  %v5937_v56 = vor.u32 %v7091_v54, %v5936_v31  ;;  %v7084_v37 = vld [vmem:[#allocation7 + $0x134] sm:$0xf0]  ;;  %v7082_v62 = vld [vmem:[#allocation7 + $0x12c] sm:$0xf] }
 0x289   :  { %v2044_v9 = vmul.f32 0.5, %v2040_v61  ;;  %v2048_v11 = vmul.f32 0.5, %v2041_v0  ;;  %v5913_v39 = vor.u32 %v7084_v37, %v5912_v15  ;;  %v7078_v54 = vld [vmem:[#allocation7 + $0x10c] sm:$0xf] }
 0x28a   :  { %2847 = vmatpush.bf16.msrb.mxu0 %v5953_v38  ;;  %2860 = vmatpush.bf16.msrb.mxu1 %v5957_v42  ;;  %v7079_v42 = vld [vmem:[#allocation7 + $0x10c] sm:$0xf0] }
 0x28b   :  { %7399 = vtanh.f32 %v2044_v9  ;;  %2876 = vmatpush.bf16.msrb.mxu2 %v5913_v39 }
 0x28c   :  { %7401 = vtanh.f32 %v2048_v11 }
 0x28d   :  { %v2019_v23 = vpop.f32.mrf.mxu2  ;;  %v2032_v3 = vpop.f32.mrf.mxu3 }
 0x28e   :  { %v2042_v34 = vadd.f32 %v2038_v14, %v2019_v23  ;;  %v2043_v35 = vadd.f32 %v2039_v36, %v2032_v3  ;;  %v1995_v53 = vpop.f32.mrf.mxu0  ;;  %v2008_v40 = vpop.f32.mrf.mxu1  ;;  %2848 = vmatpush.bf16.msrb.mxu0 %v5937_v56  ;;  %2861 = vmatpush.bf16.msrb.mxu1 %v5941_v2  ;;  %v5921_v36 = vor.u32 %v7087_v12, %v5920_v10  ;;  %v5930_v23 = vld [vmem:[#allocation7 + $0x158] sm:$0xf0] }
 0x28f   :  { %v5933_v26 = vor.u32 %v7086_v22, %v5930_v23  ;;  %v7081_v53 = vld [vmem:[#allocation7 + $0x124] sm:$0xf]  ;;  %v5906_v40 = vld [vmem:[#allocation7 + $0x130] sm:$0xf0] }
 0x290   :  { %7403 = vtanh.f32 %v2042_v34  ;;  %v2053_v24 = vmul.f32 0.5, %v2043_v35  ;;  %v5905_v35 = vor.u32 %v7083_v25, %v5904_v32  ;;  %v5909_v43 = vor.u32 %v7081_v53, %v5906_v40 }
 0x291   :  { %v7400_v45 = vpop.eup %7399  ;;  %2888 = vmatpush.bf16.msrb.mxu3 %v5933_v26 }
 0x292   :  { %v7402_v48 = vpop.eup %7401  ;;  %v2046_v50 = vmul.f32 0.5, %v7400_v45  ;;  %7405 = vtanh.f32 %v2053_v24  ;;  %2849 = vmatpush.bf16.msrb.mxu0 %v5921_v36  ;;  %2862 = vmatpush.bf16.msrb.mxu1 %v5925_v20  ;;  %v5914_v24 = vld [vmem:[#allocation7 + $0x138] sm:$0xf0]  ;;  %v5888_v45 = vld [vmem:[#allocation7 + $0x100] sm:$0xf] }
 0x293   :  { %v2050_v52 = vmul.f32 0.5, %v7402_v48  ;;  %v5917_v41 = vor.u32 %v7082_v62, %v5914_v24  ;;  %v5889_v47 = vor.u32 %v7079_v42, %v5888_v45  ;;  %v5890_v48 = vld [vmem:[#allocation7 + $0x110] sm:$0xf0]  ;;  %v6129_v24 = vld [vmem:[#allocation7 + $0xe0] sm:$0xf] }
 0x294   :  { %v2047_v55 = vadd.f32 0.5, %v2046_v50  ;;  %v5896_v50 = vld [vmem:[#allocation7 + $0x108] sm:$0xf]  ;;  %v7140_v42 = vld [vmem:[#allocation7 + $0xf4] sm:$0xf0] }
 0x295   :  { %v2051_v61 = vadd.f32 0.5, %v2050_v52  ;;  %v2021_v0 = vpop.f32.mrf.mxu2  ;;  %v2034_v1 = vpop.f32.mrf.mxu3  ;;  %2889 = vmatpush.bf16.msrb.mxu3 %v5917_v41  ;;  %v5893_v52 = vor.u32 %v7077_v44, %v5890_v48  ;;  %v5897_v31 = vor.u32 %v7080_v51, %v5896_v50  ;;  %v6131_v41 = vld [vmem:[#allocation7 + $0xf0] sm:$0xf0]  ;;  %v6137_v45 = vld [vmem:[#allocation7 + $0xe8] sm:$0xf] }
 0x296   :  { %v7404_v49 = vpop.eup %7403  ;;  %2850 = vmatpush.bf16.msrb.mxu0 %v5905_v35  ;;  %2863 = vmatpush.bf16.msrb.mxu1 %v5909_v43  ;;  %v6113_v48 = vld [vmem:[#allocation7 + $0xc0] sm:$0xf]  ;;  %v7135_v50 = vld [vmem:[#allocation7 + $0xcc] sm:$0xf0]  ;;  %v7133_v51 = vld [vmem:[#allocation7 + $0xc4] sm:$0xf] }
 0x297   :  { %v2057_v9 = vmul.f32 %v2051_v61, %v7799_v58  ;;  %v2058_v11 = vmul.f32 %v7404_v49, %v2047_v55  ;;  %v5898_v55 = vld [vmem:[#allocation7 + $0x118] sm:$0xf0]  ;;  %2877 = vmatpush.bf16.msrb.mxu2 %v5897_v31  ;;  %v6121_v31 = vld [vmem:[#allocation7 + $0xc8] sm:$0xf] }
 0x298   :  { %v7406_v14 = vpop.eup %7405  ;;  %v5901_v57 = vor.u32 %v7078_v54, %v5898_v55  ;;  %v7136_v54 = vld [vmem:[#allocation7 + $0xd4] sm:$0xf0] }
 0x299   :  { %v2059_v19 = vadd.f32 %v2058_v11, %v2057_v9  ;;  %v2055_v3 = vmul.f32 0.5, %v7406_v14  ;;  %v2325_v9 = vunpack.c.h.bf16 %v2076_v5 }
 0x29a   :  { %2851 = vmatpush.bf16.msrb.mxu0 %v5889_v47  ;;  %2864 = vmatpush.bf16.msrb.mxu1 %v5893_v52  ;;  %v6115_v52 = vld [vmem:[#allocation7 + $0xd0] sm:$0xf0] }
 0x29b   :  { %7407 = vtanh.f32 %v2059_v19  ;;  %v7822_v34 = vsel %vm2068_vm0, %v2059_v19, %v7799_v58  ;;  %v2056_v38 = vadd.f32 0.5, %v2055_v3  ;;  %v2322_v58 = vunpack.c.l.bf16 %v2075_v27  ;;  %2890 = vmatpush.bf16.msrb.mxu3 %v5901_v57  ;;  %v2354_v27 = vpop.permute.xlu1 %2353  ;;  %v7134_v57 = vld [vmem:[#allocation7 + $0xcc] sm:$0xf] }
 0x29c   :  { %vm2355_vm1 = vcmp.eq.s32.totalorder %v2354_v27, 1  ;;  %v6118_v55 = vor.u32 %v7133_v51, %v6115_v52  ;;  %v6067_v27 = vld [vmem:[#allocation7 + $0x70] sm:$0xf0]  ;;  %v7113_v51 = vld [vmem:[#allocation7 + $0x24] sm:$0xf] }
 0x29d   :  { %v6035_v52 = vld [vmem:[#allocation7 + $0x30] sm:$0xf0] }
 0x2a1   :  { %v7408_v29 = vpop.eup %7407 }
 0x2a2   :  { %v2061_v56 = vmul.f32 %v7408_v29, %v2056_v38  ;;  %v7139_v38 = vld [vmem:[#allocation7 + $0xec] sm:$0xf0]  ;;  %v6114_v29 = vor.u32 %v7135_v50, %v6113_v48  ;;  %v6033_v48 = vld [vmem:[#allocation7 + $0x20] sm:$0xf] }
 0x2a3   :  { %v6130_v39 = vor.u32 %v7139_v38, %v6129_v24  ;;  %v6049_v24 = vld [vmem:[#allocation7 + $0x40] sm:$0xf]  ;;  %v7119_v38 = vld [vmem:[#allocation7 + $0x4c] sm:$0xf0] }
 0x2a4   :  { %v2071_v0 = vsel %vm2068_vm0, %v2061_v56, 0.0  ;;  %v7827_v4 = vsel %vm2068_vm0, %v2061_v56, %v7804_v33  ;;  %v6122_v56 = vor.u32 %v7136_v54, %v6121_v31  ;;  %v7115_v50 = vld [vmem:[#allocation7 + $0x2c] sm:$0xf0]  ;;  %v6041_v31 = vld [vmem:[#allocation7 + $0x28] sm:$0xf] }
 0x2a5   :  { %2073 = vst [vmem:[#allocation9 + $0x18] sm:$0xff] %v2071_v0  ;;  %v2365_v49 = vpack.c.bf16 %v7827_v4, %v7827_v4  ;;  %v6097_v0 = vld [vmem:[#allocation7 + $0xa0] sm:$0xf]  ;;  %v7116_v54 = vld [vmem:[#allocation7 + $0x34] sm:$0xf0] }
 0x2a6   :  { %v2279_v59 = vpop.f32.mrf.mxu0  ;;  %v2292_v61 = vpop.f32.mrf.mxu1 }
 0x2a7   :  { %v2326_v1 = vadd.f32 %v2322_v58, %v2279_v59  ;;  %v2327_v2 = vadd.f32 %v2323_v46, %v2292_v61  ;;  %2566 = vmatmul.bf16.vlgmr.msra.gmra.mxu0 %v2365_v49  ;;  %2579 = vmatmul.bf16.vlgmr.msra.gmra.mxu1 %v2365_v49  ;;  %v6138_v58 = vor.u32 %v7140_v42, %v6137_v45  ;;  %v7138_v46 = vld [vmem:[#allocation7 + $0xec] sm:$0xf]  ;;  %v6123_v59 = vld [vmem:[#allocation7 + $0xd8] sm:$0xf0]  ;;  %v6057_v45 = vld [vmem:[#allocation7 + $0x48] sm:$0xf] }
 0x2a8   :  { %2592 = vmatmul.bf16.vlgmr.msra.gmra.mxu2 %v2365_v49  ;;  %2605 = vmatmul.bf16.vlgmr.msra.gmra.mxu3 %v2365_v49  ;;  %v6126_v61 = vor.u32 %v7134_v57, %v6123_v59  ;;  %v6099_v49 = vld [vmem:[#allocation7 + $0xb0] sm:$0xf0]  ;;  %v7120_v42 = vld [vmem:[#allocation7 + $0x54] sm:$0xf0]  ;;  %v7114_v57 = vld [vmem:[#allocation7 + $0x2c] sm:$0xf] }
 0x2a9   :  { %v2330_v7 = vmul.f32 0.5, %v2326_v1  ;;  %v2334_v8 = vmul.f32 0.5, %v2327_v2  ;;  %3132 = vmatpush.bf16.msra.mxu0 %v6130_v39  ;;  %3158 = vmatpush.bf16.msra.mxu2 %v6138_v58  ;;  %v7131_v1 = vld [vmem:[#allocation7 + $0xac] sm:$0xf0]  ;;  %v7129_v2 = vld [vmem:[#allocation7 + $0xa4] sm:$0xf]  ;;  %v6050_v39 = vor.u32 %v7119_v38, %v6049_v24  ;;  %v6058_v58 = vor.u32 %v7120_v42, %v6057_v45 }
 0x2aa   :  { %v6098_v5 = vor.u32 %v7131_v1, %v6097_v0  ;;  %v6043_v59 = vld [vmem:[#allocation7 + $0x38] sm:$0xf0]  ;;  %v6017_v1 = vld [vmem:[#allocation7] sm:$0xf]  ;;  %v6244_v24 = vld [vmem:[#allocation7 + $0x1d0] sm:$0xf0] }
 0x2ab   :  { %7409 = vtanh.f32 %v2330_v7  ;;  %v6105_v7 = vld [vmem:[#allocation7 + $0xa8] sm:$0xf]  ;;  %v6046_v0 = vor.u32 %v7114_v57, %v6043_v59 }
 0x2ac   :  { %7411 = vtanh.f32 %v2334_v8  ;;  %v7132_v8 = vld [vmem:[#allocation7 + $0xb4] sm:$0xf0]  ;;  %v6250_v38 = vld [vmem:[#allocation7 + $0x1c8] sm:$0xf] }
 0x2ad   :  { %v2305_v33 = vpop.f32.mrf.mxu2  ;;  %v2318_v11 = vpop.f32.mrf.mxu3  ;;  %3133 = vmatpush.bf16.msra.mxu0 %v6114_v29  ;;  %3159 = vmatpush.bf16.msra.mxu2 %v6122_v56  ;;  %v6034_v29 = vor.u32 %v7115_v50, %v6033_v48  ;;  %v6042_v56 = vor.u32 %v7116_v54, %v6041_v31  ;;  %v6226_v48 = vld [vmem:[#allocation7 + $0x1a0] sm:$0xf]  ;;  %v7163_v50 = vld [vmem:[#allocation7 + $0x1ac] sm:$0xf0]  ;;  %v6234_v31 = vld [vmem:[#allocation7 + $0x1a8] sm:$0xf] }
 0x2ae   :  { %v2328_v21 = vadd.f32 %v2324_v30, %v2305_v33  ;;  %v2329_v10 = vadd.f32 %v2325_v9, %v2318_v11  ;;  %v2281_v12 = vpop.f32.mrf.mxu0  ;;  %v2294_v13 = vpop.f32.mrf.mxu1  ;;  %v6102_v30 = vor.u32 %v7129_v2, %v6099_v49  ;;  %v6106_v9 = vor.u32 %v7132_v8, %v6105_v7  ;;  %v7130_v33 = vld [vmem:[#allocation7 + $0xac] sm:$0xf]  ;;  %v6107_v11 = vld [vmem:[#allocation7 + $0xb8] sm:$0xf0]  ;;  %v7111_v2 = vld [vmem:[#allocation7 + $0xc] sm:$0xf0] }
 0x2af   :  { %v7127_v12 = vld [vmem:[#allocation7 + $0x8c] sm:$0xf0]  ;;  %v7125_v13 = vld [vmem:[#allocation7 + $0x84] sm:$0xf]  ;;  %v6018_v49 = vor.u32 %v7111_v2, %v6017_v1  ;;  %v6019_v7 = vld [vmem:[#allocation7 + $0x10] sm:$0xf0] }
 0x2b0   :  { %7413 = vtanh.f32 %v2328_v21  ;;  %v2339_v14 = vmul.f32 0.5, %v2329_v10  ;;  %v6110_v21 = vor.u32 %v7130_v33, %v6107_v11  ;;  %v6081_v10 = vld [vmem:[#allocation7 + $0x80] sm:$0xf]  ;;  %v6025_v8 = vld [vmem:[#allocation7 + $0x8] sm:$0xf] }
 0x2b1   :  { %v7410_v36 = vpop.eup %7409  ;;  %3134 = vmatpush.bf16.msra.mxu0 %v6098_v5  ;;  %3160 = vmatpush.bf16.msra.mxu2 %v6106_v9  ;;  %v7109_v5 = vld [vmem:[#allocation7 + $0x4] sm:$0xf]  ;;  %v7112_v11 = vld [vmem:[#allocation7 + $0x14] sm:$0xf0] }
 0x2b2   :  { %v7412_v16 = vpop.eup %7411  ;;  %v2332_v28 = vmul.f32 0.5, %v7410_v36  ;;  %7415 = vtanh.f32 %v2339_v14  ;;  %v6082_v14 = vor.u32 %v7127_v12, %v6081_v10  ;;  %v6083_v36 = vld [vmem:[#allocation7 + $0x90] sm:$0xf0]  ;;  %v6022_v33 = vor.u32 %v7109_v5, %v6019_v7  ;;  %v6027_v10 = vld [vmem:[#allocation7 + $0x18] sm:$0xf0] }
 0x2b3   :  { %v2336_v17 = vmul.f32 0.5, %v7412_v16  ;;  %v6089_v16 = vld [vmem:[#allocation7 + $0x88] sm:$0xf]  ;;  %v6026_v12 = vor.u32 %v7112_v11, %v6025_v8  ;;  %v7164_v54 = vld [vmem:[#allocation7 + $0x1b4] sm:$0xf0] }
 0x2b4   :  { %v2333_v18 = vadd.f32 0.5, %v2332_v28  ;;  %v7128_v28 = vld [vmem:[#allocation7 + $0x94] sm:$0xf0]  ;;  %v6235_v59 = vor.u32 %v7164_v54, %v6234_v31  ;;  %v6210_v8 = vld [vmem:[#allocation7 + $0x180] sm:$0xf] }
 0x2b5   :  { %v2337_v19 = vadd.f32 0.5, %v2336_v17  ;;  %v2307_v20 = vpop.f32.mrf.mxu2  ;;  %v2320_v60 = vpop.f32.mrf.mxu3  ;;  %v6086_v17 = vor.u32 %v7125_v13, %v6083_v36  ;;  %3135 = vmatpush.bf16.msra.mxu0 %v6082_v14  ;;  %v6258_v14 = vld [vmem:[#allocation7 + $0x1e0] sm:$0xf]  ;;  %v7171_v36 = vld [vmem:[#allocation7 + $0x1ec] sm:$0xf0] }
 0x2b6   :  { %v7414_v22 = vpop.eup %7413  ;;  %v6091_v20 = vld [vmem:[#allocation7 + $0x98] sm:$0xf0]  ;;  %v7150_v54 = vld [vmem:[#allocation7 + $0x14c] sm:$0xf] }
 0x2b7   :  { %v2343_v23 = vmul.f32 %v2337_v19, %v7812_v63  ;;  %v2344_v3 = vmul.f32 %v7414_v22, %v2333_v18  ;;  %v6090_v18 = vor.u32 %v7128_v28, %v6089_v16  ;;  %v7126_v19 = vld [vmem:[#allocation7 + $0x8c] sm:$0xf]  ;;  %v6065_v22 = vld [vmem:[#allocation7 + $0x60] sm:$0xf]  ;;  %v7169_v16 = vld [vmem:[#allocation7 + $0x1e4] sm:$0xf]  ;;  %v6259_v28 = vor.u32 %v7171_v36, %v6258_v14 }
 0x2b8   :  { %v7416_v26 = vpop.eup %7415  ;;  %v6094_v60 = vor.u32 %v7126_v19, %v6091_v20  ;;  %v7172_v19 = vld [vmem:[#allocation7 + $0x1f4] sm:$0xf0]  ;;  %v7158_v36 = vld [vmem:[#allocation7 + $0x18c] sm:$0xf] }
 0x2b9   :  { %v2345_v32 = vadd.f32 %v2344_v3, %v2343_v23  ;;  %v2341_v35 = vmul.f32 0.5, %v7416_v26  ;;  %3161 = vmatpush.bf16.msra.mxu2 %v6090_v18  ;;  %v7123_v23 = vld [vmem:[#allocation7 + $0x6c] sm:$0xf0]  ;;  %v7121_v3 = vld [vmem:[#allocation7 + $0x64] sm:$0xf] }
 0x2ba   :  { %v6066_v26 = vor.u32 %v7123_v23, %v6065_v22  ;;  %v6266_v18 = vld [vmem:[#allocation7 + $0x1e8] sm:$0xf]  ;;  %v7160_v14 = vld [vmem:[#allocation7 + $0x194] sm:$0xf0] }
 0x2bb   :  { %7417 = vtanh.f32 %v2345_v32  ;;  %v7833_v25 = vsel %vm2355_vm1, %v2345_v32, %v7812_v63  ;;  %v2342_v53 = vadd.f32 0.5, %v2341_v35  ;;  %v7137_v63 = vld [vmem:[#allocation7 + $0xe4] sm:$0xf]  ;;  %v6073_v32 = vld [vmem:[#allocation7 + $0x68] sm:$0xf] }
 0x2bc   :  { %v6134_v44 = vor.u32 %v7137_v63, %v6131_v41  ;;  %v7124_v35 = vld [vmem:[#allocation7 + $0x74] sm:$0xf0]  ;;  %3136 = vmatpush.bf16.msra.mxu0 %v6066_v26  ;;  %v7117_v63 = vld [vmem:[#allocation7 + $0x44] sm:$0xf]  ;;  %v6051_v41 = vld [vmem:[#allocation7 + $0x50] sm:$0xf0] }
 0x2bd   :  { %v2364_v22 = vld [vmem:[#allocation4 + $0x48] sm:$0xff] }
 0x2be   :  { %3145 = vmatpush.bf16.msra.mxu1 %v6134_v44  ;;  %v6054_v44 = vor.u32 %v7117_v63, %v6051_v41  ;;  %v7170_v26 = vld [vmem:[#allocation7 + $0x1ec] sm:$0xf]  ;;  %v7168_v63 = vld [vmem:[#allocation7 + $0x1d4] sm:$0xf0] }
 0x2bf   :  { %v6251_v42 = vor.u32 %v7168_v63, %v6250_v38  ;;  %v7154_v38 = vld [vmem:[#allocation7 + $0x16c] sm:$0xf]  ;;  %v6204_v63 = vld [vmem:[#allocation7 + $0x178] sm:$0xf0] }
 0x2c0   :  { %3137 = vmatpush.bf16.msra.mxu0 %v6050_v39 }
 0x2c1   :  { %v7418_v40 = vpop.eup %7417 }
 0x2c2   :  { %v2347_v15 = vmul.f32 %v7418_v40, %v2342_v53  ;;  %3146 = vmatpush.bf16.msra.mxu1 %v6118_v55  ;;  %v6070_v53 = vor.u32 %v7121_v3, %v6067_v27  ;;  %v6074_v40 = vor.u32 %v7124_v35, %v6073_v32  ;;  %v6038_v55 = vor.u32 %v7113_v51, %v6035_v52  ;;  %v6268_v27 = vld [vmem:[#allocation7 + $0x1f8] sm:$0xf0]  ;;  %v7161_v51 = vld [vmem:[#allocation7 + $0x1a4] sm:$0xf]  ;;  %v6228_v52 = vld [vmem:[#allocation7 + $0x1b0] sm:$0xf0] }
 0x2c3   :  { %v6267_v3 = vor.u32 %v7172_v19, %v6266_v18  ;;  %v6231_v57 = vor.u32 %v7161_v51, %v6228_v52  ;;  %v2641_v51 = vpop.permute.xlu2 %2640 }
 0x2c4   :  { %v2358_v43 = vsel %vm2355_vm1, %v2347_v15, 0.0  ;;  %v7836_v37 = vsel %vm2355_vm1, %v2347_v15, %v7815_v6  ;;  %v6139_v6 = vld [vmem:[#allocation7 + $0xf8] sm:$0xf0]  ;;  %v7122_v15 = vld [vmem:[#allocation7 + $0x6c] sm:$0xf]  ;;  %3162 = vmatpush.bf16.msra.mxu2 %v6074_v40  ;;  %3138 = vmatpush.bf16.msra.mxu0 %v6034_v29  ;;  %v6227_v29 = vor.u32 %v7163_v50, %v6226_v48  ;;  %vm2642_vm2 = vcmp.eq.s32.totalorder %v2641_v51, 1 }
 0x2c5   :  { %2360 = vst [vmem:[#allocation9 + $0x58] sm:$0xff] %v2358_v43  ;;  %v2651_v62 = vpack.c.bf16 %v7836_v37, %v7836_v37  ;;  %v6142_v47 = vor.u32 %v7138_v46, %v6139_v6  ;;  %v6075_v43 = vld [vmem:[#allocation7 + $0x78] sm:$0xf0]  ;;  %v7118_v46 = vld [vmem:[#allocation7 + $0x4c] sm:$0xf] }
 0x2c6   :  { %3147 = vmatpush.bf16.msra.mxu1 %v6102_v30  ;;  %v6059_v6 = vld [vmem:[#allocation7 + $0x58] sm:$0xf0]  ;;  %v6242_v40 = vld [vmem:[#allocation7 + $0x1c0] sm:$0xf]  ;;  %v6186_v48 = vld [vmem:[#allocation7 + $0x148] sm:$0xf] }
 0x2c7   :  { %2852 = vmatmul.bf16.vlgmr.msrb.gmra.mxu0 %v2651_v62  ;;  %2865 = vmatmul.bf16.vlgmr.msrb.gmra.mxu1 %v2651_v62  ;;  %v7152_v50 = vld [vmem:[#allocation7 + $0x154] sm:$0xf0] }
 0x2c8   :  { %2878 = vmatmul.bf16.vlgmr.msrb.gmra.mxu2 %v2651_v62  ;;  %2891 = vmatmul.bf16.vlgmr.msrb.gmra.mxu3 %v2651_v62  ;;  %v6078_v62 = vor.u32 %v7122_v15, %v6075_v43  ;;  %v7167_v15 = vld [vmem:[#allocation7 + $0x1cc] sm:$0xf0]  ;;  %v7165_v43 = vld [vmem:[#allocation7 + $0x1c4] sm:$0xf]  ;;  %v6187_v31 = vor.u32 %v7152_v50, %v6186_v48 }
 0x2c9   :  { %3171 = vmatpush.bf16.msra.mxu3 %v6142_v47  ;;  %v6062_v47 = vor.u32 %v7118_v46, %v6059_v6  ;;  %3163 = vmatpush.bf16.msra.mxu2 %v6058_v58  ;;  %v6247_v45 = vor.u32 %v7165_v43, %v6244_v24  ;;  %v6252_v58 = vld [vmem:[#allocation7 + $0x1d8] sm:$0xf0]  ;;  %v2612_v46 = vunpack.c.l.bf16 %v2364_v22  ;;  %v2613_v6 = vunpack.c.h.bf16 %v2364_v22  ;;  %v7155_v22 = vld [vmem:[#allocation7 + $0x16c] sm:$0xf0]  ;;  %v7156_v43 = vld [vmem:[#allocation7 + $0x174] sm:$0xf0] }
 0x2ca   :  { %3148 = vmatpush.bf16.msra.mxu1 %v6086_v17  ;;  %3139 = vmatpush.bf16.msra.mxu0 %v6018_v49  ;;  %v6260_v17 = vld [vmem:[#allocation7 + $0x1f0] sm:$0xf0] }
 0x2cb   :  { %v6263_v23 = vor.u32 %v7169_v16, %v6260_v17  ;;  %v6220_v16 = vld [vmem:[#allocation7 + $0x198] sm:$0xf0] }
 0x2cc   :  { %v6223_v19 = vor.u32 %v7158_v36, %v6220_v16 }
 0x2cd   :  { %3172 = vmatpush.bf16.msra.mxu3 %v6126_v61  ;;  %v2363_v61 = vld [vmem:[#allocation4 + $0x40] sm:$0xff]  ;;  %3164 = vmatpush.bf16.msra.mxu2 %v6042_v56 }
 0x2ce   :  { %3149 = vmatpush.bf16.msra.mxu1 %v6070_v53  ;;  %v2610_v30 = vunpack.c.l.bf16 %v2363_v61  ;;  %v2611_v9 = vunpack.c.h.bf16 %v2363_v61  ;;  %3418 = vmatpush.bf16.msrb.mxu0 %v6259_v28  ;;  %v6271_v53 = vor.u32 %v7170_v26, %v6268_v27  ;;  %v7162_v61 = vld [vmem:[#allocation7 + $0x1ac] sm:$0xf]  ;;  %v7153_v26 = vld [vmem:[#allocation7 + $0x164] sm:$0xf]  ;;  %v6196_v27 = vld [vmem:[#allocation7 + $0x170] sm:$0xf0] }
 0x2d1   :  { %3173 = vmatpush.bf16.msra.mxu3 %v6110_v21  ;;  %v7110_v21 = vld [vmem:[#allocation7 + $0xc] sm:$0xf]  ;;  %3165 = vmatpush.bf16.msra.mxu2 %v6026_v12 }
 0x2d2   :  { %3150 = vmatpush.bf16.msra.mxu1 %v6054_v44  ;;  %v6030_v13 = vor.u32 %v7110_v21, %v6027_v10  ;;  %v7166_v44 = vld [vmem:[#allocation7 + $0x1cc] sm:$0xf]  ;;  %v6212_v21 = vld [vmem:[#allocation7 + $0x190] sm:$0xf0]  ;;  %v6218_v10 = vld [vmem:[#allocation7 + $0x188] sm:$0xf] }
 0x2d3   :  { %v6219_v18 = vor.u32 %v7160_v14, %v6218_v10  ;;  %v7141_v14 = vld [vmem:[#allocation7 + $0x104] sm:$0xf] }
 0x2d5   :  { %3174 = vmatpush.bf16.msra.mxu3 %v6094_v60  ;;  %3444 = vmatpush.bf16.msrb.mxu2 %v6267_v3 }
 0x2d6   :  { %3151 = vmatpush.bf16.msra.mxu1 %v6038_v55 }
 0x2d9   :  { %3175 = vmatpush.bf16.msra.mxu3 %v6078_v62  ;;  %v6243_v62 = vor.u32 %v7167_v15, %v6242_v40  ;;  %3445 = vmatpush.bf16.msrb.mxu2 %v6251_v42  ;;  %v6199_v40 = vor.u32 %v7153_v26, %v6196_v27  ;;  %v6202_v15 = vld [vmem:[#allocation7 + $0x168] sm:$0xf]  ;;  %v6178_v42 = vld [vmem:[#allocation7 + $0x140] sm:$0xf] }
 0x2da   :  { %3152 = vmatpush.bf16.msra.mxu1 %v6022_v33  ;;  %v6203_v24 = vor.u32 %v7156_v43, %v6202_v15  ;;  %v2650_v43 = vld [vmem:[#allocation4 + $0xc8] sm:$0xff] }
 0x2db   :  { %3419 = vmatpush.bf16.msrb.mxu0 %v6243_v62 }
 0x2dd   :  { %3176 = vmatpush.bf16.msra.mxu3 %v6062_v47  ;;  %v6255_v47 = vor.u32 %v7166_v44, %v6252_v58  ;;  %3446 = vmatpush.bf16.msrb.mxu2 %v6235_v59  ;;  %v7151_v44 = vld [vmem:[#allocation7 + $0x14c] sm:$0xf0]  ;;  %v7149_v58 = vld [vmem:[#allocation7 + $0x144] sm:$0xf] }
 0x2de   :  { %3431 = vmatpush.bf16.msrb.mxu1 %v6263_v23  ;;  %v2649_v59 = vld [vmem:[#allocation4 + $0xc0] sm:$0xff] }
 0x2df   :  { %3420 = vmatpush.bf16.msrb.mxu0 %v6227_v29  ;;  %v2897_v36 = vunpack.c.h.bf16 %v2649_v59 }
 0x2e1   :  { %3177 = vmatpush.bf16.msra.mxu3 %v6046_v0  ;;  %v6236_v0 = vld [vmem:[#allocation7 + $0x1b8] sm:$0xf0]  ;;  %3447 = vmatpush.bf16.msrb.mxu2 %v6219_v18  ;;  %v7144_v18 = vld [vmem:[#allocation7 + $0x114] sm:$0xf0] }
 0x2e2   :  { %3432 = vmatpush.bf16.msrb.mxu1 %v6247_v45  ;;  %v6239_v7 = vor.u32 %v7162_v61, %v6236_v0  ;;  %v6207_v45 = vor.u32 %v7154_v38, %v6204_v63  ;;  %v6162_v61 = vld [vmem:[#allocation7 + $0x120] sm:$0xf]  ;;  %v7147_v0 = vld [vmem:[#allocation7 + $0x12c] sm:$0xf0]  ;;  %v2898_v63 = vunpack.c.l.bf16 %v2650_v43 }
 0x2e5   :  { %3178 = vmatpush.bf16.msra.mxu3 %v6030_v13  ;;  %3448 = vmatpush.bf16.msrb.mxu2 %v6203_v24 }
 0x2e6   :  { %3433 = vmatpush.bf16.msrb.mxu1 %v6231_v57 }
 0x2e9   :  { %3457 = vmatpush.bf16.msrb.mxu3 %v6271_v53  ;;  %3449 = vmatpush.bf16.msrb.mxu2 %v6187_v31 }
 0x2ed   :  { %3458 = vmatpush.bf16.msrb.mxu3 %v6255_v47  ;;  %v6180_v47 = vld [vmem:[#allocation7 + $0x150] sm:$0xf0] }
 0x2ee   :  { %v6183_v52 = vor.u32 %v7149_v58, %v6180_v47 }
 0x2f1   :  { %3459 = vmatpush.bf16.msrb.mxu3 %v6239_v7  ;;  %v6170_v7 = vld [vmem:[#allocation7 + $0x128] sm:$0xf] }
 0x2f5   :  { %3460 = vmatpush.bf16.msrb.mxu3 %v6223_v19 }
 0x2f9   :  { %3461 = vmatpush.bf16.msrb.mxu3 %v6207_v45 }
 0x324   :  { %v2567_v20 = vpop.f32.mrf.mxu0  ;;  %v2580_v60 = vpop.f32.mrf.mxu1 }
 0x325   :  { %v2614_v32 = vadd.f32 %v2610_v30, %v2567_v20  ;;  %v2615_v35 = vadd.f32 %v2611_v9, %v2580_v60  ;;  %v7159_v30 = vld [vmem:[#allocation7 + $0x18c] sm:$0xf0]  ;;  %v7157_v9 = vld [vmem:[#allocation7 + $0x184] sm:$0xf]  ;;  %v6194_v60 = vld [vmem:[#allocation7 + $0x160] sm:$0xf] }
 0x326   :  { %v6211_v11 = vor.u32 %v7159_v30, %v6210_v8  ;;  %v6215_v13 = vor.u32 %v7157_v9, %v6212_v21  ;;  %v6195_v3 = vor.u32 %v7155_v22, %v6194_v60  ;;  %v7148_v30 = vld [vmem:[#allocation7 + $0x134] sm:$0xf0]  ;;  %v7146_v9 = vld [vmem:[#allocation7 + $0x12c] sm:$0xf] }
 0x327   :  { %v2618_v39 = vmul.f32 0.5, %v2614_v32  ;;  %v2622_v41 = vmul.f32 0.5, %v2615_v35  ;;  %v6171_v21 = vor.u32 %v7148_v30, %v6170_v7  ;;  %v7142_v22 = vld [vmem:[#allocation7 + $0x10c] sm:$0xf] }
 0x328   :  { %3421 = vmatpush.bf16.msrb.mxu0 %v6211_v11  ;;  %3434 = vmatpush.bf16.msrb.mxu1 %v6215_v13  ;;  %v7143_v13 = vld [vmem:[#allocation7 + $0x10c] sm:$0xf0] }
 0x329   :  { %7419 = vtanh.f32 %v2618_v39  ;;  %3450 = vmatpush.bf16.msrb.mxu2 %v6171_v21 }
 0x32a   :  { %7421 = vtanh.f32 %v2622_v41 }
 0x32b   :  { %v2593_v55 = vpop.f32.mrf.mxu2  ;;  %v2606_v56 = vpop.f32.mrf.mxu3 }
 0x32c   :  { %v2616_v1 = vadd.f32 %v2612_v46, %v2593_v55  ;;  %v2617_v2 = vadd.f32 %v2613_v6, %v2606_v56  ;;  %v2569_v5 = vpop.f32.mrf.mxu0  ;;  %v2582_v49 = vpop.f32.mrf.mxu1  ;;  %3422 = vmatpush.bf16.msrb.mxu0 %v6195_v3  ;;  %3435 = vmatpush.bf16.msrb.mxu1 %v6199_v40  ;;  %v6179_v6 = vor.u32 %v7151_v44, %v6178_v42  ;;  %v6188_v55 = vld [vmem:[#allocation7 + $0x158] sm:$0xf0] }
 0x32d   :  { %v6191_v57 = vor.u32 %v7150_v54, %v6188_v55  ;;  %v7145_v5 = vld [vmem:[#allocation7 + $0x124] sm:$0xf]  ;;  %v6164_v49 = vld [vmem:[#allocation7 + $0x130] sm:$0xf0] }
 0x32e   :  { %7423 = vtanh.f32 %v2616_v1  ;;  %v2627_v33 = vmul.f32 0.5, %v2617_v2  ;;  %v6163_v2 = vor.u32 %v7147_v0, %v6162_v61  ;;  %v6167_v8 = vor.u32 %v7145_v5, %v6164_v49 }
 0x32f   :  { %v7420_v12 = vpop.eup %7419  ;;  %3462 = vmatpush.bf16.msrb.mxu3 %v6191_v57 }
 0x330   :  { %v7422_v28 = vpop.eup %7421  ;;  %v2620_v17 = vmul.f32 0.5, %v7420_v12  ;;  %7425 = vtanh.f32 %v2627_v33  ;;  %3423 = vmatpush.bf16.msrb.mxu0 %v6179_v6  ;;  %3436 = vmatpush.bf16.msrb.mxu1 %v6183_v52  ;;  %v6172_v33 = vld [vmem:[#allocation7 + $0x138] sm:$0xf0]  ;;  %v6146_v12 = vld [vmem:[#allocation7 + $0x100] sm:$0xf] }
 0x331   :  { %v2624_v20 = vmul.f32 0.5, %v7422_v28  ;;  %v6175_v10 = vor.u32 %v7146_v9, %v6172_v33  ;;  %v6147_v16 = vor.u32 %v7143_v13, %v6146_v12  ;;  %v6148_v28 = vld [vmem:[#allocation7 + $0x110] sm:$0xf0]  ;;  %v6387_v33 = vld [vmem:[#allocation7 + $0xe0] sm:$0xf] }
 0x332   :  { %v2621_v23 = vadd.f32 0.5, %v2620_v17  ;;  %v6154_v17 = vld [vmem:[#allocation7 + $0x108] sm:$0xf]  ;;  %v7204_v13 = vld [vmem:[#allocation7 + $0xf4] sm:$0xf0] }
 0x333   :  { %v2625_v32 = vadd.f32 0.5, %v2624_v20  ;;  %v2595_v35 = vpop.f32.mrf.mxu2  ;;  %v2608_v53 = vpop.f32.mrf.mxu3  ;;  %3463 = vmatpush.bf16.msrb.mxu3 %v6175_v10  ;;  %v6151_v20 = vor.u32 %v7141_v14, %v6148_v28  ;;  %v6155_v60 = vor.u32 %v7144_v18, %v6154_v17  ;;  %v6389_v10 = vld [vmem:[#allocation7 + $0xf0] sm:$0xf0]  ;;  %v6395_v12 = vld [vmem:[#allocation7 + $0xe8] sm:$0xf] }
 0x334   :  { %v7424_v62 = vpop.eup %7423  ;;  %3424 = vmatpush.bf16.msrb.mxu0 %v6163_v2  ;;  %3437 = vmatpush.bf16.msrb.mxu1 %v6167_v8  ;;  %v6371_v28 = vld [vmem:[#allocation7 + $0xc0] sm:$0xf]  ;;  %v7199_v17 = vld [vmem:[#allocation7 + $0xcc] sm:$0xf0]  ;;  %v7197_v18 = vld [vmem:[#allocation7 + $0xc4] sm:$0xf] }
 0x335   :  { %v2631_v39 = vmul.f32 %v2625_v32, %v7822_v34  ;;  %v2632_v41 = vmul.f32 %v7424_v62, %v2621_v23  ;;  %v6156_v23 = vld [vmem:[#allocation7 + $0x118] sm:$0xf0]  ;;  %3451 = vmatpush.bf16.msrb.mxu2 %v6155_v60  ;;  %v6379_v60 = vld [vmem:[#allocation7 + $0xc8] sm:$0xf] }
 0x336   :  { %v7426_v46 = vpop.eup %7425  ;;  %v6159_v26 = vor.u32 %v7142_v22, %v6156_v23  ;;  %v7200_v22 = vld [vmem:[#allocation7 + $0xd4] sm:$0xf0] }
 0x337   :  { %v2633_v29 = vadd.f32 %v2632_v41, %v2631_v39  ;;  %v2629_v56 = vmul.f32 0.5, %v7426_v46  ;;  %v2899_v39 = vunpack.c.h.bf16 %v2650_v43 }
 0x338   :  { %3425 = vmatpush.bf16.msrb.mxu0 %v6147_v16  ;;  %3438 = vmatpush.bf16.msrb.mxu1 %v6151_v20  ;;  %v6373_v20 = vld [vmem:[#allocation7 + $0xd0] sm:$0xf0] }
 0x339   :  { %7427 = vtanh.f32 %v2633_v29  ;;  %v7843_v1 = vsel %vm2642_vm2, %v2633_v29, %v7822_v34  ;;  %v2630_v11 = vadd.f32 0.5, %v2629_v56  ;;  %v2896_v34 = vunpack.c.l.bf16 %v2649_v59  ;;  %3464 = vmatpush.bf16.msrb.mxu3 %v6159_v26  ;;  %v2928_v59 = vpop.permute.xlu0 %2927  ;;  %v7198_v26 = vld [vmem:[#allocation7 + $0xcc] sm:$0xf] }
 0x33a   :  { %vm2929_vm3 = vcmp.eq.s32.totalorder %v2928_v59, 1  ;;  %v6376_v23 = vor.u32 %v7197_v18, %v6373_v20  ;;  %v6325_v59 = vld [vmem:[#allocation7 + $0x70] sm:$0xf0]  ;;  %v7177_v18 = vld [vmem:[#allocation7 + $0x24] sm:$0xf] }
 0x33b   :  { %v6293_v20 = vld [vmem:[#allocation7 + $0x30] sm:$0xf0] }
 0x33f   :  { %v7428_v19 = vpop.eup %7427 }
 0x340   :  { %v2635_v3 = vmul.f32 %v7428_v19, %v2630_v11  ;;  %v7203_v11 = vld [vmem:[#allocation7 + $0xec] sm:$0xf0]  ;;  %v6372_v19 = vor.u32 %v7199_v17, %v6371_v28  ;;  %v6291_v28 = vld [vmem:[#allocation7 + $0x20] sm:$0xf] }
 0x341   :  { %v6388_v21 = vor.u32 %v7203_v11, %v6387_v33  ;;  %v6307_v33 = vld [vmem:[#allocation7 + $0x40] sm:$0xf]  ;;  %v7183_v11 = vld [vmem:[#allocation7 + $0x4c] sm:$0xf0] }
 0x342   :  { %v2645_v35 = vsel %vm2642_vm2, %v2635_v3, 0.0  ;;  %v7848_v15 = vsel %vm2642_vm2, %v2635_v3, %v7827_v4  ;;  %v6380_v3 = vor.u32 %v7200_v22, %v6379_v60  ;;  %v7179_v17 = vld [vmem:[#allocation7 + $0x2c] sm:$0xf0]  ;;  %v6299_v60 = vld [vmem:[#allocation7 + $0x28] sm:$0xf] }
 0x343   :  { %2647 = vst [vmem:[#allocation9 + $0x20] sm:$0xff] %v2645_v35  ;;  %v2939_v62 = vpack.c.bf16 %v7848_v15, %v7848_v15  ;;  %v6355_v35 = vld [vmem:[#allocation7 + $0xa0] sm:$0xf]  ;;  %v7180_v22 = vld [vmem:[#allocation7 + $0x34] sm:$0xf0] }
 0x344   :  { %v2853_v27 = vpop.f32.mrf.mxu0  ;;  %v2866_v32 = vpop.f32.mrf.mxu1 }
 0x345   :  { %v2900_v53 = vadd.f32 %v2896_v34, %v2853_v27  ;;  %v2901_v40 = vadd.f32 %v2897_v36, %v2866_v32  ;;  %3140 = vmatmul.bf16.vlgmr.msra.gmra.mxu0 %v2939_v62  ;;  %3153 = vmatmul.bf16.vlgmr.msra.gmra.mxu1 %v2939_v62  ;;  %v6396_v34 = vor.u32 %v7204_v13, %v6395_v12  ;;  %v7202_v36 = vld [vmem:[#allocation7 + $0xec] sm:$0xf]  ;;  %v6381_v27 = vld [vmem:[#allocation7 + $0xd8] sm:$0xf0]  ;;  %v6315_v12 = vld [vmem:[#allocation7 + $0x48] sm:$0xf] }
 0x346   :  { %3166 = vmatmul.bf16.vlgmr.msra.gmra.mxu2 %v2939_v62  ;;  %3179 = vmatmul.bf16.vlgmr.msra.gmra.mxu3 %v2939_v62  ;;  %v6384_v32 = vor.u32 %v7198_v26, %v6381_v27  ;;  %v6357_v62 = vld [vmem:[#allocation7 + $0xb0] sm:$0xf0]  ;;  %v7184_v13 = vld [vmem:[#allocation7 + $0x54] sm:$0xf0]  ;;  %v7178_v26 = vld [vmem:[#allocation7 + $0x2c] sm:$0xf] }
 0x347   :  { %v2904_v24 = vmul.f32 0.5, %v2900_v53  ;;  %v2908_v38 = vmul.f32 0.5, %v2901_v40  ;;  %3706 = vmatpush.bf16.msra.mxu0 %v6388_v21  ;;  %3732 = vmatpush.bf16.msra.mxu2 %v6396_v34  ;;  %v7195_v53 = vld [vmem:[#allocation7 + $0xac] sm:$0xf0]  ;;  %v7193_v40 = vld [vmem:[#allocation7 + $0xa4] sm:$0xf]  ;;  %v6308_v21 = vor.u32 %v7183_v11, %v6307_v33  ;;  %v6316_v34 = vor.u32 %v7184_v13, %v6315_v12 }
 0x348   :  { %v6356_v43 = vor.u32 %v7195_v53, %v6355_v35  ;;  %v6301_v27 = vld [vmem:[#allocation7 + $0x38] sm:$0xf0]  ;;  %v6275_v53 = vld [vmem:[#allocation7] sm:$0xf]  ;;  %v6502_v33 = vld [vmem:[#allocation7 + $0x1d0] sm:$0xf0] }
 0x349   :  { %7429 = vtanh.f32 %v2904_v24  ;;  %v6363_v24 = vld [vmem:[#allocation7 + $0xa8] sm:$0xf]  ;;  %v6304_v35 = vor.u32 %v7178_v26, %v6301_v27 }
 0x34a   :  { %7431 = vtanh.f32 %v2908_v38  ;;  %v7196_v38 = vld [vmem:[#allocation7 + $0xb4] sm:$0xf0]  ;;  %v6508_v11 = vld [vmem:[#allocation7 + $0x1c8] sm:$0xf] }
 0x34b   :  { %v2879_v4 = vpop.f32.mrf.mxu2  ;;  %v2892_v41 = vpop.f32.mrf.mxu3  ;;  %3707 = vmatpush.bf16.msra.mxu0 %v6372_v19  ;;  %3733 = vmatpush.bf16.msra.mxu2 %v6380_v3  ;;  %v6292_v19 = vor.u32 %v7179_v17, %v6291_v28  ;;  %v6300_v3 = vor.u32 %v7180_v22, %v6299_v60  ;;  %v6484_v28 = vld [vmem:[#allocation7 + $0x1a0] sm:$0xf]  ;;  %v7227_v17 = vld [vmem:[#allocation7 + $0x1ac] sm:$0xf0]  ;;  %v6492_v60 = vld [vmem:[#allocation7 + $0x1a8] sm:$0xf] }
 0x34c   :  { %v2902_v45 = vadd.f32 %v2898_v63, %v2879_v4  ;;  %v2903_v42 = vadd.f32 %v2899_v39, %v2892_v41  ;;  %v2855_v44 = vpop.f32.mrf.mxu0  ;;  %v2868_v58 = vpop.f32.mrf.mxu1  ;;  %v6360_v63 = vor.u32 %v7193_v40, %v6357_v62  ;;  %v6364_v39 = vor.u32 %v7196_v38, %v6363_v24  ;;  %v7194_v4 = vld [vmem:[#allocation7 + $0xac] sm:$0xf]  ;;  %v6365_v41 = vld [vmem:[#allocation7 + $0xb8] sm:$0xf0]  ;;  %v7175_v40 = vld [vmem:[#allocation7 + $0xc] sm:$0xf0] }
 0x34d   :  { %v7191_v44 = vld [vmem:[#allocation7 + $0x8c] sm:$0xf0]  ;;  %v7189_v58 = vld [vmem:[#allocation7 + $0x84] sm:$0xf]  ;;  %v6276_v62 = vor.u32 %v7175_v40, %v6275_v53  ;;  %v6277_v24 = vld [vmem:[#allocation7 + $0x10] sm:$0xf0] }
 0x34e   :  { %7433 = vtanh.f32 %v2902_v45  ;;  %v2913_v46 = vmul.f32 0.5, %v2903_v42  ;;  %v6368_v45 = vor.u32 %v7194_v4, %v6365_v41  ;;  %v6339_v42 = vld [vmem:[#allocation7 + $0x80] sm:$0xf]  ;;  %v6283_v38 = vld [vmem:[#allocation7 + $0x8] sm:$0xf] }
 0x34f   :  { %v7430_v6 = vpop.eup %7429  ;;  %3708 = vmatpush.bf16.msra.mxu0 %v6356_v43  ;;  %3734 = vmatpush.bf16.msra.mxu2 %v6364_v39  ;;  %v7173_v43 = vld [vmem:[#allocation7 + $0x4] sm:$0xf]  ;;  %v7176_v41 = vld [vmem:[#allocation7 + $0x14] sm:$0xf0] }
 0x350   :  { %v7432_v47 = vpop.eup %7431  ;;  %v2906_v48 = vmul.f32 0.5, %v7430_v6  ;;  %7435 = vtanh.f32 %v2913_v46  ;;  %v6340_v46 = vor.u32 %v7191_v44, %v6339_v42  ;;  %v6341_v6 = vld [vmem:[#allocation7 + $0x90] sm:$0xf0]  ;;  %v6280_v4 = vor.u32 %v7173_v43, %v6277_v24  ;;  %v6285_v42 = vld [vmem:[#allocation7 + $0x18] sm:$0xf0] }
 0x351   :  { %v2910_v50 = vmul.f32 0.5, %v7432_v47  ;;  %v6347_v47 = vld [vmem:[#allocation7 + $0x88] sm:$0xf]  ;;  %v6284_v44 = vor.u32 %v7176_v41, %v6283_v38  ;;  %v7228_v22 = vld [vmem:[#allocation7 + $0x1b4] sm:$0xf0] }
 0x352   :  { %v2907_v51 = vadd.f32 0.5, %v2906_v48  ;;  %v7192_v48 = vld [vmem:[#allocation7 + $0x94] sm:$0xf0]  ;;  %v6493_v27 = vor.u32 %v7228_v22, %v6492_v60  ;;  %v6468_v38 = vld [vmem:[#allocation7 + $0x180] sm:$0xf] }
 0x353   :  { %v2911_v29 = vadd.f32 0.5, %v2910_v50  ;;  %v2881_v52 = vpop.f32.mrf.mxu2  ;;  %v2894_v31 = vpop.f32.mrf.mxu3  ;;  %v6344_v50 = vor.u32 %v7189_v58, %v6341_v6  ;;  %3709 = vmatpush.bf16.msra.mxu0 %v6340_v46  ;;  %v6516_v46 = vld [vmem:[#allocation7 + $0x1e0] sm:$0xf]  ;;  %v7235_v6 = vld [vmem:[#allocation7 + $0x1ec] sm:$0xf0] }
 0x354   :  { %v7434_v54 = vpop.eup %7433  ;;  %v6349_v52 = vld [vmem:[#allocation7 + $0x98] sm:$0xf0]  ;;  %v7214_v22 = vld [vmem:[#allocation7 + $0x14c] sm:$0xf] }
 0x355   :  { %v2917_v55 = vmul.f32 %v2911_v29, %v7833_v25  ;;  %v2918_v56 = vmul.f32 %v7434_v54, %v2907_v51  ;;  %v6348_v51 = vor.u32 %v7192_v48, %v6347_v47  ;;  %v7190_v29 = vld [vmem:[#allocation7 + $0x8c] sm:$0xf]  ;;  %v6323_v54 = vld [vmem:[#allocation7 + $0x60] sm:$0xf]  ;;  %v7233_v47 = vld [vmem:[#allocation7 + $0x1e4] sm:$0xf]  ;;  %v6517_v48 = vor.u32 %v7235_v6, %v6516_v46 }
 0x356   :  { %v7436_v57 = vpop.eup %7435  ;;  %v6352_v31 = vor.u32 %v7190_v29, %v6349_v52  ;;  %v7236_v29 = vld [vmem:[#allocation7 + $0x1f4] sm:$0xf0]  ;;  %v7222_v6 = vld [vmem:[#allocation7 + $0x18c] sm:$0xf] }
 0x357   :  { %v2919_v61 = vadd.f32 %v2918_v56, %v2917_v55  ;;  %v2915_v2 = vmul.f32 0.5, %v7436_v57  ;;  %3735 = vmatpush.bf16.msra.mxu2 %v6348_v51  ;;  %v7187_v55 = vld [vmem:[#allocation7 + $0x6c] sm:$0xf0]  ;;  %v7185_v56 = vld [vmem:[#allocation7 + $0x64] sm:$0xf] }
 0x358   :  { %v6324_v57 = vor.u32 %v7187_v55, %v6323_v54  ;;  %v6524_v51 = vld [vmem:[#allocation7 + $0x1e8] sm:$0xf]  ;;  %v2938_v54 = vld [vmem:[#allocation4 + $0x58] sm:$0xff] }
 0x359   :  { %7437 = vtanh.f32 %v2919_v61  ;;  %v7854_v0 = vsel %vm2929_vm3, %v2919_v61, %v7833_v25  ;;  %v2916_v5 = vadd.f32 0.5, %v2915_v2  ;;  %v7201_v25 = vld [vmem:[#allocation7 + $0xe4] sm:$0xf]  ;;  %v6331_v61 = vld [vmem:[#allocation7 + $0x68] sm:$0xf] }
 0x35a   :  { %v6392_v14 = vor.u32 %v7201_v25, %v6389_v10  ;;  %v7188_v2 = vld [vmem:[#allocation7 + $0x74] sm:$0xf0]  ;;  %3710 = vmatpush.bf16.msra.mxu0 %v6324_v57  ;;  %v7181_v25 = vld [vmem:[#allocation7 + $0x44] sm:$0xf]  ;;  %v6309_v10 = vld [vmem:[#allocation7 + $0x50] sm:$0xf0] }
 0x35b   :  { %v7234_v57 = vld [vmem:[#allocation7 + $0x1ec] sm:$0xf]  ;;  %v7224_v46 = vld [vmem:[#allocation7 + $0x194] sm:$0xf0] }
 0x35c   :  { %3719 = vmatpush.bf16.msra.mxu1 %v6392_v14  ;;  %v6312_v14 = vor.u32 %v7181_v25, %v6309_v10  ;;  %v7232_v25 = vld [vmem:[#allocation7 + $0x1d4] sm:$0xf0] }
 0x35d   :  { %v6509_v13 = vor.u32 %v7232_v25, %v6508_v11  ;;  %v7218_v11 = vld [vmem:[#allocation7 + $0x16c] sm:$0xf]  ;;  %v6462_v25 = vld [vmem:[#allocation7 + $0x178] sm:$0xf0] }
 0x35e   :  { %3711 = vmatpush.bf16.msra.mxu0 %v6308_v21 }
 0x35f   :  { %v7438_v49 = vpop.eup %7437 }
 0x360   :  { %v2921_v7 = vmul.f32 %v7438_v49, %v2916_v5  ;;  %3720 = vmatpush.bf16.msra.mxu1 %v6376_v23  ;;  %v6328_v5 = vor.u32 %v7185_v56, %v6325_v59  ;;  %v6332_v49 = vor.u32 %v7188_v2, %v6331_v61  ;;  %v6296_v23 = vor.u32 %v7177_v18, %v6293_v20  ;;  %v6526_v59 = vld [vmem:[#allocation7 + $0x1f8] sm:$0xf0]  ;;  %v7225_v18 = vld [vmem:[#allocation7 + $0x1a4] sm:$0xf]  ;;  %v6486_v20 = vld [vmem:[#allocation7 + $0x1b0] sm:$0xf0] }
 0x361   :  { %v6525_v56 = vor.u32 %v7236_v29, %v6524_v51  ;;  %v6489_v26 = vor.u32 %v7225_v18, %v6486_v20  ;;  %v3215_v18 = vpop.permute.xlu1 %3214 }
 0x362   :  { %v2932_v8 = vsel %vm2929_vm3, %v2921_v7, 0.0  ;;  %v7857_v30 = vsel %vm2929_vm3, %v2921_v7, %v7836_v37  ;;  %v6397_v37 = vld [vmem:[#allocation7 + $0xf8] sm:$0xf0]  ;;  %v7186_v7 = vld [vmem:[#allocation7 + $0x6c] sm:$0xf]  ;;  %3736 = vmatpush.bf16.msra.mxu2 %v6332_v49  ;;  %3712 = vmatpush.bf16.msra.mxu0 %v6292_v19  ;;  %v6485_v19 = vor.u32 %v7227_v17, %v6484_v28  ;;  %vm3216_vm4 = vcmp.eq.s32.totalorder %v3215_v18, 1 }
 0x363   :  { %2934 = vst [vmem:[#allocation9 + $0x60] sm:$0xff] %v2932_v8  ;;  %v3225_v9 = vpack.c.bf16 %v7857_v30, %v7857_v30  ;;  %v6400_v16 = vor.u32 %v7202_v36, %v6397_v37  ;;  %v6333_v8 = vld [vmem:[#allocation7 + $0x78] sm:$0xf0]  ;;  %v7182_v36 = vld [vmem:[#allocation7 + $0x4c] sm:$0xf] }
 0x364   :  { %3721 = vmatpush.bf16.msra.mxu1 %v6360_v63  ;;  %v6317_v37 = vld [vmem:[#allocation7 + $0x58] sm:$0xf0]  ;;  %v6500_v49 = vld [vmem:[#allocation7 + $0x1c0] sm:$0xf]  ;;  %v6444_v28 = vld [vmem:[#allocation7 + $0x148] sm:$0xf] }
 0x365   :  { %3426 = vmatmul.bf16.vlgmr.msrb.gmra.mxu0 %v3225_v9  ;;  %3439 = vmatmul.bf16.vlgmr.msrb.gmra.mxu1 %v3225_v9  ;;  %v7216_v17 = vld [vmem:[#allocation7 + $0x154] sm:$0xf0] }
 0x366   :  { %3452 = vmatmul.bf16.vlgmr.msrb.gmra.mxu2 %v3225_v9  ;;  %3465 = vmatmul.bf16.vlgmr.msrb.gmra.mxu3 %v3225_v9  ;;  %v6336_v9 = vor.u32 %v7186_v7, %v6333_v8  ;;  %v7231_v7 = vld [vmem:[#allocation7 + $0x1cc] sm:$0xf0]  ;;  %v7229_v8 = vld [vmem:[#allocation7 + $0x1c4] sm:$0xf]  ;;  %v6445_v60 = vor.u32 %v7216_v17, %v6444_v28 }
 0x367   :  { %3745 = vmatpush.bf16.msra.mxu3 %v6400_v16  ;;  %v6320_v16 = vor.u32 %v7182_v36, %v6317_v37  ;;  %3737 = vmatpush.bf16.msra.mxu2 %v6316_v34  ;;  %v6505_v12 = vor.u32 %v7229_v8, %v6502_v33  ;;  %v6510_v34 = vld [vmem:[#allocation7 + $0x1d8] sm:$0xf0]  ;;  %v3186_v36 = vunpack.c.l.bf16 %v2938_v54  ;;  %v3187_v37 = vunpack.c.h.bf16 %v2938_v54  ;;  %v7219_v54 = vld [vmem:[#allocation7 + $0x16c] sm:$0xf0]  ;;  %v7220_v8 = vld [vmem:[#allocation7 + $0x174] sm:$0xf0] }
 0x368   :  { %3722 = vmatpush.bf16.msra.mxu1 %v6344_v50  ;;  %3713 = vmatpush.bf16.msra.mxu0 %v6276_v62  ;;  %v6518_v50 = vld [vmem:[#allocation7 + $0x1f0] sm:$0xf0] }
 0x369   :  { %v6521_v55 = vor.u32 %v7233_v47, %v6518_v50  ;;  %v6478_v47 = vld [vmem:[#allocation7 + $0x198] sm:$0xf0] }
 0x36a   :  { %v6481_v29 = vor.u32 %v7222_v6, %v6478_v47 }
 0x36b   :  { %3746 = vmatpush.bf16.msra.mxu3 %v6384_v32  ;;  %v2937_v32 = vld [vmem:[#allocation4 + $0x50] sm:$0xff]  ;;  %3738 = vmatpush.bf16.msra.mxu2 %v6300_v3 }
 0x36c   :  { %3723 = vmatpush.bf16.msra.mxu1 %v6328_v5  ;;  %v3184_v63 = vunpack.c.l.bf16 %v2937_v32  ;;  %v3185_v39 = vunpack.c.h.bf16 %v2937_v32  ;;  %3992 = vmatpush.bf16.msrb.mxu0 %v6517_v48  ;;  %v6529_v5 = vor.u32 %v7234_v57, %v6526_v59  ;;  %v7226_v32 = vld [vmem:[#allocation7 + $0x1ac] sm:$0xf]  ;;  %v7217_v57 = vld [vmem:[#allocation7 + $0x164] sm:$0xf]  ;;  %v6454_v59 = vld [vmem:[#allocation7 + $0x170] sm:$0xf0] }
 0x36f   :  { %3747 = vmatpush.bf16.msra.mxu3 %v6368_v45  ;;  %v7174_v45 = vld [vmem:[#allocation7 + $0xc] sm:$0xf]  ;;  %3739 = vmatpush.bf16.msra.mxu2 %v6284_v44 }
 0x370   :  { %3724 = vmatpush.bf16.msra.mxu1 %v6312_v14  ;;  %v6288_v58 = vor.u32 %v7174_v45, %v6285_v42  ;;  %v7230_v14 = vld [vmem:[#allocation7 + $0x1cc] sm:$0xf]  ;;  %v6470_v45 = vld [vmem:[#allocation7 + $0x190] sm:$0xf0]  ;;  %v6476_v42 = vld [vmem:[#allocation7 + $0x188] sm:$0xf] }
 0x371   :  { %v6477_v51 = vor.u32 %v7224_v46, %v6476_v42  ;;  %v7205_v46 = vld [vmem:[#allocation7 + $0x104] sm:$0xf] }
 0x373   :  { %3748 = vmatpush.bf16.msra.mxu3 %v6352_v31  ;;  %4018 = vmatpush.bf16.msrb.mxu2 %v6525_v56 }
 0x374   :  { %3725 = vmatpush.bf16.msra.mxu1 %v6296_v23 }
 0x377   :  { %3749 = vmatpush.bf16.msra.mxu3 %v6336_v9  ;;  %v6501_v9 = vor.u32 %v7231_v7, %v6500_v49  ;;  %4019 = vmatpush.bf16.msrb.mxu2 %v6509_v13  ;;  %v6457_v49 = vor.u32 %v7217_v57, %v6454_v59  ;;  %v6460_v7 = vld [vmem:[#allocation7 + $0x168] sm:$0xf]  ;;  %v6436_v13 = vld [vmem:[#allocation7 + $0x140] sm:$0xf] }
 0x378   :  { %3726 = vmatpush.bf16.msra.mxu1 %v6280_v4  ;;  %v6461_v33 = vor.u32 %v7220_v8, %v6460_v7  ;;  %v3224_v8 = vld [vmem:[#allocation4 + $0xd8] sm:$0xff] }
 0x379   :  { %3993 = vmatpush.bf16.msrb.mxu0 %v6501_v9 }
 0x37b   :  { %3750 = vmatpush.bf16.msra.mxu3 %v6320_v16  ;;  %v6513_v16 = vor.u32 %v7230_v14, %v6510_v34  ;;  %4020 = vmatpush.bf16.msrb.mxu2 %v6493_v27  ;;  %v7215_v14 = vld [vmem:[#allocation7 + $0x14c] sm:$0xf0]  ;;  %v7213_v34 = vld [vmem:[#allocation7 + $0x144] sm:$0xf] }
 0x37c   :  { %4005 = vmatpush.bf16.msrb.mxu1 %v6521_v55  ;;  %v3223_v27 = vld [vmem:[#allocation4 + $0xd0] sm:$0xff] }
 0x37d   :  { %3994 = vmatpush.bf16.msrb.mxu0 %v6485_v19  ;;  %v3471_v6 = vunpack.c.h.bf16 %v3223_v27 }
 0x37f   :  { %3751 = vmatpush.bf16.msra.mxu3 %v6304_v35  ;;  %v6494_v35 = vld [vmem:[#allocation7 + $0x1b8] sm:$0xf0]  ;;  %4021 = vmatpush.bf16.msrb.mxu2 %v6477_v51  ;;  %v7208_v51 = vld [vmem:[#allocation7 + $0x114] sm:$0xf0] }
 0x380   :  { %4006 = vmatpush.bf16.msrb.mxu1 %v6505_v12  ;;  %v6497_v24 = vor.u32 %v7226_v32, %v6494_v35  ;;  %v6465_v12 = vor.u32 %v7218_v11, %v6462_v25  ;;  %v6420_v32 = vld [vmem:[#allocation7 + $0x120] sm:$0xf]  ;;  %v7211_v35 = vld [vmem:[#allocation7 + $0x12c] sm:$0xf0]  ;;  %v3472_v25 = vunpack.c.l.bf16 %v3224_v8 }
 0x383   :  { %3752 = vmatpush.bf16.msra.mxu3 %v6288_v58  ;;  %4022 = vmatpush.bf16.msrb.mxu2 %v6461_v33 }
 0x384   :  { %4007 = vmatpush.bf16.msrb.mxu1 %v6489_v26 }
 0x387   :  { %4031 = vmatpush.bf16.msrb.mxu3 %v6529_v5  ;;  %4023 = vmatpush.bf16.msrb.mxu2 %v6445_v60 }
 0x38b   :  { %4032 = vmatpush.bf16.msrb.mxu3 %v6513_v16  ;;  %v6438_v16 = vld [vmem:[#allocation7 + $0x150] sm:$0xf0] }
 0x38c   :  { %v6441_v20 = vor.u32 %v7213_v34, %v6438_v16 }
 0x38f   :  { %4033 = vmatpush.bf16.msrb.mxu3 %v6497_v24  ;;  %v6428_v24 = vld [vmem:[#allocation7 + $0x128] sm:$0xf] }
 0x393   :  { %4034 = vmatpush.bf16.msrb.mxu3 %v6481_v29 }
 0x397   :  { %4035 = vmatpush.bf16.msrb.mxu3 %v6465_v12 }
 0x3c2   :  { %v3141_v52 = vpop.f32.mrf.mxu0  ;;  %v3154_v31 = vpop.f32.mrf.mxu1 }
 0x3c3   :  { %v3188_v61 = vadd.f32 %v3184_v63, %v3141_v52  ;;  %v3189_v2 = vadd.f32 %v3185_v39, %v3154_v31  ;;  %v7223_v63 = vld [vmem:[#allocation7 + $0x18c] sm:$0xf0]  ;;  %v7221_v39 = vld [vmem:[#allocation7 + $0x184] sm:$0xf]  ;;  %v6452_v31 = vld [vmem:[#allocation7 + $0x160] sm:$0xf] }
 0x3c4   :  { %v6469_v41 = vor.u32 %v7223_v63, %v6468_v38  ;;  %v6473_v58 = vor.u32 %v7221_v39, %v6470_v45  ;;  %v6453_v56 = vor.u32 %v7219_v54, %v6452_v31  ;;  %v7212_v63 = vld [vmem:[#allocation7 + $0x134] sm:$0xf0]  ;;  %v7210_v39 = vld [vmem:[#allocation7 + $0x12c] sm:$0xf] }
 0x3c5   :  { %v3192_v21 = vmul.f32 0.5, %v3188_v61  ;;  %v3196_v10 = vmul.f32 0.5, %v3189_v2  ;;  %v6429_v45 = vor.u32 %v7212_v63, %v6428_v24  ;;  %v7206_v54 = vld [vmem:[#allocation7 + $0x10c] sm:$0xf] }
 0x3c6   :  { %3995 = vmatpush.bf16.msrb.mxu0 %v6469_v41  ;;  %4008 = vmatpush.bf16.msrb.mxu1 %v6473_v58  ;;  %v7207_v58 = vld [vmem:[#allocation7 + $0x10c] sm:$0xf0] }
 0x3c7   :  { %7439 = vtanh.f32 %v3192_v21  ;;  %4024 = vmatpush.bf16.msrb.mxu2 %v6429_v45 }
 0x3c8   :  { %7441 = vtanh.f32 %v3196_v10 }
 0x3c9   :  { %v3167_v23 = vpop.f32.mrf.mxu2  ;;  %v3180_v3 = vpop.f32.mrf.mxu3 }
 0x3ca   :  { %v3190_v53 = vadd.f32 %v3186_v36, %v3167_v23  ;;  %v3191_v40 = vadd.f32 %v3187_v37, %v3180_v3  ;;  %v3143_v43 = vpop.f32.mrf.mxu0  ;;  %v3156_v62 = vpop.f32.mrf.mxu1  ;;  %3996 = vmatpush.bf16.msrb.mxu0 %v6453_v56  ;;  %4009 = vmatpush.bf16.msrb.mxu1 %v6457_v49  ;;  %v6437_v37 = vor.u32 %v7215_v14, %v6436_v13  ;;  %v6446_v23 = vld [vmem:[#allocation7 + $0x158] sm:$0xf0] }
 0x3cb   :  { %v6449_v26 = vor.u32 %v7214_v22, %v6446_v23  ;;  %v7209_v43 = vld [vmem:[#allocation7 + $0x124] sm:$0xf]  ;;  %v6422_v62 = vld [vmem:[#allocation7 + $0x130] sm:$0xf0] }
 0x3cc   :  { %7443 = vtanh.f32 %v3190_v53  ;;  %v3201_v4 = vmul.f32 0.5, %v3191_v40  ;;  %v6421_v40 = vor.u32 %v7211_v35, %v6420_v32  ;;  %v6425_v38 = vor.u32 %v7209_v43, %v6422_v62 }
 0x3cd   :  { %v7440_v44 = vpop.eup %7439  ;;  %4036 = vmatpush.bf16.msrb.mxu3 %v6449_v26 }
 0x3ce   :  { %v7442_v48 = vpop.eup %7441  ;;  %v3194_v50 = vmul.f32 0.5, %v7440_v44  ;;  %7445 = vtanh.f32 %v3201_v4  ;;  %3997 = vmatpush.bf16.msrb.mxu0 %v6437_v37  ;;  %4010 = vmatpush.bf16.msrb.mxu1 %v6441_v20  ;;  %v6430_v4 = vld [vmem:[#allocation7 + $0x138] sm:$0xf0]  ;;  %v6404_v44 = vld [vmem:[#allocation7 + $0x100] sm:$0xf] }
 0x3cf   :  { %v3198_v52 = vmul.f32 0.5, %v7442_v48  ;;  %v6433_v42 = vor.u32 %v7210_v39, %v6430_v4  ;;  %v6405_v47 = vor.u32 %v7207_v58, %v6404_v44  ;;  %v6406_v48 = vld [vmem:[#allocation7 + $0x110] sm:$0xf0]  ;;  %v6645_v4 = vld [vmem:[#allocation7 + $0xe0] sm:$0xf] }
 0x3d0   :  { %v3195_v55 = vadd.f32 0.5, %v3194_v50  ;;  %v6412_v50 = vld [vmem:[#allocation7 + $0x108] sm:$0xf]  ;;  %v7268_v58 = vld [vmem:[#allocation7 + $0xf4] sm:$0xf0] }
 0x3d1   :  { %v3199_v61 = vadd.f32 0.5, %v3198_v52  ;;  %v3169_v2 = vpop.f32.mrf.mxu2  ;;  %v3182_v5 = vpop.f32.mrf.mxu3  ;;  %4037 = vmatpush.bf16.msrb.mxu3 %v6433_v42  ;;  %v6409_v52 = vor.u32 %v7205_v46, %v6406_v48  ;;  %v6413_v31 = vor.u32 %v7208_v51, %v6412_v50  ;;  %v6647_v42 = vld [vmem:[#allocation7 + $0xf0] sm:$0xf0]  ;;  %v6653_v44 = vld [vmem:[#allocation7 + $0xe8] sm:$0xf] }
 0x3d2   :  { %v7444_v9 = vpop.eup %7443  ;;  %3998 = vmatpush.bf16.msrb.mxu0 %v6421_v40  ;;  %4011 = vmatpush.bf16.msrb.mxu1 %v6425_v38  ;;  %v6629_v48 = vld [vmem:[#allocation7 + $0xc0] sm:$0xf]  ;;  %v7263_v50 = vld [vmem:[#allocation7 + $0xcc] sm:$0xf0]  ;;  %v7261_v51 = vld [vmem:[#allocation7 + $0xc4] sm:$0xf] }
 0x3d3   :  { %v3205_v21 = vmul.f32 %v3199_v61, %v7843_v1  ;;  %v3206_v10 = vmul.f32 %v7444_v9, %v3195_v55  ;;  %v6414_v55 = vld [vmem:[#allocation7 + $0x118] sm:$0xf0]  ;;  %4025 = vmatpush.bf16.msrb.mxu2 %v6413_v31  ;;  %v6637_v31 = vld [vmem:[#allocation7 + $0xc8] sm:$0xf] }
 0x3d4   :  { %v7446_v36 = vpop.eup %7445  ;;  %v6417_v57 = vor.u32 %v7206_v54, %v6414_v55  ;;  %v7264_v54 = vld [vmem:[#allocation7 + $0xd4] sm:$0xf0] }
 0x3d5   :  { %v3207_v19 = vadd.f32 %v3206_v10, %v3205_v21  ;;  %v3203_v3 = vmul.f32 0.5, %v7446_v36  ;;  %v3473_v21 = vunpack.c.h.bf16 %v3224_v8 }
 0x3d6   :  { %3999 = vmatpush.bf16.msrb.mxu0 %v6405_v47  ;;  %4012 = vmatpush.bf16.msrb.mxu1 %v6409_v52  ;;  %v6631_v52 = vld [vmem:[#allocation7 + $0xd0] sm:$0xf0] }
 0x3d7   :  { %7447 = vtanh.f32 %v3207_v19  ;;  %v7864_v53 = vsel %vm3216_vm4, %v3207_v19, %v7843_v1  ;;  %v3204_v41 = vadd.f32 0.5, %v3203_v3  ;;  %v3470_v1 = vunpack.c.l.bf16 %v3223_v27  ;;  %4038 = vmatpush.bf16.msrb.mxu3 %v6417_v57  ;;  %v3502_v27 = vpop.permute.xlu2 %3501  ;;  %v7262_v57 = vld [vmem:[#allocation7 + $0xcc] sm:$0xf] }
 0x3d8   :  { %vm3503_vm5 = vcmp.eq.s32.totalorder %v3502_v27, 1  ;;  %v6634_v55 = vor.u32 %v7261_v51, %v6631_v52  ;;  %v6583_v27 = vld [vmem:[#allocation7 + $0x70] sm:$0xf0]  ;;  %v7241_v51 = vld [vmem:[#allocation7 + $0x24] sm:$0xf] }
 0x3d9   :  { %v6551_v52 = vld [vmem:[#allocation7 + $0x30] sm:$0xf0] }
 0x3dd   :  { %v7448_v29 = vpop.eup %7447 }
 0x3de   :  { %v3209_v56 = vmul.f32 %v7448_v29, %v3204_v41  ;;  %v7267_v41 = vld [vmem:[#allocation7 + $0xec] sm:$0xf0]  ;;  %v6630_v29 = vor.u32 %v7263_v50, %v6629_v48  ;;  %v6549_v48 = vld [vmem:[#allocation7 + $0x20] sm:$0xf] }
 0x3df   :  { %v6646_v45 = vor.u32 %v7267_v41, %v6645_v4  ;;  %v6565_v4 = vld [vmem:[#allocation7 + $0x40] sm:$0xf]  ;;  %v7247_v41 = vld [vmem:[#allocation7 + $0x4c] sm:$0xf0] }
 0x3e0   :  { %v7868_v2 = vsel %vm3216_vm4, %v3209_v56, %v7848_v15  ;;  %v3219_v5 = vsel %vm3216_vm4, %v3209_v56, 0.0  ;;  %v6638_v56 = vor.u32 %v7264_v54, %v6637_v31  ;;  %v7243_v50 = vld [vmem:[#allocation7 + $0x2c] sm:$0xf0]  ;;  %v6557_v31 = vld [vmem:[#allocation7 + $0x28] sm:$0xf] }
 0x3e1   :  { %3221 = vst [vmem:[#allocation9 + $0x28] sm:$0xff] %v3219_v5  ;;  %v3513_v9 = vpack.c.bf16 %v7868_v2, %v7868_v2  ;;  %v6613_v5 = vld [vmem:[#allocation7 + $0xa0] sm:$0xf]  ;;  %v7244_v54 = vld [vmem:[#allocation7 + $0x34] sm:$0xf0] }
 0x3e2   :  { %v3427_v59 = vpop.f32.mrf.mxu0  ;;  %v3440_v61 = vpop.f32.mrf.mxu1 }
 0x3e3   :  { %v3474_v49 = vadd.f32 %v3470_v1, %v3427_v59  ;;  %v3475_v7 = vadd.f32 %v3471_v6, %v3440_v61  ;;  %3714 = vmatmul.bf16.vlgmr.msra.gmra.mxu0 %v3513_v9  ;;  %3727 = vmatmul.bf16.vlgmr.msra.gmra.mxu1 %v3513_v9  ;;  %v6654_v1 = vor.u32 %v7268_v58, %v6653_v44  ;;  %v6655_v6 = vld [vmem:[#allocation7 + $0xf8] sm:$0xf0]  ;;  %v6573_v44 = vld [vmem:[#allocation7 + $0x48] sm:$0xf]  ;;  %v7248_v58 = vld [vmem:[#allocation7 + $0x54] sm:$0xf0] }
 0x3e4   :  { %3740 = vmatmul.bf16.vlgmr.msra.gmra.mxu2 %v3513_v9  ;;  %3753 = vmatmul.bf16.vlgmr.msra.gmra.mxu3 %v3513_v9  ;;  %v6639_v59 = vld [vmem:[#allocation7 + $0xd8] sm:$0xf0]  ;;  %v6615_v9 = vld [vmem:[#allocation7 + $0xb0] sm:$0xf0] }
 0x3e5   :  { %v3478_v33 = vmul.f32 0.5, %v3474_v49  ;;  %v3482_v11 = vmul.f32 0.5, %v3475_v7  ;;  %4280 = vmatpush.bf16.msra.mxu0 %v6646_v45  ;;  %4306 = vmatpush.bf16.msra.mxu2 %v6654_v1  ;;  %v6642_v61 = vor.u32 %v7262_v57, %v6639_v59  ;;  %v7259_v49 = vld [vmem:[#allocation7 + $0xac] sm:$0xf0]  ;;  %v7257_v7 = vld [vmem:[#allocation7 + $0xa4] sm:$0xf]  ;;  %v6566_v45 = vor.u32 %v7247_v41, %v6565_v4 }
 0x3e6   :  { %v6614_v8 = vor.u32 %v7259_v49, %v6613_v5  ;;  %v6574_v1 = vor.u32 %v7248_v58, %v6573_v44  ;;  %v7242_v57 = vld [vmem:[#allocation7 + $0x2c] sm:$0xf]  ;;  %v6559_v59 = vld [vmem:[#allocation7 + $0x38] sm:$0xf0]  ;;  %v6533_v49 = vld [vmem:[#allocation7] sm:$0xf] }
 0x3e7   :  { %7449 = vtanh.f32 %v3478_v33  ;;  %v6621_v33 = vld [vmem:[#allocation7 + $0xa8] sm:$0xf]  ;;  %v6562_v5 = vor.u32 %v7242_v57, %v6559_v59  ;;  %v6760_v4 = vld [vmem:[#allocation7 + $0x1d0] sm:$0xf0] }
 0x3e8   :  { %7451 = vtanh.f32 %v3482_v11  ;;  %v7260_v11 = vld [vmem:[#allocation7 + $0xb4] sm:$0xf0]  ;;  %v6766_v41 = vld [vmem:[#allocation7 + $0x1c8] sm:$0xf] }
 0x3e9   :  { %v3453_v15 = vpop.f32.mrf.mxu2  ;;  %v3466_v10 = vpop.f32.mrf.mxu3  ;;  %4281 = vmatpush.bf16.msra.mxu0 %v6630_v29  ;;  %4307 = vmatpush.bf16.msra.mxu2 %v6638_v56  ;;  %v6550_v29 = vor.u32 %v7243_v50, %v6549_v48  ;;  %v6558_v56 = vor.u32 %v7244_v54, %v6557_v31  ;;  %v6742_v48 = vld [vmem:[#allocation7 + $0x1a0] sm:$0xf]  ;;  %v7291_v50 = vld [vmem:[#allocation7 + $0x1ac] sm:$0xf0]  ;;  %v6750_v31 = vld [vmem:[#allocation7 + $0x1a8] sm:$0xf] }
 0x3ea   :  { %v3476_v12 = vadd.f32 %v3472_v25, %v3453_v15  ;;  %v3477_v13 = vadd.f32 %v3473_v21, %v3466_v10  ;;  %v3429_v14 = vpop.f32.mrf.mxu0  ;;  %v3442_v34 = vpop.f32.mrf.mxu1  ;;  %v6618_v25 = vor.u32 %v7257_v7, %v6615_v9  ;;  %v6622_v21 = vor.u32 %v7260_v11, %v6621_v33  ;;  %v7258_v15 = vld [vmem:[#allocation7 + $0xac] sm:$0xf]  ;;  %v6623_v10 = vld [vmem:[#allocation7 + $0xb8] sm:$0xf0]  ;;  %v7239_v7 = vld [vmem:[#allocation7 + $0xc] sm:$0xf0] }
 0x3eb   :  { %v7255_v14 = vld [vmem:[#allocation7 + $0x8c] sm:$0xf0]  ;;  %v7253_v34 = vld [vmem:[#allocation7 + $0x84] sm:$0xf]  ;;  %v6534_v9 = vor.u32 %v7239_v7, %v6533_v49  ;;  %v6535_v33 = vld [vmem:[#allocation7 + $0x10] sm:$0xf0] }
 0x3ec   :  { %7453 = vtanh.f32 %v3476_v12  ;;  %v3487_v36 = vmul.f32 0.5, %v3477_v13  ;;  %v6626_v12 = vor.u32 %v7258_v15, %v6623_v10  ;;  %v6597_v13 = vld [vmem:[#allocation7 + $0x80] sm:$0xf]  ;;  %v6541_v11 = vld [vmem:[#allocation7 + $0x8] sm:$0xf] }
 0x3ed   :  { %v7450_v37 = vpop.eup %7449  ;;  %4282 = vmatpush.bf16.msra.mxu0 %v6614_v8  ;;  %4308 = vmatpush.bf16.msra.mxu2 %v6622_v21  ;;  %v7237_v8 = vld [vmem:[#allocation7 + $0x4] sm:$0xf]  ;;  %v7240_v10 = vld [vmem:[#allocation7 + $0x14] sm:$0xf0] }
 0x3ee   :  { %v7452_v16 = vpop.eup %7451  ;;  %v3480_v28 = vmul.f32 0.5, %v7450_v37  ;;  %7455 = vtanh.f32 %v3487_v36  ;;  %v6598_v36 = vor.u32 %v7255_v14, %v6597_v13  ;;  %v6599_v37 = vld [vmem:[#allocation7 + $0x90] sm:$0xf0]  ;;  %v6538_v15 = vor.u32 %v7237_v8, %v6535_v33  ;;  %v6543_v13 = vld [vmem:[#allocation7 + $0x18] sm:$0xf0] }
 0x3ef   :  { %v3484_v17 = vmul.f32 0.5, %v7452_v16  ;;  %v6605_v16 = vld [vmem:[#allocation7 + $0x88] sm:$0xf]  ;;  %v6542_v14 = vor.u32 %v7240_v10, %v6541_v11  ;;  %v7292_v54 = vld [vmem:[#allocation7 + $0x1b4] sm:$0xf0] }
 0x3f0   :  { %v3481_v18 = vadd.f32 0.5, %v3480_v28  ;;  %v7256_v28 = vld [vmem:[#allocation7 + $0x94] sm:$0xf0]  ;;  %v6751_v59 = vor.u32 %v7292_v54, %v6750_v31  ;;  %v6726_v11 = vld [vmem:[#allocation7 + $0x180] sm:$0xf] }
 0x3f1   :  { %v3485_v19 = vadd.f32 0.5, %v3484_v17  ;;  %v3455_v20 = vpop.f32.mrf.mxu2  ;;  %v3468_v60 = vpop.f32.mrf.mxu3  ;;  %v6602_v17 = vor.u32 %v7253_v34, %v6599_v37  ;;  %4283 = vmatpush.bf16.msra.mxu0 %v6598_v36  ;;  %v6774_v36 = vld [vmem:[#allocation7 + $0x1e0] sm:$0xf]  ;;  %v7299_v37 = vld [vmem:[#allocation7 + $0x1ec] sm:$0xf0] }
 0x3f2   :  { %v7454_v22 = vpop.eup %7453  ;;  %v6607_v20 = vld [vmem:[#allocation7 + $0x98] sm:$0xf0]  ;;  %v7278_v54 = vld [vmem:[#allocation7 + $0x14c] sm:$0xf] }
 0x3f3   :  { %v3491_v23 = vmul.f32 %v3485_v19, %v7854_v0  ;;  %v3492_v3 = vmul.f32 %v7454_v22, %v3481_v18  ;;  %v6606_v18 = vor.u32 %v7256_v28, %v6605_v16  ;;  %v7254_v19 = vld [vmem:[#allocation7 + $0x8c] sm:$0xf]  ;;  %v6581_v22 = vld [vmem:[#allocation7 + $0x60] sm:$0xf]  ;;  %v7297_v16 = vld [vmem:[#allocation7 + $0x1e4] sm:$0xf]  ;;  %v6775_v28 = vor.u32 %v7299_v37, %v6774_v36 }
 0x3f4   :  { %v7456_v26 = vpop.eup %7455  ;;  %v6610_v60 = vor.u32 %v7254_v19, %v6607_v20  ;;  %v7300_v19 = vld [vmem:[#allocation7 + $0x1f4] sm:$0xf0]  ;;  %v7286_v37 = vld [vmem:[#allocation7 + $0x18c] sm:$0xf] }
 0x3f5   :  { %v3493_v32 = vadd.f32 %v3492_v3, %v3491_v23  ;;  %v3489_v40 = vmul.f32 0.5, %v7456_v26  ;;  %4309 = vmatpush.bf16.msra.mxu2 %v6606_v18  ;;  %v7251_v23 = vld [vmem:[#allocation7 + $0x6c] sm:$0xf0]  ;;  %v7249_v3 = vld [vmem:[#allocation7 + $0x64] sm:$0xf] }
 0x3f6   :  { %v6582_v26 = vor.u32 %v7251_v23, %v6581_v22  ;;  %v6782_v18 = vld [vmem:[#allocation7 + $0x1e8] sm:$0xf]  ;;  %v7288_v36 = vld [vmem:[#allocation7 + $0x194] sm:$0xf0] }
 0x3f7   :  { %7457 = vtanh.f32 %v3493_v32  ;;  %v7875_v35 = vsel %vm3503_vm5, %v3493_v32, %v7854_v0  ;;  %v3490_v43 = vadd.f32 0.5, %v3489_v40  ;;  %v7265_v0 = vld [vmem:[#allocation7 + $0xe4] sm:$0xf]  ;;  %v6589_v32 = vld [vmem:[#allocation7 + $0x68] sm:$0xf] }
 0x3f8   :  { %v6650_v46 = vor.u32 %v7265_v0, %v6647_v42  ;;  %v7252_v40 = vld [vmem:[#allocation7 + $0x74] sm:$0xf0]  ;;  %4284 = vmatpush.bf16.msra.mxu0 %v6582_v26  ;;  %v7245_v0 = vld [vmem:[#allocation7 + $0x44] sm:$0xf]  ;;  %v6567_v42 = vld [vmem:[#allocation7 + $0x50] sm:$0xf0] }
 0x3f9   :  { %v3512_v22 = vld [vmem:[#allocation4 + $0x68] sm:$0xff] }
 0x3fa   :  { %4293 = vmatpush.bf16.msra.mxu1 %v6650_v46  ;;  %v6570_v46 = vor.u32 %v7245_v0, %v6567_v42  ;;  %v7298_v26 = vld [vmem:[#allocation7 + $0x1ec] sm:$0xf]  ;;  %v7296_v0 = vld [vmem:[#allocation7 + $0x1d4] sm:$0xf0] }
 0x3fb   :  { %v6767_v58 = vor.u32 %v7296_v0, %v6766_v41  ;;  %v7282_v41 = vld [vmem:[#allocation7 + $0x16c] sm:$0xf]  ;;  %v6720_v0 = vld [vmem:[#allocation7 + $0x178] sm:$0xf0] }
 0x3fc   :  { %4285 = vmatpush.bf16.msra.mxu0 %v6566_v45 }
 0x3fd   :  { %v7458_v62 = vpop.eup %7457 }
 0x3fe   :  { %v3495_v24 = vmul.f32 %v7458_v62, %v3490_v43  ;;  %4294 = vmatpush.bf16.msra.mxu1 %v6634_v55  ;;  %v6586_v43 = vor.u32 %v7249_v3, %v6583_v27  ;;  %v6590_v62 = vor.u32 %v7252_v40, %v6589_v32  ;;  %v6554_v55 = vor.u32 %v7241_v51, %v6551_v52  ;;  %v6784_v27 = vld [vmem:[#allocation7 + $0x1f8] sm:$0xf0]  ;;  %v7289_v51 = vld [vmem:[#allocation7 + $0x1a4] sm:$0xf]  ;;  %v6744_v52 = vld [vmem:[#allocation7 + $0x1b0] sm:$0xf0] }
 0x3ff   :  { %v6783_v3 = vor.u32 %v7300_v19, %v6782_v18  ;;  %v6747_v57 = vor.u32 %v7289_v51, %v6744_v52  ;;  %v3789_v51 = vpop.permute.xlu0 %3788 }
 0x400   :  { %v7878_v38 = vsel %vm3503_vm5, %v3495_v24, %v7857_v30  ;;  %v3506_v63 = vsel %vm3503_vm5, %v3495_v24, 0.0  ;;  %v7266_v30 = vld [vmem:[#allocation7 + $0xec] sm:$0xf]  ;;  %4310 = vmatpush.bf16.msra.mxu2 %v6590_v62  ;;  %4286 = vmatpush.bf16.msra.mxu0 %v6550_v29  ;;  %v6758_v62 = vld [vmem:[#allocation7 + $0x1c0] sm:$0xf]  ;;  %v6743_v29 = vor.u32 %v7291_v50, %v6742_v48  ;;  %vm3790_vm6 = vcmp.eq.s32.totalorder %v3789_v51, 1 }
 0x401   :  { %3508 = vst [vmem:[#allocation9 + $0x68] sm:$0xff] %v3506_v63  ;;  %v3799_v39 = vpack.c.bf16 %v7878_v38, %v7878_v38  ;;  %v6658_v47 = vor.u32 %v7266_v30, %v6655_v6  ;;  %v7250_v24 = vld [vmem:[#allocation7 + $0x6c] sm:$0xf]  ;;  %v6591_v63 = vld [vmem:[#allocation7 + $0x78] sm:$0xf0] }
 0x402   :  { %4295 = vmatpush.bf16.msra.mxu1 %v6618_v25  ;;  %v7246_v30 = vld [vmem:[#allocation7 + $0x4c] sm:$0xf]  ;;  %v6575_v6 = vld [vmem:[#allocation7 + $0x58] sm:$0xf0]  ;;  %v6702_v48 = vld [vmem:[#allocation7 + $0x148] sm:$0xf] }
 0x403   :  { %4000 = vmatmul.bf16.vlgmr.msrb.gmra.mxu0 %v3799_v39  ;;  %4013 = vmatmul.bf16.vlgmr.msrb.gmra.mxu1 %v3799_v39  ;;  %v7280_v50 = vld [vmem:[#allocation7 + $0x154] sm:$0xf0] }
 0x404   :  { %4026 = vmatmul.bf16.vlgmr.msrb.gmra.mxu2 %v3799_v39  ;;  %4039 = vmatmul.bf16.vlgmr.msrb.gmra.mxu3 %v3799_v39  ;;  %v6594_v39 = vor.u32 %v7250_v24, %v6591_v63  ;;  %v7295_v24 = vld [vmem:[#allocation7 + $0x1cc] sm:$0xf0]  ;;  %v7293_v63 = vld [vmem:[#allocation7 + $0x1c4] sm:$0xf]  ;;  %v6703_v31 = vor.u32 %v7280_v50, %v6702_v48 }
 0x405   :  { %4319 = vmatpush.bf16.msra.mxu3 %v6658_v47  ;;  %v6578_v47 = vor.u32 %v7246_v30, %v6575_v6  ;;  %4311 = vmatpush.bf16.msra.mxu2 %v6574_v1  ;;  %v6763_v44 = vor.u32 %v7293_v63, %v6760_v4  ;;  %v6768_v1 = vld [vmem:[#allocation7 + $0x1d8] sm:$0xf0]  ;;  %v3760_v30 = vunpack.c.l.bf16 %v3512_v22  ;;  %v3761_v6 = vunpack.c.h.bf16 %v3512_v22  ;;  %v7283_v22 = vld [vmem:[#allocation7 + $0x16c] sm:$0xf0]  ;;  %v7284_v63 = vld [vmem:[#allocation7 + $0x174] sm:$0xf0] }
 0x406   :  { %4296 = vmatpush.bf16.msra.mxu1 %v6602_v17  ;;  %4287 = vmatpush.bf16.msra.mxu0 %v6534_v9  ;;  %v6776_v17 = vld [vmem:[#allocation7 + $0x1f0] sm:$0xf0] }
 0x407   :  { %v6779_v23 = vor.u32 %v7297_v16, %v6776_v17  ;;  %v6736_v16 = vld [vmem:[#allocation7 + $0x198] sm:$0xf0] }
 0x408   :  { %v6739_v19 = vor.u32 %v7286_v37, %v6736_v16 }
 0x409   :  { %4320 = vmatpush.bf16.msra.mxu3 %v6642_v61  ;;  %v3511_v61 = vld [vmem:[#allocation4 + $0x60] sm:$0xff]  ;;  %4312 = vmatpush.bf16.msra.mxu2 %v6558_v56 }
 0x40a   :  { %4297 = vmatpush.bf16.msra.mxu1 %v6586_v43  ;;  %v3758_v25 = vunpack.c.l.bf16 %v3511_v61  ;;  %v3759_v21 = vunpack.c.h.bf16 %v3511_v61  ;;  %4566 = vmatpush.bf16.msrb.mxu0 %v6775_v28  ;;  %v6787_v43 = vor.u32 %v7298_v26, %v6784_v27  ;;  %v7290_v61 = vld [vmem:[#allocation7 + $0x1ac] sm:$0xf]  ;;  %v7281_v26 = vld [vmem:[#allocation7 + $0x164] sm:$0xf]  ;;  %v6712_v27 = vld [vmem:[#allocation7 + $0x170] sm:$0xf0] }
 0x40d   :  { %4321 = vmatpush.bf16.msra.mxu3 %v6626_v12  ;;  %v7238_v12 = vld [vmem:[#allocation7 + $0xc] sm:$0xf]  ;;  %4313 = vmatpush.bf16.msra.mxu2 %v6542_v14 }
 0x40e   :  { %4298 = vmatpush.bf16.msra.mxu1 %v6570_v46  ;;  %v6546_v34 = vor.u32 %v7238_v12, %v6543_v13  ;;  %v7294_v46 = vld [vmem:[#allocation7 + $0x1cc] sm:$0xf]  ;;  %v6728_v12 = vld [vmem:[#allocation7 + $0x190] sm:$0xf0]  ;;  %v6734_v13 = vld [vmem:[#allocation7 + $0x188] sm:$0xf] }
 0x40f   :  { %v6735_v18 = vor.u32 %v7288_v36, %v6734_v13  ;;  %v7269_v36 = vld [vmem:[#allocation7 + $0x104] sm:$0xf] }
 0x411   :  { %4322 = vmatpush.bf16.msra.mxu3 %v6610_v60  ;;  %4592 = vmatpush.bf16.msrb.mxu2 %v6783_v3 }
 0x412   :  { %4299 = vmatpush.bf16.msra.mxu1 %v6554_v55 }
 0x415   :  { %4323 = vmatpush.bf16.msra.mxu3 %v6594_v39  ;;  %v6759_v39 = vor.u32 %v7295_v24, %v6758_v62  ;;  %4593 = vmatpush.bf16.msrb.mxu2 %v6767_v58  ;;  %v6715_v62 = vor.u32 %v7281_v26, %v6712_v27  ;;  %v6718_v24 = vld [vmem:[#allocation7 + $0x168] sm:$0xf]  ;;  %v6694_v58 = vld [vmem:[#allocation7 + $0x140] sm:$0xf] }
 0x416   :  { %4300 = vmatpush.bf16.msra.mxu1 %v6538_v15  ;;  %v6719_v4 = vor.u32 %v7284_v63, %v6718_v24  ;;  %v3798_v63 = vld [vmem:[#allocation4 + $0xe8] sm:$0xff] }
 0x417   :  { %4567 = vmatpush.bf16.msrb.mxu0 %v6759_v39 }
 0x419   :  { %4324 = vmatpush.bf16.msra.mxu3 %v6578_v47  ;;  %v6771_v47 = vor.u32 %v7294_v46, %v6768_v1  ;;  %4594 = vmatpush.bf16.msrb.mxu2 %v6751_v59  ;;  %v7279_v46 = vld [vmem:[#allocation7 + $0x14c] sm:$0xf0]  ;;  %v7277_v1 = vld [vmem:[#allocation7 + $0x144] sm:$0xf] }
 0x41a   :  { %4579 = vmatpush.bf16.msrb.mxu1 %v6779_v23  ;;  %v3797_v59 = vld [vmem:[#allocation4 + $0xe0] sm:$0xff] }
 0x41b   :  { %4568 = vmatpush.bf16.msrb.mxu0 %v6743_v29  ;;  %v4045_v37 = vunpack.c.h.bf16 %v3797_v59 }
 0x41d   :  { %4325 = vmatpush.bf16.msra.mxu3 %v6562_v5  ;;  %v6752_v5 = vld [vmem:[#allocation7 + $0x1b8] sm:$0xf0]  ;;  %4595 = vmatpush.bf16.msrb.mxu2 %v6735_v18  ;;  %v7272_v18 = vld [vmem:[#allocation7 + $0x114] sm:$0xf0] }
 0x41e   :  { %4580 = vmatpush.bf16.msrb.mxu1 %v6763_v44  ;;  %v6755_v33 = vor.u32 %v7290_v61, %v6752_v5  ;;  %v6723_v44 = vor.u32 %v7282_v41, %v6720_v0  ;;  %v6678_v61 = vld [vmem:[#allocation7 + $0x120] sm:$0xf]  ;;  %v7275_v5 = vld [vmem:[#allocation7 + $0x12c] sm:$0xf0]  ;;  %v4046_v0 = vunpack.c.l.bf16 %v3798_v63 }
 0x421   :  { %4326 = vmatpush.bf16.msra.mxu3 %v6546_v34  ;;  %4596 = vmatpush.bf16.msrb.mxu2 %v6719_v4 }
 0x422   :  { %4581 = vmatpush.bf16.msrb.mxu1 %v6747_v57 }
 0x425   :  { %4605 = vmatpush.bf16.msrb.mxu3 %v6787_v43  ;;  %4597 = vmatpush.bf16.msrb.mxu2 %v6703_v31 }
 0x429   :  { %4606 = vmatpush.bf16.msrb.mxu3 %v6771_v47  ;;  %v6696_v47 = vld [vmem:[#allocation7 + $0x150] sm:$0xf0] }
 0x42a   :  { %v6699_v52 = vor.u32 %v7277_v1, %v6696_v47 }
 0x42d   :  { %4607 = vmatpush.bf16.msrb.mxu3 %v6755_v33  ;;  %v6686_v33 = vld [vmem:[#allocation7 + $0x128] sm:$0xf] }
 0x431   :  { %4608 = vmatpush.bf16.msrb.mxu3 %v6739_v19 }
 0x435   :  { %4609 = vmatpush.bf16.msrb.mxu3 %v6723_v44 }
 0x460   :  { %v3715_v20 = vpop.f32.mrf.mxu0  ;;  %v3728_v60 = vpop.f32.mrf.mxu1 }
 0x461   :  { %v3762_v32 = vadd.f32 %v3758_v25, %v3715_v20  ;;  %v3763_v40 = vadd.f32 %v3759_v21, %v3728_v60  ;;  %v7287_v25 = vld [vmem:[#allocation7 + $0x18c] sm:$0xf0]  ;;  %v7285_v21 = vld [vmem:[#allocation7 + $0x184] sm:$0xf]  ;;  %v6710_v60 = vld [vmem:[#allocation7 + $0x160] sm:$0xf] }
 0x462   :  { %v6727_v10 = vor.u32 %v7287_v25, %v6726_v11  ;;  %v6731_v34 = vor.u32 %v7285_v21, %v6728_v12  ;;  %v6711_v3 = vor.u32 %v7283_v22, %v6710_v60  ;;  %v7276_v25 = vld [vmem:[#allocation7 + $0x134] sm:$0xf0]  ;;  %v7274_v21 = vld [vmem:[#allocation7 + $0x12c] sm:$0xf] }
 0x463   :  { %v3766_v45 = vmul.f32 0.5, %v3762_v32  ;;  %v3770_v42 = vmul.f32 0.5, %v3763_v40  ;;  %v6687_v12 = vor.u32 %v7276_v25, %v6686_v33  ;;  %v7270_v22 = vld [vmem:[#allocation7 + $0x10c] sm:$0xf] }
 0x464   :  { %4569 = vmatpush.bf16.msrb.mxu0 %v6727_v10  ;;  %4582 = vmatpush.bf16.msrb.mxu1 %v6731_v34  ;;  %v7271_v34 = vld [vmem:[#allocation7 + $0x10c] sm:$0xf0] }
 0x465   :  { %7459 = vtanh.f32 %v3766_v45  ;;  %4598 = vmatpush.bf16.msrb.mxu2 %v6687_v12 }
 0x466   :  { %7461 = vtanh.f32 %v3770_v42 }
 0x467   :  { %v3741_v55 = vpop.f32.mrf.mxu2  ;;  %v3754_v56 = vpop.f32.mrf.mxu3 }
 0x468   :  { %v3764_v49 = vadd.f32 %v3760_v30, %v3741_v55  ;;  %v3765_v7 = vadd.f32 %v3761_v6, %v3754_v56  ;;  %v3717_v8 = vpop.f32.mrf.mxu0  ;;  %v3730_v9 = vpop.f32.mrf.mxu1  ;;  %4570 = vmatpush.bf16.msrb.mxu0 %v6711_v3  ;;  %4583 = vmatpush.bf16.msrb.mxu1 %v6715_v62  ;;  %v6695_v6 = vor.u32 %v7279_v46, %v6694_v58  ;;  %v6704_v55 = vld [vmem:[#allocation7 + $0x158] sm:$0xf0] }
 0x469   :  { %v6707_v57 = vor.u32 %v7278_v54, %v6704_v55  ;;  %v7273_v8 = vld [vmem:[#allocation7 + $0x124] sm:$0xf]  ;;  %v6680_v9 = vld [vmem:[#allocation7 + $0x130] sm:$0xf0]  ;;  %v4076_v55 = vpop.permute.xlu1 %4075 }
 0x46a   :  { %7463 = vtanh.f32 %v3764_v49  ;;  %v3775_v15 = vmul.f32 0.5, %v3765_v7  ;;  %v6679_v7 = vor.u32 %v7275_v5, %v6678_v61  ;;  %v6683_v11 = vor.u32 %v7273_v8, %v6680_v9 }
 0x46b   :  { %v7460_v14 = vpop.eup %7459  ;;  %4610 = vmatpush.bf16.msrb.mxu3 %v6707_v57  ;;  %vm4077_vm7 = vcmp.eq.s32.totalorder %v4076_v55, 1 }
 0x46c   :  { %v7462_v28 = vpop.eup %7461  ;;  %v3768_v17 = vmul.f32 0.5, %v7460_v14  ;;  %7465 = vtanh.f32 %v3775_v15  ;;  %4571 = vmatpush.bf16.msrb.mxu0 %v6695_v6  ;;  %4584 = vmatpush.bf16.msrb.mxu1 %v6699_v52  ;;  %v6688_v15 = vld [vmem:[#allocation7 + $0x138] sm:$0xf0]  ;;  %v6662_v14 = vld [vmem:[#allocation7 + $0x100] sm:$0xf] }
 0x46d   :  { %v3772_v20 = vmul.f32 0.5, %v7462_v28  ;;  %v6691_v13 = vor.u32 %v7274_v21, %v6688_v15  ;;  %v6663_v16 = vor.u32 %v7271_v34, %v6662_v14  ;;  %v6664_v28 = vld [vmem:[#allocation7 + $0x110] sm:$0xf0] }
 0x46e   :  { %v3769_v23 = vadd.f32 0.5, %v3768_v17  ;;  %v6670_v17 = vld [vmem:[#allocation7 + $0x108] sm:$0xf]  ;;  %v4085_v15 = vld [vmem:[#allocation4 + $0x70] sm:$0xff] }
 0x46f   :  { %v3773_v32 = vadd.f32 0.5, %v3772_v20  ;;  %v3743_v40 = vpop.f32.mrf.mxu2  ;;  %v3756_v43 = vpop.f32.mrf.mxu3  ;;  %4611 = vmatpush.bf16.msrb.mxu3 %v6691_v13  ;;  %v6667_v20 = vor.u32 %v7269_v36, %v6664_v28  ;;  %v6671_v60 = vor.u32 %v7272_v18, %v6670_v17  ;;  %v4086_v36 = vld [vmem:[#allocation4 + $0x78] sm:$0xff] }
 0x470   :  { %v7464_v39 = vpop.eup %7463  ;;  %4572 = vmatpush.bf16.msrb.mxu0 %v6679_v7  ;;  %4585 = vmatpush.bf16.msrb.mxu1 %v6683_v11 }
 0x471   :  { %v3779_v45 = vmul.f32 %v3773_v32, %v7864_v53  ;;  %v3780_v42 = vmul.f32 %v7464_v39, %v3769_v23  ;;  %v6672_v23 = vld [vmem:[#allocation7 + $0x118] sm:$0xf0]  ;;  %4599 = vmatpush.bf16.msrb.mxu2 %v6671_v60 }
 0x472   :  { %v7466_v30 = vpop.eup %7465  ;;  %v6675_v26 = vor.u32 %v7270_v22, %v6672_v23 }
 0x473   :  { %v3781_v29 = vadd.f32 %v3780_v42, %v3779_v45  ;;  %v3777_v56 = vmul.f32 0.5, %v7466_v30  ;;  %v4047_v45 = vunpack.c.h.bf16 %v3798_v63 }
 0x474   :  { %4573 = vmatpush.bf16.msrb.mxu0 %v6663_v16  ;;  %4586 = vmatpush.bf16.msrb.mxu1 %v6667_v20  ;;  %v4335_v16 = vunpack.c.h.bf16 %v4086_v36 }
 0x475   :  { %7467 = vtanh.f32 %v3781_v29  ;;  %v7885_v49 = vsel %vm3790_vm6, %v3781_v29, %v7864_v53  ;;  %v3778_v10 = vadd.f32 0.5, %v3777_v56  ;;  %v4044_v53 = vunpack.c.l.bf16 %v3797_v59  ;;  %4612 = vmatpush.bf16.msrb.mxu3 %v6675_v26 }
 0x47b   :  { %v7468_v19 = vpop.eup %7467 }
 0x47c   :  { %v3783_v3 = vmul.f32 %v7468_v19, %v3778_v10  ;;  %v4332_v10 = vunpack.c.l.bf16 %v4085_v15 }
 0x47e   :  { %v7889_v40 = vsel %vm3790_vm6, %v3783_v3, %v7868_v2  ;;  %v3793_v43 = vsel %vm3790_vm6, %v3783_v3, 0.0 }
 0x47f   :  { %3795 = vst [vmem:[#allocation9 + $0x30] sm:$0xff] %v3793_v43  ;;  %v4087_v39 = vpack.c.bf16 %v7889_v40, %v7889_v40 }
 0x480   :  { %v4001_v27 = vpop.f32.mrf.mxu0  ;;  %v4014_v32 = vpop.f32.mrf.mxu1 }
 0x481   :  { %v4048_v62 = vadd.f32 %v4044_v53, %v4001_v27  ;;  %v4049_v24 = vadd.f32 %v4045_v37, %v4014_v32  ;;  %4288 = vmatmul.bf16.vlgmr.msra.gmra.mxu0 %v4087_v39  ;;  %4301 = vmatmul.bf16.vlgmr.msra.gmra.mxu1 %v4087_v39  ;;  %v4334_v37 = vunpack.c.l.bf16 %v4086_v36 }
 0x482   :  { %4314 = vmatmul.bf16.vlgmr.msra.gmra.mxu2 %v4087_v39  ;;  %4327 = vmatmul.bf16.vlgmr.msra.gmra.mxu3 %v4087_v39  ;;  %v4363_v39 = vpop.permute.xlu2 %4362 }
 0x483   :  { %v4052_v4 = vmul.f32 0.5, %v4048_v62  ;;  %v4056_v41 = vmul.f32 0.5, %v4049_v24  ;;  %vm4364_vm8 = vcmp.eq.s32.totalorder %v4363_v39, 1 }
 0x485   :  { %7469 = vtanh.f32 %v4052_v4 }
 0x486   :  { %7471 = vtanh.f32 %v4056_v41 }
 0x487   :  { %v4027_v2 = vpop.f32.mrf.mxu2  ;;  %v4040_v42 = vpop.f32.mrf.mxu3 }
 0x488   :  { %v4050_v44 = vadd.f32 %v4046_v0, %v4027_v2  ;;  %v4051_v58 = vadd.f32 %v4047_v45, %v4040_v42  ;;  %v4003_v46 = vpop.f32.mrf.mxu0  ;;  %v4016_v1 = vpop.f32.mrf.mxu1 }
 0x48a   :  { %7473 = vtanh.f32 %v4050_v44  ;;  %v4061_v30 = vmul.f32 0.5, %v4051_v58  ;;  %v4371_v44 = vld [vmem:[#allocation4 + $0xf0] sm:$0xff] }
 0x48b   :  { %v7470_v6 = vpop.eup %7469  ;;  %v4618_v46 = vunpack.c.l.bf16 %v4371_v44  ;;  %v4619_v1 = vunpack.c.h.bf16 %v4371_v44 }
 0x48c   :  { %v7472_v47 = vpop.eup %7471  ;;  %v4054_v48 = vmul.f32 0.5, %v7470_v6  ;;  %7475 = vtanh.f32 %v4061_v30 }
 0x48d   :  { %v4058_v50 = vmul.f32 0.5, %v7472_v47 }
 0x48e   :  { %v4055_v51 = vadd.f32 0.5, %v4054_v48 }
 0x48f   :  { %v4059_v29 = vadd.f32 0.5, %v4058_v50  ;;  %v4029_v52 = vpop.f32.mrf.mxu2  ;;  %v4042_v31 = vpop.f32.mrf.mxu3 }
 0x490   :  { %v7474_v54 = vpop.eup %7473  ;;  %v4372_v31 = vld [vmem:[#allocation4 + $0xf8] sm:$0xff] }
 0x491   :  { %v4065_v56 = vmul.f32 %v4059_v29, %v7875_v35  ;;  %v4066_v57 = vmul.f32 %v7474_v54, %v4055_v51  ;;  %v4620_v55 = vunpack.c.l.bf16 %v4372_v31 }
 0x492   :  { %v7476_v59 = vpop.eup %7475 }
 0x493   :  { %v4067_v61 = vadd.f32 %v4066_v57, %v4065_v56  ;;  %v4063_v7 = vmul.f32 0.5, %v7476_v59  ;;  %v4621_v56 = vunpack.c.h.bf16 %v4372_v31 }
 0x495   :  { %7477 = vtanh.f32 %v4067_v61  ;;  %v7896_v5 = vsel %vm4077_vm7, %v4067_v61, %v7875_v35  ;;  %v4064_v8 = vadd.f32 0.5, %v4063_v7  ;;  %v4333_v35 = vunpack.c.h.bf16 %v4085_v15 }
 0x49b   :  { %v7478_v9 = vpop.eup %7477 }
 0x49c   :  { %v4069_v33 = vmul.f32 %v7478_v9, %v4064_v8 }
 0x49e   :  { %v7899_v11 = vsel %vm4077_vm7, %v4069_v33, %v7878_v38  ;;  %v4080_v25 = vsel %vm4077_vm7, %v4069_v33, 0.0 }
 0x49f   :  { %4082 = vst [vmem:[#allocation9 + $0x70] sm:$0xff] %v4080_v25  ;;  %v4373_v21 = vpack.c.bf16 %v7899_v11, %v7899_v11 }
 0x4a1   :  { %4574 = vmatmul.bf16.vlgmr.msrb.gmra.mxu0 %v4373_v21  ;;  %4587 = vmatmul.bf16.vlgmr.msrb.gmra.mxu1 %v4373_v21 }
 0x4a2   :  { %4600 = vmatmul.bf16.vlgmr.msrb.gmra.mxu2 %v4373_v21  ;;  %4613 = vmatmul.bf16.vlgmr.msrb.gmra.mxu3 %v4373_v21 }
 0x4fe   :  { %v4289_v12 = vpop.f32.mrf.mxu0  ;;  %v4302_v13 = vpop.f32.mrf.mxu1 }
 0x4ff   :  { %v4336_v14 = vadd.f32 %v4332_v10, %v4289_v12  ;;  %v4337_v34 = vadd.f32 %v4333_v35, %v4302_v13 }
 0x501   :  { %v4340_v53 = vmul.f32 0.5, %v4336_v14  ;;  %v4344_v38 = vmul.f32 0.5, %v4337_v34  ;;  %v4650_v34 = vpop.permute.xlu0 %4649 }
 0x502   :  { %vm4651_vm9 = vcmp.eq.s32.totalorder %v4650_v34, 1 }
 0x503   :  { %7479 = vtanh.f32 %v4340_v53 }
 0x504   :  { %7481 = vtanh.f32 %v4344_v38 }
 0x505   :  { %v4315_v28 = vpop.f32.mrf.mxu2  ;;  %v4328_v17 = vpop.f32.mrf.mxu3 }
 0x506   :  { %v4338_v18 = vadd.f32 %v4334_v37, %v4315_v28  ;;  %v4339_v19 = vadd.f32 %v4335_v16, %v4328_v17  ;;  %v4291_v20 = vpop.f32.mrf.mxu0  ;;  %v4304_v60 = vpop.f32.mrf.mxu1 }
 0x508   :  { %7483 = vtanh.f32 %v4338_v18  ;;  %v4349_v22 = vmul.f32 0.5, %v4339_v19 }
 0x509   :  { %v7480_v23 = vpop.eup %7479 }
 0x50a   :  { %v7482_v3 = vpop.eup %7481  ;;  %v4342_v26 = vmul.f32 0.5, %v7480_v23  ;;  %7485 = vtanh.f32 %v4349_v22 }
 0x50b   :  { %v4346_v27 = vmul.f32 0.5, %v7482_v3 }
 0x50c   :  { %v4343_v32 = vadd.f32 0.5, %v4342_v26 }
 0x50d   :  { %v4347_v43 = vadd.f32 0.5, %v4346_v27  ;;  %v4317_v62 = vpop.f32.mrf.mxu2  ;;  %v4330_v24 = vpop.f32.mrf.mxu3 }
 0x50e   :  { %v7484_v63 = vpop.eup %7483 }
 0x50f   :  { %v4353_v4 = vmul.f32 %v4347_v43, %v7885_v49  ;;  %v4354_v41 = vmul.f32 %v7484_v63, %v4343_v32 }
 0x510   :  { %v7486_v0 = vpop.eup %7485 }
 0x511   :  { %v4355_v45 = vadd.f32 %v4354_v41, %v4353_v4  ;;  %v4351_v42 = vmul.f32 0.5, %v7486_v0 }
 0x513   :  { %7487 = vtanh.f32 %v4355_v45  ;;  %v4366_v2 = vsel %vm4364_vm8, %v4355_v45, %v7885_v49  ;;  %v4352_v58 = vadd.f32 0.5, %v4351_v42 }
 0x514   :  { %4665 = vst [vmem:[#allocation12] sm:$0xff] %v4366_v2 }
 0x519   :  { %v7488_v30 = vpop.eup %7487 }
 0x51a   :  { %v4357_v6 = vmul.f32 %v7488_v30, %v4352_v58 }
 0x51c   :  { %v4365_v50 = vsel %vm4364_vm8, %v4357_v6, %v7889_v40  ;;  %v4367_v51 = vsel %vm4364_vm8, %v4357_v6, 0.0 }
 0x51d   :  { %4369 = vst [vmem:[#allocation9 + $0x38] sm:$0xff] %v4367_v51 }
 0x51e   :  { %v4575_v47 = vpop.f32.mrf.mxu0  ;;  %v4588_v48 = vpop.f32.mrf.mxu1  ;;  %4664 = vst [vmem:[#allocation10] sm:$0xff] %v4365_v50 }
 0x51f   :  { %v4622_v29 = vadd.f32 %v4618_v46, %v4575_v47  ;;  %v4623_v52 = vadd.f32 %v4619_v1, %v4588_v48 }
 0x521   :  { %v4626_v54 = vmul.f32 0.5, %v4622_v29  ;;  %v4630_v49 = vmul.f32 0.5, %v4623_v52 }
 0x523   :  { %7489 = vtanh.f32 %v4626_v54 }
 0x524   :  { %7491 = vtanh.f32 %v4630_v49 }
 0x525   :  { %v4601_v57 = vpop.f32.mrf.mxu2  ;;  %v4614_v59 = vpop.f32.mrf.mxu3 }
 0x526   :  { %v4624_v61 = vadd.f32 %v4620_v55, %v4601_v57  ;;  %v4625_v7 = vadd.f32 %v4621_v56, %v4614_v59  ;;  %v4577_v8 = vpop.f32.mrf.mxu0  ;;  %v4590_v9 = vpop.f32.mrf.mxu1 }
 0x528   :  { %7493 = vtanh.f32 %v4624_v61  ;;  %v4635_v40 = vmul.f32 0.5, %v4625_v7 }
 0x529   :  { %v7490_v33 = vpop.eup %7489 }
 0x52a   :  { %v7492_v25 = vpop.eup %7491  ;;  %v4628_v21 = vmul.f32 0.5, %v7490_v33  ;;  %7495 = vtanh.f32 %v4635_v40 }
 0x52b   :  { %v4632_v15 = vmul.f32 0.5, %v7492_v25 }
 0x52c   :  { %v4629_v10 = vadd.f32 0.5, %v4628_v21 }
 0x52d   :  { %v4633_v35 = vadd.f32 0.5, %v4632_v15  ;;  %v4603_v12 = vpop.f32.mrf.mxu2  ;;  %v4616_v13 = vpop.f32.mrf.mxu3 }
 0x52e   :  { %v7494_v14 = vpop.eup %7493 }
 0x52f   :  { %v4639_v36 = vmul.f32 %v4633_v35, %v7896_v5  ;;  %v4640_v53 = vmul.f32 %v7494_v14, %v4629_v10 }
 0x530   :  { %v7496_v38 = vpop.eup %7495 }
 0x531   :  { %v4641_v37 = vadd.f32 %v4640_v53, %v4639_v36  ;;  %v4637_v28 = vmul.f32 0.5, %v7496_v38 }
 0x533   :  { %7497 = vtanh.f32 %v4641_v37  ;;  %v4653_v16 = vsel %vm4651_vm9, %v4641_v37, %v7896_v5  ;;  %v4638_v17 = vadd.f32 0.5, %v4637_v28 }
 0x534   :  { %4669 = vst [vmem:[#allocation12 + $0x8] sm:$0xff] %v4653_v16 }
 0x539   :  { %v7498_v18 = vpop.eup %7497 }
 0x53a   :  { %v4643_v19 = vmul.f32 %v7498_v18, %v4638_v17 }
 0x53c   :  { %v4652_v5 = vsel %vm4651_vm9, %v4643_v19, %v7899_v11  ;;  %v4654_v20 = vsel %vm4651_vm9, %v4643_v19, 0.0 }
 0x53d   :  { %4656 = vst [vmem:[#allocation9 + $0x78] sm:$0xff] %v4654_v20 }
 0x53e   :  { %4667 = vst [vmem:[#allocation10 + $0x8] sm:$0xff] %v4652_v5  ;;  %4682 = dma.vmem_to_hbm [thread:$0]  %s4675_s12, 2048, %s4677_s15, [#allocation6], %s7637_s3, %s7637_s3, %s7638_s4  }
 0x53f   :  { %4695 = dma.vmem_to_hbm [thread:$0]  %s4688_s7, 256, %s4690_s10, [#allocation11], %s7637_s3, %s7637_s3, %s7638_s4  }
 0x540   :  { %4708 = dma.vmem_to_hbm [thread:$0]  %s4701_s17, 256, %s4703_s20, [#allocation11], %s7637_s3, %s7637_s3, %s7638_s4  }
 0x541   :  { %7624 = dma.done.wait [#allocation6], 2048  }
 0x542   :  { %7625 = vsyncadd [#allocation6], 4294965248 }
 0x543   :  { %7626 = dma.done.wait [#allocation11], 512  }
 0x544   :  { %7627 = vsyncadd [#allocation11], 4294966784 }
 0x545   :  { %4721 = vsyncpa [#allocation5], 1 }
 0x546   :  { %4722 = vsyncpa [#allocation8], 1 }
 0x547   :  { %4723 = vsyncpa [#allocation6], 1 }
 0x548   :  { %4724 = vsyncpa [#allocation11], 1 }

</bundles_post_ra>
